<compile_context>
chip_gen: v7x
topology: tpu7x:2x2x1
jax: 0.10.0
libtpu: 0.0.40
codegen_flags: <defaults>
</compile_context>

<pallas_src>
import jax
import jax.numpy as jnp
import numpy as np
from jax.experimental import pallas as pl
from jax.experimental.pallas import tpu as pltpu

BN_EPS = 1e-5


# ----------------------------- Pallas kernel --------------------------------

def _decoder_kernel(x_ref,
                    w1, sc1, sh1, w2, sc2, sh2, w3, sc3, sh3,
                    w4, sc4, sh4, w5, sc5, sh5, wft, bft,
                    o_ref, a1, a2, a3, a4):
    """Fused 5x(matmul + f32 scale/shift + ReLU + pixel-shuffle) + final 1x1 conv."""

    def up_conv(x, w_ref, sc_ref, sh_ref, a_ref):
        m = x.shape[0]
        cgrp = w_ref.shape[1] // 4
        w = w_ref[...]
        if w.dtype != jnp.bfloat16:          # int8-stored weight: dequant is just a
            w = w.astype(jnp.bfloat16)       # cast; its quant scale lives in sc_ref.
        y = jnp.dot(x, w, preferred_element_type=jnp.float32)
        y = jnp.maximum(y * sc_ref[...] + sh_ref[...], 0.0).astype(jnp.bfloat16)
        # ConvTranspose2d(k=2,s=2) has non-overlapping taps: tap q = 2*di + dj becomes
        # a new block of spatial rows.  Row order stays "bit-scrambled"; the wrapper
        # undoes the accumulated permutation once on the tiny final output.
        for q in range(4):
            a_ref[q * m:(q + 1) * m, :] = y[:, q * cgrp:(q + 1) * cgrp]

    up_conv(x_ref[...], w1, sc1, sh1, a1)
    up_conv(a1[...], w2, sc2, sh2, a2)
    up_conv(a2[...], w3, sc3, sh3, a3)
    up_conv(a3[...], w4, sc4, sh4, a4)

    # Layer 5 (its taps stay in columns) + fused final 1x1 conv in transposed form so
    # the kernel output (4*out_ch, rows) is lane-dense.
    y5 = jnp.dot(a4[...], w5[...], preferred_element_type=jnp.float32)
    y5 = jnp.maximum(y5 * sc5[...] + sh5[...], 0.0).astype(jnp.bfloat16)
    out_t = jax.lax.dot_general(wft[...], y5, (((1,), (1,)), ((), ())),
                                preferred_element_type=jnp.float32)
    o_ref[...] = out_t + bft[...]


# ------------------------------ parameter folding (once, at init) ------------

def _fold_up_conv(p, quantize_int8=False, pad_cin_to=None, pad_cout_to=None):
    """ConvTranspose(k=2,s=2) + eval BN -> (weight, f32 col-scale, f32 col-shift)."""
    w = p["w"].astype(jnp.float32)                     # (Cin, Cout, 2, 2)
    cin, cout = w.shape[0], w.shape[1]
    w_stack = jnp.transpose(w, (0, 2, 3, 1)).reshape(cin, 4, cout)   # cols (tap, oc)
    bn_scale = p["gamma"] * jax.lax.rsqrt(p["var"] + BN_EPS)         # (Cout,)
    bn_shift = p["beta"] + (p["b"] - p["mean"]) * bn_scale           # (Cout,)
    scale = jnp.broadcast_to(bn_scale[None, :], (4, cout))
    shift = jnp.broadcast_to(bn_shift[None, :], (4, cout))
    if quantize_int8:
        qs = jnp.maximum(jnp.max(jnp.abs(w_stack), axis=0), 1e-30) / 127.0
        w_out = jnp.clip(jnp.round(w_stack / qs[None]), -127.0, 127.0).astype(jnp.int8)
        scale = scale * qs                              # fold quant scale into BN scale
    else:
        w_out = w_stack.astype(jnp.bfloat16)
    if pad_cout_to is not None and pad_cout_to > cout:  # lane-align per-tap groups
        pc = pad_cout_to - cout
        w_out = jnp.pad(w_out, ((0, 0), (0, 0), (0, pc)))
        scale = jnp.pad(scale, ((0, 0), (0, pc)))
        shift = jnp.pad(shift, ((0, 0), (0, pc)))
        cout = pad_cout_to
    w_out = w_out.reshape(cin, 4 * cout)
    if pad_cin_to is not None and pad_cin_to > cin:     # match previous layer's pad
        w_out = jnp.pad(w_out, ((0, pad_cin_to - cin), (0, 0)))
    scale = scale.reshape(1, 4 * cout).astype(jnp.float32)
    shift = shift.reshape(1, 4 * cout).astype(jnp.float32)
    return w_out, scale, shift


def _final_conv_t(params):
    """Final 1x1 conv as a transposed block-diagonal (4*out_ch, 4*c5) matmul + bias."""
    wf = params["final_w"][:, :, 0, 0].astype(jnp.float32)   # (out_ch, c5)
    out_ch, c5 = wf.shape
    wft = jnp.einsum("qp,oc->qopc", jnp.eye(4, dtype=jnp.float32), wf)
    wft = wft.reshape(4 * out_ch, 4 * c5).astype(jnp.bfloat16)
    bft = jnp.tile(params["final_b"], 4).reshape(4 * out_ch, 1).astype(jnp.float32)
    return wft, bft


def prepare_params(params):
    """Fold/quantize/cast all decoder parameters ONCE (outside the forward path)."""
    up = params["up_convs"]
    ops = []
    pad_cin = None
    for i, p in enumerate(up):
        cout = p["w"].shape[1]
        pad_cout = None
        if i + 1 < len(up) and cout % 128 != 0:
            pad_cout = ((cout + 127) // 128) * 128
        w, sc, sh = _fold_up_conv(p, quantize_int8=(i == 0),
                                  pad_cin_to=pad_cin, pad_cout_to=pad_cout)
        ops += [w, sc, sh]
        pad_cin = pad_cout
    wft, bft = _final_conv_t(params)
    ops += [wft, bft]
    return tuple(ops)


# ------------------------------ forward ---------------------------------------

def decoder_forward(feat_nchw, prep):
    """Decoder.forward on the encoder feature map (N, n_channels, H, W)."""
    # TODO(synk): the encoder (pretrained DenseNet121 loaded from a checkpoint) has
    # no clean in-script Pallas equivalent; this implements the Decoder head on the
    # (N, n_channels, H, W) feature map it would produce.
    (w1, sc1, sh1, w2, sc2, sh2, w3, sc3, sh3,
     w4, sc4, sh4, w5, sc5, sh5, wft, bft) = prep
    N, cin, H, W = feat_nchw.shape
    assert cin == w1.shape[0]
    m0 = N * H * W                                   # batch collapsed into matmul M
    x = jnp.transpose(feat_nchw, (0, 2, 3, 1)).reshape(m0, cin).astype(jnp.bfloat16)

    c1, c2, c3, c4 = (w1.shape[1] // 4, w2.shape[1] // 4,
                      w3.shape[1] // 4, w4.shape[1] // 4)
    out_rows = wft.shape[0]                          # 4 * out_ch
    out_ch = out_rows // 4
    r5 = 256 * m0                                    # kernel-output columns

    out_t = pl.pallas_call(
        _decoder_kernel,
        out_shape=jax.ShapeDtypeStruct((out_rows, r5), jnp.float32),
        scratch_shapes=[
            pltpu.VMEM((4 * m0, c1), jnp.bfloat16),
            pltpu.VMEM((16 * m0, c2), jnp.bfloat16),
            pltpu.VMEM((64 * m0, c3), jnp.bfloat16),
            pltpu.VMEM((256 * m0, c4), jnp.bfloat16),
        ],
        compiler_params=pltpu.CompilerParams(vmem_limit_bytes=32 << 20),
    )(x, *prep)

    # Undo the accumulated pixel-shuffle permutation on the tiny final output.
    # out_t row encodes (d5i,d5j,o); column encodes (d4i,d4j,d3i,d3j,d2i,d2j,d1i,d1j,
    # n,h,w).  True spatial position = (32h+16d1i+8d2i+4d3i+2d4i+d5i, same for cols).
    out = out_t.reshape(2, 2, out_ch, 2, 2, 2, 2, 2, 2, 2, 2, N, H, W)
    out = out.transpose(11, 2, 12, 9, 7, 5, 3, 0, 13, 10, 8, 6, 4, 1)
    return out.reshape(N, out_ch, 32 * H, 32 * W)


# ------------------------------ reference (JAX, f32) --------------------------

def reference_forward(feat_nchw, params):
    x = feat_nchw
    for p in params["up_convs"]:
        # out[n,o,2h+i,2w+j] = sum_c x[n,c,h,w] * W[c,o,i,j] + b[o]
        t = jnp.einsum("nchw,coij->nohiwj", x, p["w"])
        N, Cout, H, _, W, _ = t.shape
        y = t.reshape(N, Cout, 2 * H, 2 * W) + p["b"][None, :, None, None]
        y = (y - p["mean"][None, :, None, None]) / jnp.sqrt(
            p["var"][None, :, None, None] + BN_EPS)
        y = y * p["gamma"][None, :, None, None] + p["beta"][None, :, None, None]
        x = jnp.maximum(y, 0.0)
    wf = params["final_w"][:, :, 0, 0]
    return jnp.einsum("nchw,oc->nohw", x, wf) + params["final_b"][None, :, None, None]


# ------------------------------ params / main ---------------------------------

def init_params(key, n_channels=1024, out_channels=1):
    chans = [n_channels, 512, 256, 128, 64, 32]
    params = {"up_convs": []}
    for i in range(5):
        cin, cout = chans[i], chans[i + 1]
        key, k1, k2, k3, k4, k5, k6 = jax.random.split(key, 7)
        params["up_convs"].append(dict(
            w=jax.random.normal(k1, (cin, cout, 2, 2), jnp.float32)
              * (1.0 / np.sqrt(cin * 4.0)),
            b=0.01 * jax.random.normal(k2, (cout,), jnp.float32),
            gamma=1.0 + 0.1 * jax.random.normal(k3, (cout,), jnp.float32),
            beta=0.1 * jax.random.normal(k4, (cout,), jnp.float32),
            mean=0.1 * jax.random.normal(k5, (cout,), jnp.float32),
            var=1.0 + 0.1 * jax.random.uniform(k6, (cout,), jnp.float32),
        ))
    key, k1, k2 = jax.random.split(key, 3)
    params["final_w"] = jax.random.normal(
        k1, (out_channels, chans[-1], 1, 1), jnp.float32) * (1.0 / np.sqrt(chans[-1]))
    params["final_b"] = 0.01 * jax.random.normal(k2, (out_channels,), jnp.float32)
    return params


if __name__ == "__main__":
    key = jax.random.PRNGKey(0)
    pkey, xkey, xkey2 = jax.random.split(key, 3)
    params = init_params(pkey, n_channels=1024, out_channels=1)

    # Fold / quantize / pad the weights ONCE (not in the per-call path).
    prep = jax.tree_util.tree_map(jax.block_until_ready, prepare_params(params))
    fwd = jax.jit(decoder_forward)

    # encoder-feature-shaped input: batch=2, channels=1024, spatial 2x2 -> out 64x64
    x = jax.random.normal(xkey, (2, 1024, 2, 2), jnp.float32)
    out = jax.block_until_ready(fwd(x, prep))
    assert out.shape == (2, 1, 64, 64), out.shape
    ref = jax.block_until_ready(reference_forward(x, params))
    # int8 layer-1 weights + bf16 activations (f32 MXU accumulation, f32 BN epilogue)
    # vs. the all-f32 einsum reference.
    np.testing.assert_allclose(np.asarray(out), np.asarray(ref), rtol=5e-2, atol=5e-2)

    # larger feature map to validate the pixel-shuffle un-permute generically
    x2 = jax.random.normal(xkey2, (1, 1024, 4, 4), jnp.float32)
    out2 = jax.block_until_ready(fwd(x2, prep))
    assert out2.shape == (1, 1, 128, 128), out2.shape
    ref2 = jax.block_until_ready(reference_forward(x2, params))
    np.testing.assert_allclose(np.asarray(out2), np.asarray(ref2), rtol=5e-2, atol=5e-2)

    print("KERNEL_OK")
</pallas_src>

<mosaic_0001>
module attributes {stable_mosaic.version = 11 : i64} {
  func.func @_decoder_kernel(%arg0: memref<8x1024xbf16, #tpu.memory_space<vmem>>, %arg1: memref<1024x2048xi8, #tpu.memory_space<vmem>>, %arg2: memref<1x2048xf32, #tpu.memory_space<vmem>>, %arg3: memref<1x2048xf32, #tpu.memory_space<vmem>>, %arg4: memref<512x1024xbf16, #tpu.memory_space<vmem>>, %arg5: memref<1x1024xf32, #tpu.memory_space<vmem>>, %arg6: memref<1x1024xf32, #tpu.memory_space<vmem>>, %arg7: memref<256x512xbf16, #tpu.memory_space<vmem>>, %arg8: memref<1x512xf32, #tpu.memory_space<vmem>>, %arg9: memref<1x512xf32, #tpu.memory_space<vmem>>, %arg10: memref<128x512xbf16, #tpu.memory_space<vmem>>, %arg11: memref<1x512xf32, #tpu.memory_space<vmem>>, %arg12: memref<1x512xf32, #tpu.memory_space<vmem>>, %arg13: memref<128x128xbf16, #tpu.memory_space<vmem>>, %arg14: memref<1x128xf32, #tpu.memory_space<vmem>>, %arg15: memref<1x128xf32, #tpu.memory_space<vmem>>, %arg16: memref<4x128xbf16, #tpu.memory_space<vmem>>, %arg17: memref<4x1xf32, #tpu.memory_space<vmem>>, %arg18: memref<4x2048xf32, #tpu.memory_space<vmem>>, %arg19: memref<32x512xbf16, #tpu.memory_space<vmem>>, %arg20: memref<128x256xbf16, #tpu.memory_space<vmem>>, %arg21: memref<512x128xbf16, #tpu.memory_space<vmem>>, %arg22: memref<2048x128xbf16, #tpu.memory_space<vmem>>) attributes {dimension_semantics = [], scalar_prefetch = 0 : i64, scratch_operands = 4 : i64, tpu.core_type = #tpu.core_type<tc>} {
    %c0 = arith.constant 0 : index
    %c0_0 = arith.constant 0 : index
    %0 = vector.load %arg0[%c0, %c0_0] : memref<8x1024xbf16, #tpu.memory_space<vmem>>, vector<8x1024xbf16>
    %c0_1 = arith.constant 0 : index
    %c0_2 = arith.constant 0 : index
    %1 = vector.load %arg1[%c0_1, %c0_2] : memref<1024x2048xi8, #tpu.memory_space<vmem>>, vector<1024x2048xi8>
    %2 = arith.sitofp %1 : vector<1024x2048xi8> to vector<1024x2048xbf16>
    %cst = arith.constant dense<0.000000e+00> : vector<8x2048xf32>
    %3 = tpu.matmul %0, %2, %cst {dimension_numbers = #tpu.dot_dimension_numbers<[1], [0], [0], [1], [0, 0, 1, 1], [], []>} : vector<8x1024xbf16>, vector<1024x2048xbf16>, vector<8x2048xf32> -> vector<8x2048xf32>
    %c0_3 = arith.constant 0 : index
    %c0_4 = arith.constant 0 : index
    %4 = vector.load %arg2[%c0_3, %c0_4] : memref<1x2048xf32, #tpu.memory_space<vmem>>, vector<1x2048xf32>
    %5 = vector.broadcast %4 : vector<1x2048xf32> to vector<8x2048xf32>
    %6 = arith.mulf %3, %5 : vector<8x2048xf32>
    %c0_5 = arith.constant 0 : index
    %c0_6 = arith.constant 0 : index
    %7 = vector.load %arg3[%c0_5, %c0_6] : memref<1x2048xf32, #tpu.memory_space<vmem>>, vector<1x2048xf32>
    %8 = vector.broadcast %7 : vector<1x2048xf32> to vector<8x2048xf32>
    %9 = arith.addf %6, %8 : vector<8x2048xf32>
    %cst_7 = arith.constant 0.000000e+00 : f32
    %10 = vector.broadcast %cst_7 : f32 to vector<8x2048xf32>
    %11 = arith.maximumf %9, %10 : vector<8x2048xf32>
    %12 = arith.truncf %11 : vector<8x2048xf32> to vector<8x2048xbf16>
    %13 = vector.extract_strided_slice %12 {offsets = [0, 0], sizes = [8, 512], strides = [1, 1]} : vector<8x2048xbf16> to vector<8x512xbf16>
    %c0_8 = arith.constant 0 : index
    %c0_9 = arith.constant 0 : index
    %14 = vector.load %arg19[%c0_8, %c0_9] : memref<32x512xbf16, #tpu.memory_space<vmem>>, vector<8x512xbf16>
    tpu.vector_store %arg19[%c0_8, %c0_9], %13 {strides = array<i32>} : memref<32x512xbf16, #tpu.memory_space<vmem>>, vector<8x512xbf16>,
    %15 = vector.extract_strided_slice %12 {offsets = [0, 512], sizes = [8, 512], strides = [1, 1]} : vector<8x2048xbf16> to vector<8x512xbf16>
    %c8 = arith.constant 8 : index
    %c0_10 = arith.constant 0 : index
    %16 = vector.load %arg19[%c8, %c0_10] : memref<32x512xbf16, #tpu.memory_space<vmem>>, vector<8x512xbf16>
    tpu.vector_store %arg19[%c8, %c0_10], %15 {strides = array<i32>} : memref<32x512xbf16, #tpu.memory_space<vmem>>, vector<8x512xbf16>,
    %17 = vector.extract_strided_slice %12 {offsets = [0, 1024], sizes = [8, 512], strides = [1, 1]} : vector<8x2048xbf16> to vector<8x512xbf16>
    %c16 = arith.constant 16 : index
    %c0_11 = arith.constant 0 : index
    %18 = vector.load %arg19[%c16, %c0_11] : memref<32x512xbf16, #tpu.memory_space<vmem>>, vector<8x512xbf16>
    tpu.vector_store %arg19[%c16, %c0_11], %17 {strides = array<i32>} : memref<32x512xbf16, #tpu.memory_space<vmem>>, vector<8x512xbf16>,
    %19 = vector.extract_strided_slice %12 {offsets = [0, 1536], sizes = [8, 512], strides = [1, 1]} : vector<8x2048xbf16> to vector<8x512xbf16>
    %c24 = arith.constant 24 : index
    %c0_12 = arith.constant 0 : index
    %20 = vector.load %arg19[%c24, %c0_12] : memref<32x512xbf16, #tpu.memory_space<vmem>>, vector<8x512xbf16>
    tpu.vector_store %arg19[%c24, %c0_12], %19 {strides = array<i32>} : memref<32x512xbf16, #tpu.memory_space<vmem>>, vector<8x512xbf16>,
    %c0_13 = arith.constant 0 : index
    %c0_14 = arith.constant 0 : index
    %21 = vector.load %arg19[%c0_13, %c0_14] : memref<32x512xbf16, #tpu.memory_space<vmem>>, vector<32x512xbf16>
    %c0_15 = arith.constant 0 : index
    %c0_16 = arith.constant 0 : index
    %22 = vector.load %arg4[%c0_15, %c0_16] : memref<512x1024xbf16, #tpu.memory_space<vmem>>, vector<512x1024xbf16>
    %cst_17 = arith.constant dense<0.000000e+00> : vector<32x1024xf32>
    %23 = tpu.matmul %21, %22, %cst_17 {dimension_numbers = #tpu.dot_dimension_numbers<[1], [0], [0], [1], [0, 0, 1, 1], [], []>} : vector<32x512xbf16>, vector<512x1024xbf16>, vector<32x1024xf32> -> vector<32x1024xf32>
    %c0_18 = arith.constant 0 : index
    %c0_19 = arith.constant 0 : index
    %24 = vector.load %arg5[%c0_18, %c0_19] : memref<1x1024xf32, #tpu.memory_space<vmem>>, vector<1x1024xf32>
    %25 = vector.broadcast %24 : vector<1x1024xf32> to vector<32x1024xf32>
    %26 = arith.mulf %23, %25 : vector<32x1024xf32>
    %c0_20 = arith.constant 0 : index
    %c0_21 = arith.constant 0 : index
    %27 = vector.load %arg6[%c0_20, %c0_21] : memref<1x1024xf32, #tpu.memory_space<vmem>>, vector<1x1024xf32>
    %28 = vector.broadcast %27 : vector<1x1024xf32> to vector<32x1024xf32>
    %29 = arith.addf %26, %28 : vector<32x1024xf32>
    %cst_22 = arith.constant 0.000000e+00 : f32
    %30 = vector.broadcast %cst_22 : f32 to vector<32x1024xf32>
    %31 = arith.maximumf %29, %30 : vector<32x1024xf32>
    %32 = arith.truncf %31 : vector<32x1024xf32> to vector<32x1024xbf16>
    %33 = vector.extract_strided_slice %32 {offsets = [0, 0], sizes = [32, 256], strides = [1, 1]} : vector<32x1024xbf16> to vector<32x256xbf16>
    %c0_23 = arith.constant 0 : index
    %c0_24 = arith.constant 0 : index
    %34 = vector.load %arg20[%c0_23, %c0_24] : memref<128x256xbf16, #tpu.memory_space<vmem>>, vector<32x256xbf16>
    tpu.vector_store %arg20[%c0_23, %c0_24], %33 {strides = array<i32>} : memref<128x256xbf16, #tpu.memory_space<vmem>>, vector<32x256xbf16>,
    %35 = vector.extract_strided_slice %32 {offsets = [0, 256], sizes = [32, 256], strides = [1, 1]} : vector<32x1024xbf16> to vector<32x256xbf16>
    %c32 = arith.constant 32 : index
    %c0_25 = arith.constant 0 : index
    %36 = vector.load %arg20[%c32, %c0_25] : memref<128x256xbf16, #tpu.memory_space<vmem>>, vector<32x256xbf16>
    tpu.vector_store %arg20[%c32, %c0_25], %35 {strides = array<i32>} : memref<128x256xbf16, #tpu.memory_space<vmem>>, vector<32x256xbf16>,
    %37 = vector.extract_strided_slice %32 {offsets = [0, 512], sizes = [32, 256], strides = [1, 1]} : vector<32x1024xbf16> to vector<32x256xbf16>
    %c64 = arith.constant 64 : index
    %c0_26 = arith.constant 0 : index
    %38 = vector.load %arg20[%c64, %c0_26] : memref<128x256xbf16, #tpu.memory_space<vmem>>, vector<32x256xbf16>
    tpu.vector_store %arg20[%c64, %c0_26], %37 {strides = array<i32>} : memref<128x256xbf16, #tpu.memory_space<vmem>>, vector<32x256xbf16>,
    %39 = vector.extract_strided_slice %32 {offsets = [0, 768], sizes = [32, 256], strides = [1, 1]} : vector<32x1024xbf16> to vector<32x256xbf16>
    %c96 = arith.constant 96 : index
    %c0_27 = arith.constant 0 : index
    %40 = vector.load %arg20[%c96, %c0_27] : memref<128x256xbf16, #tpu.memory_space<vmem>>, vector<32x256xbf16>
    tpu.vector_store %arg20[%c96, %c0_27], %39 {strides = array<i32>} : memref<128x256xbf16, #tpu.memory_space<vmem>>, vector<32x256xbf16>,
    %c0_28 = arith.constant 0 : index
    %c0_29 = arith.constant 0 : index
    %41 = vector.load %arg20[%c0_28, %c0_29] : memref<128x256xbf16, #tpu.memory_space<vmem>>, vector<128x256xbf16>
    %c0_30 = arith.constant 0 : index
    %c0_31 = arith.constant 0 : index
    %42 = vector.load %arg7[%c0_30, %c0_31] : memref<256x512xbf16, #tpu.memory_space<vmem>>, vector<256x512xbf16>
    %cst_32 = arith.constant dense<0.000000e+00> : vector<128x512xf32>
    %43 = tpu.matmul %41, %42, %cst_32 {dimension_numbers = #tpu.dot_dimension_numbers<[1], [0], [0], [1], [0, 0, 1, 1], [], []>} : vector<128x256xbf16>, vector<256x512xbf16>, vector<128x512xf32> -> vector<128x512xf32>
    %c0_33 = arith.constant 0 : index
    %c0_34 = arith.constant 0 : index
    %44 = vector.load %arg8[%c0_33, %c0_34] : memref<1x512xf32, #tpu.memory_space<vmem>>, vector<1x512xf32>
    %45 = vector.broadcast %44 : vector<1x512xf32> to vector<128x512xf32>
    %46 = arith.mulf %43, %45 : vector<128x512xf32>
    %c0_35 = arith.constant 0 : index
    %c0_36 = arith.constant 0 : index
    %47 = vector.load %arg9[%c0_35, %c0_36] : memref<1x512xf32, #tpu.memory_space<vmem>>, vector<1x512xf32>
    %48 = vector.broadcast %47 : vector<1x512xf32> to vector<128x512xf32>
    %49 = arith.addf %46, %48 : vector<128x512xf32>
    %cst_37 = arith.constant 0.000000e+00 : f32
    %50 = vector.broadcast %cst_37 : f32 to vector<128x512xf32>
    %51 = arith.maximumf %49, %50 : vector<128x512xf32>
    %52 = arith.truncf %51 : vector<128x512xf32> to vector<128x512xbf16>
    %53 = vector.extract_strided_slice %52 {offsets = [0, 0], sizes = [128, 128], strides = [1, 1]} : vector<128x512xbf16> to vector<128x128xbf16>
    %c0_38 = arith.constant 0 : index
    %c0_39 = arith.constant 0 : index
    %54 = vector.load %arg21[%c0_38, %c0_39] : memref<512x128xbf16, #tpu.memory_space<vmem>>, vector<128x128xbf16>
    tpu.vector_store %arg21[%c0_38, %c0_39], %53 {strides = array<i32>} : memref<512x128xbf16, #tpu.memory_space<vmem>>, vector<128x128xbf16>,
    %55 = vector.extract_strided_slice %52 {offsets = [0, 128], sizes = [128, 128], strides = [1, 1]} : vector<128x512xbf16> to vector<128x128xbf16>
    %c128 = arith.constant 128 : index
    %c0_40 = arith.constant 0 : index
    %56 = vector.load %arg21[%c128, %c0_40] : memref<512x128xbf16, #tpu.memory_space<vmem>>, vector<128x128xbf16>
    tpu.vector_store %arg21[%c128, %c0_40], %55 {strides = array<i32>} : memref<512x128xbf16, #tpu.memory_space<vmem>>, vector<128x128xbf16>,
    %57 = vector.extract_strided_slice %52 {offsets = [0, 256], sizes = [128, 128], strides = [1, 1]} : vector<128x512xbf16> to vector<128x128xbf16>
    %c256 = arith.constant 256 : index
    %c0_41 = arith.constant 0 : index
    %58 = vector.load %arg21[%c256, %c0_41] : memref<512x128xbf16, #tpu.memory_space<vmem>>, vector<128x128xbf16>
    tpu.vector_store %arg21[%c256, %c0_41], %57 {strides = array<i32>} : memref<512x128xbf16, #tpu.memory_space<vmem>>, vector<128x128xbf16>,
    %59 = vector.extract_strided_slice %52 {offsets = [0, 384], sizes = [128, 128], strides = [1, 1]} : vector<128x512xbf16> to vector<128x128xbf16>
    %c384 = arith.constant 384 : index
    %c0_42 = arith.constant 0 : index
    %60 = vector.load %arg21[%c384, %c0_42] : memref<512x128xbf16, #tpu.memory_space<vmem>>, vector<128x128xbf16>
    tpu.vector_store %arg21[%c384, %c0_42], %59 {strides = array<i32>} : memref<512x128xbf16, #tpu.memory_space<vmem>>, vector<128x128xbf16>,
    %c0_43 = arith.constant 0 : index
    %c0_44 = arith.constant 0 : index
    %61 = vector.load %arg21[%c0_43, %c0_44] : memref<512x128xbf16, #tpu.memory_space<vmem>>, vector<512x128xbf16>
    %c0_45 = arith.constant 0 : index
    %c0_46 = arith.constant 0 : index
    %62 = vector.load %arg10[%c0_45, %c0_46] : memref<128x512xbf16, #tpu.memory_space<vmem>>, vector<128x512xbf16>
    %cst_47 = arith.constant dense<0.000000e+00> : vector<512x512xf32>
    %63 = tpu.matmul %61, %62, %cst_47 {dimension_numbers = #tpu.dot_dimension_numbers<[1], [0], [0], [1], [0, 0, 1, 1], [], []>} : vector<512x128xbf16>, vector<128x512xbf16>, vector<512x512xf32> -> vector<512x512xf32>
    %c0_48 = arith.constant 0 : index
    %c0_49 = arith.constant 0 : index
    %64 = vector.load %arg11[%c0_48, %c0_49] : memref<1x512xf32, #tpu.memory_space<vmem>>, vector<1x512xf32>
    %65 = vector.broadcast %64 : vector<1x512xf32> to vector<512x512xf32>
    %66 = arith.mulf %63, %65 : vector<512x512xf32>
    %c0_50 = arith.constant 0 : index
    %c0_51 = arith.constant 0 : index
    %67 = vector.load %arg12[%c0_50, %c0_51] : memref<1x512xf32, #tpu.memory_space<vmem>>, vector<1x512xf32>
    %68 = vector.broadcast %67 : vector<1x512xf32> to vector<512x512xf32>
    %69 = arith.addf %66, %68 : vector<512x512xf32>
    %cst_52 = arith.constant 0.000000e+00 : f32
    %70 = vector.broadcast %cst_52 : f32 to vector<512x512xf32>
    %71 = arith.maximumf %69, %70 : vector<512x512xf32>
    %72 = arith.truncf %71 : vector<512x512xf32> to vector<512x512xbf16>
    %73 = vector.extract_strided_slice %72 {offsets = [0, 0], sizes = [512, 128], strides = [1, 1]} : vector<512x512xbf16> to vector<512x128xbf16>
    %c0_53 = arith.constant 0 : index
    %c0_54 = arith.constant 0 : index
    %74 = vector.load %arg22[%c0_53, %c0_54] : memref<2048x128xbf16, #tpu.memory_space<vmem>>, vector<512x128xbf16>
    tpu.vector_store %arg22[%c0_53, %c0_54], %73 {strides = array<i32>} : memref<2048x128xbf16, #tpu.memory_space<vmem>>, vector<512x128xbf16>,
    %75 = vector.extract_strided_slice %72 {offsets = [0, 128], sizes = [512, 128], strides = [1, 1]} : vector<512x512xbf16> to vector<512x128xbf16>
    %c512 = arith.constant 512 : index
    %c0_55 = arith.constant 0 : index
    %76 = vector.load %arg22[%c512, %c0_55] : memref<2048x128xbf16, #tpu.memory_space<vmem>>, vector<512x128xbf16>
    tpu.vector_store %arg22[%c512, %c0_55], %75 {strides = array<i32>} : memref<2048x128xbf16, #tpu.memory_space<vmem>>, vector<512x128xbf16>,
    %77 = vector.extract_strided_slice %72 {offsets = [0, 256], sizes = [512, 128], strides = [1, 1]} : vector<512x512xbf16> to vector<512x128xbf16>
    %c1024 = arith.constant 1024 : index
    %c0_56 = arith.constant 0 : index
    %78 = vector.load %arg22[%c1024, %c0_56] : memref<2048x128xbf16, #tpu.memory_space<vmem>>, vector<512x128xbf16>
    tpu.vector_store %arg22[%c1024, %c0_56], %77 {strides = array<i32>} : memref<2048x128xbf16, #tpu.memory_space<vmem>>, vector<512x128xbf16>,
    %79 = vector.extract_strided_slice %72 {offsets = [0, 384], sizes = [512, 128], strides = [1, 1]} : vector<512x512xbf16> to vector<512x128xbf16>
    %c1536 = arith.constant 1536 : index
    %c0_57 = arith.constant 0 : index
    %80 = vector.load %arg22[%c1536, %c0_57] : memref<2048x128xbf16, #tpu.memory_space<vmem>>, vector<512x128xbf16>
    tpu.vector_store %arg22[%c1536, %c0_57], %79 {strides = array<i32>} : memref<2048x128xbf16, #tpu.memory_space<vmem>>, vector<512x128xbf16>,
    %c0_58 = arith.constant 0 : index
    %c0_59 = arith.constant 0 : index
    %81 = vector.load %arg22[%c0_58, %c0_59] : memref<2048x128xbf16, #tpu.memory_space<vmem>>, vector<2048x128xbf16>
    %c0_60 = arith.constant 0 : index
    %c0_61 = arith.constant 0 : index
    %82 = vector.load %arg13[%c0_60, %c0_61] : memref<128x128xbf16, #tpu.memory_space<vmem>>, vector<128x128xbf16>
    %cst_62 = arith.constant dense<0.000000e+00> : vector<2048x128xf32>
    %83 = tpu.matmul %81, %82, %cst_62 {dimension_numbers = #tpu.dot_dimension_numbers<[1], [0], [0], [1], [0, 0, 1, 1], [], []>} : vector<2048x128xbf16>, vector<128x128xbf16>, vector<2048x128xf32> -> vector<2048x128xf32>
    %c0_63 = arith.constant 0 : index
    %c0_64 = arith.constant 0 : index
    %84 = vector.load %arg14[%c0_63, %c0_64] : memref<1x128xf32, #tpu.memory_space<vmem>>, vector<1x128xf32>
    %85 = vector.broadcast %84 : vector<1x128xf32> to vector<2048x128xf32>
    %86 = arith.mulf %83, %85 : vector<2048x128xf32>
    %c0_65 = arith.constant 0 : index
    %c0_66 = arith.constant 0 : index
    %87 = vector.load %arg15[%c0_65, %c0_66] : memref<1x128xf32, #tpu.memory_space<vmem>>, vector<1x128xf32>
    %88 = vector.broadcast %87 : vector<1x128xf32> to vector<2048x128xf32>
    %89 = arith.addf %86, %88 : vector<2048x128xf32>
    %cst_67 = arith.constant 0.000000e+00 : f32
    %90 = vector.broadcast %cst_67 : f32 to vector<2048x128xf32>
    %91 = arith.maximumf %89, %90 : vector<2048x128xf32>
    %92 = arith.truncf %91 : vector<2048x128xf32> to vector<2048x128xbf16>
    %c0_68 = arith.constant 0 : index
    %c0_69 = arith.constant 0 : index
    %93 = vector.load %arg16[%c0_68, %c0_69] : memref<4x128xbf16, #tpu.memory_space<vmem>>, vector<4x128xbf16>
    %cst_70 = arith.constant dense<0.000000e+00> : vector<4x2048xf32>
    %94 = tpu.matmul %93, %92, %cst_70 {dimension_numbers = #tpu.dot_dimension_numbers<[1], [1], [0], [0], [0, 0, 1, 0], [], []>} : vector<4x128xbf16>, vector<2048x128xbf16>, vector<4x2048xf32> -> vector<4x2048xf32>
    %c0_71 = arith.constant 0 : index
    %c0_72 = arith.constant 0 : index
    %95 = vector.load %arg17[%c0_71, %c0_72] : memref<4x1xf32, #tpu.memory_space<vmem>>, vector<4x1xf32>
    %96 = vector.broadcast %95 : vector<4x1xf32> to vector<4x2048xf32>
    %97 = arith.addf %94, %96 : vector<4x2048xf32>
    %c0_73 = arith.constant 0 : index
    %c0_74 = arith.constant 0 : index
    %98 = vector.load %arg18[%c0_73, %c0_74] : memref<4x2048xf32, #tpu.memory_space<vmem>>, vector<4x2048xf32>
    tpu.vector_store %arg18[%c0_73, %c0_74], %97 {strides = array<i32>} : memref<4x2048xf32, #tpu.memory_space<vmem>>, vector<4x2048xf32>,
    return
  }
}

</mosaic_0001>

<bundles_post_ra>
// kernel: decoder_forward.1
= control target key start
LH: loop header
LB: loop body
LE: loop exit
PB: predicated region body
PF: predicated region fallthrough
CT: control target
= control target key end

     0   :  { %s15240_s0 = inlined_call_operand.vmem [shape: bf16[8,1024], index: 0, kind: input, shape index: {}]   ;;  %s15241_s1 = inlined_call_operand.hbm [shape: s8[1024,2048], index: 1, kind: input, shape index: {}]   ;;  %s15242_s2 = inlined_call_operand.hbm [shape: f32[1,2048], index: 2, kind: input, shape index: {}]   ;;  %s15243_s3 = inlined_call_operand.hbm [shape: f32[1,2048], index: 3, kind: input, shape index: {}]   ;;  %s15244_s4 = inlined_call_operand.hbm [shape: bf16[512,1024], index: 4, kind: input, shape index: {}]   ;;  %s15245_s5 = inlined_call_operand.hbm [shape: f32[1,1024], index: 5, kind: input, shape index: {}]   ;;  %s15246_s6 = inlined_call_operand.hbm [shape: f32[1,1024], index: 6, kind: input, shape index: {}]   ;;  %s15247_s7 = inlined_call_operand.hbm [shape: bf16[256,512], index: 7, kind: input, shape index: {}]   ;;  %s15248_s8 = inlined_call_operand.hbm [shape: f32[1,512], index: 8, kind: input, shape index: {}]   ;;  %s15249_s9 = inlined_call_operand.hbm [shape: f32[1,512], index: 9, kind: input, shape index: {}]   ;;  %s15250_s10 = inlined_call_operand.hbm [shape: bf16[128,512], index: 10, kind: input, shape index: {}]   ;;  %s15251_s11 = inlined_call_operand.hbm [shape: f32[1,512], index: 11, kind: input, shape index: {}]   ;;  %s15252_s12 = inlined_call_operand.hbm [shape: f32[1,512], index: 12, kind: input, shape index: {}]   ;;  %s15253_s13 = inlined_call_operand.hbm [shape: bf16[128,128], index: 13, kind: input, shape index: {}]   ;;  %s15254_s14 = inlined_call_operand.hbm [shape: f32[1,128], index: 14, kind: input, shape index: {}]   ;;  %s15255_s15 = inlined_call_operand.hbm [shape: f32[1,128], index: 15, kind: input, shape index: {}]   ;;  %s15256_s16 = inlined_call_operand.hbm [shape: bf16[4,128], index: 16, kind: input, shape index: {}]   ;;  %s15257_s17 = inlined_call_operand.vmem [shape: f32[4,1], index: 17, kind: input, shape index: {}]   ;;  %s15258_s18 = inlined_call_operand.vmem [shape: f32[4,2048], index: 18, kind: output, shape index: {}]  }
   0x1   :  { %15263 = sst [smem:[#allocation99_spill]] %s15240_s0 }
   0x2   :  { %15264 = sst [smem:[#allocation100_spill]] %s15241_s1 }
   0x3   :  { %15265 = sst [smem:[#allocation101_spill]] %s15242_s2 }
   0x4   :  { %15266 = sst [smem:[#allocation102_spill]] %s15258_s18 }
   0x5   :  { %23 = vsyncpa [#allocation7], 0 }
   0x6   :  { %24 = vsyncpa [#allocation9], 0 }
   0x7   :  { %25 = vsyncpa [#allocation12], 0 }
   0x8   :  { %26 = vsyncpa [#allocation15], 0 }
   0x9   :  { %27 = vsyncpa [#allocation18], 0 }
   0xa   :  { %28 = vsyncpa [#allocation21], 0 }
   0xb   :  { %29 = vsyncpa [#allocation24], 0 }
   0xc   :  { %30 = vsyncpa [#allocation27], 0 }
   0xd   :  { %31 = vsyncpa [#allocation30], 0  ;;  %s12674_s27 = smov [#allocation8]   ;;  %s12675_s29 = smov [#allocation11]  }
   0xe   :  { %s52_s28 = sshll.u32 %s12674_s27, 4  ;;  %s71_s30 = sshll.u32 %s12675_s29, 4  ;;  %s53_s28 = int_to_ptr.vmem [resolvable:$true] %s52_s28  ;;  %s12794_s30 = int_to_ptr.vmem [resolvable:$true] %s71_s30 }
   0xf   :  { %s15267_s1 = sld [smem:[#allocation101_spill]] }
  0x15   :  { %s12304_s20 = scalar_lea.hbm %s15267_s1, 256 }
  0x16   :  { %p12305_p0 = scmp.ne.s32.totalorder %s15267_s1, %s12304_s20  ;;  %p12308_p1 = scmp.lt.u32.totalorder %s12304_s20, %s15267_s1 }
  0x18   :  { %p12310_p2 = pnand %p12308_p1, %p12305_p0 }
  0x1a   :  { %12313 = shalt.err (!%p12310_p2)
}
  0x1b   :  { %s12314_s24 = scalar_lea.vmem %s53_s28, 256  ;;  %p12319_p4 = scmp.lt.s32.totalorder %s53_s28, %s53_s28 }
  0x1c   :  { %p12315_p3 = scmp.ne.s32.totalorder %s53_s28, %s12314_s24  ;;  %p12320_p5 = scmp.lt.s32.totalorder %s12314_s24, %s12314_s24 }
  0x1e   :  { %p12321_p6 = por %p12320_p5, %p12319_p4 }
  0x20   :  { %p12322_p7 = pnand %p12321_p6, %p12315_p3 }
  0x22   :  { %12325 = shalt.err (!%p12322_p7)
}
  0x23   :  { %55 = dma.hbm_to_vmem [thread:$0]  %s15267_s1, 256, %s53_s28, [#allocation9]  }
  0x24   :  { %s12326_s0 = scalar_lea.hbm %s15244_s4, 32768 }
  0x25   :  { %p12327_p8 = scmp.ne.s32.totalorder %s15244_s4, %s12326_s0  ;;  %p12330_p9 = scmp.lt.u32.totalorder %s12326_s0, %s15244_s4 }
  0x27   :  { %p12332_p10 = pnand %p12330_p9, %p12327_p8 }
  0x29   :  { %12335 = shalt.err (!%p12332_p10)
}
  0x2a   :  { %s12336_s2 = scalar_lea.vmem %s12794_s30, 32768  ;;  %p12341_p12 = scmp.lt.s32.totalorder %s12794_s30, %s12794_s30 }
  0x2b   :  { %p12337_p11 = scmp.ne.s32.totalorder %s12794_s30, %s12336_s2  ;;  %p12342_p13 = scmp.lt.s32.totalorder %s12336_s2, %s12336_s2 }
  0x2d   :  { %p12343_p0 = por %p12342_p13, %p12341_p12 }
  0x2f   :  { %p12344_p1 = pnand %p12343_p0, %p12337_p11 }
  0x31   :  { %12347 = shalt.err (!%p12344_p1)
}
  0x32   :  { %s12676_s28 = smov 512   ;;  %s12677_s1 = smov 32  }
  0x33   :  { %77 = dma.hbm_to_vmem [thread:$0]  %s15244_s4, 32768, %s12794_s30, [#allocation12], %s12676_s28, %s12676_s28, %s12677_s1  }
  0x34   :  { %s12678_s25 = smov [#allocation14]   ;;  %s12679_s27 = smov [#allocation17]  }
  0x35   :  { %s94_s26 = sshll.u32 %s12678_s25, 4  ;;  %s116_s29 = sshll.u32 %s12679_s27, 4  ;;  %s95_s26 = int_to_ptr.vmem [resolvable:$true] %s94_s26  ;;  %s117_s29 = int_to_ptr.vmem [resolvable:$true] %s116_s29 }
  0x36   :  { %s12348_s21 = scalar_lea.hbm %s15246_s6, 128 }
  0x37   :  { %p12349_p2 = scmp.ne.s32.totalorder %s15246_s6, %s12348_s21  ;;  %p12352_p3 = scmp.lt.u32.totalorder %s12348_s21, %s15246_s6 }
  0x39   :  { %p12354_p4 = pnand %p12352_p3, %p12349_p2 }
  0x3b   :  { %12357 = shalt.err (!%p12354_p4)
}
  0x3c   :  { %s12358_s4 = scalar_lea.vmem %s95_s26, 128  ;;  %p12363_p6 = scmp.lt.s32.totalorder %s95_s26, %s95_s26 }
  0x3d   :  { %p12359_p5 = scmp.ne.s32.totalorder %s95_s26, %s12358_s4  ;;  %p12364_p7 = scmp.lt.s32.totalorder %s12358_s4, %s12358_s4 }
  0x3f   :  { %p12365_p8 = por %p12364_p7, %p12363_p6 }
  0x41   :  { %p12366_p9 = pnand %p12365_p8, %p12359_p5 }
  0x43   :  { %12369 = shalt.err (!%p12366_p9)
}
  0x44   :  { %97 = dma.hbm_to_vmem [thread:$0]  %s15246_s6, 128, %s95_s26, [#allocation15]  }
  0x45   :  { %s12370_s24 = scalar_lea.hbm %s15248_s8, 64 }
  0x46   :  { %p12371_p10 = scmp.ne.s32.totalorder %s15248_s8, %s12370_s24  ;;  %p12374_p11 = scmp.lt.u32.totalorder %s12370_s24, %s15248_s8 }
  0x48   :  { %p12376_p12 = pnand %p12374_p11, %p12371_p10 }
  0x4a   :  { %12379 = shalt.err (!%p12376_p12)
}
  0x4b   :  { %s12380_s19 = scalar_lea.vmem %s117_s29, 64  ;;  %p12385_p0 = scmp.lt.s32.totalorder %s117_s29, %s117_s29 }
  0x4c   :  { %p12381_p13 = scmp.ne.s32.totalorder %s117_s29, %s12380_s19  ;;  %p12386_p1 = scmp.lt.s32.totalorder %s12380_s19, %s12380_s19 }
  0x4e   :  { %p12387_p2 = por %p12386_p1, %p12385_p0 }
  0x50   :  { %p12388_p3 = pnand %p12387_p2, %p12381_p13 }
  0x52   :  { %12391 = shalt.err (!%p12388_p3)
}
  0x53   :  { %119 = dma.hbm_to_vmem [thread:$0]  %s15248_s8, 64, %s117_s29, [#allocation18]  }
  0x54   :  { %s12680_s21 = smov [#allocation20]   ;;  %s12681_s22 = smov [#allocation23]  }
  0x55   :  { %s135_s20 = sshll.u32 %s12680_s21, 4  ;;  %s158_s2 = sshll.u32 %s12681_s22, 4  ;;  %s136_s20 = int_to_ptr.vmem [resolvable:$true] %s135_s20  ;;  %s159_s2 = int_to_ptr.vmem [resolvable:$true] %s158_s2 }
  0x56   :  { %s12392_s28 = scalar_lea.hbm %s15250_s10, 4096 }
  0x57   :  { %p12393_p4 = scmp.ne.s32.totalorder %s15250_s10, %s12392_s28  ;;  %p12396_p5 = scmp.lt.u32.totalorder %s12392_s28, %s15250_s10 }
  0x59   :  { %p12398_p6 = pnand %p12396_p5, %p12393_p4 }
  0x5b   :  { %12401 = shalt.err (!%p12398_p6)
}
  0x5c   :  { %s12402_s8 = scalar_lea.vmem %s136_s20, 4096  ;;  %p12407_p8 = scmp.lt.s32.totalorder %s136_s20, %s136_s20 }
  0x5d   :  { %p12403_p7 = scmp.ne.s32.totalorder %s136_s20, %s12402_s8  ;;  %p12408_p9 = scmp.lt.s32.totalorder %s12402_s8, %s12402_s8 }
  0x5f   :  { %p12409_p10 = por %p12408_p9, %p12407_p8 }
  0x61   :  { %p12410_p11 = pnand %p12409_p10, %p12403_p7 }
  0x63   :  { %12413 = shalt.err (!%p12410_p11)
}
  0x64   :  { %s12682_s29 = smov 256   ;;  %s12683_s18 = smov 16  }
  0x65   :  { %141 = dma.hbm_to_vmem [thread:$0]  %s15250_s10, 4096, %s136_s20, [#allocation21], %s12682_s29, %s12682_s29, %s12683_s18  }
  0x66   :  { %s12414_s26 = scalar_lea.hbm %s15252_s12, 64 }
  0x67   :  { %p12415_p12 = scmp.ne.s32.totalorder %s15252_s12, %s12414_s26  ;;  %p12418_p13 = scmp.lt.u32.totalorder %s12414_s26, %s15252_s12 }
  0x69   :  { %p12420_p0 = pnand %p12418_p13, %p12415_p12 }
  0x6b   :  { %12423 = shalt.err (!%p12420_p0)
}
  0x6c   :  { %s12424_s28 = scalar_lea.vmem %s159_s2, 64  ;;  %p12429_p2 = scmp.lt.s32.totalorder %s159_s2, %s159_s2 }
  0x6d   :  { %p12425_p1 = scmp.ne.s32.totalorder %s159_s2, %s12424_s28  ;;  %p12430_p3 = scmp.lt.s32.totalorder %s12424_s28, %s12424_s28 }
  0x6f   :  { %p12431_p4 = por %p12430_p3, %p12429_p2 }
  0x71   :  { %p12432_p5 = pnand %p12431_p4, %p12425_p1 }
  0x73   :  { %12435 = shalt.err (!%p12432_p5)
}
  0x74   :  { %161 = dma.hbm_to_vmem [thread:$0]  %s15252_s12, 64, %s159_s2, [#allocation24]  }
  0x75   :  { %s12684_s1 = smov [#allocation26]   ;;  %s12685_s24 = smov [#allocation6]  }
  0x76   :  { %s180_s23 = sshll.u32 %s12684_s1, 4  ;;  %s39_s25 = sshll.u32 %s12685_s24, 4  ;;  %s181_s23 = int_to_ptr.vmem [resolvable:$true] %s180_s23  ;;  %s12876_s25 = int_to_ptr.vmem [resolvable:$true] %s39_s25 }
  0x77   :  { %s12436_s0 = scalar_lea.hbm %s15254_s14, 16 }
  0x78   :  { %p12437_p6 = scmp.ne.s32.totalorder %s15254_s14, %s12436_s0  ;;  %p12440_p7 = scmp.lt.u32.totalorder %s12436_s0, %s15254_s14 }
  0x7a   :  { %p12442_p8 = pnand %p12440_p7, %p12437_p6 }
  0x7c   :  { %12445 = shalt.err (!%p12442_p8)
}
  0x7d   :  { %s12446_s12 = scalar_lea.vmem %s181_s23, 16  ;;  %s12450_s2 = scalar_lea.vmem %s181_s23, 32 }
  0x7e   :  { %p12447_p9 = scmp.ne.s32.totalorder %s181_s23, %s12446_s12  ;;  %p12451_p10 = scmp.lt.s32.totalorder %s181_s23, %s181_s23 }
  0x7f   :  { %p12452_p11 = scmp.lt.s32.totalorder %s12450_s2, %s12446_s12 }
  0x81   :  { %p12453_p12 = por %p12452_p11, %p12451_p10 }
  0x83   :  { %p12454_p13 = pnand %p12453_p12, %p12447_p9 }
  0x85   :  { %12457 = shalt.err (!%p12454_p13)
}
  0x86   :  { %183 = dma.hbm_to_vmem [thread:$0]  %s15254_s14, 16, %s181_s23, [#allocation27]  }
  0x87   :  { %s15268_s10 = sld [smem:[#allocation100_spill]] }
  0x8d   :  { %s12458_s20 = scalar_lea.hbm %s15268_s10, 65536 }
  0x8e   :  { %p12459_p0 = scmp.ne.s32.totalorder %s15268_s10, %s12458_s20  ;;  %p12462_p1 = scmp.lt.u32.totalorder %s12458_s20, %s15268_s10 }
  0x90   :  { %p12464_p2 = pnand %p12462_p1, %p12459_p0 }
  0x92   :  { %12467 = shalt.err (!%p12464_p2)
}
  0x93   :  { %s12468_s0 = scalar_lea.vmem %s12876_s25, 65536  ;;  %p12473_p4 = scmp.lt.s32.totalorder %s12876_s25, %s12876_s25 }
  0x94   :  { %p12469_p3 = scmp.ne.s32.totalorder %s12876_s25, %s12468_s0  ;;  %p12474_p5 = scmp.lt.s32.totalorder %s12468_s0, %s12468_s0 }
  0x96   :  { %p12475_p6 = por %p12474_p5, %p12473_p4 }
  0x98   :  { %p12476_p7 = pnand %p12475_p6, %p12469_p3 }
  0x9a   :  { %12479 = shalt.err (!%p12476_p7)
}
  0x9b   :  { %s12686_s14 = smov 2048   ;;  %s12687_s23 = smov 128  }
  0x9c   :  { %45 = dma.hbm_to_vmem [thread:$0]  %s15268_s10, 65536, %s12876_s25, [#allocation7], %s12686_s14, %s12686_s14, %s12687_s23  }
  0x9d   :  { %s12688_s26 = smov [#allocation10]   ;;  %s12689_s12 = smov [#allocation13]  }
  0x9e   :  { %s62_s21 = sshll.u32 %s12688_s26, 4  ;;  %s84_s2 = sshll.u32 %s12689_s12, 4  ;;  %s63_s21 = int_to_ptr.vmem [resolvable:$true] %s62_s21  ;;  %s85_s2 = int_to_ptr.vmem [resolvable:$true] %s84_s2 }
  0x9f   :  { %s12480_s30 = scalar_lea.hbm %s15243_s3, 256 }
  0xa0   :  { %p12481_p8 = scmp.ne.s32.totalorder %s15243_s3, %s12480_s30  ;;  %p12484_p9 = scmp.lt.u32.totalorder %s12480_s30, %s15243_s3 }
  0xa2   :  { %p12486_p10 = pnand %p12484_p9, %p12481_p8 }
  0xa4   :  { %12489 = shalt.err (!%p12486_p10)
}
  0xa5   :  { %s12490_s25 = scalar_lea.vmem %s63_s21, 256  ;;  %p12495_p12 = scmp.lt.s32.totalorder %s63_s21, %s63_s21 }
  0xa6   :  { %p12491_p11 = scmp.ne.s32.totalorder %s63_s21, %s12490_s25  ;;  %p12496_p13 = scmp.lt.s32.totalorder %s12490_s25, %s12490_s25 }
  0xa8   :  { %p12497_p0 = por %p12496_p13, %p12495_p12 }
  0xaa   :  { %p12498_p1 = pnand %p12497_p0, %p12491_p11 }
  0xac   :  { %12501 = shalt.err (!%p12498_p1)
}
  0xad   :  { %65 = dma.hbm_to_vmem [thread:$0]  %s15243_s3, 256, %s63_s21, [#allocation9]  }
  0xae   :  { %s12502_s14 = scalar_lea.hbm %s15245_s5, 128 }
  0xaf   :  { %p12503_p2 = scmp.ne.s32.totalorder %s15245_s5, %s12502_s14  ;;  %p12506_p3 = scmp.lt.u32.totalorder %s12502_s14, %s15245_s5 }
  0xb1   :  { %p12508_p4 = pnand %p12506_p3, %p12503_p2 }
  0xb3   :  { %12511 = shalt.err (!%p12508_p4)
}
  0xb4   :  { %s12512_s12 = scalar_lea.vmem %s85_s2, 128  ;;  %p12517_p6 = scmp.lt.s32.totalorder %s85_s2, %s85_s2 }
  0xb5   :  { %p12513_p5 = scmp.ne.s32.totalorder %s85_s2, %s12512_s12  ;;  %p12518_p7 = scmp.lt.s32.totalorder %s12512_s12, %s12512_s12 }
  0xb7   :  { %p12519_p8 = por %p12518_p7, %p12517_p6 }
  0xb9   :  { %p12520_p9 = pnand %p12519_p8, %p12513_p5 }
  0xbb   :  { %12523 = shalt.err (!%p12520_p9)
}
  0xbc   :  { %87 = dma.hbm_to_vmem [thread:$0]  %s15245_s5, 128, %s85_s2, [#allocation12]  }
  0xbd   :  { %s12690_s22 = smov [#allocation16]   ;;  %s12691_s30 = smov [#allocation19]  }
  0xbe   :  { %s103_s4 = sshll.u32 %s12690_s22, 4  ;;  %s126_s28 = sshll.u32 %s12691_s30, 4  ;;  %s104_s4 = int_to_ptr.vmem [resolvable:$true] %s103_s4  ;;  %s127_s28 = int_to_ptr.vmem [resolvable:$true] %s126_s28 }
  0xbf   :  { %s12524_s24 = scalar_lea.hbm %s15247_s7, 8192 }
  0xc0   :  { %p12525_p10 = scmp.ne.s32.totalorder %s15247_s7, %s12524_s24  ;;  %p12528_p11 = scmp.lt.u32.totalorder %s12524_s24, %s15247_s7 }
  0xc2   :  { %p12530_p12 = pnand %p12528_p11, %p12525_p10 }
  0xc4   :  { %12533 = shalt.err (!%p12530_p12)
}
  0xc5   :  { %s12534_s5 = scalar_lea.vmem %s104_s4, 8192  ;;  %p12539_p0 = scmp.lt.s32.totalorder %s104_s4, %s104_s4 }
  0xc6   :  { %p12535_p13 = scmp.ne.s32.totalorder %s104_s4, %s12534_s5  ;;  %p12540_p1 = scmp.lt.s32.totalorder %s12534_s5, %s12534_s5 }
  0xc8   :  { %p12541_p2 = por %p12540_p1, %p12539_p0 }
  0xca   :  { %p12542_p3 = pnand %p12541_p2, %p12535_p13 }
  0xcc   :  { %12545 = shalt.err (!%p12542_p3)
}
  0xcd   :  { %109 = dma.hbm_to_vmem [thread:$0]  %s15247_s7, 8192, %s104_s4, [#allocation15], %s12682_s29, %s12682_s29, %s12683_s18  }
  0xce   :  { %s12546_s19 = scalar_lea.hbm %s15249_s9, 64 }
  0xcf   :  { %p12547_p4 = scmp.ne.s32.totalorder %s15249_s9, %s12546_s19  ;;  %p12550_p5 = scmp.lt.u32.totalorder %s12546_s19, %s15249_s9 }
  0xd1   :  { %p12552_p6 = pnand %p12550_p5, %p12547_p4 }
  0xd3   :  { %12555 = shalt.err (!%p12552_p6)
}
  0xd4   :  { %s12556_s21 = scalar_lea.vmem %s127_s28, 64  ;;  %p12561_p8 = scmp.lt.s32.totalorder %s127_s28, %s127_s28 }
  0xd5   :  { %p12557_p7 = scmp.ne.s32.totalorder %s127_s28, %s12556_s21  ;;  %p12562_p9 = scmp.lt.s32.totalorder %s12556_s21, %s12556_s21 }
  0xd7   :  { %p12563_p10 = por %p12562_p9, %p12561_p8 }
  0xd9   :  { %p12564_p11 = pnand %p12563_p10, %p12557_p7 }
  0xdb   :  { %12567 = shalt.err (!%p12564_p11)
}
  0xdc   :  { %129 = dma.hbm_to_vmem [thread:$0]  %s15249_s9, 64, %s127_s28, [#allocation18]  }
  0xdd   :  { %s12692_s18 = smov [#allocation22]   ;;  %s12693_s4 = smov [#allocation25]  }
  0xde   :  { %s148_s22 = sshll.u32 %s12692_s18, 4  ;;  %s167_s30 = sshll.u32 %s12693_s4, 4  ;;  %s149_s22 = int_to_ptr.vmem [resolvable:$true] %s148_s22  ;;  %s12958_s30 = int_to_ptr.vmem [resolvable:$true] %s167_s30 }
  0xdf   :  { %s12568_s24 = scalar_lea.hbm %s15251_s11, 64 }
  0xe0   :  { %p12569_p12 = scmp.ne.s32.totalorder %s15251_s11, %s12568_s24  ;;  %p12572_p13 = scmp.lt.u32.totalorder %s12568_s24, %s15251_s11 }
  0xe2   :  { %p12574_p0 = pnand %p12572_p13, %p12569_p12 }
  0xe4   :  { %12577 = shalt.err (!%p12574_p0)
}
  0xe5   :  { %s12578_s9 = scalar_lea.vmem %s149_s22, 64  ;;  %p12583_p2 = scmp.lt.s32.totalorder %s149_s22, %s149_s22 }
  0xe6   :  { %p12579_p1 = scmp.ne.s32.totalorder %s149_s22, %s12578_s9  ;;  %p12584_p3 = scmp.lt.s32.totalorder %s12578_s9, %s12578_s9 }
  0xe8   :  { %p12585_p4 = por %p12584_p3, %p12583_p2 }
  0xea   :  { %p12586_p5 = pnand %p12585_p4, %p12579_p1 }
  0xec   :  { %12589 = shalt.err (!%p12586_p5)
}
  0xed   :  { %151 = dma.hbm_to_vmem [thread:$0]  %s15251_s11, 64, %s149_s22, [#allocation21]  }
  0xee   :  { %s12590_s14 = scalar_lea.hbm %s15253_s13, 1024 }
  0xef   :  { %p12591_p6 = scmp.ne.s32.totalorder %s15253_s13, %s12590_s14  ;;  %p12594_p7 = scmp.lt.u32.totalorder %s12590_s14, %s15253_s13 }
  0xf1   :  { %p12596_p8 = pnand %p12594_p7, %p12591_p6 }
  0xf3   :  { %12599 = shalt.err (!%p12596_p8)
}
  0xf4   :  { %s12600_s12 = scalar_lea.vmem %s12958_s30, 1024  ;;  %p12605_p10 = scmp.lt.s32.totalorder %s12958_s30, %s12958_s30 }
  0xf5   :  { %p12601_p9 = scmp.ne.s32.totalorder %s12958_s30, %s12600_s12  ;;  %p12606_p11 = scmp.lt.s32.totalorder %s12600_s12, %s12600_s12 }
  0xf7   :  { %p12607_p12 = por %p12606_p11, %p12605_p10 }
  0xf9   :  { %p12608_p13 = pnand %p12607_p12, %p12601_p9 }
  0xfb   :  { %12611 = shalt.err (!%p12608_p13)
}
  0xfc   :  { %s12694_s11 = smov 64   ;;  %s12695_s3 = smov 4  }
  0xfd   :  { %173 = dma.hbm_to_vmem [thread:$0]  %s15253_s13, 1024, %s12958_s30, [#allocation24], %s12694_s11, %s12694_s11, %s12695_s3  }
  0xfe   :  { %s12696_s29 = smov [#allocation28]   ;;  %s12697_s22 = smov [#allocation29]  }
  0xff   :  { %s190_s18 = sshll.u32 %s12696_s29, 4  ;;  %s200_s4 = sshll.u32 %s12697_s22, 4  ;;  %s191_s18 = int_to_ptr.vmem [resolvable:$true] %s190_s18  ;;  %s201_s4 = int_to_ptr.vmem [resolvable:$true] %s200_s4 }
 0x100   :  { %s12612_s24 = scalar_lea.hbm %s15255_s15, 16 }
 0x101   :  { %p12613_p0 = scmp.ne.s32.totalorder %s15255_s15, %s12612_s24  ;;  %p12616_p1 = scmp.lt.u32.totalorder %s12612_s24, %s15255_s15 }
 0x103   :  { %p12618_p2 = pnand %p12616_p1, %p12613_p0 }
 0x105   :  { %12621 = shalt.err (!%p12618_p2)
}
 0x106   :  { %s12622_s13 = scalar_lea.vmem %s191_s18, 16  ;;  %s12626_s30 = scalar_lea.vmem %s191_s18, 32 }
 0x107   :  { %p12623_p3 = scmp.ne.s32.totalorder %s191_s18, %s12622_s13  ;;  %p12627_p4 = scmp.lt.s32.totalorder %s191_s18, %s191_s18 }
 0x108   :  { %p12628_p5 = scmp.lt.s32.totalorder %s12626_s30, %s12622_s13 }
 0x10a   :  { %p12629_p6 = por %p12628_p5, %p12627_p4 }
 0x10c   :  { %p12630_p7 = pnand %p12629_p6, %p12623_p3 }
 0x10e   :  { %12633 = shalt.err (!%p12630_p7)
}
 0x10f   :  { %193 = dma.hbm_to_vmem [thread:$0]  %s15255_s15, 16, %s191_s18, [#allocation27]  }
 0x110   :  { %s12634_s0 = scalar_lea.hbm %s15256_s16, 32 }
 0x111   :  { %p12635_p8 = scmp.ne.s32.totalorder %s15256_s16, %s12634_s0  ;;  %p12638_p9 = scmp.lt.u32.totalorder %s12634_s0, %s15256_s16 }
 0x113   :  { %p12640_p10 = pnand %p12638_p9, %p12635_p8 }
 0x115   :  { %12643 = shalt.err (!%p12640_p10)
}
 0x116   :  { %s12644_s26 = scalar_lea.vmem %s201_s4, 32  ;;  %p12649_p12 = scmp.lt.s32.totalorder %s201_s4, %s201_s4 }
 0x117   :  { %p12645_p11 = scmp.ne.s32.totalorder %s201_s4, %s12644_s26  ;;  %p12650_p13 = scmp.lt.s32.totalorder %s12644_s26, %s12644_s26 }
 0x119   :  { %p12651_p0 = por %p12650_p13, %p12649_p12 }
 0x11b   :  { %p12652_p1 = pnand %p12651_p0, %p12645_p11 }
 0x11d   :  { %12655 = shalt.err (!%p12652_p1)
}
 0x11e   :  { %203 = dma.hbm_to_vmem [thread:$0]  %s15256_s16, 32, %s201_s4, [#allocation30]  }
 0x11f   :  { %12656 = dma.done.wait [#allocation7], 65536  }
 0x120   :  { %12657 = vsyncadd [#allocation7], 4294901760 }
 0x121   :  { %12658 = dma.done.wait [#allocation9], 512  }
 0x122   :  { %12659 = vsyncadd [#allocation9], 4294966784 }
 0x123   :  { %12660 = dma.done.wait [#allocation12], 32896  }
 0x124   :  { %12661 = vsyncadd [#allocation12], 4294934400 }
 0x125   :  { %12662 = dma.done.wait [#allocation15], 8320  }
 0x126   :  { %12663 = vsyncadd [#allocation15], 4294958976 }
 0x127   :  { %12664 = dma.done.wait [#allocation18], 128  }
 0x128   :  { %12665 = vsyncadd [#allocation18], 4294967168 }
 0x129   :  { %12666 = dma.done.wait [#allocation21], 4160  }
 0x12a   :  { %12667 = vsyncadd [#allocation21], 4294963136 }
 0x12b   :  { %12668 = dma.done.wait [#allocation24], 1088  }
 0x12c   :  { %12669 = vsyncadd [#allocation24], 4294966208 }
 0x12d   :  { %12670 = dma.done.wait [#allocation27], 32  }
 0x12e   :  { %12671 = vsyncadd [#allocation27], 4294967264 }
 0x12f   :  { %12672 = dma.done.wait [#allocation30], 32  }
 0x130   :  { %12673 = vsyncadd [#allocation30], 4294967264  ;;  %v260_v0 = vld [vmem:[#allocation6 + $0x8] sm:$0xff]  ;;  %v262_v1 = vld [vmem:[#allocation6 + $0x18] sm:$0xff]  ;;  %s15269_s3 = sld [smem:[#allocation99_spill]]  ;;  %s15376_s25 = sld [smem:[#allocation102_spill]] }
 0x131   :  { %v259_v2 = vld [vmem:[#allocation6] sm:$0xff]  ;;  %v772_v3 = vunpack.c.l.s8.bf16 %v260_v0  ;;  %v788_v4 = vunpack.c.h.s8.bf16 %v260_v0  ;;  %v774_v5 = vunpack.c.l.s8.bf16 %v262_v1  ;;  %v790_v6 = vunpack.c.h.s8.bf16 %v262_v1  ;;  %v261_v7 = vld [vmem:[#allocation6 + $0x10] sm:$0xff]  ;;  %v276_v10 = vld [vmem:[#allocation6 + $0x88] sm:$0xff] }
 0x132   :  { %v771_v8 = vunpack.c.l.s8.bf16 %v259_v2  ;;  %v773_v9 = vunpack.c.l.s8.bf16 %v261_v7  ;;  %v278_v11 = vld [vmem:[#allocation6 + $0x98] sm:$0xff]  ;;  %v787_v12 = vunpack.c.h.s8.bf16 %v259_v2  ;;  %v789_v13 = vunpack.c.h.s8.bf16 %v261_v7  ;;  %v275_v16 = vld [vmem:[#allocation6 + $0x80] sm:$0xff]  ;;  %v277_v17 = vld [vmem:[#allocation6 + $0x90] sm:$0xff] }
 0x133   :  { %1823 = vmatprep.subr.bf16.mxu0 %v772_v3  ;;  %1987 = vmatprep.subr.bf16.mxu1 %v774_v5  ;;  %v804_v14 = vunpack.c.l.s8.bf16 %v276_v10  ;;  %v806_v15 = vunpack.c.l.s8.bf16 %v278_v11  ;;  %v803_v18 = vunpack.c.l.s8.bf16 %v275_v16  ;;  %v805_v19 = vunpack.c.l.s8.bf16 %v277_v17  ;;  %v292_v22 = vld [vmem:[#allocation6 + $0x108] sm:$0xff]  ;;  %v294_v23 = vld [vmem:[#allocation6 + $0x118] sm:$0xff]  ;;  %v291_v28 = vld [vmem:[#allocation6 + $0x100] sm:$0xff] }
 0x134   :  { %1824 = vmatpush1.bf16.msra.mxu0 %v771_v8  ;;  %1988 = vmatpush1.bf16.msra.mxu1 %v773_v9  ;;  %v820_v20 = vunpack.c.h.s8.bf16 %v276_v10  ;;  %v822_v21 = vunpack.c.h.s8.bf16 %v278_v11  ;;  %v819_v24 = vunpack.c.h.s8.bf16 %v275_v16  ;;  %v821_v25 = vunpack.c.h.s8.bf16 %v277_v17  ;;  %v293_v29 = vld [vmem:[#allocation6 + $0x110] sm:$0xff]  ;;  %v308_v36 = vld [vmem:[#allocation6 + $0x188] sm:$0xff]  ;;  %v310_v37 = vld [vmem:[#allocation6 + $0x198] sm:$0xff] }
 0x135   :  { %1825 = vmatprep.subr.bf16.mxu0 %v788_v4  ;;  %1989 = vmatprep.subr.bf16.mxu1 %v790_v6  ;;  %v836_v26 = vunpack.c.l.s8.bf16 %v292_v22  ;;  %v838_v27 = vunpack.c.l.s8.bf16 %v294_v23  ;;  %v835_v31 = vunpack.c.l.s8.bf16 %v291_v28  ;;  %v837_v32 = vunpack.c.l.s8.bf16 %v293_v29  ;;  %v307_v42 = vld [vmem:[#allocation6 + $0x180] sm:$0xff]  ;;  %v309_v43 = vld [vmem:[#allocation6 + $0x190] sm:$0xff]  ;;  %v324_v48 = vld [vmem:[#allocation6 + $0x208] sm:$0xff] }
 0x136   :  { %v13016_v30 = vld [vmem:[%s15269_s3] sm:$0xff]  ;;  %v852_v33 = vunpack.c.h.s8.bf16 %v292_v22  ;;  %v854_v34 = vunpack.c.h.s8.bf16 %v294_v23  ;;  %v851_v38 = vunpack.c.h.s8.bf16 %v291_v28  ;;  %v853_v39 = vunpack.c.h.s8.bf16 %v293_v29  ;;  %v326_v49 = vld [vmem:[#allocation6 + $0x218] sm:$0xff]  ;;  %v325_v51 = vld [vmem:[#allocation6 + $0x210] sm:$0xff] }
 0x137   :  { %v13020_v35 = vcombine.high %v13016_v30, %v13016_v30  ;;  %v868_v40 = vunpack.c.l.s8.bf16 %v308_v36  ;;  %v870_v41 = vunpack.c.l.s8.bf16 %v310_v37  ;;  %v867_v44 = vunpack.c.l.s8.bf16 %v307_v42  ;;  %v323_v50 = vld [vmem:[#allocation6 + $0x200] sm:$0xff]  ;;  %v340_v60 = vld [vmem:[#allocation6 + $0x288] sm:$0xff]  ;;  %v342_v61 = vld [vmem:[#allocation6 + $0x298] sm:$0xff] }
 0x138   :  { %1826 = vmatpush1.bf16.msra.mxu0 %v787_v12  ;;  %1990 = vmatpush1.bf16.msra.mxu1 %v789_v13  ;;  %v869_v45 = vunpack.c.l.s8.bf16 %v309_v43  ;;  %v884_v46 = vunpack.c.h.s8.bf16 %v308_v36  ;;  %v886_v47 = vunpack.c.h.s8.bf16 %v310_v37  ;;  %v883_v52 = vunpack.c.h.s8.bf16 %v307_v42  ;;  %v339_v62 = vld [vmem:[#allocation6 + $0x280] sm:$0xff]  ;;  %v341_v63 = vld [vmem:[#allocation6 + $0x290] sm:$0xff]  ;;  %v356_v8 = vld [vmem:[#allocation6 + $0x308] sm:$0xff] }
 0x139   :  { %1827 = vmatprep.subr.bf16.mxu0 %v804_v14  ;;  %1991 = vmatprep.subr.bf16.mxu1 %v806_v15  ;;  %v885_v53 = vunpack.c.h.s8.bf16 %v309_v43  ;;  %v900_v54 = vunpack.c.l.s8.bf16 %v324_v48  ;;  %v902_v55 = vunpack.c.l.s8.bf16 %v326_v49  ;;  %v899_v56 = vunpack.c.l.s8.bf16 %v323_v50  ;;  %v358_v9 = vld [vmem:[#allocation6 + $0x318] sm:$0xff]  ;;  %v355_v10 = vld [vmem:[#allocation6 + $0x300] sm:$0xff]  ;;  %v357_v11 = vld [vmem:[#allocation6 + $0x310] sm:$0xff] }
 0x13a   :  { %1855 = vmatprep.mubr.bf16.mxu0 %v13020_v35  ;;  %2019 = vmatprep.mubr.bf16.mxu1 %v13020_v35  ;;  %v901_v57 = vunpack.c.l.s8.bf16 %v325_v51  ;;  %v916_v58 = vunpack.c.h.s8.bf16 %v324_v48  ;;  %v918_v59 = vunpack.c.h.s8.bf16 %v326_v49  ;;  %v915_v0 = vunpack.c.h.s8.bf16 %v323_v50  ;;  %v371_v22 = vld [vmem:[#allocation6 + $0x380] sm:$0xff]  ;;  %v373_v23 = vld [vmem:[#allocation6 + $0x390] sm:$0xff]  ;;  %v13027_v42 = vld [vmem:[%s15269_s3 + $0x8] sm:$0xff] }
 0x13b   :  { %v917_v1 = vunpack.c.h.s8.bf16 %v325_v51  ;;  %v932_v2 = vunpack.c.l.s8.bf16 %v340_v60  ;;  %v934_v3 = vunpack.c.l.s8.bf16 %v342_v61  ;;  %v931_v4 = vunpack.c.l.s8.bf16 %v339_v62  ;;  %v387_v36 = vld [vmem:[#allocation6 + $0x400] sm:$0xff]  ;;  %v389_v37 = vld [vmem:[#allocation6 + $0x410] sm:$0xff]  ;;  %v404_v48 = vld [vmem:[#allocation6 + $0x488] sm:$0xff] }
 0x13c   :  { %1828 = vmatpush1.bf16.msra.mxu0 %v803_v18  ;;  %1992 = vmatpush1.bf16.msra.mxu1 %v805_v19  ;;  %v933_v5 = vunpack.c.l.s8.bf16 %v341_v63  ;;  %v948_v6 = vunpack.c.h.s8.bf16 %v340_v60  ;;  %v950_v7 = vunpack.c.h.s8.bf16 %v342_v61  ;;  %v947_v12 = vunpack.c.h.s8.bf16 %v339_v62  ;;  %v406_v49 = vld [vmem:[#allocation6 + $0x498] sm:$0xff]  ;;  %v405_v51 = vld [vmem:[#allocation6 + $0x490] sm:$0xff]  ;;  %v420_v60 = vld [vmem:[#allocation6 + $0x508] sm:$0xff] }
 0x13d   :  { %1829 = vmatprep.subr.bf16.mxu0 %v820_v20  ;;  %1993 = vmatprep.subr.bf16.mxu1 %v822_v21  ;;  %v949_v13 = vunpack.c.h.s8.bf16 %v341_v63  ;;  %v964_v14 = vunpack.c.l.s8.bf16 %v356_v8  ;;  %v966_v15 = vunpack.c.l.s8.bf16 %v358_v9  ;;  %v963_v16 = vunpack.c.l.s8.bf16 %v355_v10  ;;  %v372_v20 = vld [vmem:[#allocation6 + $0x388] sm:$0xff]  ;;  %v374_v21 = vld [vmem:[#allocation6 + $0x398] sm:$0xff] }
 0x13e   :  { %v965_v17 = vunpack.c.l.s8.bf16 %v357_v11  ;;  %v980_v18 = vunpack.c.h.s8.bf16 %v356_v8  ;;  %v982_v19 = vunpack.c.h.s8.bf16 %v358_v9  ;;  %v995_v28 = vunpack.c.l.s8.bf16 %v371_v22  ;;  %v422_v61 = vld [vmem:[#allocation6 + $0x518] sm:$0xff]  ;;  %v436_v8 = vld [vmem:[#allocation6 + $0x588] sm:$0xff] }
 0x13f   :  { %v997_v29 = vunpack.c.l.s8.bf16 %v373_v23  ;;  %v13031_v43 = vcombine.low %v13016_v30, %v13016_v30  ;;  %v13035_v50 = vcombine.high %v13027_v42, %v13027_v42  ;;  %v403_v30 = vld [vmem:[#allocation6 + $0x480] sm:$0xff]  ;;  %v1077_v63 = vunpack.c.h.s8.bf16 %v405_v51  ;;  %v438_v9 = vld [vmem:[#allocation6 + $0x598] sm:$0xff] }
 0x140   :  { %1830 = vmatpush1.bf16.msra.mxu0 %v819_v24  ;;  %1994 = vmatpush1.bf16.msra.mxu1 %v821_v25  ;;  %v979_v24 = vunpack.c.h.s8.bf16 %v355_v10  ;;  %v981_v25 = vunpack.c.h.s8.bf16 %v357_v11  ;;  %v1075_v62 = vunpack.c.h.s8.bf16 %v403_v30 }
 0x141   :  { %1831 = vmatprep.subr.bf16.mxu0 %v836_v26  ;;  %1995 = vmatprep.subr.bf16.mxu1 %v838_v27  ;;  %v996_v26 = vunpack.c.l.s8.bf16 %v372_v20  ;;  %v998_v27 = vunpack.c.l.s8.bf16 %v374_v21 }
 0x144   :  { %1832 = vmatpush1.bf16.msra.mxu0 %v835_v31  ;;  %1996 = vmatpush1.bf16.msra.mxu1 %v837_v32  ;;  %v1012_v31 = vunpack.c.h.s8.bf16 %v372_v20  ;;  %v1014_v32 = vunpack.c.h.s8.bf16 %v374_v21  ;;  %v452_v20 = vld [vmem:[#allocation6 + $0x608] sm:$0xff]  ;;  %v454_v21 = vld [vmem:[#allocation6 + $0x618] sm:$0xff] }
 0x145   :  { %1833 = vmatprep.subr.bf16.mxu0 %v852_v33  ;;  %1997 = vmatprep.subr.bf16.mxu1 %v854_v34  ;;  %v388_v33 = vld [vmem:[#allocation6 + $0x408] sm:$0xff]  ;;  %v390_v34 = vld [vmem:[#allocation6 + $0x418] sm:$0xff] }
 0x148   :  { %1834 = vmatpush1.bf16.msra.mxu0 %v851_v38  ;;  %1998 = vmatpush1.bf16.msra.mxu1 %v853_v39  ;;  %v1011_v38 = vunpack.c.h.s8.bf16 %v371_v22  ;;  %v1013_v39 = vunpack.c.h.s8.bf16 %v373_v23 }
 0x149   :  { %1835 = vmatprep.subr.bf16.mxu0 %v868_v40  ;;  %1999 = vmatprep.subr.bf16.mxu1 %v870_v41  ;;  %v1028_v40 = vunpack.c.l.s8.bf16 %v388_v33  ;;  %v1030_v41 = vunpack.c.l.s8.bf16 %v390_v34 }
 0x14c   :  { %1836 = vmatpush1.bf16.msra.mxu0 %v867_v44  ;;  %2000 = vmatpush1.bf16.msra.mxu1 %v869_v45  ;;  %v1027_v44 = vunpack.c.l.s8.bf16 %v387_v36  ;;  %v1029_v45 = vunpack.c.l.s8.bf16 %v389_v37 }
 0x14d   :  { %1837 = vmatprep.subr.bf16.mxu0 %v884_v46  ;;  %2001 = vmatprep.subr.bf16.mxu1 %v886_v47  ;;  %v1044_v46 = vunpack.c.h.s8.bf16 %v388_v33  ;;  %v1046_v47 = vunpack.c.h.s8.bf16 %v390_v34  ;;  %v468_v33 = vld [vmem:[#allocation6 + $0x688] sm:$0xff]  ;;  %v470_v34 = vld [vmem:[#allocation6 + $0x698] sm:$0xff] }
 0x150   :  { %1838 = vmatpush1.bf16.msra.mxu0 %v883_v52  ;;  %2002 = vmatpush1.bf16.msra.mxu1 %v885_v53  ;;  %v1043_v52 = vunpack.c.h.s8.bf16 %v387_v36  ;;  %v1045_v53 = vunpack.c.h.s8.bf16 %v389_v37 }
 0x151   :  { %1839 = vmatprep.subr.bf16.mxu0 %v900_v54  ;;  %2003 = vmatprep.subr.bf16.mxu1 %v902_v55  ;;  %v1060_v54 = vunpack.c.l.s8.bf16 %v404_v48  ;;  %v1062_v55 = vunpack.c.l.s8.bf16 %v406_v49 }
 0x154   :  { %1840 = vmatpush1.bf16.msra.mxu0 %v899_v56  ;;  %2004 = vmatpush1.bf16.msra.mxu1 %v901_v57  ;;  %v1059_v56 = vunpack.c.l.s8.bf16 %v403_v30  ;;  %v1061_v57 = vunpack.c.l.s8.bf16 %v405_v51 }
 0x155   :  { %1841 = vmatprep.subr.bf16.mxu0 %v916_v58  ;;  %2005 = vmatprep.subr.bf16.mxu1 %v918_v59  ;;  %v1076_v58 = vunpack.c.h.s8.bf16 %v404_v48  ;;  %v1078_v59 = vunpack.c.h.s8.bf16 %v406_v49  ;;  %v484_v48 = vld [vmem:[#allocation6 + $0x708] sm:$0xff]  ;;  %v486_v49 = vld [vmem:[#allocation6 + $0x718] sm:$0xff] }
 0x158   :  { %1842 = vmatpush1.bf16.msra.mxu0 %v915_v0  ;;  %2006 = vmatpush1.bf16.msra.mxu1 %v917_v1  ;;  %v1092_v0 = vunpack.c.l.s8.bf16 %v420_v60  ;;  %v1094_v1 = vunpack.c.l.s8.bf16 %v422_v61 }
 0x159   :  { %1843 = vmatprep.subr.bf16.mxu0 %v932_v2  ;;  %2007 = vmatprep.subr.bf16.mxu1 %v934_v3  ;;  %v419_v2 = vld [vmem:[#allocation6 + $0x500] sm:$0xff]  ;;  %v421_v3 = vld [vmem:[#allocation6 + $0x510] sm:$0xff] }
 0x15a   :  { %v1107_v10 = vunpack.c.h.s8.bf16 %v419_v2  ;;  %v1109_v11 = vunpack.c.h.s8.bf16 %v421_v3 }
 0x15c   :  { %1844 = vmatpush1.bf16.msra.mxu0 %v931_v4  ;;  %2008 = vmatpush1.bf16.msra.mxu1 %v933_v5  ;;  %v1091_v4 = vunpack.c.l.s8.bf16 %v419_v2  ;;  %v1093_v5 = vunpack.c.l.s8.bf16 %v421_v3  ;;  %v499_v2 = vld [vmem:[#allocation6 + $0x780] sm:$0xff]  ;;  %v501_v3 = vld [vmem:[#allocation6 + $0x790] sm:$0xff] }
 0x15d   :  { %1845 = vmatprep.subr.bf16.mxu0 %v948_v6  ;;  %2009 = vmatprep.subr.bf16.mxu1 %v950_v7  ;;  %v1108_v6 = vunpack.c.h.s8.bf16 %v420_v60  ;;  %v1110_v7 = vunpack.c.h.s8.bf16 %v422_v61  ;;  %v500_v60 = vld [vmem:[#allocation6 + $0x788] sm:$0xff]  ;;  %v502_v61 = vld [vmem:[#allocation6 + $0x798] sm:$0xff] }
 0x160   :  { %1846 = vmatpush1.bf16.msra.mxu0 %v947_v12  ;;  %2010 = vmatpush1.bf16.msra.mxu1 %v949_v13  ;;  %v1124_v12 = vunpack.c.l.s8.bf16 %v436_v8  ;;  %v1126_v13 = vunpack.c.l.s8.bf16 %v438_v9 }
 0x161   :  { %1847 = vmatprep.subr.bf16.mxu0 %v964_v14  ;;  %2011 = vmatprep.subr.bf16.mxu1 %v966_v15  ;;  %v435_v14 = vld [vmem:[#allocation6 + $0x580] sm:$0xff]  ;;  %v437_v15 = vld [vmem:[#allocation6 + $0x590] sm:$0xff] }
 0x162   :  { %v1139_v22 = vunpack.c.h.s8.bf16 %v435_v14  ;;  %v1141_v23 = vunpack.c.h.s8.bf16 %v437_v15 }
 0x164   :  { %1848 = vmatpush1.bf16.msra.mxu0 %v963_v16  ;;  %2012 = vmatpush1.bf16.msra.mxu1 %v965_v17  ;;  %v1123_v16 = vunpack.c.l.s8.bf16 %v435_v14  ;;  %v1125_v17 = vunpack.c.l.s8.bf16 %v437_v15  ;;  %v515_v14 = vld [vmem:[#allocation6 + $0x800] sm:$0xff]  ;;  %v517_v15 = vld [vmem:[#allocation6 + $0x810] sm:$0xff] }
 0x165   :  { %1849 = vmatprep.subr.bf16.mxu0 %v980_v18  ;;  %2013 = vmatprep.subr.bf16.mxu1 %v982_v19  ;;  %v1140_v18 = vunpack.c.h.s8.bf16 %v436_v8  ;;  %v1142_v19 = vunpack.c.h.s8.bf16 %v438_v9  ;;  %v516_v8 = vld [vmem:[#allocation6 + $0x808] sm:$0xff]  ;;  %v518_v9 = vld [vmem:[#allocation6 + $0x818] sm:$0xff] }
 0x168   :  { %1850 = vmatpush1.bf16.msra.mxu0 %v979_v24  ;;  %2014 = vmatpush1.bf16.msra.mxu1 %v981_v25  ;;  %v1156_v24 = vunpack.c.l.s8.bf16 %v452_v20  ;;  %v1158_v25 = vunpack.c.l.s8.bf16 %v454_v21 }
 0x169   :  { %1851 = vmatprep.subr.bf16.mxu0 %v996_v26  ;;  %2015 = vmatprep.subr.bf16.mxu1 %v998_v27  ;;  %v451_v26 = vld [vmem:[#allocation6 + $0x600] sm:$0xff]  ;;  %v453_v27 = vld [vmem:[#allocation6 + $0x610] sm:$0xff] }
 0x16a   :  { %v1171_v36 = vunpack.c.h.s8.bf16 %v451_v26  ;;  %v1173_v37 = vunpack.c.h.s8.bf16 %v453_v27 }
 0x16c   :  { %1852 = vmatpush1.bf16.msra.mxu0 %v995_v28  ;;  %2016 = vmatpush1.bf16.msra.mxu1 %v997_v29  ;;  %v1155_v28 = vunpack.c.l.s8.bf16 %v451_v26  ;;  %v1157_v29 = vunpack.c.l.s8.bf16 %v453_v27 }
 0x16d   :  { %1853 = vmatprep.subr.bf16.mxu0 %v1012_v31  ;;  %2017 = vmatprep.subr.bf16.mxu1 %v1014_v32  ;;  %v1172_v31 = vunpack.c.h.s8.bf16 %v452_v20  ;;  %v1174_v32 = vunpack.c.h.s8.bf16 %v454_v21  ;;  %v1300_v20 = vunpack.c.h.s8.bf16 %v516_v8  ;;  %v1302_v21 = vunpack.c.h.s8.bf16 %v518_v9 }
 0x170   :  { %1854 = vmatpush1.bf16.msra.mxu0 %v1011_v38  ;;  %2018 = vmatpush1.bf16.msra.mxu1 %v1013_v39  ;;  %v1188_v38 = vunpack.c.l.s8.bf16 %v468_v33  ;;  %v1190_v39 = vunpack.c.l.s8.bf16 %v470_v34 }
 0x171   :  { %1864 = vmatprep.subr.bf16.mxu0 %v1028_v40  ;;  %2028 = vmatprep.subr.bf16.mxu1 %v1030_v41  ;;  %v467_v40 = vld [vmem:[#allocation6 + $0x680] sm:$0xff]  ;;  %v469_v41 = vld [vmem:[#allocation6 + $0x690] sm:$0xff] }
 0x172   :  { %v1203_v30 = vunpack.c.h.s8.bf16 %v467_v40  ;;  %v1205_v51 = vunpack.c.h.s8.bf16 %v469_v41 }
 0x173   :  { %1856 = vmatmul.mubr.bf16.vlgmr.msra.gmra.mrb[0].mxu0 %v13031_v43  ;;  %2020 = vmatmul.mubr.bf16.vlgmr.msra.gmra.mrb[0].mxu1 %v13031_v43 }
 0x174   :  { %1865 = vmatpush1.bf16.msra.mxu0 %v1027_v44  ;;  %2029 = vmatpush1.bf16.msra.mxu1 %v1029_v45  ;;  %v1187_v44 = vunpack.c.l.s8.bf16 %v467_v40  ;;  %v1189_v45 = vunpack.c.l.s8.bf16 %v469_v41 }
 0x175   :  { %1866 = vmatprep.subr.bf16.mxu0 %v1044_v46  ;;  %2030 = vmatprep.subr.bf16.mxu1 %v1046_v47  ;;  %v1204_v46 = vunpack.c.h.s8.bf16 %v468_v33  ;;  %v1206_v47 = vunpack.c.h.s8.bf16 %v470_v34 }
 0x176   :  { %1896 = vmatprep.mubr.bf16.mxu0 %v13035_v50  ;;  %2060 = vmatprep.mubr.bf16.mxu1 %v13035_v50 }
 0x178   :  { %1867 = vmatpush1.bf16.msra.mxu0 %v1043_v52  ;;  %2031 = vmatpush1.bf16.msra.mxu1 %v1045_v53  ;;  %v1220_v52 = vunpack.c.l.s8.bf16 %v484_v48  ;;  %v1222_v53 = vunpack.c.l.s8.bf16 %v486_v49 }
 0x179   :  { %1868 = vmatprep.subr.bf16.mxu0 %v1060_v54  ;;  %2032 = vmatprep.subr.bf16.mxu1 %v1062_v55  ;;  %v483_v54 = vld [vmem:[#allocation6 + $0x700] sm:$0xff]  ;;  %v485_v55 = vld [vmem:[#allocation6 + $0x710] sm:$0xff] }
 0x17c   :  { %1869 = vmatpush1.bf16.msra.mxu0 %v1059_v56  ;;  %2033 = vmatpush1.bf16.msra.mxu1 %v1061_v57  ;;  %v1219_v56 = vunpack.c.l.s8.bf16 %v483_v54  ;;  %v1221_v57 = vunpack.c.l.s8.bf16 %v485_v55 }
 0x17d   :  { %1870 = vmatprep.subr.bf16.mxu0 %v1076_v58  ;;  %2034 = vmatprep.subr.bf16.mxu1 %v1078_v59  ;;  %v1236_v58 = vunpack.c.h.s8.bf16 %v484_v48  ;;  %v1238_v59 = vunpack.c.h.s8.bf16 %v486_v49 }
 0x180   :  { %1871 = vmatpush1.bf16.msra.mxu0 %v1075_v62  ;;  %2035 = vmatpush1.bf16.msra.mxu1 %v1077_v63  ;;  %v1235_v62 = vunpack.c.h.s8.bf16 %v483_v54  ;;  %v1237_v63 = vunpack.c.h.s8.bf16 %v485_v55 }
 0x181   :  { %1872 = vmatprep.subr.bf16.mxu0 %v1092_v0  ;;  %2036 = vmatprep.subr.bf16.mxu1 %v1094_v1  ;;  %v1252_v0 = vunpack.c.l.s8.bf16 %v500_v60  ;;  %v1254_v1 = vunpack.c.l.s8.bf16 %v502_v61 }
 0x184   :  { %1873 = vmatpush1.bf16.msra.mxu0 %v1091_v4  ;;  %2037 = vmatpush1.bf16.msra.mxu1 %v1093_v5  ;;  %v1251_v4 = vunpack.c.l.s8.bf16 %v499_v2  ;;  %v1253_v5 = vunpack.c.l.s8.bf16 %v501_v3 }
 0x185   :  { %1874 = vmatprep.subr.bf16.mxu0 %v1108_v6  ;;  %2038 = vmatprep.subr.bf16.mxu1 %v1110_v7  ;;  %v1268_v6 = vunpack.c.h.s8.bf16 %v500_v60  ;;  %v1270_v7 = vunpack.c.h.s8.bf16 %v502_v61 }
 0x188   :  { %1875 = vmatpush1.bf16.msra.mxu0 %v1107_v10  ;;  %2039 = vmatpush1.bf16.msra.mxu1 %v1109_v11  ;;  %v1267_v10 = vunpack.c.h.s8.bf16 %v499_v2  ;;  %v1269_v11 = vunpack.c.h.s8.bf16 %v501_v3 }
 0x189   :  { %1876 = vmatprep.subr.bf16.mxu0 %v1124_v12  ;;  %2040 = vmatprep.subr.bf16.mxu1 %v1126_v13  ;;  %v1284_v12 = vunpack.c.l.s8.bf16 %v516_v8  ;;  %v1286_v13 = vunpack.c.l.s8.bf16 %v518_v9 }
 0x18c   :  { %1877 = vmatpush1.bf16.msra.mxu0 %v1123_v16  ;;  %2041 = vmatpush1.bf16.msra.mxu1 %v1125_v17  ;;  %v13043_v16 = vcombine.low %v13027_v42, %v13027_v42  ;;  %v13048_v17 = vld [vmem:[%s15269_s3 + $0x10] sm:$0xff]  ;;  %v1299_v42 = vunpack.c.h.s8.bf16 %v515_v14 }
 0x18d   :  { %1878 = vmatprep.subr.bf16.mxu0 %v1140_v18  ;;  %2042 = vmatprep.subr.bf16.mxu1 %v1142_v19  ;;  %v1283_v18 = vunpack.c.l.s8.bf16 %v515_v14  ;;  %v1285_v19 = vunpack.c.l.s8.bf16 %v517_v15 }
 0x190   :  { %1879 = vmatpush1.bf16.msra.mxu0 %v1139_v22  ;;  %2043 = vmatpush1.bf16.msra.mxu1 %v1141_v23  ;;  %v532_v22 = vld [vmem:[#allocation6 + $0x888] sm:$0xff]  ;;  %v534_v23 = vld [vmem:[#allocation6 + $0x898] sm:$0xff] }
 0x191   :  { %1880 = vmatprep.subr.bf16.mxu0 %v1156_v24  ;;  %2044 = vmatprep.subr.bf16.mxu1 %v1158_v25  ;;  %v13052_v24 = vcombine.high %v13048_v17, %v13048_v17  ;;  %v1301_v25 = vunpack.c.h.s8.bf16 %v517_v15  ;;  %v1316_v26 = vunpack.c.l.s8.bf16 %v532_v22  ;;  %v1318_v27 = vunpack.c.l.s8.bf16 %v534_v23 }
 0x192   :  { %v1332_v33 = vunpack.c.h.s8.bf16 %v532_v22  ;;  %v1334_v34 = vunpack.c.h.s8.bf16 %v534_v23 }
 0x194   :  { %1881 = vmatpush1.bf16.msra.mxu0 %v1155_v28  ;;  %2045 = vmatpush1.bf16.msra.mxu1 %v1157_v29  ;;  %v531_v28 = vld [vmem:[#allocation6 + $0x880] sm:$0xff]  ;;  %v533_v29 = vld [vmem:[#allocation6 + $0x890] sm:$0xff] }
 0x195   :  { %1882 = vmatprep.subr.bf16.mxu0 %v1172_v31  ;;  %2046 = vmatprep.subr.bf16.mxu1 %v1174_v32  ;;  %v1315_v31 = vunpack.c.l.s8.bf16 %v531_v28  ;;  %v1317_v32 = vunpack.c.l.s8.bf16 %v533_v29 }
 0x198   :  { %1883 = vmatpush1.bf16.msra.mxu0 %v1171_v36  ;;  %2047 = vmatpush1.bf16.msra.mxu1 %v1173_v37  ;;  %v548_v36 = vld [vmem:[#allocation6 + $0x908] sm:$0xff]  ;;  %v550_v37 = vld [vmem:[#allocation6 + $0x918] sm:$0xff] }
 0x199   :  { %1884 = vmatprep.subr.bf16.mxu0 %v1188_v38  ;;  %2048 = vmatprep.subr.bf16.mxu1 %v1190_v39  ;;  %v1331_v38 = vunpack.c.h.s8.bf16 %v531_v28  ;;  %v1333_v39 = vunpack.c.h.s8.bf16 %v533_v29  ;;  %v1348_v40 = vunpack.c.l.s8.bf16 %v548_v36  ;;  %v1350_v41 = vunpack.c.l.s8.bf16 %v550_v37 }
 0x19a   :  { %v1364_v48 = vunpack.c.h.s8.bf16 %v548_v36  ;;  %v1366_v49 = vunpack.c.h.s8.bf16 %v550_v37 }
 0x19c   :  { %1885 = vmatpush1.bf16.msra.mxu0 %v1187_v44  ;;  %2049 = vmatpush1.bf16.msra.mxu1 %v1189_v45  ;;  %v547_v44 = vld [vmem:[#allocation6 + $0x900] sm:$0xff]  ;;  %v549_v45 = vld [vmem:[#allocation6 + $0x910] sm:$0xff] }
 0x19d   :  { %1886 = vmatprep.subr.bf16.mxu0 %v1204_v46  ;;  %2050 = vmatprep.subr.bf16.mxu1 %v1206_v47  ;;  %v1347_v46 = vunpack.c.l.s8.bf16 %v547_v44  ;;  %v1349_v47 = vunpack.c.l.s8.bf16 %v549_v45 }
 0x1a0   :  { %1887 = vmatpush1.bf16.msra.mxu0 %v1203_v30  ;;  %2051 = vmatpush1.bf16.msra.mxu1 %v1205_v51  ;;  %v564_v30 = vld [vmem:[#allocation6 + $0x988] sm:$0xff]  ;;  %v566_v51 = vld [vmem:[#allocation6 + $0x998] sm:$0xff] }
 0x1a1   :  { %1888 = vmatprep.subr.bf16.mxu0 %v1220_v52  ;;  %2052 = vmatprep.subr.bf16.mxu1 %v1222_v53  ;;  %v1363_v52 = vunpack.c.h.s8.bf16 %v547_v44  ;;  %v1365_v53 = vunpack.c.h.s8.bf16 %v549_v45  ;;  %v1380_v54 = vunpack.c.l.s8.bf16 %v564_v30  ;;  %v1382_v55 = vunpack.c.l.s8.bf16 %v566_v51 }
 0x1a2   :  { %v1396_v60 = vunpack.c.h.s8.bf16 %v564_v30  ;;  %v1398_v61 = vunpack.c.h.s8.bf16 %v566_v51 }
 0x1a4   :  { %1889 = vmatpush1.bf16.msra.mxu0 %v1219_v56  ;;  %2053 = vmatpush1.bf16.msra.mxu1 %v1221_v57  ;;  %v563_v56 = vld [vmem:[#allocation6 + $0x980] sm:$0xff]  ;;  %v565_v57 = vld [vmem:[#allocation6 + $0x990] sm:$0xff] }
 0x1a5   :  { %1890 = vmatprep.subr.bf16.mxu0 %v1236_v58  ;;  %2054 = vmatprep.subr.bf16.mxu1 %v1238_v59  ;;  %v1379_v58 = vunpack.c.l.s8.bf16 %v563_v56  ;;  %v1381_v59 = vunpack.c.l.s8.bf16 %v565_v57 }
 0x1a8   :  { %1891 = vmatpush1.bf16.msra.mxu0 %v1235_v62  ;;  %2055 = vmatpush1.bf16.msra.mxu1 %v1237_v63  ;;  %v580_v62 = vld [vmem:[#allocation6 + $0xa08] sm:$0xff]  ;;  %v582_v63 = vld [vmem:[#allocation6 + $0xa18] sm:$0xff] }
 0x1a9   :  { %1892 = vmatprep.subr.bf16.mxu0 %v1252_v0  ;;  %2056 = vmatprep.subr.bf16.mxu1 %v1254_v1  ;;  %v1395_v0 = vunpack.c.h.s8.bf16 %v563_v56  ;;  %v1397_v1 = vunpack.c.h.s8.bf16 %v565_v57  ;;  %v1412_v2 = vunpack.c.l.s8.bf16 %v580_v62  ;;  %v1414_v3 = vunpack.c.l.s8.bf16 %v582_v63 }
 0x1aa   :  { %v1428_v8 = vunpack.c.h.s8.bf16 %v580_v62  ;;  %v1430_v9 = vunpack.c.h.s8.bf16 %v582_v63 }
 0x1ac   :  { %1893 = vmatpush1.bf16.msra.mxu0 %v1251_v4  ;;  %2057 = vmatpush1.bf16.msra.mxu1 %v1253_v5  ;;  %v579_v4 = vld [vmem:[#allocation6 + $0xa00] sm:$0xff]  ;;  %v581_v5 = vld [vmem:[#allocation6 + $0xa10] sm:$0xff] }
 0x1ad   :  { %1894 = vmatprep.subr.bf16.mxu0 %v1268_v6  ;;  %2058 = vmatprep.subr.bf16.mxu1 %v1270_v7  ;;  %v1411_v6 = vunpack.c.l.s8.bf16 %v579_v4  ;;  %v1413_v7 = vunpack.c.l.s8.bf16 %v581_v5 }
 0x1b0   :  { %1895 = vmatpush1.bf16.msra.mxu0 %v1267_v10  ;;  %2059 = vmatpush1.bf16.msra.mxu1 %v1269_v11  ;;  %v596_v10 = vld [vmem:[#allocation6 + $0xa88] sm:$0xff]  ;;  %v598_v11 = vld [vmem:[#allocation6 + $0xa98] sm:$0xff] }
 0x1b1   :  { %1905 = vmatprep.subr.bf16.mxu0 %v1284_v12  ;;  %2069 = vmatprep.subr.bf16.mxu1 %v1286_v13  ;;  %v1427_v12 = vunpack.c.h.s8.bf16 %v579_v4  ;;  %v1429_v13 = vunpack.c.h.s8.bf16 %v581_v5  ;;  %v1444_v14 = vunpack.c.l.s8.bf16 %v596_v10  ;;  %v1446_v15 = vunpack.c.l.s8.bf16 %v598_v11 }
 0x1b2   :  { %v1460_v22 = vunpack.c.h.s8.bf16 %v596_v10  ;;  %v1462_v23 = vunpack.c.h.s8.bf16 %v598_v11 }
 0x1b3   :  { %1897 = vmatmul.mubr.bf16.vlgmr.msra.gmra.mrb[0].mxu0 %v13043_v16  ;;  %2061 = vmatmul.mubr.bf16.vlgmr.msra.gmra.mrb[0].mxu1 %v13043_v16 }
 0x1b4   :  { %1906 = vmatpush1.bf16.msra.mxu0 %v1283_v18  ;;  %2070 = vmatpush1.bf16.msra.mxu1 %v1285_v19  ;;  %v595_v18 = vld [vmem:[#allocation6 + $0xa80] sm:$0xff]  ;;  %v597_v19 = vld [vmem:[#allocation6 + $0xa90] sm:$0xff] }
 0x1b5   :  { %1907 = vmatprep.subr.bf16.mxu0 %v1300_v20  ;;  %2071 = vmatprep.subr.bf16.mxu1 %v1302_v21  ;;  %v1443_v20 = vunpack.c.l.s8.bf16 %v595_v18  ;;  %v1445_v21 = vunpack.c.l.s8.bf16 %v597_v19 }
 0x1b6   :  { %1937 = vmatprep.mubr.bf16.mxu0 %v13052_v24  ;;  %2101 = vmatprep.mubr.bf16.mxu1 %v13052_v24 }
 0x1b8   :  { %1908 = vmatpush1.bf16.msra.mxu0 %v1299_v42  ;;  %2072 = vmatpush1.bf16.msra.mxu1 %v1301_v25  ;;  %v612_v42 = vld [vmem:[#allocation6 + $0xb08] sm:$0xff]  ;;  %v614_v25 = vld [vmem:[#allocation6 + $0xb18] sm:$0xff] }
 0x1b9   :  { %1909 = vmatprep.subr.bf16.mxu0 %v1316_v26  ;;  %2073 = vmatprep.subr.bf16.mxu1 %v1318_v27  ;;  %v1459_v26 = vunpack.c.h.s8.bf16 %v595_v18  ;;  %v1461_v27 = vunpack.c.h.s8.bf16 %v597_v19  ;;  %v1476_v28 = vunpack.c.l.s8.bf16 %v612_v42  ;;  %v1478_v29 = vunpack.c.l.s8.bf16 %v614_v25 }
 0x1ba   :  { %v1492_v36 = vunpack.c.h.s8.bf16 %v612_v42  ;;  %v1494_v37 = vunpack.c.h.s8.bf16 %v614_v25 }
 0x1bc   :  { %1910 = vmatpush1.bf16.msra.mxu0 %v1315_v31  ;;  %2074 = vmatpush1.bf16.msra.mxu1 %v1317_v32  ;;  %v611_v31 = vld [vmem:[#allocation6 + $0xb00] sm:$0xff]  ;;  %v613_v32 = vld [vmem:[#allocation6 + $0xb10] sm:$0xff] }
 0x1bd   :  { %1911 = vmatprep.subr.bf16.mxu0 %v1332_v33  ;;  %2075 = vmatprep.subr.bf16.mxu1 %v1334_v34  ;;  %v1475_v33 = vunpack.c.l.s8.bf16 %v611_v31  ;;  %v1477_v34 = vunpack.c.l.s8.bf16 %v613_v32 }
 0x1c0   :  { %1912 = vmatpush1.bf16.msra.mxu0 %v1331_v38  ;;  %2076 = vmatpush1.bf16.msra.mxu1 %v1333_v39  ;;  %v628_v38 = vld [vmem:[#allocation6 + $0xb88] sm:$0xff]  ;;  %v630_v39 = vld [vmem:[#allocation6 + $0xb98] sm:$0xff] }
 0x1c1   :  { %1913 = vmatprep.subr.bf16.mxu0 %v1348_v40  ;;  %2077 = vmatprep.subr.bf16.mxu1 %v1350_v41  ;;  %v1491_v40 = vunpack.c.h.s8.bf16 %v611_v31  ;;  %v1493_v41 = vunpack.c.h.s8.bf16 %v613_v32  ;;  %v1508_v44 = vunpack.c.l.s8.bf16 %v628_v38  ;;  %v1510_v45 = vunpack.c.l.s8.bf16 %v630_v39 }
 0x1c2   :  { %v1524_v30 = vunpack.c.h.s8.bf16 %v628_v38  ;;  %v1526_v51 = vunpack.c.h.s8.bf16 %v630_v39 }
 0x1c4   :  { %1914 = vmatpush1.bf16.msra.mxu0 %v1347_v46  ;;  %2078 = vmatpush1.bf16.msra.mxu1 %v1349_v47  ;;  %v627_v46 = vld [vmem:[#allocation6 + $0xb80] sm:$0xff]  ;;  %v629_v47 = vld [vmem:[#allocation6 + $0xb90] sm:$0xff] }
 0x1c5   :  { %1915 = vmatprep.subr.bf16.mxu0 %v1364_v48  ;;  %2079 = vmatprep.subr.bf16.mxu1 %v1366_v49  ;;  %v1507_v48 = vunpack.c.l.s8.bf16 %v627_v46  ;;  %v1509_v49 = vunpack.c.l.s8.bf16 %v629_v47 }
 0x1c8   :  { %1916 = vmatpush1.bf16.msra.mxu0 %v1363_v52  ;;  %2080 = vmatpush1.bf16.msra.mxu1 %v1365_v53  ;;  %v644_v52 = vld [vmem:[#allocation6 + $0xc08] sm:$0xff]  ;;  %v646_v53 = vld [vmem:[#allocation6 + $0xc18] sm:$0xff] }
 0x1c9   :  { %1917 = vmatprep.subr.bf16.mxu0 %v1380_v54  ;;  %2081 = vmatprep.subr.bf16.mxu1 %v1382_v55  ;;  %v1523_v54 = vunpack.c.h.s8.bf16 %v627_v46  ;;  %v1525_v55 = vunpack.c.h.s8.bf16 %v629_v47  ;;  %v1540_v56 = vunpack.c.l.s8.bf16 %v644_v52  ;;  %v1542_v57 = vunpack.c.l.s8.bf16 %v646_v53 }
 0x1cc   :  { %1918 = vmatpush1.bf16.msra.mxu0 %v1379_v58  ;;  %2082 = vmatpush1.bf16.msra.mxu1 %v1381_v59  ;;  %v643_v58 = vld [vmem:[#allocation6 + $0xc00] sm:$0xff]  ;;  %v645_v59 = vld [vmem:[#allocation6 + $0xc10] sm:$0xff] }
 0x1cd   :  { %1919 = vmatprep.subr.bf16.mxu0 %v1396_v60  ;;  %2083 = vmatprep.subr.bf16.mxu1 %v1398_v61  ;;  %v13060_v60 = vcombine.low %v13048_v17, %v13048_v17  ;;  %v13065_v61 = vld [vmem:[%s15269_s3 + $0x18] sm:$0xff]  ;;  %v1539_v62 = vunpack.c.l.s8.bf16 %v643_v58  ;;  %v1541_v63 = vunpack.c.l.s8.bf16 %v645_v59  ;;  %v1555_v17 = vunpack.c.h.s8.bf16 %v643_v58 }
 0x1ce   :  { %v13069_v4 = vcombine.high %v13065_v61, %v13065_v61  ;;  %v1557_v5 = vunpack.c.h.s8.bf16 %v645_v59 }
 0x1d0   :  { %1920 = vmatpush1.bf16.msra.mxu0 %v1395_v0  ;;  %2084 = vmatpush1.bf16.msra.mxu1 %v1397_v1  ;;  %v1556_v0 = vunpack.c.h.s8.bf16 %v644_v52  ;;  %v1558_v1 = vunpack.c.h.s8.bf16 %v646_v53 }
 0x1d1   :  { %1921 = vmatprep.subr.bf16.mxu0 %v1412_v2  ;;  %2085 = vmatprep.subr.bf16.mxu1 %v1414_v3  ;;  %v660_v2 = vld [vmem:[#allocation6 + $0xc88] sm:$0xff]  ;;  %v662_v3 = vld [vmem:[#allocation6 + $0xc98] sm:$0xff] }
 0x1d4   :  { %1922 = vmatpush1.bf16.msra.mxu0 %v1411_v6  ;;  %2086 = vmatpush1.bf16.msra.mxu1 %v1413_v7  ;;  %v1572_v6 = vunpack.c.l.s8.bf16 %v660_v2  ;;  %v1574_v7 = vunpack.c.l.s8.bf16 %v662_v3 }
 0x1d5   :  { %1923 = vmatprep.subr.bf16.mxu0 %v1428_v8  ;;  %2087 = vmatprep.subr.bf16.mxu1 %v1430_v9  ;;  %v659_v8 = vld [vmem:[#allocation6 + $0xc80] sm:$0xff]  ;;  %v661_v9 = vld [vmem:[#allocation6 + $0xc90] sm:$0xff] }
 0x1d6   :  { %v1571_v10 = vunpack.c.l.s8.bf16 %v659_v8  ;;  %v1573_v11 = vunpack.c.l.s8.bf16 %v661_v9  ;;  %v1587_v18 = vunpack.c.h.s8.bf16 %v659_v8  ;;  %v1589_v19 = vunpack.c.h.s8.bf16 %v661_v9 }
 0x1d8   :  { %1924 = vmatpush1.bf16.msra.mxu0 %v1427_v12  ;;  %2088 = vmatpush1.bf16.msra.mxu1 %v1429_v13  ;;  %v1588_v12 = vunpack.c.h.s8.bf16 %v660_v2  ;;  %v1590_v13 = vunpack.c.h.s8.bf16 %v662_v3 }
 0x1d9   :  { %1925 = vmatprep.subr.bf16.mxu0 %v1444_v14  ;;  %2089 = vmatprep.subr.bf16.mxu1 %v1446_v15  ;;  %v676_v14 = vld [vmem:[#allocation6 + $0xd08] sm:$0xff]  ;;  %v678_v15 = vld [vmem:[#allocation6 + $0xd18] sm:$0xff] }
 0x1dc   :  { %1926 = vmatpush1.bf16.msra.mxu0 %v1443_v20  ;;  %2090 = vmatpush1.bf16.msra.mxu1 %v1445_v21  ;;  %v1604_v20 = vunpack.c.l.s8.bf16 %v676_v14  ;;  %v1606_v21 = vunpack.c.l.s8.bf16 %v678_v15 }
 0x1dd   :  { %1927 = vmatprep.subr.bf16.mxu0 %v1460_v22  ;;  %2091 = vmatprep.subr.bf16.mxu1 %v1462_v23  ;;  %v675_v22 = vld [vmem:[#allocation6 + $0xd00] sm:$0xff]  ;;  %v677_v23 = vld [vmem:[#allocation6 + $0xd10] sm:$0xff] }
 0x1de   :  { %v1603_v42 = vunpack.c.l.s8.bf16 %v675_v22  ;;  %v1605_v25 = vunpack.c.l.s8.bf16 %v677_v23  ;;  %v1619_v31 = vunpack.c.h.s8.bf16 %v675_v22  ;;  %v1621_v32 = vunpack.c.h.s8.bf16 %v677_v23 }
 0x1e0   :  { %1928 = vmatpush1.bf16.msra.mxu0 %v1459_v26  ;;  %2092 = vmatpush1.bf16.msra.mxu1 %v1461_v27  ;;  %v1620_v26 = vunpack.c.h.s8.bf16 %v676_v14  ;;  %v1622_v27 = vunpack.c.h.s8.bf16 %v678_v15 }
 0x1e1   :  { %1929 = vmatprep.subr.bf16.mxu0 %v1476_v28  ;;  %2093 = vmatprep.subr.bf16.mxu1 %v1478_v29  ;;  %v692_v28 = vld [vmem:[#allocation6 + $0xd88] sm:$0xff]  ;;  %v694_v29 = vld [vmem:[#allocation6 + $0xd98] sm:$0xff] }
 0x1e4   :  { %1930 = vmatpush1.bf16.msra.mxu0 %v1475_v33  ;;  %2094 = vmatpush1.bf16.msra.mxu1 %v1477_v34  ;;  %v1636_v33 = vunpack.c.l.s8.bf16 %v692_v28  ;;  %v1638_v34 = vunpack.c.l.s8.bf16 %v694_v29 }
 0x1e5   :  { %1931 = vmatprep.subr.bf16.mxu0 %v1492_v36  ;;  %2095 = vmatprep.subr.bf16.mxu1 %v1494_v37  ;;  %v691_v36 = vld [vmem:[#allocation6 + $0xd80] sm:$0xff]  ;;  %v693_v37 = vld [vmem:[#allocation6 + $0xd90] sm:$0xff] }
 0x1e6   :  { %v1635_v38 = vunpack.c.l.s8.bf16 %v691_v36  ;;  %v1637_v39 = vunpack.c.l.s8.bf16 %v693_v37  ;;  %v1651_v46 = vunpack.c.h.s8.bf16 %v691_v36  ;;  %v1653_v47 = vunpack.c.h.s8.bf16 %v693_v37 }
 0x1e8   :  { %1932 = vmatpush1.bf16.msra.mxu0 %v1491_v40  ;;  %2096 = vmatpush1.bf16.msra.mxu1 %v1493_v41  ;;  %v1652_v40 = vunpack.c.h.s8.bf16 %v692_v28  ;;  %v1654_v41 = vunpack.c.h.s8.bf16 %v694_v29 }
 0x1e9   :  { %1933 = vmatprep.subr.bf16.mxu0 %v1508_v44  ;;  %2097 = vmatprep.subr.bf16.mxu1 %v1510_v45  ;;  %v708_v44 = vld [vmem:[#allocation6 + $0xe08] sm:$0xff]  ;;  %v710_v45 = vld [vmem:[#allocation6 + $0xe18] sm:$0xff] }
 0x1ec   :  { %1934 = vmatpush1.bf16.msra.mxu0 %v1507_v48  ;;  %2098 = vmatpush1.bf16.msra.mxu1 %v1509_v49  ;;  %v1668_v48 = vunpack.c.l.s8.bf16 %v708_v44  ;;  %v1670_v49 = vunpack.c.l.s8.bf16 %v710_v45 }
 0x1ed   :  { %1935 = vmatprep.subr.bf16.mxu0 %v1524_v30  ;;  %2099 = vmatprep.subr.bf16.mxu1 %v1526_v51  ;;  %v707_v30 = vld [vmem:[#allocation6 + $0xe00] sm:$0xff]  ;;  %v709_v51 = vld [vmem:[#allocation6 + $0xe10] sm:$0xff] }
 0x1ee   :  { %v1667_v52 = vunpack.c.l.s8.bf16 %v707_v30  ;;  %v1669_v53 = vunpack.c.l.s8.bf16 %v709_v51  ;;  %v1683_v58 = vunpack.c.h.s8.bf16 %v707_v30  ;;  %v1685_v59 = vunpack.c.h.s8.bf16 %v709_v51  ;;  %v282_v30 = vld [vmem:[#allocation6 + $0xb8] sm:$0xff] }
 0x1f0   :  { %1936 = vmatpush1.bf16.msra.mxu0 %v1523_v54  ;;  %2100 = vmatpush1.bf16.msra.mxu1 %v1525_v55  ;;  %v1684_v54 = vunpack.c.h.s8.bf16 %v708_v44  ;;  %v1686_v55 = vunpack.c.h.s8.bf16 %v710_v45  ;;  %v13077_v44 = vcombine.low %v13065_v61, %v13065_v61 }
 0x1f1   :  { %1946 = vmatprep.subr.bf16.mxu0 %v1540_v56  ;;  %2110 = vmatprep.subr.bf16.mxu1 %v1542_v57  ;;  %v724_v56 = vld [vmem:[#allocation6 + $0xe88] sm:$0xff]  ;;  %v726_v57 = vld [vmem:[#allocation6 + $0xe98] sm:$0xff] }
 0x1f3   :  { %1938 = vmatmul.mubr.bf16.vlgmr.msra.gmra.mrb[0].mxu0 %v13060_v60  ;;  %2102 = vmatmul.mubr.bf16.vlgmr.msra.gmra.mrb[0].mxu1 %v13060_v60 }
 0x1f4   :  { %1947 = vmatpush1.bf16.msra.mxu0 %v1539_v62  ;;  %2111 = vmatpush1.bf16.msra.mxu1 %v1541_v63  ;;  %v1700_v62 = vunpack.c.l.s8.bf16 %v724_v56  ;;  %v1702_v63 = vunpack.c.l.s8.bf16 %v726_v57 }
 0x1f5   :  { %1948 = vmatprep.subr.bf16.mxu0 %v1556_v0  ;;  %2112 = vmatprep.subr.bf16.mxu1 %v1558_v1  ;;  %v723_v0 = vld [vmem:[#allocation6 + $0xe80] sm:$0xff]  ;;  %v725_v1 = vld [vmem:[#allocation6 + $0xe90] sm:$0xff] }
 0x1f6   :  { %1978 = vmatprep.mubr.bf16.mxu0 %v13069_v4  ;;  %2142 = vmatprep.mubr.bf16.mxu1 %v13069_v4  ;;  %v1699_v2 = vunpack.c.l.s8.bf16 %v723_v0  ;;  %v1701_v3 = vunpack.c.l.s8.bf16 %v725_v1  ;;  %v1715_v8 = vunpack.c.h.s8.bf16 %v723_v0  ;;  %v1717_v9 = vunpack.c.h.s8.bf16 %v725_v1 }
 0x1f8   :  { %1949 = vmatpush1.bf16.msra.mxu0 %v1555_v17  ;;  %2113 = vmatpush1.bf16.msra.mxu1 %v1557_v5  ;;  %v1716_v17 = vunpack.c.h.s8.bf16 %v724_v56  ;;  %v1718_v5 = vunpack.c.h.s8.bf16 %v726_v57 }
 0x1f9   :  { %1950 = vmatprep.subr.bf16.mxu0 %v1572_v6  ;;  %2114 = vmatprep.subr.bf16.mxu1 %v1574_v7  ;;  %v740_v6 = vld [vmem:[#allocation6 + $0xf08] sm:$0xff]  ;;  %v742_v7 = vld [vmem:[#allocation6 + $0xf18] sm:$0xff] }
 0x1fc   :  { %1951 = vmatpush1.bf16.msra.mxu0 %v1571_v10  ;;  %2115 = vmatpush1.bf16.msra.mxu1 %v1573_v11  ;;  %v1732_v10 = vunpack.c.l.s8.bf16 %v740_v6  ;;  %v1734_v11 = vunpack.c.l.s8.bf16 %v742_v7 }
 0x1fd   :  { %1952 = vmatprep.subr.bf16.mxu0 %v1588_v12  ;;  %2116 = vmatprep.subr.bf16.mxu1 %v1590_v13  ;;  %v739_v12 = vld [vmem:[#allocation6 + $0xf00] sm:$0xff]  ;;  %v741_v13 = vld [vmem:[#allocation6 + $0xf10] sm:$0xff] }
 0x1fe   :  { %v1731_v14 = vunpack.c.l.s8.bf16 %v739_v12  ;;  %v1733_v15 = vunpack.c.l.s8.bf16 %v741_v13  ;;  %v1747_v22 = vunpack.c.h.s8.bf16 %v739_v12  ;;  %v1749_v23 = vunpack.c.h.s8.bf16 %v741_v13 }
 0x200   :  { %1953 = vmatpush1.bf16.msra.mxu0 %v1587_v18  ;;  %2117 = vmatpush1.bf16.msra.mxu1 %v1589_v19  ;;  %v1748_v18 = vunpack.c.h.s8.bf16 %v740_v6  ;;  %v1750_v19 = vunpack.c.h.s8.bf16 %v742_v7 }
 0x201   :  { %1954 = vmatprep.subr.bf16.mxu0 %v1604_v20  ;;  %2118 = vmatprep.subr.bf16.mxu1 %v1606_v21  ;;  %v756_v20 = vld [vmem:[#allocation6 + $0xf88] sm:$0xff]  ;;  %v758_v21 = vld [vmem:[#allocation6 + $0xf98] sm:$0xff] }
 0x204   :  { %1955 = vmatpush1.bf16.msra.mxu0 %v1603_v42  ;;  %2119 = vmatpush1.bf16.msra.mxu1 %v1605_v25  ;;  %v1764_v42 = vunpack.c.l.s8.bf16 %v756_v20  ;;  %v1766_v25 = vunpack.c.l.s8.bf16 %v758_v21 }
 0x205   :  { %1956 = vmatprep.subr.bf16.mxu0 %v1620_v26  ;;  %2120 = vmatprep.subr.bf16.mxu1 %v1622_v27  ;;  %v755_v26 = vld [vmem:[#allocation6 + $0xf80] sm:$0xff]  ;;  %v757_v27 = vld [vmem:[#allocation6 + $0xf90] sm:$0xff] }
 0x206   :  { %v1763_v28 = vunpack.c.l.s8.bf16 %v755_v26  ;;  %v1765_v29 = vunpack.c.l.s8.bf16 %v757_v27  ;;  %v1779_v36 = vunpack.c.h.s8.bf16 %v755_v26  ;;  %v1781_v37 = vunpack.c.h.s8.bf16 %v757_v27 }
 0x208   :  { %1957 = vmatpush1.bf16.msra.mxu0 %v1619_v31  ;;  %2121 = vmatpush1.bf16.msra.mxu1 %v1621_v32  ;;  %v1780_v31 = vunpack.c.h.s8.bf16 %v756_v20  ;;  %v1782_v32 = vunpack.c.h.s8.bf16 %v758_v21 }
 0x209   :  { %1958 = vmatprep.subr.bf16.mxu0 %v1636_v33  ;;  %2122 = vmatprep.subr.bf16.mxu1 %v1638_v34  ;;  %v264_v33 = vld [vmem:[#allocation6 + $0x28] sm:$0xff]  ;;  %v266_v34 = vld [vmem:[#allocation6 + $0x38] sm:$0xff] }
 0x20c   :  { %1959 = vmatpush1.bf16.msra.mxu0 %v1635_v38  ;;  %2123 = vmatpush1.bf16.msra.mxu1 %v1637_v39  ;;  %v776_v38 = vunpack.c.l.s8.bf16 %v264_v33  ;;  %v778_v39 = vunpack.c.l.s8.bf16 %v266_v34 }
 0x20d   :  { %1960 = vmatprep.subr.bf16.mxu0 %v1652_v40  ;;  %2124 = vmatprep.subr.bf16.mxu1 %v1654_v41  ;;  %v263_v40 = vld [vmem:[#allocation6 + $0x20] sm:$0xff]  ;;  %v265_v41 = vld [vmem:[#allocation6 + $0x30] sm:$0xff] }
 0x20e   :  { %v775_v45 = vunpack.c.l.s8.bf16 %v263_v40  ;;  %v791_v51 = vunpack.c.h.s8.bf16 %v263_v40 }
 0x210   :  { %1961 = vmatpush1.bf16.msra.mxu0 %v1651_v46  ;;  %2125 = vmatpush1.bf16.msra.mxu1 %v1653_v47  ;;  %v777_v46 = vunpack.c.l.s8.bf16 %v265_v41  ;;  %v792_v47 = vunpack.c.h.s8.bf16 %v264_v33 }
 0x211   :  { %1962 = vmatprep.subr.bf16.mxu0 %v1668_v48  ;;  %2126 = vmatprep.subr.bf16.mxu1 %v1670_v49  ;;  %v794_v48 = vunpack.c.h.s8.bf16 %v266_v34  ;;  %v280_v49 = vld [vmem:[#allocation6 + $0xa8] sm:$0xff] }
 0x212   :  { %v808_v61 = vunpack.c.l.s8.bf16 %v280_v49 }
 0x214   :  { %1963 = vmatpush1.bf16.msra.mxu0 %v1667_v52  ;;  %2127 = vmatpush1.bf16.msra.mxu1 %v1669_v53  ;;  %v793_v52 = vunpack.c.h.s8.bf16 %v265_v41  ;;  %v810_v53 = vunpack.c.l.s8.bf16 %v282_v30 }
 0x215   :  { %1964 = vmatprep.subr.bf16.mxu0 %v1684_v54  ;;  %2128 = vmatprep.subr.bf16.mxu1 %v1686_v55  ;;  %v279_v54 = vld [vmem:[#allocation6 + $0xa0] sm:$0xff]  ;;  %v281_v55 = vld [vmem:[#allocation6 + $0xb0] sm:$0xff] }
 0x216   :  { %v807_v56 = vunpack.c.l.s8.bf16 %v279_v54  ;;  %v809_v57 = vunpack.c.l.s8.bf16 %v281_v55  ;;  %v823_v0 = vunpack.c.h.s8.bf16 %v279_v54  ;;  %v825_v1 = vunpack.c.h.s8.bf16 %v281_v55 }
 0x218   :  { %1965 = vmatpush1.bf16.msra.mxu0 %v1683_v58  ;;  %2129 = vmatpush1.bf16.msra.mxu1 %v1685_v59  ;;  %v824_v58 = vunpack.c.h.s8.bf16 %v280_v49  ;;  %v826_v59 = vunpack.c.h.s8.bf16 %v282_v30 }
 0x219   :  { %1966 = vmatprep.subr.bf16.mxu0 %v1700_v62  ;;  %2130 = vmatprep.subr.bf16.mxu1 %v1702_v63  ;;  %v296_v62 = vld [vmem:[#allocation6 + $0x128] sm:$0xff]  ;;  %v298_v63 = vld [vmem:[#allocation6 + $0x138] sm:$0xff] }
 0x21c   :  { %1967 = vmatpush1.bf16.msra.mxu0 %v1699_v2  ;;  %2131 = vmatpush1.bf16.msra.mxu1 %v1701_v3  ;;  %v840_v2 = vunpack.c.l.s8.bf16 %v296_v62  ;;  %v842_v3 = vunpack.c.l.s8.bf16 %v298_v63 }
 0x21d   :  { %1968 = vmatprep.subr.bf16.mxu0 %v1716_v17  ;;  %2132 = vmatprep.subr.bf16.mxu1 %v1718_v5  ;;  %v295_v17 = vld [vmem:[#allocation6 + $0x120] sm:$0xff]  ;;  %v297_v5 = vld [vmem:[#allocation6 + $0x130] sm:$0xff] }
 0x21e   :  { %v839_v6 = vunpack.c.l.s8.bf16 %v295_v17  ;;  %v841_v7 = vunpack.c.l.s8.bf16 %v297_v5  ;;  %v855_v12 = vunpack.c.h.s8.bf16 %v295_v17  ;;  %v857_v13 = vunpack.c.h.s8.bf16 %v297_v5 }
 0x220   :  { %1969 = vmatpush1.bf16.msra.mxu0 %v1715_v8  ;;  %2133 = vmatpush1.bf16.msra.mxu1 %v1717_v9  ;;  %v856_v8 = vunpack.c.h.s8.bf16 %v296_v62  ;;  %v858_v9 = vunpack.c.h.s8.bf16 %v298_v63 }
 0x221   :  { %1970 = vmatprep.subr.bf16.mxu0 %v1732_v10  ;;  %2134 = vmatprep.subr.bf16.mxu1 %v1734_v11  ;;  %v312_v10 = vld [vmem:[#allocation6 + $0x1a8] sm:$0xff]  ;;  %v314_v11 = vld [vmem:[#allocation6 + $0x1b8] sm:$0xff] }
 0x224   :  { %1971 = vmatpush1.bf16.msra.mxu0 %v1731_v14  ;;  %2135 = vmatpush1.bf16.msra.mxu1 %v1733_v15  ;;  %v872_v14 = vunpack.c.l.s8.bf16 %v312_v10  ;;  %v874_v15 = vunpack.c.l.s8.bf16 %v314_v11 }
 0x225   :  { %1972 = vmatprep.subr.bf16.mxu0 %v1748_v18  ;;  %2136 = vmatprep.subr.bf16.mxu1 %v1750_v19  ;;  %v311_v18 = vld [vmem:[#allocation6 + $0x1a0] sm:$0xff]  ;;  %v313_v19 = vld [vmem:[#allocation6 + $0x1b0] sm:$0xff] }
 0x226   :  { %v871_v20 = vunpack.c.l.s8.bf16 %v311_v18  ;;  %v873_v21 = vunpack.c.l.s8.bf16 %v313_v19  ;;  %v887_v26 = vunpack.c.h.s8.bf16 %v311_v18  ;;  %v889_v27 = vunpack.c.h.s8.bf16 %v313_v19 }
 0x228   :  { %1973 = vmatpush1.bf16.msra.mxu0 %v1747_v22  ;;  %2137 = vmatpush1.bf16.msra.mxu1 %v1749_v23  ;;  %v888_v22 = vunpack.c.h.s8.bf16 %v312_v10  ;;  %v890_v23 = vunpack.c.h.s8.bf16 %v314_v11 }
 0x229   :  { %1974 = vmatprep.subr.bf16.mxu0 %v1764_v42  ;;  %2138 = vmatprep.subr.bf16.mxu1 %v1766_v25  ;;  %v328_v42 = vld [vmem:[#allocation6 + $0x228] sm:$0xff]  ;;  %v330_v25 = vld [vmem:[#allocation6 + $0x238] sm:$0xff] }
 0x22c   :  { %1975 = vmatpush1.bf16.msra.mxu0 %v1763_v28  ;;  %2139 = vmatpush1.bf16.msra.mxu1 %v1765_v29  ;;  %v904_v28 = vunpack.c.l.s8.bf16 %v328_v42  ;;  %v906_v29 = vunpack.c.l.s8.bf16 %v330_v25 }
 0x22d   :  { %1976 = vmatprep.subr.bf16.mxu0 %v1780_v31  ;;  %2140 = vmatprep.subr.bf16.mxu1 %v1782_v32  ;;  %v327_v31 = vld [vmem:[#allocation6 + $0x220] sm:$0xff]  ;;  %v329_v32 = vld [vmem:[#allocation6 + $0x230] sm:$0xff] }
 0x22e   :  { %v903_v33 = vunpack.c.l.s8.bf16 %v327_v31  ;;  %v905_v34 = vunpack.c.l.s8.bf16 %v329_v32  ;;  %v919_v40 = vunpack.c.h.s8.bf16 %v327_v31  ;;  %v921_v41 = vunpack.c.h.s8.bf16 %v329_v32 }
 0x230   :  { %1977 = vmatpush1.bf16.msra.mxu0 %v1779_v36  ;;  %2141 = vmatpush1.bf16.msra.mxu1 %v1781_v37  ;;  %v920_v36 = vunpack.c.h.s8.bf16 %v328_v42  ;;  %v922_v37 = vunpack.c.h.s8.bf16 %v330_v25 }
 0x231   :  { %2151 = vmatprep.subr.bf16.mxu0 %v776_v38  ;;  %2315 = vmatprep.subr.bf16.mxu1 %v778_v39  ;;  %v344_v38 = vld [vmem:[#allocation6 + $0x2a8] sm:$0xff]  ;;  %v346_v39 = vld [vmem:[#allocation6 + $0x2b8] sm:$0xff] }
 0x233   :  { %1979 = vmatmul.mubr.bf16.vlgmr.msra.gmra.mrb[0].mxu0 %v13077_v44  ;;  %2143 = vmatmul.mubr.bf16.vlgmr.msra.gmra.mrb[0].mxu1 %v13077_v44 }
 0x234   :  { %2152 = vmatpush1.bf16.msra.mxu0 %v775_v45  ;;  %2316 = vmatpush1.bf16.msra.mxu1 %v777_v46  ;;  %v936_v45 = vunpack.c.l.s8.bf16 %v344_v38  ;;  %v938_v46 = vunpack.c.l.s8.bf16 %v346_v39 }
 0x235   :  { %2153 = vmatprep.subr.bf16.mxu0 %v792_v47  ;;  %2317 = vmatprep.subr.bf16.mxu1 %v794_v48  ;;  %v343_v47 = vld [vmem:[#allocation6 + $0x2a0] sm:$0xff]  ;;  %v345_v48 = vld [vmem:[#allocation6 + $0x2b0] sm:$0xff] }
 0x236   :  { %2183 = vmatprep.mubr.bf16.mxu0 %v13020_v35  ;;  %2347 = vmatprep.mubr.bf16.mxu1 %v13020_v35  ;;  %v935_v49 = vunpack.c.l.s8.bf16 %v343_v47  ;;  %v937_v30 = vunpack.c.l.s8.bf16 %v345_v48  ;;  %v951_v54 = vunpack.c.h.s8.bf16 %v343_v47  ;;  %v953_v55 = vunpack.c.h.s8.bf16 %v345_v48 }
 0x238   :  { %2154 = vmatpush1.bf16.msra.mxu0 %v791_v51  ;;  %2318 = vmatpush1.bf16.msra.mxu1 %v793_v52  ;;  %v952_v51 = vunpack.c.h.s8.bf16 %v344_v38  ;;  %v954_v52 = vunpack.c.h.s8.bf16 %v346_v39 }
 0x239   :  { %2155 = vmatprep.subr.bf16.mxu0 %v808_v61  ;;  %2319 = vmatprep.subr.bf16.mxu1 %v810_v53  ;;  %v360_v61 = vld [vmem:[#allocation6 + $0x328] sm:$0xff]  ;;  %v362_v53 = vld [vmem:[#allocation6 + $0x338] sm:$0xff] }
 0x23c   :  { %2156 = vmatpush1.bf16.msra.mxu0 %v807_v56  ;;  %2320 = vmatpush1.bf16.msra.mxu1 %v809_v57  ;;  %v968_v56 = vunpack.c.l.s8.bf16 %v360_v61  ;;  %v970_v57 = vunpack.c.l.s8.bf16 %v362_v53 }
 0x23d   :  { %2157 = vmatprep.subr.bf16.mxu0 %v824_v58  ;;  %2321 = vmatprep.subr.bf16.mxu1 %v826_v59  ;;  %v359_v58 = vld [vmem:[#allocation6 + $0x320] sm:$0xff]  ;;  %v361_v59 = vld [vmem:[#allocation6 + $0x330] sm:$0xff] }
 0x23e   :  { %v967_v62 = vunpack.c.l.s8.bf16 %v359_v58  ;;  %v969_v63 = vunpack.c.l.s8.bf16 %v361_v59  ;;  %v983_v17 = vunpack.c.h.s8.bf16 %v359_v58  ;;  %v985_v5 = vunpack.c.h.s8.bf16 %v361_v59 }
 0x240   :  { %2158 = vmatpush1.bf16.msra.mxu0 %v823_v0  ;;  %2322 = vmatpush1.bf16.msra.mxu1 %v825_v1  ;;  %v984_v0 = vunpack.c.h.s8.bf16 %v360_v61  ;;  %v986_v1 = vunpack.c.h.s8.bf16 %v362_v53 }
 0x241   :  { %2159 = vmatprep.subr.bf16.mxu0 %v840_v2  ;;  %2323 = vmatprep.subr.bf16.mxu1 %v842_v3  ;;  %v376_v2 = vld [vmem:[#allocation6 + $0x3a8] sm:$0xff]  ;;  %v378_v3 = vld [vmem:[#allocation6 + $0x3b8] sm:$0xff] }
 0x244   :  { %2160 = vmatpush1.bf16.msra.mxu0 %v839_v6  ;;  %2324 = vmatpush1.bf16.msra.mxu1 %v841_v7  ;;  %v1000_v6 = vunpack.c.l.s8.bf16 %v376_v2  ;;  %v1002_v7 = vunpack.c.l.s8.bf16 %v378_v3 }
 0x245   :  { %2161 = vmatprep.subr.bf16.mxu0 %v856_v8  ;;  %2325 = vmatprep.subr.bf16.mxu1 %v858_v9  ;;  %v375_v8 = vld [vmem:[#allocation6 + $0x3a0] sm:$0xff]  ;;  %v377_v9 = vld [vmem:[#allocation6 + $0x3b0] sm:$0xff] }
 0x246   :  { %v999_v10 = vunpack.c.l.s8.bf16 %v375_v8  ;;  %v1001_v11 = vunpack.c.l.s8.bf16 %v377_v9  ;;  %v1015_v18 = vunpack.c.h.s8.bf16 %v375_v8  ;;  %v1017_v19 = vunpack.c.h.s8.bf16 %v377_v9 }
 0x248   :  { %2162 = vmatpush1.bf16.msra.mxu0 %v855_v12  ;;  %2326 = vmatpush1.bf16.msra.mxu1 %v857_v13  ;;  %v1016_v12 = vunpack.c.h.s8.bf16 %v376_v2  ;;  %v1018_v13 = vunpack.c.h.s8.bf16 %v378_v3 }
 0x249   :  { %2163 = vmatprep.subr.bf16.mxu0 %v872_v14  ;;  %2327 = vmatprep.subr.bf16.mxu1 %v874_v15  ;;  %v392_v14 = vld [vmem:[#allocation6 + $0x428] sm:$0xff]  ;;  %v394_v15 = vld [vmem:[#allocation6 + $0x438] sm:$0xff] }
 0x24c   :  { %2164 = vmatpush1.bf16.msra.mxu0 %v871_v20  ;;  %2328 = vmatpush1.bf16.msra.mxu1 %v873_v21  ;;  %v1032_v20 = vunpack.c.l.s8.bf16 %v392_v14  ;;  %v1034_v21 = vunpack.c.l.s8.bf16 %v394_v15 }
 0x24d   :  { %2165 = vmatprep.subr.bf16.mxu0 %v888_v22  ;;  %2329 = vmatprep.subr.bf16.mxu1 %v890_v23  ;;  %v391_v22 = vld [vmem:[#allocation6 + $0x420] sm:$0xff]  ;;  %v393_v23 = vld [vmem:[#allocation6 + $0x430] sm:$0xff] }
 0x24e   :  { %v1031_v42 = vunpack.c.l.s8.bf16 %v391_v22  ;;  %v1033_v25 = vunpack.c.l.s8.bf16 %v393_v23  ;;  %v1047_v31 = vunpack.c.h.s8.bf16 %v391_v22  ;;  %v1049_v32 = vunpack.c.h.s8.bf16 %v393_v23 }
 0x250   :  { %2166 = vmatpush1.bf16.msra.mxu0 %v887_v26  ;;  %2330 = vmatpush1.bf16.msra.mxu1 %v889_v27  ;;  %v1048_v26 = vunpack.c.h.s8.bf16 %v392_v14  ;;  %v1050_v27 = vunpack.c.h.s8.bf16 %v394_v15 }
 0x251   :  { %2167 = vmatprep.subr.bf16.mxu0 %v904_v28  ;;  %2331 = vmatprep.subr.bf16.mxu1 %v906_v29  ;;  %v408_v28 = vld [vmem:[#allocation6 + $0x4a8] sm:$0xff]  ;;  %v410_v29 = vld [vmem:[#allocation6 + $0x4b8] sm:$0xff] }
 0x254   :  { %2168 = vmatpush1.bf16.msra.mxu0 %v903_v33  ;;  %2332 = vmatpush1.bf16.msra.mxu1 %v905_v34  ;;  %v1064_v33 = vunpack.c.l.s8.bf16 %v408_v28  ;;  %v1066_v34 = vunpack.c.l.s8.bf16 %v410_v29 }
 0x255   :  { %2169 = vmatprep.subr.bf16.mxu0 %v920_v36  ;;  %2333 = vmatprep.subr.bf16.mxu1 %v922_v37  ;;  %v407_v36 = vld [vmem:[#allocation6 + $0x4a0] sm:$0xff]  ;;  %v409_v37 = vld [vmem:[#allocation6 + $0x4b0] sm:$0xff] }
 0x256   :  { %v1063_v38 = vunpack.c.l.s8.bf16 %v407_v36  ;;  %v1065_v39 = vunpack.c.l.s8.bf16 %v409_v37  ;;  %v1079_v47 = vunpack.c.h.s8.bf16 %v407_v36  ;;  %v1081_v48 = vunpack.c.h.s8.bf16 %v409_v37 }
 0x258   :  { %2170 = vmatpush1.bf16.msra.mxu0 %v919_v40  ;;  %2334 = vmatpush1.bf16.msra.mxu1 %v921_v41  ;;  %v1080_v40 = vunpack.c.h.s8.bf16 %v408_v28  ;;  %v1082_v41 = vunpack.c.h.s8.bf16 %v410_v29 }
 0x259   :  { %2171 = vmatprep.subr.bf16.mxu0 %v936_v45  ;;  %2335 = vmatprep.subr.bf16.mxu1 %v938_v46  ;;  %v424_v45 = vld [vmem:[#allocation6 + $0x528] sm:$0xff]  ;;  %v426_v46 = vld [vmem:[#allocation6 + $0x538] sm:$0xff] }
 0x25c   :  { %2172 = vmatpush1.bf16.msra.mxu0 %v935_v49  ;;  %2336 = vmatpush1.bf16.msra.mxu1 %v937_v30  ;;  %v1096_v49 = vunpack.c.l.s8.bf16 %v424_v45  ;;  %v1098_v30 = vunpack.c.l.s8.bf16 %v426_v46 }
 0x25d   :  { %2173 = vmatprep.subr.bf16.mxu0 %v952_v51  ;;  %2337 = vmatprep.subr.bf16.mxu1 %v954_v52  ;;  %v423_v51 = vld [vmem:[#allocation6 + $0x520] sm:$0xff]  ;;  %v425_v52 = vld [vmem:[#allocation6 + $0x530] sm:$0xff] }
 0x25e   :  { %v1095_v61 = vunpack.c.l.s8.bf16 %v423_v51  ;;  %v1097_v53 = vunpack.c.l.s8.bf16 %v425_v52  ;;  %v1111_v58 = vunpack.c.h.s8.bf16 %v423_v51  ;;  %v1113_v59 = vunpack.c.h.s8.bf16 %v425_v52 }
 0x260   :  { %2174 = vmatpush1.bf16.msra.mxu0 %v951_v54  ;;  %2338 = vmatpush1.bf16.msra.mxu1 %v953_v55  ;;  %v1112_v54 = vunpack.c.h.s8.bf16 %v424_v45  ;;  %v1114_v55 = vunpack.c.h.s8.bf16 %v426_v46 }
 0x261   :  { %2175 = vmatprep.subr.bf16.mxu0 %v968_v56  ;;  %2339 = vmatprep.subr.bf16.mxu1 %v970_v57  ;;  %v440_v56 = vld [vmem:[#allocation6 + $0x5a8] sm:$0xff]  ;;  %v442_v57 = vld [vmem:[#allocation6 + $0x5b8] sm:$0xff] }
 0x264   :  { %2176 = vmatpush1.bf16.msra.mxu0 %v967_v62  ;;  %2340 = vmatpush1.bf16.msra.mxu1 %v969_v63  ;;  %v1128_v62 = vunpack.c.l.s8.bf16 %v440_v56  ;;  %v1130_v63 = vunpack.c.l.s8.bf16 %v442_v57 }
 0x265   :  { %2177 = vmatprep.subr.bf16.mxu0 %v984_v0  ;;  %2341 = vmatprep.subr.bf16.mxu1 %v986_v1  ;;  %v439_v0 = vld [vmem:[#allocation6 + $0x5a0] sm:$0xff]  ;;  %v441_v1 = vld [vmem:[#allocation6 + $0x5b0] sm:$0xff] }
 0x266   :  { %v1127_v2 = vunpack.c.l.s8.bf16 %v439_v0  ;;  %v1129_v3 = vunpack.c.l.s8.bf16 %v441_v1  ;;  %v1143_v8 = vunpack.c.h.s8.bf16 %v439_v0  ;;  %v1145_v9 = vunpack.c.h.s8.bf16 %v441_v1 }
 0x268   :  { %2178 = vmatpush1.bf16.msra.mxu0 %v983_v17  ;;  %2342 = vmatpush1.bf16.msra.mxu1 %v985_v5  ;;  %v1144_v17 = vunpack.c.h.s8.bf16 %v440_v56  ;;  %v1146_v5 = vunpack.c.h.s8.bf16 %v442_v57 }
 0x269   :  { %2179 = vmatprep.subr.bf16.mxu0 %v1000_v6  ;;  %2343 = vmatprep.subr.bf16.mxu1 %v1002_v7  ;;  %v456_v6 = vld [vmem:[#allocation6 + $0x628] sm:$0xff]  ;;  %v458_v7 = vld [vmem:[#allocation6 + $0x638] sm:$0xff] }
 0x26c   :  { %2180 = vmatpush1.bf16.msra.mxu0 %v999_v10  ;;  %2344 = vmatpush1.bf16.msra.mxu1 %v1001_v11  ;;  %v1160_v10 = vunpack.c.l.s8.bf16 %v456_v6  ;;  %v1162_v11 = vunpack.c.l.s8.bf16 %v458_v7 }
 0x26d   :  { %2181 = vmatprep.subr.bf16.mxu0 %v1016_v12  ;;  %2345 = vmatprep.subr.bf16.mxu1 %v1018_v13  ;;  %v455_v12 = vld [vmem:[#allocation6 + $0x620] sm:$0xff]  ;;  %v457_v13 = vld [vmem:[#allocation6 + $0x630] sm:$0xff] }
 0x26e   :  { %v1159_v14 = vunpack.c.l.s8.bf16 %v455_v12  ;;  %v1161_v15 = vunpack.c.l.s8.bf16 %v457_v13  ;;  %v1175_v22 = vunpack.c.h.s8.bf16 %v455_v12  ;;  %v1177_v23 = vunpack.c.h.s8.bf16 %v457_v13 }
 0x270   :  { %2182 = vmatpush1.bf16.msra.mxu0 %v1015_v18  ;;  %2346 = vmatpush1.bf16.msra.mxu1 %v1017_v19  ;;  %v1176_v18 = vunpack.c.h.s8.bf16 %v456_v6  ;;  %v1178_v19 = vunpack.c.h.s8.bf16 %v458_v7 }
 0x271   :  { %2192 = vmatprep.subr.bf16.mxu0 %v1032_v20  ;;  %2356 = vmatprep.subr.bf16.mxu1 %v1034_v21  ;;  %v472_v20 = vld [vmem:[#allocation6 + $0x6a8] sm:$0xff]  ;;  %v474_v21 = vld [vmem:[#allocation6 + $0x6b8] sm:$0xff] }
 0x273   :  { %2184 = vmatmul.mubr.bf16.vlgmr.msra.gmra.mrb[4].mxu0 %v13031_v43  ;;  %2348 = vmatmul.mubr.bf16.vlgmr.msra.gmra.mrb[4].mxu1 %v13031_v43 }
 0x274   :  { %2193 = vmatpush1.bf16.msra.mxu0 %v1031_v42  ;;  %2357 = vmatpush1.bf16.msra.mxu1 %v1033_v25  ;;  %v1192_v42 = vunpack.c.l.s8.bf16 %v472_v20  ;;  %v1194_v25 = vunpack.c.l.s8.bf16 %v474_v21 }
 0x275   :  { %2194 = vmatprep.subr.bf16.mxu0 %v1048_v26  ;;  %2358 = vmatprep.subr.bf16.mxu1 %v1050_v27  ;;  %v471_v26 = vld [vmem:[#allocation6 + $0x6a0] sm:$0xff]  ;;  %v473_v27 = vld [vmem:[#allocation6 + $0x6b0] sm:$0xff] }
 0x276   :  { %2224 = vmatprep.mubr.bf16.mxu0 %v13035_v50  ;;  %2388 = vmatprep.mubr.bf16.mxu1 %v13035_v50  ;;  %v1191_v28 = vunpack.c.l.s8.bf16 %v471_v26  ;;  %v1193_v29 = vunpack.c.l.s8.bf16 %v473_v27  ;;  %v1207_v36 = vunpack.c.h.s8.bf16 %v471_v26  ;;  %v1209_v37 = vunpack.c.h.s8.bf16 %v473_v27 }
 0x278   :  { %2195 = vmatpush1.bf16.msra.mxu0 %v1047_v31  ;;  %2359 = vmatpush1.bf16.msra.mxu1 %v1049_v32  ;;  %v1208_v31 = vunpack.c.h.s8.bf16 %v472_v20  ;;  %v1210_v32 = vunpack.c.h.s8.bf16 %v474_v21 }
 0x279   :  { %2196 = vmatprep.subr.bf16.mxu0 %v1064_v33  ;;  %2360 = vmatprep.subr.bf16.mxu1 %v1066_v34  ;;  %v488_v33 = vld [vmem:[#allocation6 + $0x728] sm:$0xff]  ;;  %v490_v34 = vld [vmem:[#allocation6 + $0x738] sm:$0xff] }
 0x27c   :  { %2197 = vmatpush1.bf16.msra.mxu0 %v1063_v38  ;;  %2361 = vmatpush1.bf16.msra.mxu1 %v1065_v39  ;;  %v1224_v38 = vunpack.c.l.s8.bf16 %v488_v33  ;;  %v1226_v39 = vunpack.c.l.s8.bf16 %v490_v34 }
 0x27d   :  { %2198 = vmatprep.subr.bf16.mxu0 %v1080_v40  ;;  %2362 = vmatprep.subr.bf16.mxu1 %v1082_v41  ;;  %v487_v40 = vld [vmem:[#allocation6 + $0x720] sm:$0xff]  ;;  %v489_v41 = vld [vmem:[#allocation6 + $0x730] sm:$0xff] }
 0x27e   :  { %v1223_v45 = vunpack.c.l.s8.bf16 %v487_v40  ;;  %v1225_v46 = vunpack.c.l.s8.bf16 %v489_v41  ;;  %v1239_v51 = vunpack.c.h.s8.bf16 %v487_v40  ;;  %v1241_v52 = vunpack.c.h.s8.bf16 %v489_v41 }
 0x280   :  { %2199 = vmatpush1.bf16.msra.mxu0 %v1079_v47  ;;  %2363 = vmatpush1.bf16.msra.mxu1 %v1081_v48  ;;  %v1240_v47 = vunpack.c.h.s8.bf16 %v488_v33  ;;  %v1242_v48 = vunpack.c.h.s8.bf16 %v490_v34 }
 0x281   :  { %2200 = vmatprep.subr.bf16.mxu0 %v1096_v49  ;;  %2364 = vmatprep.subr.bf16.mxu1 %v1098_v30  ;;  %v504_v49 = vld [vmem:[#allocation6 + $0x7a8] sm:$0xff]  ;;  %v506_v30 = vld [vmem:[#allocation6 + $0x7b8] sm:$0xff] }
 0x284   :  { %2201 = vmatpush1.bf16.msra.mxu0 %v1095_v61  ;;  %2365 = vmatpush1.bf16.msra.mxu1 %v1097_v53  ;;  %v1256_v61 = vunpack.c.l.s8.bf16 %v504_v49  ;;  %v1258_v53 = vunpack.c.l.s8.bf16 %v506_v30 }
 0x285   :  { %2202 = vmatprep.subr.bf16.mxu0 %v1112_v54  ;;  %2366 = vmatprep.subr.bf16.mxu1 %v1114_v55  ;;  %v503_v54 = vld [vmem:[#allocation6 + $0x7a0] sm:$0xff]  ;;  %v505_v55 = vld [vmem:[#allocation6 + $0x7b0] sm:$0xff] }
 0x286   :  { %v1255_v56 = vunpack.c.l.s8.bf16 %v503_v54  ;;  %v1257_v57 = vunpack.c.l.s8.bf16 %v505_v55  ;;  %v1271_v0 = vunpack.c.h.s8.bf16 %v503_v54  ;;  %v1273_v1 = vunpack.c.h.s8.bf16 %v505_v55 }
 0x288   :  { %2203 = vmatpush1.bf16.msra.mxu0 %v1111_v58  ;;  %2367 = vmatpush1.bf16.msra.mxu1 %v1113_v59  ;;  %v1272_v58 = vunpack.c.h.s8.bf16 %v504_v49  ;;  %v1274_v59 = vunpack.c.h.s8.bf16 %v506_v30 }
 0x289   :  { %2204 = vmatprep.subr.bf16.mxu0 %v1128_v62  ;;  %2368 = vmatprep.subr.bf16.mxu1 %v1130_v63  ;;  %v520_v62 = vld [vmem:[#allocation6 + $0x828] sm:$0xff]  ;;  %v522_v63 = vld [vmem:[#allocation6 + $0x838] sm:$0xff] }
 0x28c   :  { %2205 = vmatpush1.bf16.msra.mxu0 %v1127_v2  ;;  %2369 = vmatpush1.bf16.msra.mxu1 %v1129_v3  ;;  %v1288_v2 = vunpack.c.l.s8.bf16 %v520_v62  ;;  %v1290_v3 = vunpack.c.l.s8.bf16 %v522_v63 }
 0x28d   :  { %2206 = vmatprep.subr.bf16.mxu0 %v1144_v17  ;;  %2370 = vmatprep.subr.bf16.mxu1 %v1146_v5  ;;  %v519_v17 = vld [vmem:[#allocation6 + $0x820] sm:$0xff]  ;;  %v521_v5 = vld [vmem:[#allocation6 + $0x830] sm:$0xff] }
 0x28e   :  { %v1287_v6 = vunpack.c.l.s8.bf16 %v519_v17  ;;  %v1289_v7 = vunpack.c.l.s8.bf16 %v521_v5  ;;  %v1303_v12 = vunpack.c.h.s8.bf16 %v519_v17  ;;  %v1305_v13 = vunpack.c.h.s8.bf16 %v521_v5 }
 0x290   :  { %2207 = vmatpush1.bf16.msra.mxu0 %v1143_v8  ;;  %2371 = vmatpush1.bf16.msra.mxu1 %v1145_v9  ;;  %v1304_v8 = vunpack.c.h.s8.bf16 %v520_v62  ;;  %v1306_v9 = vunpack.c.h.s8.bf16 %v522_v63 }
 0x291   :  { %2208 = vmatprep.subr.bf16.mxu0 %v1160_v10  ;;  %2372 = vmatprep.subr.bf16.mxu1 %v1162_v11  ;;  %v536_v10 = vld [vmem:[#allocation6 + $0x8a8] sm:$0xff]  ;;  %v538_v11 = vld [vmem:[#allocation6 + $0x8b8] sm:$0xff] }
 0x294   :  { %2209 = vmatpush1.bf16.msra.mxu0 %v1159_v14  ;;  %2373 = vmatpush1.bf16.msra.mxu1 %v1161_v15  ;;  %v1320_v14 = vunpack.c.l.s8.bf16 %v536_v10  ;;  %v1322_v15 = vunpack.c.l.s8.bf16 %v538_v11 }
 0x295   :  { %2210 = vmatprep.subr.bf16.mxu0 %v1176_v18  ;;  %2374 = vmatprep.subr.bf16.mxu1 %v1178_v19  ;;  %v535_v18 = vld [vmem:[#allocation6 + $0x8a0] sm:$0xff]  ;;  %v537_v19 = vld [vmem:[#allocation6 + $0x8b0] sm:$0xff] }
 0x296   :  { %v1319_v20 = vunpack.c.l.s8.bf16 %v535_v18  ;;  %v1321_v21 = vunpack.c.l.s8.bf16 %v537_v19  ;;  %v1335_v26 = vunpack.c.h.s8.bf16 %v535_v18  ;;  %v1337_v27 = vunpack.c.h.s8.bf16 %v537_v19 }
 0x298   :  { %2211 = vmatpush1.bf16.msra.mxu0 %v1175_v22  ;;  %2375 = vmatpush1.bf16.msra.mxu1 %v1177_v23  ;;  %v1336_v22 = vunpack.c.h.s8.bf16 %v536_v10  ;;  %v1338_v23 = vunpack.c.h.s8.bf16 %v538_v11 }
 0x299   :  { %2212 = vmatprep.subr.bf16.mxu0 %v1192_v42  ;;  %2376 = vmatprep.subr.bf16.mxu1 %v1194_v25  ;;  %v552_v42 = vld [vmem:[#allocation6 + $0x928] sm:$0xff]  ;;  %v554_v25 = vld [vmem:[#allocation6 + $0x938] sm:$0xff] }
 0x29c   :  { %2213 = vmatpush1.bf16.msra.mxu0 %v1191_v28  ;;  %2377 = vmatpush1.bf16.msra.mxu1 %v1193_v29  ;;  %v1352_v28 = vunpack.c.l.s8.bf16 %v552_v42  ;;  %v1354_v29 = vunpack.c.l.s8.bf16 %v554_v25 }
 0x29d   :  { %2214 = vmatprep.subr.bf16.mxu0 %v1208_v31  ;;  %2378 = vmatprep.subr.bf16.mxu1 %v1210_v32  ;;  %v551_v31 = vld [vmem:[#allocation6 + $0x920] sm:$0xff]  ;;  %v553_v32 = vld [vmem:[#allocation6 + $0x930] sm:$0xff] }
 0x29e   :  { %v1351_v33 = vunpack.c.l.s8.bf16 %v551_v31  ;;  %v1353_v34 = vunpack.c.l.s8.bf16 %v553_v32  ;;  %v1367_v40 = vunpack.c.h.s8.bf16 %v551_v31  ;;  %v1369_v41 = vunpack.c.h.s8.bf16 %v553_v32 }
 0x2a0   :  { %2215 = vmatpush1.bf16.msra.mxu0 %v1207_v36  ;;  %2379 = vmatpush1.bf16.msra.mxu1 %v1209_v37  ;;  %v1368_v36 = vunpack.c.h.s8.bf16 %v552_v42  ;;  %v1370_v37 = vunpack.c.h.s8.bf16 %v554_v25 }
 0x2a1   :  { %2216 = vmatprep.subr.bf16.mxu0 %v1224_v38  ;;  %2380 = vmatprep.subr.bf16.mxu1 %v1226_v39  ;;  %v568_v38 = vld [vmem:[#allocation6 + $0x9a8] sm:$0xff]  ;;  %v570_v39 = vld [vmem:[#allocation6 + $0x9b8] sm:$0xff] }
 0x2a4   :  { %2217 = vmatpush1.bf16.msra.mxu0 %v1223_v45  ;;  %2381 = vmatpush1.bf16.msra.mxu1 %v1225_v46  ;;  %v1384_v45 = vunpack.c.l.s8.bf16 %v568_v38  ;;  %v1386_v46 = vunpack.c.l.s8.bf16 %v570_v39 }
 0x2a5   :  { %2218 = vmatprep.subr.bf16.mxu0 %v1240_v47  ;;  %2382 = vmatprep.subr.bf16.mxu1 %v1242_v48  ;;  %v567_v47 = vld [vmem:[#allocation6 + $0x9a0] sm:$0xff]  ;;  %v569_v48 = vld [vmem:[#allocation6 + $0x9b0] sm:$0xff] }
 0x2a6   :  { %v1383_v49 = vunpack.c.l.s8.bf16 %v567_v47  ;;  %v1385_v30 = vunpack.c.l.s8.bf16 %v569_v48  ;;  %v1399_v54 = vunpack.c.h.s8.bf16 %v567_v47  ;;  %v1401_v55 = vunpack.c.h.s8.bf16 %v569_v48 }
 0x2a8   :  { %2219 = vmatpush1.bf16.msra.mxu0 %v1239_v51  ;;  %2383 = vmatpush1.bf16.msra.mxu1 %v1241_v52  ;;  %v1400_v51 = vunpack.c.h.s8.bf16 %v568_v38  ;;  %v1402_v52 = vunpack.c.h.s8.bf16 %v570_v39 }
 0x2a9   :  { %2220 = vmatprep.subr.bf16.mxu0 %v1256_v61  ;;  %2384 = vmatprep.subr.bf16.mxu1 %v1258_v53  ;;  %v584_v61 = vld [vmem:[#allocation6 + $0xa28] sm:$0xff]  ;;  %v586_v53 = vld [vmem:[#allocation6 + $0xa38] sm:$0xff] }
 0x2ac   :  { %2221 = vmatpush1.bf16.msra.mxu0 %v1255_v56  ;;  %2385 = vmatpush1.bf16.msra.mxu1 %v1257_v57  ;;  %v1416_v56 = vunpack.c.l.s8.bf16 %v584_v61  ;;  %v1418_v57 = vunpack.c.l.s8.bf16 %v586_v53 }
 0x2ad   :  { %2222 = vmatprep.subr.bf16.mxu0 %v1272_v58  ;;  %2386 = vmatprep.subr.bf16.mxu1 %v1274_v59  ;;  %v583_v58 = vld [vmem:[#allocation6 + $0xa20] sm:$0xff]  ;;  %v585_v59 = vld [vmem:[#allocation6 + $0xa30] sm:$0xff] }
 0x2ae   :  { %v1415_v62 = vunpack.c.l.s8.bf16 %v583_v58  ;;  %v1417_v63 = vunpack.c.l.s8.bf16 %v585_v59  ;;  %v1431_v17 = vunpack.c.h.s8.bf16 %v583_v58  ;;  %v1433_v5 = vunpack.c.h.s8.bf16 %v585_v59 }
 0x2b0   :  { %2223 = vmatpush1.bf16.msra.mxu0 %v1271_v0  ;;  %2387 = vmatpush1.bf16.msra.mxu1 %v1273_v1  ;;  %v1432_v0 = vunpack.c.h.s8.bf16 %v584_v61  ;;  %v1434_v1 = vunpack.c.h.s8.bf16 %v586_v53 }
 0x2b1   :  { %2233 = vmatprep.subr.bf16.mxu0 %v1288_v2  ;;  %2397 = vmatprep.subr.bf16.mxu1 %v1290_v3  ;;  %v600_v2 = vld [vmem:[#allocation6 + $0xaa8] sm:$0xff]  ;;  %v602_v3 = vld [vmem:[#allocation6 + $0xab8] sm:$0xff] }
 0x2b3   :  { %2225 = vmatmul.mubr.bf16.vlgmr.msra.gmra.mrb[4].mxu0 %v13043_v16  ;;  %2389 = vmatmul.mubr.bf16.vlgmr.msra.gmra.mrb[4].mxu1 %v13043_v16 }
 0x2b4   :  { %2234 = vmatpush1.bf16.msra.mxu0 %v1287_v6  ;;  %2398 = vmatpush1.bf16.msra.mxu1 %v1289_v7  ;;  %v1448_v6 = vunpack.c.l.s8.bf16 %v600_v2  ;;  %v1450_v7 = vunpack.c.l.s8.bf16 %v602_v3 }
 0x2b5   :  { %2235 = vmatprep.subr.bf16.mxu0 %v1304_v8  ;;  %2399 = vmatprep.subr.bf16.mxu1 %v1306_v9  ;;  %v599_v8 = vld [vmem:[#allocation6 + $0xaa0] sm:$0xff]  ;;  %v601_v9 = vld [vmem:[#allocation6 + $0xab0] sm:$0xff] }
 0x2b6   :  { %2265 = vmatprep.mubr.bf16.mxu0 %v13052_v24  ;;  %2429 = vmatprep.mubr.bf16.mxu1 %v13052_v24  ;;  %v1447_v10 = vunpack.c.l.s8.bf16 %v599_v8  ;;  %v1449_v11 = vunpack.c.l.s8.bf16 %v601_v9  ;;  %v1463_v18 = vunpack.c.h.s8.bf16 %v599_v8  ;;  %v1465_v19 = vunpack.c.h.s8.bf16 %v601_v9  ;;  %v682_v8 = vld [vmem:[#allocation6 + $0xd38] sm:$0xff] }
 0x2b8   :  { %2236 = vmatpush1.bf16.msra.mxu0 %v1303_v12  ;;  %2400 = vmatpush1.bf16.msra.mxu1 %v1305_v13  ;;  %v1464_v12 = vunpack.c.h.s8.bf16 %v600_v2  ;;  %v1466_v13 = vunpack.c.h.s8.bf16 %v602_v3  ;;  %v3139_v2 = vlaneseq }
 0x2b9   :  { %2237 = vmatprep.subr.bf16.mxu0 %v1320_v14  ;;  %2401 = vmatprep.subr.bf16.mxu1 %v1322_v15  ;;  %v616_v14 = vld [vmem:[#allocation6 + $0xb28] sm:$0xff]  ;;  %v618_v15 = vld [vmem:[#allocation6 + $0xb38] sm:$0xff] }
 0x2ba   :  { %v13095_v9 = vshrl.u32 %v3139_v2, 7 }
 0x2bc   :  { %2238 = vmatpush1.bf16.msra.mxu0 %v1319_v20  ;;  %2402 = vmatpush1.bf16.msra.mxu1 %v1321_v21  ;;  %v1480_v20 = vunpack.c.l.s8.bf16 %v616_v14  ;;  %v1482_v21 = vunpack.c.l.s8.bf16 %v618_v15 }
 0x2bd   :  { %2239 = vmatprep.subr.bf16.mxu0 %v1336_v22  ;;  %2403 = vmatprep.subr.bf16.mxu1 %v1338_v23  ;;  %v615_v22 = vld [vmem:[#allocation6 + $0xb20] sm:$0xff]  ;;  %v617_v23 = vld [vmem:[#allocation6 + $0xb30] sm:$0xff] }
 0x2be   :  { %v1479_v42 = vunpack.c.l.s8.bf16 %v615_v22  ;;  %v1481_v25 = vunpack.c.l.s8.bf16 %v617_v23  ;;  %v1495_v31 = vunpack.c.h.s8.bf16 %v615_v22  ;;  %v1497_v32 = vunpack.c.h.s8.bf16 %v617_v23  ;;  %v3135_v22 = vld [vmem:[#allocation8] sm:$0xff] }
 0x2bf   :  { %v13104_v23 = vsub.s32 1, %v13095_v9 }
 0x2c0   :  { %2240 = vmatpush1.bf16.msra.mxu0 %v1335_v26  ;;  %2404 = vmatpush1.bf16.msra.mxu1 %v1337_v27  ;;  %v1496_v26 = vunpack.c.h.s8.bf16 %v616_v14  ;;  %v1498_v27 = vunpack.c.h.s8.bf16 %v618_v15  ;;  %v679_v14 = vld [vmem:[#allocation6 + $0xd20] sm:$0xff]  ;;  %v681_v15 = vld [vmem:[#allocation6 + $0xd30] sm:$0xff] }
 0x2c1   :  { %2241 = vmatprep.subr.bf16.mxu0 %v1352_v28  ;;  %2405 = vmatprep.subr.bf16.mxu1 %v1354_v29  ;;  %v632_v28 = vld [vmem:[#allocation6 + $0xba8] sm:$0xff]  ;;  %v634_v29 = vld [vmem:[#allocation6 + $0xbb8] sm:$0xff] }
 0x2c4   :  { %2242 = vmatpush1.bf16.msra.mxu0 %v1351_v33  ;;  %2406 = vmatpush1.bf16.msra.mxu1 %v1353_v34  ;;  %v1512_v33 = vunpack.c.l.s8.bf16 %v632_v28  ;;  %v1514_v34 = vunpack.c.l.s8.bf16 %v634_v29 }
 0x2c5   :  { %2243 = vmatprep.subr.bf16.mxu0 %v1368_v36  ;;  %2407 = vmatprep.subr.bf16.mxu1 %v1370_v37  ;;  %v631_v36 = vld [vmem:[#allocation6 + $0xba0] sm:$0xff]  ;;  %v633_v37 = vld [vmem:[#allocation6 + $0xbb0] sm:$0xff] }
 0x2c6   :  { %v1511_v38 = vunpack.c.l.s8.bf16 %v631_v36  ;;  %v1513_v39 = vunpack.c.l.s8.bf16 %v633_v37  ;;  %v1527_v47 = vunpack.c.h.s8.bf16 %v631_v36  ;;  %v1529_v48 = vunpack.c.h.s8.bf16 %v633_v37 }
 0x2c7   :  { %v1623_v36 = vunpack.c.h.s8.bf16 %v679_v14  ;;  %v1625_v37 = vunpack.c.h.s8.bf16 %v681_v15 }
 0x2c8   :  { %2244 = vmatpush1.bf16.msra.mxu0 %v1367_v40  ;;  %2408 = vmatpush1.bf16.msra.mxu1 %v1369_v41  ;;  %v1528_v40 = vunpack.c.h.s8.bf16 %v632_v28  ;;  %v1530_v41 = vunpack.c.h.s8.bf16 %v634_v29  ;;  %v696_v28 = vld [vmem:[#allocation6 + $0xda8] sm:$0xff]  ;;  %v698_v29 = vld [vmem:[#allocation6 + $0xdb8] sm:$0xff] }
 0x2c9   :  { %2245 = vmatprep.subr.bf16.mxu0 %v1384_v45  ;;  %2409 = vmatprep.subr.bf16.mxu1 %v1386_v46  ;;  %v648_v45 = vld [vmem:[#allocation6 + $0xc28] sm:$0xff]  ;;  %v650_v46 = vld [vmem:[#allocation6 + $0xc38] sm:$0xff]  ;;  %v1656_v2 = vunpack.c.h.s8.bf16 %v696_v28 }
 0x2cc   :  { %2246 = vmatpush1.bf16.msra.mxu0 %v1383_v49  ;;  %2410 = vmatpush1.bf16.msra.mxu1 %v1385_v30  ;;  %v1544_v49 = vunpack.c.l.s8.bf16 %v648_v45  ;;  %v1546_v30 = vunpack.c.l.s8.bf16 %v650_v46 }
 0x2cd   :  { %2247 = vmatprep.subr.bf16.mxu0 %v1400_v51  ;;  %2411 = vmatprep.subr.bf16.mxu1 %v1402_v52  ;;  %v647_v51 = vld [vmem:[#allocation6 + $0xc20] sm:$0xff]  ;;  %v649_v52 = vld [vmem:[#allocation6 + $0xc30] sm:$0xff] }
 0x2ce   :  { %v1543_v61 = vunpack.c.l.s8.bf16 %v647_v51  ;;  %v1545_v53 = vunpack.c.l.s8.bf16 %v649_v52  ;;  %v1559_v58 = vunpack.c.h.s8.bf16 %v647_v51  ;;  %v1561_v59 = vunpack.c.h.s8.bf16 %v649_v52 }
 0x2d0   :  { %2248 = vmatpush1.bf16.msra.mxu0 %v1399_v54  ;;  %2412 = vmatpush1.bf16.msra.mxu1 %v1401_v55  ;;  %v1560_v54 = vunpack.c.h.s8.bf16 %v648_v45  ;;  %v1562_v55 = vunpack.c.h.s8.bf16 %v650_v46  ;;  %v695_v45 = vld [vmem:[#allocation6 + $0xda0] sm:$0xff]  ;;  %v697_v46 = vld [vmem:[#allocation6 + $0xdb0] sm:$0xff] }
 0x2d1   :  { %2249 = vmatprep.subr.bf16.mxu0 %v1416_v56  ;;  %2413 = vmatprep.subr.bf16.mxu1 %v1418_v57  ;;  %v664_v56 = vld [vmem:[#allocation6 + $0xca8] sm:$0xff]  ;;  %v666_v57 = vld [vmem:[#allocation6 + $0xcb8] sm:$0xff] }
 0x2d4   :  { %2250 = vmatpush1.bf16.msra.mxu0 %v1415_v62  ;;  %2414 = vmatpush1.bf16.msra.mxu1 %v1417_v63  ;;  %v1576_v62 = vunpack.c.l.s8.bf16 %v664_v56  ;;  %v1578_v63 = vunpack.c.l.s8.bf16 %v666_v57 }
 0x2d5   :  { %2251 = vmatprep.subr.bf16.mxu0 %v1432_v0  ;;  %2415 = vmatprep.subr.bf16.mxu1 %v1434_v1  ;;  %v663_v0 = vld [vmem:[#allocation6 + $0xca0] sm:$0xff]  ;;  %v665_v1 = vld [vmem:[#allocation6 + $0xcb0] sm:$0xff] }
 0x2d6   :  { %v1575_v3 = vunpack.c.l.s8.bf16 %v663_v0 }
 0x2d8   :  { %2252 = vmatpush1.bf16.msra.mxu0 %v1431_v17  ;;  %2416 = vmatpush1.bf16.msra.mxu1 %v1433_v5  ;;  %v1577_v17 = vunpack.c.l.s8.bf16 %v665_v1  ;;  %v1592_v5 = vunpack.c.h.s8.bf16 %v664_v56 }
 0x2d9   :  { %2253 = vmatprep.subr.bf16.mxu0 %v1448_v6  ;;  %2417 = vmatprep.subr.bf16.mxu1 %v1450_v7  ;;  %v1594_v6 = vunpack.c.h.s8.bf16 %v666_v57  ;;  %v680_v7 = vld [vmem:[#allocation6 + $0xd28] sm:$0xff] }
 0x2dc   :  { %2254 = vmatpush1.bf16.msra.mxu0 %v1447_v10  ;;  %2418 = vmatpush1.bf16.msra.mxu1 %v1449_v11  ;;  %v1591_v10 = vunpack.c.h.s8.bf16 %v663_v0  ;;  %v1593_v11 = vunpack.c.h.s8.bf16 %v665_v1 }
 0x2dd   :  { %2255 = vmatprep.subr.bf16.mxu0 %v1464_v12  ;;  %2419 = vmatprep.subr.bf16.mxu1 %v1466_v13  ;;  %v1608_v12 = vunpack.c.l.s8.bf16 %v680_v7  ;;  %v1610_v13 = vunpack.c.l.s8.bf16 %v682_v8 }
 0x2e0   :  { %2256 = vmatpush1.bf16.msra.mxu0 %v1463_v18  ;;  %2420 = vmatpush1.bf16.msra.mxu1 %v1465_v19  ;;  %v13098_v18 = vsub.s32 0, %v13095_v9  ;;  %v13101_v19 = vsub.s32 2, %v13095_v9 }
 0x2e1   :  { %2257 = vmatprep.subr.bf16.mxu0 %v1480_v20  ;;  %2421 = vmatprep.subr.bf16.mxu1 %v1482_v21  ;;  %v1607_v20 = vunpack.c.l.s8.bf16 %v679_v14  ;;  %v1609_v21 = vunpack.c.l.s8.bf16 %v681_v15  ;;  %v1657_v14 = vunpack.c.h.s8.bf16 %v697_v46 }
 0x2e4   :  { %2258 = vmatpush1.bf16.msra.mxu0 %v1479_v42  ;;  %2422 = vmatpush1.bf16.msra.mxu1 %v1481_v25  ;;  %v13107_v42 = vsub.s32 3, %v13095_v9  ;;  %v1624_v25 = vunpack.c.h.s8.bf16 %v680_v7  ;;  %v714_v7 = vld [vmem:[#allocation6 + $0xe38] sm:$0xff] }
 0x2e5   :  { %2259 = vmatprep.subr.bf16.mxu0 %v1496_v26  ;;  %2423 = vmatprep.subr.bf16.mxu1 %v1498_v27  ;;  %v1626_v26 = vunpack.c.h.s8.bf16 %v682_v8  ;;  %v3235_v27 = vld [vmem:[#allocation10] sm:$0xff] }
 0x2e8   :  { %2260 = vmatpush1.bf16.msra.mxu0 %v1495_v31  ;;  %2424 = vmatpush1.bf16.msra.mxu1 %v1497_v32  ;;  %v3142_v31 = vrot.slane %v3135_v22, %v13098_v18  ;;  %v3150_v32 = vrot.slane %v3135_v22, %v13101_v19 }
 0x2e9   :  { %2261 = vmatprep.subr.bf16.mxu0 %v1512_v33  ;;  %2425 = vmatprep.subr.bf16.mxu1 %v1514_v34  ;;  %v3146_v33 = vrot.slane %v3135_v22, %v13104_v23  ;;  %v3154_v34 = vrot.slane %v3135_v22, %v13107_v42  ;;  %v1674_v22 = vunpack.c.l.s8.bf16 %v714_v7 }
 0x2ec   :  { %2262 = vmatpush1.bf16.msra.mxu0 %v1511_v38  ;;  %2426 = vmatpush1.bf16.msra.mxu1 %v1513_v39  ;;  %v3242_v38 = vrot.slane %v3235_v27, %v13098_v18  ;;  %v3250_v39 = vrot.slane %v3235_v27, %v13101_v19 }
 0x2ed   :  { %2263 = vmatprep.subr.bf16.mxu0 %v1528_v40  ;;  %2427 = vmatprep.subr.bf16.mxu1 %v1530_v41  ;;  %v1640_v40 = vunpack.c.l.s8.bf16 %v696_v28  ;;  %v1642_v41 = vunpack.c.l.s8.bf16 %v698_v29 }
 0x2f0   :  { %2264 = vmatpush1.bf16.msra.mxu0 %v1527_v47  ;;  %2428 = vmatpush1.bf16.msra.mxu1 %v1529_v48 }
 0x2f1   :  { %2274 = vmatprep.subr.bf16.mxu0 %v1544_v49  ;;  %2438 = vmatprep.subr.bf16.mxu1 %v1546_v30  ;;  %v3246_v49 = vrot.slane %v3235_v27, %v13104_v23  ;;  %v3254_v30 = vrot.slane %v3235_v27, %v13107_v42 }
 0x2f3   :  { %2266 = vmatmul.mubr.bf16.vlgmr.msra.gmra.mrb[4].mxu0 %v13060_v60  ;;  %2430 = vmatmul.mubr.bf16.vlgmr.msra.gmra.mrb[4].mxu1 %v13060_v60 }
 0x2f4   :  { %2275 = vmatpush1.bf16.msra.mxu0 %v1543_v61  ;;  %2439 = vmatpush1.bf16.msra.mxu1 %v1545_v53 }
 0x2f5   :  { %2276 = vmatprep.subr.bf16.mxu0 %v1560_v54  ;;  %2440 = vmatprep.subr.bf16.mxu1 %v1562_v55 }
 0x2f6   :  { %2306 = vmatprep.mubr.bf16.mxu0 %v13069_v4  ;;  %2470 = vmatprep.mubr.bf16.mxu1 %v13069_v4 }
 0x2f8   :  { %2277 = vmatpush1.bf16.msra.mxu0 %v1559_v58  ;;  %2441 = vmatpush1.bf16.msra.mxu1 %v1561_v59  ;;  %v1639_v58 = vunpack.c.l.s8.bf16 %v695_v45  ;;  %v1641_v59 = vunpack.c.l.s8.bf16 %v697_v46 }
 0x2f9   :  { %2278 = vmatprep.subr.bf16.mxu0 %v1576_v62  ;;  %2442 = vmatprep.subr.bf16.mxu1 %v1578_v63 }
 0x2fc   :  { %2279 = vmatpush1.bf16.msra.mxu0 %v1575_v3  ;;  %2443 = vmatpush1.bf16.msra.mxu1 %v1577_v17  ;;  %v1658_v3 = vunpack.c.h.s8.bf16 %v698_v29 }
 0x2fd   :  { %2280 = vmatprep.subr.bf16.mxu0 %v1592_v5  ;;  %2444 = vmatprep.subr.bf16.mxu1 %v1594_v6  ;;  %v712_v6 = vld [vmem:[#allocation6 + $0xe28] sm:$0xff] }
 0x300   :  { %2281 = vmatpush1.bf16.msra.mxu0 %v1591_v10  ;;  %2445 = vmatpush1.bf16.msra.mxu1 %v1593_v11 }
 0x301   :  { %2282 = vmatprep.subr.bf16.mxu0 %v1608_v12  ;;  %2446 = vmatprep.subr.bf16.mxu1 %v1610_v13  ;;  %v1655_v13 = vunpack.c.h.s8.bf16 %v695_v45  ;;  %v729_v45 = vld [vmem:[#allocation6 + $0xeb0] sm:$0xff] }
 0x304   :  { %2283 = vmatpush1.bf16.msra.mxu0 %v1607_v20  ;;  %2447 = vmatpush1.bf16.msra.mxu1 %v1609_v21  ;;  %v1672_v21 = vunpack.c.l.s8.bf16 %v712_v6 }
 0x305   :  { %2284 = vmatprep.subr.bf16.mxu0 %v1624_v25  ;;  %2448 = vmatprep.subr.bf16.mxu1 %v1626_v26  ;;  %v711_v25 = vld [vmem:[#allocation6 + $0xe20] sm:$0xff]  ;;  %v713_v26 = vld [vmem:[#allocation6 + $0xe30] sm:$0xff] }
 0x306   :  { %v1980_v47 = vpop.f32.mrb[0].mxu0  ;;  %v2144_v48 = vpop.f32.mrb[0].mxu1  ;;  %v1671_v29 = vunpack.c.l.s8.bf16 %v711_v25 }
 0x307   :  { %v3219_v51 = vmul.f32 %v3142_v31, %v1980_v47  ;;  %v3221_v52 = vmul.f32 %v3150_v32, %v2144_v48  ;;  %v1982_v61 = vpop.f32.mrb[1].mxu0  ;;  %v2146_v53 = vpop.f32.mrb[1].mxu1  ;;  %v1673_v31 = vunpack.c.l.s8.bf16 %v713_v26  ;;  %v1688_v32 = vunpack.c.h.s8.bf16 %v712_v6  ;;  %v761_v6 = vld [vmem:[#allocation6 + $0xfb0] sm:$0xff] }
 0x308   :  { %v3220_v54 = vmul.f32 %v3146_v33, %v1982_v61  ;;  %v3222_v55 = vmul.f32 %v3154_v34, %v2146_v53  ;;  %v1984_v56 = vpop.f32.mrb[2].mxu0  ;;  %v2148_v57 = vpop.f32.mrb[2].mxu1  ;;  %2285 = vmatpush1.bf16.msra.mxu0 %v1623_v36  ;;  %2449 = vmatpush1.bf16.msra.mxu1 %v1625_v37  ;;  %v1690_v33 = vunpack.c.h.s8.bf16 %v714_v7  ;;  %v728_v34 = vld [vmem:[#allocation6 + $0xea8] sm:$0xff]  ;;  %v730_v36 = vld [vmem:[#allocation6 + $0xeb8] sm:$0xff]  ;;  %v1687_v37 = vunpack.c.h.s8.bf16 %v711_v25  ;;  %v269_v25 = vld [vmem:[#allocation6 + $0x50] sm:$0xff] }
 0x309   :  { %v3319_v62 = vadd.f32 %v3242_v38, %v3219_v51  ;;  %v3321_v63 = vadd.f32 %v3250_v39, %v3221_v52  ;;  %v1985_v0 = vpop.f32.mrb[3].mxu0  ;;  %v2149_v1 = vpop.f32.mrb[3].mxu1  ;;  %2286 = vmatprep.subr.bf16.mxu0 %v1640_v40  ;;  %2450 = vmatprep.subr.bf16.mxu1 %v1642_v41  ;;  %v1689_v38 = vunpack.c.h.s8.bf16 %v713_v26  ;;  %v1704_v39 = vunpack.c.l.s8.bf16 %v728_v34  ;;  %v727_v41 = vld [vmem:[#allocation6 + $0xea0] sm:$0xff]  ;;  %v746_v51 = vld [vmem:[#allocation6 + $0xf38] sm:$0xff]  ;;  %v745_v56 = vld [vmem:[#allocation6 + $0xf30] sm:$0xff] }
 0x30a   :  { %v3320_v17 = vadd.f32 %v3246_v49, %v3220_v54  ;;  %v3322_v5 = vadd.f32 %v3254_v30, %v3222_v55  ;;  %v1706_v40 = vunpack.c.l.s8.bf16 %v730_v36  ;;  %v1703_v46 = vunpack.c.l.s8.bf16 %v727_v41  ;;  %v744_v30 = vld [vmem:[#allocation6 + $0xf28] sm:$0xff]  ;;  %v743_v55 = vld [vmem:[#allocation6 + $0xf20] sm:$0xff]  ;;  %v762_v0 = vld [vmem:[#allocation6 + $0xfb8] sm:$0xff] }
 0x30b   :  { %v3335_v8 = vmax.f32 %v3319_v62, 0.0  ;;  %v3337_v10 = vmax.f32 %v3321_v63, 0.0  ;;  %v1705_v47 = vunpack.c.l.s8.bf16 %v729_v45  ;;  %v1720_v48 = vunpack.c.h.s8.bf16 %v728_v34  ;;  %v760_v63 = vld [vmem:[#allocation6 + $0xfa8] sm:$0xff] }
 0x30c   :  { %v3336_v11 = vmax.f32 %v3320_v17, 0.0  ;;  %v3338_v12 = vmax.f32 %v3322_v5, 0.0  ;;  %2287 = vmatpush1.bf16.msra.mxu0 %v1639_v58  ;;  %2451 = vmatpush1.bf16.msra.mxu1 %v1641_v59  ;;  %v1722_v49 = vunpack.c.h.s8.bf16 %v730_v36  ;;  %v1719_v52 = vunpack.c.h.s8.bf16 %v727_v41  ;;  %v759_v5 = vld [vmem:[#allocation6 + $0xfa0] sm:$0xff] }
 0x30d   :  { %v3351_v15 = vpack.c.bf16 %v3335_v8, %v3335_v8  ;;  %v3353_v20 = vpack.c.bf16 %v3337_v10, %v3337_v10  ;;  %2288 = vmatprep.subr.bf16.mxu0 %v1656_v2  ;;  %2452 = vmatprep.subr.bf16.mxu1 %v1658_v3  ;;  %v1721_v61 = vunpack.c.h.s8.bf16 %v729_v45  ;;  %v1736_v53 = vunpack.c.l.s8.bf16 %v744_v30 }
 0x30e   :  { %v3352_v27 = vpack.c.bf16 %v3336_v11, %v3336_v11  ;;  %v3354_v28 = vpack.c.bf16 %v3338_v12, %v3338_v12  ;;  %v1738_v54 = vunpack.c.l.s8.bf16 %v746_v51  ;;  %v1735_v57 = vunpack.c.l.s8.bf16 %v743_v55  ;;  %v268_v12 = vld [vmem:[#allocation6 + $0x48] sm:$0xff] }
 0x30f   :  { %3367 = vst [vmem:[#allocation2] sm:$0xf] %v3351_v15  ;;  %3369 = vst [vmem:[#allocation2 + $0x10] sm:$0xf] %v3353_v20  ;;  %v1737_v58 = vunpack.c.l.s8.bf16 %v745_v56  ;;  %v1752_v59 = vunpack.c.h.s8.bf16 %v744_v30  ;;  %v1754_v62 = vunpack.c.h.s8.bf16 %v746_v51  ;;  %v1751_v1 = vunpack.c.h.s8.bf16 %v743_v55 }
 0x310   :  { %3368 = vst [vmem:[#allocation2 + $0x8] sm:$0xf] %v3352_v27  ;;  %3370 = vst [vmem:[#allocation2 + $0x18] sm:$0xf] %v3354_v28  ;;  %2289 = vmatpush1.bf16.msra.mxu0 %v1655_v13  ;;  %2453 = vmatpush1.bf16.msra.mxu1 %v1657_v14  ;;  %v1753_v2 = vunpack.c.h.s8.bf16 %v745_v56  ;;  %v1768_v3 = vunpack.c.l.s8.bf16 %v760_v63  ;;  %v1770_v17 = vunpack.c.l.s8.bf16 %v762_v0  ;;  %v1767_v7 = vunpack.c.l.s8.bf16 %v759_v5  ;;  %v270_v13 = vld [vmem:[#allocation6 + $0x58] sm:$0xff] }
 0x311   :  { %2290 = vmatprep.subr.bf16.mxu0 %v1672_v21  ;;  %2454 = vmatprep.subr.bf16.mxu1 %v1674_v22  ;;  %v1769_v8 = vunpack.c.l.s8.bf16 %v761_v6  ;;  %v1784_v10 = vunpack.c.h.s8.bf16 %v760_v63  ;;  %v1786_v11 = vunpack.c.h.s8.bf16 %v762_v0  ;;  %v1783_v14 = vunpack.c.h.s8.bf16 %v759_v5  ;;  %v267_v22 = vld [vmem:[#allocation6 + $0x40] sm:$0xff] }
 0x312   :  { %v1785_v15 = vunpack.c.h.s8.bf16 %v761_v6  ;;  %v780_v20 = vunpack.c.l.s8.bf16 %v268_v12  ;;  %v782_v21 = vunpack.c.l.s8.bf16 %v270_v13  ;;  %v779_v26 = vunpack.c.l.s8.bf16 %v267_v22 }
 0x313   :  { %v781_v27 = vunpack.c.l.s8.bf16 %v269_v25  ;;  %v796_v28 = vunpack.c.h.s8.bf16 %v268_v12  ;;  %v797_v34 = vunpack.c.h.s8.bf16 %v269_v25 }
 0x314   :  { %2291 = vmatpush1.bf16.msra.mxu0 %v1671_v29  ;;  %2455 = vmatpush1.bf16.msra.mxu1 %v1673_v31  ;;  %v798_v29 = vunpack.c.h.s8.bf16 %v270_v13  ;;  %v284_v31 = vld [vmem:[#allocation6 + $0xc8] sm:$0xff] }
 0x315   :  { %2292 = vmatprep.subr.bf16.mxu0 %v1688_v32  ;;  %2456 = vmatprep.subr.bf16.mxu1 %v1690_v33  ;;  %v286_v32 = vld [vmem:[#allocation6 + $0xd8] sm:$0xff]  ;;  %v795_v33 = vunpack.c.h.s8.bf16 %v267_v22  ;;  %v812_v36 = vunpack.c.l.s8.bf16 %v284_v31  ;;  %v828_v45 = vunpack.c.h.s8.bf16 %v284_v31 }
 0x318   :  { %2293 = vmatpush1.bf16.msra.mxu0 %v1687_v37  ;;  %2457 = vmatpush1.bf16.msra.mxu1 %v1689_v38  ;;  %v814_v37 = vunpack.c.l.s8.bf16 %v286_v32  ;;  %v283_v38 = vld [vmem:[#allocation6 + $0xc0] sm:$0xff] }
 0x319   :  { %2294 = vmatprep.subr.bf16.mxu0 %v1704_v39  ;;  %2458 = vmatprep.subr.bf16.mxu1 %v1706_v40  ;;  %v285_v39 = vld [vmem:[#allocation6 + $0xd0] sm:$0xff]  ;;  %v811_v40 = vunpack.c.l.s8.bf16 %v283_v38 }
 0x31a   :  { %v813_v41 = vunpack.c.l.s8.bf16 %v285_v39  ;;  %v829_v30 = vunpack.c.h.s8.bf16 %v285_v39 }
 0x31c   :  { %2295 = vmatpush1.bf16.msra.mxu0 %v1703_v46  ;;  %2459 = vmatpush1.bf16.msra.mxu1 %v1705_v47  ;;  %v830_v46 = vunpack.c.h.s8.bf16 %v286_v32  ;;  %v300_v47 = vld [vmem:[#allocation6 + $0x148] sm:$0xff] }
 0x31d   :  { %2296 = vmatprep.subr.bf16.mxu0 %v1720_v48  ;;  %2460 = vmatprep.subr.bf16.mxu1 %v1722_v49  ;;  %v302_v48 = vld [vmem:[#allocation6 + $0x158] sm:$0xff]  ;;  %v827_v49 = vunpack.c.h.s8.bf16 %v283_v38  ;;  %v844_v51 = vunpack.c.l.s8.bf16 %v300_v47  ;;  %v860_v56 = vunpack.c.h.s8.bf16 %v300_v47 }
 0x320   :  { %2297 = vmatpush1.bf16.msra.mxu0 %v1719_v52  ;;  %2461 = vmatpush1.bf16.msra.mxu1 %v1721_v61  ;;  %v846_v52 = vunpack.c.l.s8.bf16 %v302_v48  ;;  %v299_v61 = vld [vmem:[#allocation6 + $0x140] sm:$0xff] }
 0x321   :  { %2298 = vmatprep.subr.bf16.mxu0 %v1736_v53  ;;  %2462 = vmatprep.subr.bf16.mxu1 %v1738_v54  ;;  %v301_v53 = vld [vmem:[#allocation6 + $0x150] sm:$0xff]  ;;  %v843_v54 = vunpack.c.l.s8.bf16 %v299_v61 }
 0x322   :  { %v845_v55 = vunpack.c.l.s8.bf16 %v301_v53  ;;  %v861_v63 = vunpack.c.h.s8.bf16 %v301_v53 }
 0x324   :  { %2299 = vmatpush1.bf16.msra.mxu0 %v1735_v57  ;;  %2463 = vmatpush1.bf16.msra.mxu1 %v1737_v58  ;;  %v862_v57 = vunpack.c.h.s8.bf16 %v302_v48  ;;  %v316_v58 = vld [vmem:[#allocation6 + $0x1c8] sm:$0xff] }
 0x325   :  { %2300 = vmatprep.subr.bf16.mxu0 %v1752_v59  ;;  %2464 = vmatprep.subr.bf16.mxu1 %v1754_v62  ;;  %v318_v59 = vld [vmem:[#allocation6 + $0x1d8] sm:$0xff]  ;;  %v859_v62 = vunpack.c.h.s8.bf16 %v299_v61  ;;  %v876_v0 = vunpack.c.l.s8.bf16 %v316_v58  ;;  %v892_v6 = vunpack.c.h.s8.bf16 %v316_v58 }
 0x328   :  { %2301 = vmatpush1.bf16.msra.mxu0 %v1751_v1  ;;  %2465 = vmatpush1.bf16.msra.mxu1 %v1753_v2  ;;  %v878_v1 = vunpack.c.l.s8.bf16 %v318_v59  ;;  %v315_v2 = vld [vmem:[#allocation6 + $0x1c0] sm:$0xff] }
 0x329   :  { %2302 = vmatprep.subr.bf16.mxu0 %v1768_v3  ;;  %2466 = vmatprep.subr.bf16.mxu1 %v1770_v17  ;;  %v317_v3 = vld [vmem:[#allocation6 + $0x1d0] sm:$0xff]  ;;  %v875_v17 = vunpack.c.l.s8.bf16 %v315_v2 }
 0x32a   :  { %v877_v5 = vunpack.c.l.s8.bf16 %v317_v3  ;;  %v893_v12 = vunpack.c.h.s8.bf16 %v317_v3 }
 0x32c   :  { %2303 = vmatpush1.bf16.msra.mxu0 %v1767_v7  ;;  %2467 = vmatpush1.bf16.msra.mxu1 %v1769_v8  ;;  %v894_v7 = vunpack.c.h.s8.bf16 %v318_v59  ;;  %v332_v8 = vld [vmem:[#allocation6 + $0x248] sm:$0xff] }
 0x32d   :  { %2304 = vmatprep.subr.bf16.mxu0 %v1784_v10  ;;  %2468 = vmatprep.subr.bf16.mxu1 %v1786_v11  ;;  %v334_v10 = vld [vmem:[#allocation6 + $0x258] sm:$0xff]  ;;  %v891_v11 = vunpack.c.h.s8.bf16 %v315_v2  ;;  %v908_v13 = vunpack.c.l.s8.bf16 %v332_v8  ;;  %v924_v25 = vunpack.c.h.s8.bf16 %v332_v8 }
 0x330   :  { %2305 = vmatpush1.bf16.msra.mxu0 %v1783_v14  ;;  %2469 = vmatpush1.bf16.msra.mxu1 %v1785_v15  ;;  %v910_v14 = vunpack.c.l.s8.bf16 %v334_v10  ;;  %v331_v15 = vld [vmem:[#allocation6 + $0x240] sm:$0xff] }
 0x331   :  { %2479 = vmatprep.subr.bf16.mxu0 %v780_v20  ;;  %2643 = vmatprep.subr.bf16.mxu1 %v782_v21  ;;  %v333_v20 = vld [vmem:[#allocation6 + $0x250] sm:$0xff]  ;;  %v907_v21 = vunpack.c.l.s8.bf16 %v331_v15 }
 0x332   :  { %v909_v22 = vunpack.c.l.s8.bf16 %v333_v20  ;;  %v925_v31 = vunpack.c.h.s8.bf16 %v333_v20 }
 0x333   :  { %2307 = vmatmul.mubr.bf16.vlgmr.msra.gmra.mrb[4].mxu0 %v13077_v44  ;;  %2471 = vmatmul.mubr.bf16.vlgmr.msra.gmra.mrb[4].mxu1 %v13077_v44 }
 0x334   :  { %2480 = vmatpush1.bf16.msra.mxu0 %v779_v26  ;;  %2644 = vmatpush1.bf16.msra.mxu1 %v781_v27  ;;  %v926_v26 = vunpack.c.h.s8.bf16 %v334_v10  ;;  %v348_v27 = vld [vmem:[#allocation6 + $0x2c8] sm:$0xff] }
 0x335   :  { %2481 = vmatprep.subr.bf16.mxu0 %v796_v28  ;;  %2645 = vmatprep.subr.bf16.mxu1 %v798_v29  ;;  %v350_v28 = vld [vmem:[#allocation6 + $0x2d8] sm:$0xff]  ;;  %v923_v29 = vunpack.c.h.s8.bf16 %v331_v15  ;;  %v940_v32 = vunpack.c.l.s8.bf16 %v348_v27  ;;  %v956_v39 = vunpack.c.h.s8.bf16 %v348_v27 }
 0x336   :  { %2511 = vmatprep.mubr.bf16.mxu0 %v13020_v35  ;;  %2675 = vmatprep.mubr.bf16.mxu1 %v13020_v35 }
 0x338   :  { %2482 = vmatpush1.bf16.msra.mxu0 %v795_v33  ;;  %2646 = vmatpush1.bf16.msra.mxu1 %v797_v34  ;;  %v942_v33 = vunpack.c.l.s8.bf16 %v350_v28  ;;  %v347_v34 = vld [vmem:[#allocation6 + $0x2c0] sm:$0xff] }
 0x339   :  { %2483 = vmatprep.subr.bf16.mxu0 %v812_v36  ;;  %2647 = vmatprep.subr.bf16.mxu1 %v814_v37  ;;  %v349_v36 = vld [vmem:[#allocation6 + $0x2d0] sm:$0xff]  ;;  %v939_v37 = vunpack.c.l.s8.bf16 %v347_v34 }
 0x33a   :  { %v941_v38 = vunpack.c.l.s8.bf16 %v349_v36  ;;  %v957_v47 = vunpack.c.h.s8.bf16 %v349_v36 }
 0x33c   :  { %2484 = vmatpush1.bf16.msra.mxu0 %v811_v40  ;;  %2648 = vmatpush1.bf16.msra.mxu1 %v813_v41  ;;  %v958_v40 = vunpack.c.h.s8.bf16 %v350_v28  ;;  %v364_v41 = vld [vmem:[#allocation6 + $0x348] sm:$0xff] }
 0x33d   :  { %2485 = vmatprep.subr.bf16.mxu0 %v828_v45  ;;  %2649 = vmatprep.subr.bf16.mxu1 %v830_v46  ;;  %v366_v45 = vld [vmem:[#allocation6 + $0x358] sm:$0xff]  ;;  %v955_v46 = vunpack.c.h.s8.bf16 %v347_v34  ;;  %v972_v48 = vunpack.c.l.s8.bf16 %v364_v41  ;;  %v988_v53 = vunpack.c.h.s8.bf16 %v364_v41 }
 0x340   :  { %2486 = vmatpush1.bf16.msra.mxu0 %v827_v49  ;;  %2650 = vmatpush1.bf16.msra.mxu1 %v829_v30  ;;  %v974_v49 = vunpack.c.l.s8.bf16 %v366_v45  ;;  %v363_v30 = vld [vmem:[#allocation6 + $0x340] sm:$0xff] }
 0x341   :  { %2487 = vmatprep.subr.bf16.mxu0 %v844_v51  ;;  %2651 = vmatprep.subr.bf16.mxu1 %v846_v52  ;;  %v365_v51 = vld [vmem:[#allocation6 + $0x350] sm:$0xff]  ;;  %v971_v52 = vunpack.c.l.s8.bf16 %v363_v30 }
 0x342   :  { %v973_v61 = vunpack.c.l.s8.bf16 %v365_v51  ;;  %v989_v58 = vunpack.c.h.s8.bf16 %v365_v51 }
 0x344   :  { %2488 = vmatpush1.bf16.msra.mxu0 %v843_v54  ;;  %2652 = vmatpush1.bf16.msra.mxu1 %v845_v55  ;;  %v990_v54 = vunpack.c.h.s8.bf16 %v366_v45  ;;  %v380_v55 = vld [vmem:[#allocation6 + $0x3c8] sm:$0xff] }
 0x345   :  { %2489 = vmatprep.subr.bf16.mxu0 %v860_v56  ;;  %2653 = vmatprep.subr.bf16.mxu1 %v862_v57  ;;  %v382_v56 = vld [vmem:[#allocation6 + $0x3d8] sm:$0xff]  ;;  %v987_v57 = vunpack.c.h.s8.bf16 %v363_v30  ;;  %v1004_v59 = vunpack.c.l.s8.bf16 %v380_v55  ;;  %v1020_v3 = vunpack.c.h.s8.bf16 %v380_v55 }
 0x348   :  { %2490 = vmatpush1.bf16.msra.mxu0 %v859_v62  ;;  %2654 = vmatpush1.bf16.msra.mxu1 %v861_v63  ;;  %v1006_v62 = vunpack.c.l.s8.bf16 %v382_v56  ;;  %v379_v63 = vld [vmem:[#allocation6 + $0x3c0] sm:$0xff] }
 0x349   :  { %2491 = vmatprep.subr.bf16.mxu0 %v876_v0  ;;  %2655 = vmatprep.subr.bf16.mxu1 %v878_v1  ;;  %v381_v0 = vld [vmem:[#allocation6 + $0x3d0] sm:$0xff]  ;;  %v1003_v1 = vunpack.c.l.s8.bf16 %v379_v63 }
 0x34a   :  { %v1005_v2 = vunpack.c.l.s8.bf16 %v381_v0  ;;  %v1021_v8 = vunpack.c.h.s8.bf16 %v381_v0 }
 0x34c   :  { %2492 = vmatpush1.bf16.msra.mxu0 %v875_v17  ;;  %2656 = vmatpush1.bf16.msra.mxu1 %v877_v5  ;;  %v1022_v17 = vunpack.c.h.s8.bf16 %v382_v56  ;;  %v396_v5 = vld [vmem:[#allocation6 + $0x448] sm:$0xff] }
 0x34d   :  { %2493 = vmatprep.subr.bf16.mxu0 %v892_v6  ;;  %2657 = vmatprep.subr.bf16.mxu1 %v894_v7  ;;  %v398_v6 = vld [vmem:[#allocation6 + $0x458] sm:$0xff]  ;;  %v1019_v7 = vunpack.c.h.s8.bf16 %v379_v63  ;;  %v1036_v10 = vunpack.c.l.s8.bf16 %v396_v5  ;;  %v1052_v20 = vunpack.c.h.s8.bf16 %v396_v5 }
 0x350   :  { %2494 = vmatpush1.bf16.msra.mxu0 %v891_v11  ;;  %2658 = vmatpush1.bf16.msra.mxu1 %v893_v12  ;;  %v1038_v11 = vunpack.c.l.s8.bf16 %v398_v6  ;;  %v395_v12 = vld [vmem:[#allocation6 + $0x440] sm:$0xff] }
 0x351   :  { %2495 = vmatprep.subr.bf16.mxu0 %v908_v13  ;;  %2659 = vmatprep.subr.bf16.mxu1 %v910_v14  ;;  %v397_v13 = vld [vmem:[#allocation6 + $0x450] sm:$0xff]  ;;  %v1035_v14 = vunpack.c.l.s8.bf16 %v395_v12 }
 0x352   :  { %v1037_v15 = vunpack.c.l.s8.bf16 %v397_v13  ;;  %v1053_v27 = vunpack.c.h.s8.bf16 %v397_v13 }
 0x354   :  { %2496 = vmatpush1.bf16.msra.mxu0 %v907_v21  ;;  %2660 = vmatpush1.bf16.msra.mxu1 %v909_v22  ;;  %v1054_v21 = vunpack.c.h.s8.bf16 %v398_v6  ;;  %v412_v22 = vld [vmem:[#allocation6 + $0x4c8] sm:$0xff] }
 0x355   :  { %2497 = vmatprep.subr.bf16.mxu0 %v924_v25  ;;  %2661 = vmatprep.subr.bf16.mxu1 %v926_v26  ;;  %v414_v25 = vld [vmem:[#allocation6 + $0x4d8] sm:$0xff]  ;;  %v1051_v26 = vunpack.c.h.s8.bf16 %v395_v12  ;;  %v1068_v28 = vunpack.c.l.s8.bf16 %v412_v22  ;;  %v1084_v36 = vunpack.c.h.s8.bf16 %v412_v22 }
 0x358   :  { %2498 = vmatpush1.bf16.msra.mxu0 %v923_v29  ;;  %2662 = vmatpush1.bf16.msra.mxu1 %v925_v31  ;;  %v1070_v29 = vunpack.c.l.s8.bf16 %v414_v25  ;;  %v411_v31 = vld [vmem:[#allocation6 + $0x4c0] sm:$0xff] }
 0x359   :  { %2499 = vmatprep.subr.bf16.mxu0 %v940_v32  ;;  %2663 = vmatprep.subr.bf16.mxu1 %v942_v33  ;;  %v413_v32 = vld [vmem:[#allocation6 + $0x4d0] sm:$0xff]  ;;  %v1067_v33 = vunpack.c.l.s8.bf16 %v411_v31 }
 0x35a   :  { %v1069_v34 = vunpack.c.l.s8.bf16 %v413_v32  ;;  %v1085_v41 = vunpack.c.h.s8.bf16 %v413_v32 }
 0x35c   :  { %2500 = vmatpush1.bf16.msra.mxu0 %v939_v37  ;;  %2664 = vmatpush1.bf16.msra.mxu1 %v941_v38  ;;  %v1086_v37 = vunpack.c.h.s8.bf16 %v414_v25  ;;  %v428_v38 = vld [vmem:[#allocation6 + $0x548] sm:$0xff] }
 0x35d   :  { %2501 = vmatprep.subr.bf16.mxu0 %v956_v39  ;;  %2665 = vmatprep.subr.bf16.mxu1 %v958_v40  ;;  %v430_v39 = vld [vmem:[#allocation6 + $0x558] sm:$0xff]  ;;  %v1083_v40 = vunpack.c.h.s8.bf16 %v411_v31  ;;  %v1100_v45 = vunpack.c.l.s8.bf16 %v428_v38  ;;  %v1116_v51 = vunpack.c.h.s8.bf16 %v428_v38 }
 0x360   :  { %2502 = vmatpush1.bf16.msra.mxu0 %v955_v46  ;;  %2666 = vmatpush1.bf16.msra.mxu1 %v957_v47  ;;  %v1102_v46 = vunpack.c.l.s8.bf16 %v430_v39  ;;  %v427_v47 = vld [vmem:[#allocation6 + $0x540] sm:$0xff] }
 0x361   :  { %2503 = vmatprep.subr.bf16.mxu0 %v972_v48  ;;  %2667 = vmatprep.subr.bf16.mxu1 %v974_v49  ;;  %v429_v48 = vld [vmem:[#allocation6 + $0x550] sm:$0xff]  ;;  %v1099_v49 = vunpack.c.l.s8.bf16 %v427_v47 }
 0x362   :  { %v1101_v30 = vunpack.c.l.s8.bf16 %v429_v48  ;;  %v1117_v55 = vunpack.c.h.s8.bf16 %v429_v48 }
 0x364   :  { %2504 = vmatpush1.bf16.msra.mxu0 %v971_v52  ;;  %2668 = vmatpush1.bf16.msra.mxu1 %v973_v61  ;;  %v1118_v52 = vunpack.c.h.s8.bf16 %v430_v39  ;;  %v444_v61 = vld [vmem:[#allocation6 + $0x5c8] sm:$0xff] }
 0x365   :  { %2505 = vmatprep.subr.bf16.mxu0 %v988_v53  ;;  %2669 = vmatprep.subr.bf16.mxu1 %v990_v54  ;;  %v446_v53 = vld [vmem:[#allocation6 + $0x5d8] sm:$0xff]  ;;  %v1115_v54 = vunpack.c.h.s8.bf16 %v427_v47  ;;  %v1132_v56 = vunpack.c.l.s8.bf16 %v444_v61  ;;  %v1148_v0 = vunpack.c.h.s8.bf16 %v444_v61 }
 0x368   :  { %2506 = vmatpush1.bf16.msra.mxu0 %v987_v57  ;;  %2670 = vmatpush1.bf16.msra.mxu1 %v989_v58  ;;  %v1134_v57 = vunpack.c.l.s8.bf16 %v446_v53  ;;  %v443_v58 = vld [vmem:[#allocation6 + $0x5c0] sm:$0xff] }
 0x369   :  { %2507 = vmatprep.subr.bf16.mxu0 %v1004_v59  ;;  %2671 = vmatprep.subr.bf16.mxu1 %v1006_v62  ;;  %v445_v59 = vld [vmem:[#allocation6 + $0x5d0] sm:$0xff]  ;;  %v1131_v62 = vunpack.c.l.s8.bf16 %v443_v58 }
 0x36a   :  { %v1133_v63 = vunpack.c.l.s8.bf16 %v445_v59  ;;  %v1149_v5 = vunpack.c.h.s8.bf16 %v445_v59 }
 0x36c   :  { %2508 = vmatpush1.bf16.msra.mxu0 %v1003_v1  ;;  %2672 = vmatpush1.bf16.msra.mxu1 %v1005_v2  ;;  %v1150_v1 = vunpack.c.h.s8.bf16 %v446_v53  ;;  %v460_v2 = vld [vmem:[#allocation6 + $0x648] sm:$0xff] }
 0x36d   :  { %2509 = vmatprep.subr.bf16.mxu0 %v1020_v3  ;;  %2673 = vmatprep.subr.bf16.mxu1 %v1022_v17  ;;  %v462_v3 = vld [vmem:[#allocation6 + $0x658] sm:$0xff]  ;;  %v1147_v17 = vunpack.c.h.s8.bf16 %v443_v58  ;;  %v1164_v6 = vunpack.c.l.s8.bf16 %v460_v2  ;;  %v1180_v13 = vunpack.c.h.s8.bf16 %v460_v2 }
 0x370   :  { %2510 = vmatpush1.bf16.msra.mxu0 %v1019_v7  ;;  %2674 = vmatpush1.bf16.msra.mxu1 %v1021_v8  ;;  %v1166_v7 = vunpack.c.l.s8.bf16 %v462_v3  ;;  %v459_v8 = vld [vmem:[#allocation6 + $0x640] sm:$0xff] }
 0x371   :  { %2520 = vmatprep.subr.bf16.mxu0 %v1036_v10  ;;  %2684 = vmatprep.subr.bf16.mxu1 %v1038_v11  ;;  %v461_v10 = vld [vmem:[#allocation6 + $0x650] sm:$0xff]  ;;  %v1163_v11 = vunpack.c.l.s8.bf16 %v459_v8 }
 0x372   :  { %v1165_v12 = vunpack.c.l.s8.bf16 %v461_v10  ;;  %v1181_v22 = vunpack.c.h.s8.bf16 %v461_v10 }
 0x373   :  { %2512 = vmatmul.mubr.bf16.vlgmr.msra.gmra.mrb[8].mxu0 %v13031_v43  ;;  %2676 = vmatmul.mubr.bf16.vlgmr.msra.gmra.mrb[8].mxu1 %v13031_v43 }
 0x374   :  { %2521 = vmatpush1.bf16.msra.mxu0 %v1035_v14  ;;  %2685 = vmatpush1.bf16.msra.mxu1 %v1037_v15  ;;  %v1182_v14 = vunpack.c.h.s8.bf16 %v462_v3  ;;  %v476_v15 = vld [vmem:[#allocation6 + $0x6c8] sm:$0xff] }
 0x375   :  { %2522 = vmatprep.subr.bf16.mxu0 %v1052_v20  ;;  %2686 = vmatprep.subr.bf16.mxu1 %v1054_v21  ;;  %v478_v20 = vld [vmem:[#allocation6 + $0x6d8] sm:$0xff]  ;;  %v1179_v21 = vunpack.c.h.s8.bf16 %v459_v8  ;;  %v1196_v25 = vunpack.c.l.s8.bf16 %v476_v15  ;;  %v1212_v32 = vunpack.c.h.s8.bf16 %v476_v15 }
 0x376   :  { %2552 = vmatprep.mubr.bf16.mxu0 %v13035_v50  ;;  %2716 = vmatprep.mubr.bf16.mxu1 %v13035_v50 }
 0x378   :  { %2523 = vmatpush1.bf16.msra.mxu0 %v1051_v26  ;;  %2687 = vmatpush1.bf16.msra.mxu1 %v1053_v27  ;;  %v1198_v26 = vunpack.c.l.s8.bf16 %v478_v20  ;;  %v475_v27 = vld [vmem:[#allocation6 + $0x6c0] sm:$0xff] }
 0x379   :  { %2524 = vmatprep.subr.bf16.mxu0 %v1068_v28  ;;  %2688 = vmatprep.subr.bf16.mxu1 %v1070_v29  ;;  %v477_v28 = vld [vmem:[#allocation6 + $0x6d0] sm:$0xff]  ;;  %v1195_v29 = vunpack.c.l.s8.bf16 %v475_v27 }
 0x37a   :  { %v1197_v31 = vunpack.c.l.s8.bf16 %v477_v28  ;;  %v1213_v38 = vunpack.c.h.s8.bf16 %v477_v28 }
 0x37c   :  { %2525 = vmatpush1.bf16.msra.mxu0 %v1067_v33  ;;  %2689 = vmatpush1.bf16.msra.mxu1 %v1069_v34  ;;  %v1214_v33 = vunpack.c.h.s8.bf16 %v478_v20  ;;  %v492_v34 = vld [vmem:[#allocation6 + $0x748] sm:$0xff] }
 0x37d   :  { %2526 = vmatprep.subr.bf16.mxu0 %v1084_v36  ;;  %2690 = vmatprep.subr.bf16.mxu1 %v1086_v37  ;;  %v494_v36 = vld [vmem:[#allocation6 + $0x758] sm:$0xff]  ;;  %v1211_v37 = vunpack.c.h.s8.bf16 %v475_v27  ;;  %v1228_v39 = vunpack.c.l.s8.bf16 %v492_v34  ;;  %v1244_v48 = vunpack.c.h.s8.bf16 %v492_v34 }
 0x380   :  { %2527 = vmatpush1.bf16.msra.mxu0 %v1083_v40  ;;  %2691 = vmatpush1.bf16.msra.mxu1 %v1085_v41  ;;  %v1230_v40 = vunpack.c.l.s8.bf16 %v494_v36  ;;  %v491_v41 = vld [vmem:[#allocation6 + $0x740] sm:$0xff] }
 0x381   :  { %2528 = vmatprep.subr.bf16.mxu0 %v1100_v45  ;;  %2692 = vmatprep.subr.bf16.mxu1 %v1102_v46  ;;  %v493_v45 = vld [vmem:[#allocation6 + $0x750] sm:$0xff]  ;;  %v1227_v46 = vunpack.c.l.s8.bf16 %v491_v41 }
 0x382   :  { %v1229_v47 = vunpack.c.l.s8.bf16 %v493_v45  ;;  %v1245_v61 = vunpack.c.h.s8.bf16 %v493_v45 }
 0x384   :  { %2529 = vmatpush1.bf16.msra.mxu0 %v1099_v49  ;;  %2693 = vmatpush1.bf16.msra.mxu1 %v1101_v30  ;;  %v1246_v49 = vunpack.c.h.s8.bf16 %v494_v36  ;;  %v508_v30 = vld [vmem:[#allocation6 + $0x7c8] sm:$0xff] }
 0x385   :  { %2530 = vmatprep.subr.bf16.mxu0 %v1116_v51  ;;  %2694 = vmatprep.subr.bf16.mxu1 %v1118_v52  ;;  %v510_v51 = vld [vmem:[#allocation6 + $0x7d8] sm:$0xff]  ;;  %v1243_v52 = vunpack.c.h.s8.bf16 %v491_v41  ;;  %v1260_v53 = vunpack.c.l.s8.bf16 %v508_v30  ;;  %v1276_v59 = vunpack.c.h.s8.bf16 %v508_v30 }
 0x388   :  { %2531 = vmatpush1.bf16.msra.mxu0 %v1115_v54  ;;  %2695 = vmatpush1.bf16.msra.mxu1 %v1117_v55  ;;  %v1262_v54 = vunpack.c.l.s8.bf16 %v510_v51  ;;  %v507_v55 = vld [vmem:[#allocation6 + $0x7c0] sm:$0xff] }
 0x389   :  { %2532 = vmatprep.subr.bf16.mxu0 %v1132_v56  ;;  %2696 = vmatprep.subr.bf16.mxu1 %v1134_v57  ;;  %v509_v56 = vld [vmem:[#allocation6 + $0x7d0] sm:$0xff]  ;;  %v1259_v57 = vunpack.c.l.s8.bf16 %v507_v55 }
 0x38a   :  { %v1261_v58 = vunpack.c.l.s8.bf16 %v509_v56  ;;  %v1277_v2 = vunpack.c.h.s8.bf16 %v509_v56 }
 0x38c   :  { %2533 = vmatpush1.bf16.msra.mxu0 %v1131_v62  ;;  %2697 = vmatpush1.bf16.msra.mxu1 %v1133_v63  ;;  %v1278_v62 = vunpack.c.h.s8.bf16 %v510_v51  ;;  %v524_v63 = vld [vmem:[#allocation6 + $0x848] sm:$0xff] }
 0x38d   :  { %2534 = vmatprep.subr.bf16.mxu0 %v1148_v0  ;;  %2698 = vmatprep.subr.bf16.mxu1 %v1150_v1  ;;  %v526_v0 = vld [vmem:[#allocation6 + $0x858] sm:$0xff]  ;;  %v1275_v1 = vunpack.c.h.s8.bf16 %v507_v55  ;;  %v1292_v3 = vunpack.c.l.s8.bf16 %v524_v63  ;;  %v1308_v10 = vunpack.c.h.s8.bf16 %v524_v63 }
 0x390   :  { %2535 = vmatpush1.bf16.msra.mxu0 %v1147_v17  ;;  %2699 = vmatpush1.bf16.msra.mxu1 %v1149_v5  ;;  %v1294_v17 = vunpack.c.l.s8.bf16 %v526_v0  ;;  %v523_v5 = vld [vmem:[#allocation6 + $0x840] sm:$0xff] }
 0x391   :  { %2536 = vmatprep.subr.bf16.mxu0 %v1164_v6  ;;  %2700 = vmatprep.subr.bf16.mxu1 %v1166_v7  ;;  %v525_v6 = vld [vmem:[#allocation6 + $0x850] sm:$0xff]  ;;  %v1291_v7 = vunpack.c.l.s8.bf16 %v523_v5 }
 0x392   :  { %v1293_v8 = vunpack.c.l.s8.bf16 %v525_v6  ;;  %v1309_v15 = vunpack.c.h.s8.bf16 %v525_v6 }
 0x394   :  { %2537 = vmatpush1.bf16.msra.mxu0 %v1163_v11  ;;  %2701 = vmatpush1.bf16.msra.mxu1 %v1165_v12  ;;  %v1310_v11 = vunpack.c.h.s8.bf16 %v526_v0  ;;  %v540_v12 = vld [vmem:[#allocation6 + $0x8c8] sm:$0xff] }
 0x395   :  { %2538 = vmatprep.subr.bf16.mxu0 %v1180_v13  ;;  %2702 = vmatprep.subr.bf16.mxu1 %v1182_v14  ;;  %v542_v13 = vld [vmem:[#allocation6 + $0x8d8] sm:$0xff]  ;;  %v1307_v14 = vunpack.c.h.s8.bf16 %v523_v5  ;;  %v1324_v20 = vunpack.c.l.s8.bf16 %v540_v12  ;;  %v1340_v28 = vunpack.c.h.s8.bf16 %v540_v12 }
 0x398   :  { %2539 = vmatpush1.bf16.msra.mxu0 %v1179_v21  ;;  %2703 = vmatpush1.bf16.msra.mxu1 %v1181_v22  ;;  %v1326_v21 = vunpack.c.l.s8.bf16 %v542_v13  ;;  %v539_v22 = vld [vmem:[#allocation6 + $0x8c0] sm:$0xff] }
 0x399   :  { %2540 = vmatprep.subr.bf16.mxu0 %v1196_v25  ;;  %2704 = vmatprep.subr.bf16.mxu1 %v1198_v26  ;;  %v541_v25 = vld [vmem:[#allocation6 + $0x8d0] sm:$0xff]  ;;  %v1323_v26 = vunpack.c.l.s8.bf16 %v539_v22 }
 0x39a   :  { %v1325_v27 = vunpack.c.l.s8.bf16 %v541_v25  ;;  %v1341_v34 = vunpack.c.h.s8.bf16 %v541_v25 }
 0x39c   :  { %2541 = vmatpush1.bf16.msra.mxu0 %v1195_v29  ;;  %2705 = vmatpush1.bf16.msra.mxu1 %v1197_v31  ;;  %v1342_v29 = vunpack.c.h.s8.bf16 %v542_v13  ;;  %v556_v31 = vld [vmem:[#allocation6 + $0x948] sm:$0xff] }
 0x39d   :  { %2542 = vmatprep.subr.bf16.mxu0 %v1212_v32  ;;  %2706 = vmatprep.subr.bf16.mxu1 %v1214_v33  ;;  %v558_v32 = vld [vmem:[#allocation6 + $0x958] sm:$0xff]  ;;  %v1339_v33 = vunpack.c.h.s8.bf16 %v539_v22  ;;  %v1356_v36 = vunpack.c.l.s8.bf16 %v556_v31  ;;  %v1372_v45 = vunpack.c.h.s8.bf16 %v556_v31 }
 0x3a0   :  { %2543 = vmatpush1.bf16.msra.mxu0 %v1211_v37  ;;  %2707 = vmatpush1.bf16.msra.mxu1 %v1213_v38  ;;  %v1358_v37 = vunpack.c.l.s8.bf16 %v558_v32  ;;  %v555_v38 = vld [vmem:[#allocation6 + $0x940] sm:$0xff] }
 0x3a1   :  { %2544 = vmatprep.subr.bf16.mxu0 %v1228_v39  ;;  %2708 = vmatprep.subr.bf16.mxu1 %v1230_v40  ;;  %v557_v39 = vld [vmem:[#allocation6 + $0x950] sm:$0xff]  ;;  %v1355_v40 = vunpack.c.l.s8.bf16 %v555_v38 }
 0x3a2   :  { %v1357_v41 = vunpack.c.l.s8.bf16 %v557_v39  ;;  %v1373_v30 = vunpack.c.h.s8.bf16 %v557_v39 }
 0x3a4   :  { %2545 = vmatpush1.bf16.msra.mxu0 %v1227_v46  ;;  %2709 = vmatpush1.bf16.msra.mxu1 %v1229_v47  ;;  %v1374_v46 = vunpack.c.h.s8.bf16 %v558_v32  ;;  %v572_v47 = vld [vmem:[#allocation6 + $0x9c8] sm:$0xff] }
 0x3a5   :  { %2546 = vmatprep.subr.bf16.mxu0 %v1244_v48  ;;  %2710 = vmatprep.subr.bf16.mxu1 %v1246_v49  ;;  %v574_v48 = vld [vmem:[#allocation6 + $0x9d8] sm:$0xff]  ;;  %v1371_v49 = vunpack.c.h.s8.bf16 %v555_v38  ;;  %v1388_v51 = vunpack.c.l.s8.bf16 %v572_v47  ;;  %v1404_v56 = vunpack.c.h.s8.bf16 %v572_v47 }
 0x3a8   :  { %2547 = vmatpush1.bf16.msra.mxu0 %v1243_v52  ;;  %2711 = vmatpush1.bf16.msra.mxu1 %v1245_v61  ;;  %v1390_v52 = vunpack.c.l.s8.bf16 %v574_v48  ;;  %v571_v61 = vld [vmem:[#allocation6 + $0x9c0] sm:$0xff] }
 0x3a9   :  { %2548 = vmatprep.subr.bf16.mxu0 %v1260_v53  ;;  %2712 = vmatprep.subr.bf16.mxu1 %v1262_v54  ;;  %v573_v53 = vld [vmem:[#allocation6 + $0x9d0] sm:$0xff]  ;;  %v1387_v54 = vunpack.c.l.s8.bf16 %v571_v61 }
 0x3aa   :  { %v1389_v55 = vunpack.c.l.s8.bf16 %v573_v53  ;;  %v1405_v63 = vunpack.c.h.s8.bf16 %v573_v53 }
 0x3ac   :  { %2549 = vmatpush1.bf16.msra.mxu0 %v1259_v57  ;;  %2713 = vmatpush1.bf16.msra.mxu1 %v1261_v58  ;;  %v1406_v57 = vunpack.c.h.s8.bf16 %v574_v48  ;;  %v588_v58 = vld [vmem:[#allocation6 + $0xa48] sm:$0xff] }
 0x3ad   :  { %2550 = vmatprep.subr.bf16.mxu0 %v1276_v59  ;;  %2714 = vmatprep.subr.bf16.mxu1 %v1278_v62  ;;  %v590_v59 = vld [vmem:[#allocation6 + $0xa58] sm:$0xff]  ;;  %v1403_v62 = vunpack.c.h.s8.bf16 %v571_v61  ;;  %v1420_v0 = vunpack.c.l.s8.bf16 %v588_v58  ;;  %v1436_v6 = vunpack.c.h.s8.bf16 %v588_v58 }
 0x3b0   :  { %2551 = vmatpush1.bf16.msra.mxu0 %v1275_v1  ;;  %2715 = vmatpush1.bf16.msra.mxu1 %v1277_v2  ;;  %v1422_v1 = vunpack.c.l.s8.bf16 %v590_v59  ;;  %v587_v2 = vld [vmem:[#allocation6 + $0xa40] sm:$0xff] }
 0x3b1   :  { %2561 = vmatprep.subr.bf16.mxu0 %v1292_v3  ;;  %2725 = vmatprep.subr.bf16.mxu1 %v1294_v17  ;;  %v589_v3 = vld [vmem:[#allocation6 + $0xa50] sm:$0xff]  ;;  %v1419_v17 = vunpack.c.l.s8.bf16 %v587_v2 }
 0x3b2   :  { %v1421_v5 = vunpack.c.l.s8.bf16 %v589_v3  ;;  %v1437_v12 = vunpack.c.h.s8.bf16 %v589_v3 }
 0x3b3   :  { %2553 = vmatmul.mubr.bf16.vlgmr.msra.gmra.mrb[8].mxu0 %v13043_v16  ;;  %2717 = vmatmul.mubr.bf16.vlgmr.msra.gmra.mrb[8].mxu1 %v13043_v16 }
 0x3b4   :  { %2562 = vmatpush1.bf16.msra.mxu0 %v1291_v7  ;;  %2726 = vmatpush1.bf16.msra.mxu1 %v1293_v8  ;;  %v1438_v7 = vunpack.c.h.s8.bf16 %v590_v59  ;;  %v604_v8 = vld [vmem:[#allocation6 + $0xac8] sm:$0xff] }
 0x3b5   :  { %2563 = vmatprep.subr.bf16.mxu0 %v1308_v10  ;;  %2727 = vmatprep.subr.bf16.mxu1 %v1310_v11  ;;  %v606_v10 = vld [vmem:[#allocation6 + $0xad8] sm:$0xff]  ;;  %v1435_v11 = vunpack.c.h.s8.bf16 %v587_v2  ;;  %v1452_v13 = vunpack.c.l.s8.bf16 %v604_v8  ;;  %v1468_v25 = vunpack.c.h.s8.bf16 %v604_v8 }
 0x3b6   :  { %2593 = vmatprep.mubr.bf16.mxu0 %v13052_v24  ;;  %2757 = vmatprep.mubr.bf16.mxu1 %v13052_v24 }
 0x3b8   :  { %2564 = vmatpush1.bf16.msra.mxu0 %v1307_v14  ;;  %2728 = vmatpush1.bf16.msra.mxu1 %v1309_v15  ;;  %v1454_v14 = vunpack.c.l.s8.bf16 %v606_v10  ;;  %v603_v15 = vld [vmem:[#allocation6 + $0xac0] sm:$0xff] }
 0x3b9   :  { %2565 = vmatprep.subr.bf16.mxu0 %v1324_v20  ;;  %2729 = vmatprep.subr.bf16.mxu1 %v1326_v21  ;;  %v605_v20 = vld [vmem:[#allocation6 + $0xad0] sm:$0xff]  ;;  %v1451_v21 = vunpack.c.l.s8.bf16 %v603_v15 }
 0x3ba   :  { %v1453_v22 = vunpack.c.l.s8.bf16 %v605_v20  ;;  %v1469_v31 = vunpack.c.h.s8.bf16 %v605_v20 }
 0x3bc   :  { %2566 = vmatpush1.bf16.msra.mxu0 %v1323_v26  ;;  %2730 = vmatpush1.bf16.msra.mxu1 %v1325_v27  ;;  %v1470_v26 = vunpack.c.h.s8.bf16 %v606_v10  ;;  %v620_v27 = vld [vmem:[#allocation6 + $0xb48] sm:$0xff] }
 0x3bd   :  { %2567 = vmatprep.subr.bf16.mxu0 %v1340_v28  ;;  %2731 = vmatprep.subr.bf16.mxu1 %v1342_v29  ;;  %v622_v28 = vld [vmem:[#allocation6 + $0xb58] sm:$0xff]  ;;  %v1467_v29 = vunpack.c.h.s8.bf16 %v603_v15  ;;  %v1484_v32 = vunpack.c.l.s8.bf16 %v620_v27  ;;  %v1500_v39 = vunpack.c.h.s8.bf16 %v620_v27 }
 0x3c0   :  { %2568 = vmatpush1.bf16.msra.mxu0 %v1339_v33  ;;  %2732 = vmatpush1.bf16.msra.mxu1 %v1341_v34  ;;  %v1486_v33 = vunpack.c.l.s8.bf16 %v622_v28  ;;  %v619_v34 = vld [vmem:[#allocation6 + $0xb40] sm:$0xff] }
 0x3c1   :  { %2569 = vmatprep.subr.bf16.mxu0 %v1356_v36  ;;  %2733 = vmatprep.subr.bf16.mxu1 %v1358_v37  ;;  %v621_v36 = vld [vmem:[#allocation6 + $0xb50] sm:$0xff]  ;;  %v1483_v37 = vunpack.c.l.s8.bf16 %v619_v34 }
 0x3c2   :  { %v1485_v38 = vunpack.c.l.s8.bf16 %v621_v36  ;;  %v1501_v47 = vunpack.c.h.s8.bf16 %v621_v36 }
 0x3c4   :  { %2570 = vmatpush1.bf16.msra.mxu0 %v1355_v40  ;;  %2734 = vmatpush1.bf16.msra.mxu1 %v1357_v41  ;;  %v1502_v40 = vunpack.c.h.s8.bf16 %v622_v28  ;;  %v636_v41 = vld [vmem:[#allocation6 + $0xbc8] sm:$0xff] }
 0x3c5   :  { %2571 = vmatprep.subr.bf16.mxu0 %v1372_v45  ;;  %2735 = vmatprep.subr.bf16.mxu1 %v1374_v46  ;;  %v638_v45 = vld [vmem:[#allocation6 + $0xbd8] sm:$0xff]  ;;  %v1499_v46 = vunpack.c.h.s8.bf16 %v619_v34  ;;  %v1516_v48 = vunpack.c.l.s8.bf16 %v636_v41  ;;  %v1532_v53 = vunpack.c.h.s8.bf16 %v636_v41  ;;  %v13137_v34 = vsub.s32 6, %v13095_v9 }
 0x3c8   :  { %2572 = vmatpush1.bf16.msra.mxu0 %v1371_v49  ;;  %2736 = vmatpush1.bf16.msra.mxu1 %v1373_v30  ;;  %v1518_v49 = vunpack.c.l.s8.bf16 %v638_v45  ;;  %v635_v30 = vld [vmem:[#allocation6 + $0xbc0] sm:$0xff] }
 0x3c9   :  { %2573 = vmatprep.subr.bf16.mxu0 %v1388_v51  ;;  %2737 = vmatprep.subr.bf16.mxu1 %v1390_v52  ;;  %v637_v51 = vld [vmem:[#allocation6 + $0xbd0] sm:$0xff]  ;;  %v1515_v52 = vunpack.c.l.s8.bf16 %v635_v30 }
 0x3ca   :  { %v1517_v61 = vunpack.c.l.s8.bf16 %v637_v51  ;;  %v1533_v58 = vunpack.c.h.s8.bf16 %v637_v51 }
 0x3cc   :  { %2574 = vmatpush1.bf16.msra.mxu0 %v1387_v54  ;;  %2738 = vmatpush1.bf16.msra.mxu1 %v1389_v55  ;;  %v1534_v54 = vunpack.c.h.s8.bf16 %v638_v45  ;;  %v652_v55 = vld [vmem:[#allocation6 + $0xc48] sm:$0xff] }
 0x3cd   :  { %2575 = vmatprep.subr.bf16.mxu0 %v1404_v56  ;;  %2739 = vmatprep.subr.bf16.mxu1 %v1406_v57  ;;  %v654_v56 = vld [vmem:[#allocation6 + $0xc58] sm:$0xff]  ;;  %v1531_v57 = vunpack.c.h.s8.bf16 %v635_v30  ;;  %v1548_v59 = vunpack.c.l.s8.bf16 %v652_v55  ;;  %v1564_v3 = vunpack.c.h.s8.bf16 %v652_v55  ;;  %v700_v45 = vld [vmem:[#allocation6 + $0xdc8] sm:$0xff] }
 0x3ce   :  { %v1644_v55 = vunpack.c.l.s8.bf16 %v700_v45 }
 0x3d0   :  { %2576 = vmatpush1.bf16.msra.mxu0 %v1403_v62  ;;  %2740 = vmatpush1.bf16.msra.mxu1 %v1405_v63  ;;  %v1550_v62 = vunpack.c.l.s8.bf16 %v654_v56  ;;  %v651_v63 = vld [vmem:[#allocation6 + $0xc40] sm:$0xff] }
 0x3d1   :  { %2577 = vmatprep.subr.bf16.mxu0 %v1420_v0  ;;  %2741 = vmatprep.subr.bf16.mxu1 %v1422_v1  ;;  %v653_v0 = vld [vmem:[#allocation6 + $0xc50] sm:$0xff]  ;;  %v1547_v1 = vunpack.c.l.s8.bf16 %v651_v63 }
 0x3d2   :  { %v1549_v2 = vunpack.c.l.s8.bf16 %v653_v0  ;;  %v1565_v8 = vunpack.c.h.s8.bf16 %v653_v0 }
 0x3d4   :  { %2578 = vmatpush1.bf16.msra.mxu0 %v1419_v17  ;;  %2742 = vmatpush1.bf16.msra.mxu1 %v1421_v5  ;;  %v1566_v17 = vunpack.c.h.s8.bf16 %v654_v56  ;;  %v668_v5 = vld [vmem:[#allocation6 + $0xcc8] sm:$0xff] }
 0x3d5   :  { %2579 = vmatprep.subr.bf16.mxu0 %v1436_v6  ;;  %2743 = vmatprep.subr.bf16.mxu1 %v1438_v7  ;;  %v670_v6 = vld [vmem:[#allocation6 + $0xcd8] sm:$0xff]  ;;  %v1563_v7 = vunpack.c.h.s8.bf16 %v651_v63  ;;  %v1580_v10 = vunpack.c.l.s8.bf16 %v668_v5  ;;  %v1596_v20 = vunpack.c.h.s8.bf16 %v668_v5 }
 0x3d8   :  { %2580 = vmatpush1.bf16.msra.mxu0 %v1435_v11  ;;  %2744 = vmatpush1.bf16.msra.mxu1 %v1437_v12  ;;  %v1582_v11 = vunpack.c.l.s8.bf16 %v670_v6  ;;  %v667_v12 = vld [vmem:[#allocation6 + $0xcc0] sm:$0xff] }
 0x3d9   :  { %2581 = vmatprep.subr.bf16.mxu0 %v1452_v13  ;;  %2745 = vmatprep.subr.bf16.mxu1 %v1454_v14  ;;  %v669_v13 = vld [vmem:[#allocation6 + $0xcd0] sm:$0xff]  ;;  %v1579_v14 = vunpack.c.l.s8.bf16 %v667_v12 }
 0x3da   :  { %v1581_v15 = vunpack.c.l.s8.bf16 %v669_v13  ;;  %v1597_v27 = vunpack.c.h.s8.bf16 %v669_v13 }
 0x3dc   :  { %2582 = vmatpush1.bf16.msra.mxu0 %v1451_v21  ;;  %2746 = vmatpush1.bf16.msra.mxu1 %v1453_v22  ;;  %v1598_v21 = vunpack.c.h.s8.bf16 %v670_v6  ;;  %v684_v22 = vld [vmem:[#allocation6 + $0xd48] sm:$0xff] }
 0x3dd   :  { %2583 = vmatprep.subr.bf16.mxu0 %v1468_v25  ;;  %2747 = vmatprep.subr.bf16.mxu1 %v1470_v26  ;;  %v686_v25 = vld [vmem:[#allocation6 + $0xd58] sm:$0xff]  ;;  %v1595_v26 = vunpack.c.h.s8.bf16 %v667_v12  ;;  %v1612_v28 = vunpack.c.l.s8.bf16 %v684_v22 }
 0x3de   :  { %v1630_v41 = vunpack.c.h.s8.bf16 %v686_v25 }
 0x3e0   :  { %2584 = vmatpush1.bf16.msra.mxu0 %v1467_v29  ;;  %2748 = vmatpush1.bf16.msra.mxu1 %v1469_v31  ;;  %v1614_v29 = vunpack.c.l.s8.bf16 %v686_v25  ;;  %v683_v31 = vld [vmem:[#allocation6 + $0xd40] sm:$0xff] }
 0x3e1   :  { %2585 = vmatprep.subr.bf16.mxu0 %v1484_v32  ;;  %2749 = vmatprep.subr.bf16.mxu1 %v1486_v33  ;;  %v685_v32 = vld [vmem:[#allocation6 + $0xd50] sm:$0xff]  ;;  %v13134_v33 = vsub.s32 4, %v13095_v9  ;;  %v1611_v36 = vunpack.c.l.s8.bf16 %v683_v31 }
 0x3e4   :  { %2586 = vmatpush1.bf16.msra.mxu0 %v1483_v37  ;;  %2750 = vmatpush1.bf16.msra.mxu1 %v1485_v38  ;;  %v1613_v37 = vunpack.c.l.s8.bf16 %v685_v32  ;;  %v13140_v38 = vsub.s32 5, %v13095_v9 }
 0x3e5   :  { %2587 = vmatprep.subr.bf16.mxu0 %v1500_v39  ;;  %2751 = vmatprep.subr.bf16.mxu1 %v1502_v40  ;;  %v13143_v39 = vsub.s32 7, %v13095_v9  ;;  %v1628_v40 = vunpack.c.h.s8.bf16 %v684_v22  ;;  %v1629_v9 = vunpack.c.h.s8.bf16 %v685_v32 }
 0x3e8   :  { %2588 = vmatpush1.bf16.msra.mxu0 %v1499_v46  ;;  %2752 = vmatpush1.bf16.msra.mxu1 %v1501_v47  ;;  %v702_v46 = vld [vmem:[#allocation6 + $0xdd8] sm:$0xff]  ;;  %v12294_v47 = vld [vmem:[#allocation8] sm:$0xff] }
 0x3e9   :  { %2589 = vmatprep.subr.bf16.mxu0 %v1516_v48  ;;  %2753 = vmatprep.subr.bf16.mxu1 %v1518_v49  ;;  %v3158_v48 = vrot.slane %v12294_v47, %v13134_v33  ;;  %v3166_v49 = vrot.slane %v12294_v47, %v13137_v34  ;;  %v3162_v30 = vrot.slane %v12294_v47, %v13140_v38  ;;  %v1646_v56 = vunpack.c.l.s8.bf16 %v702_v46 }
 0x3ea   :  { %v3170_v51 = vrot.slane %v12294_v47, %v13143_v39 }
 0x3ec   :  { %2590 = vmatpush1.bf16.msra.mxu0 %v1515_v52  ;;  %2754 = vmatpush1.bf16.msra.mxu1 %v1517_v61  ;;  %v1627_v52 = vunpack.c.h.s8.bf16 %v683_v31  ;;  %v12295_v61 = vld [vmem:[#allocation10] sm:$0xff] }
 0x3ed   :  { %2591 = vmatprep.subr.bf16.mxu0 %v1532_v53  ;;  %2755 = vmatprep.subr.bf16.mxu1 %v1534_v54  ;;  %v3258_v53 = vrot.slane %v12295_v61, %v13134_v33  ;;  %v3266_v54 = vrot.slane %v12295_v61, %v13137_v34  ;;  %v3262_v63 = vrot.slane %v12295_v61, %v13140_v38 }
 0x3ee   :  { %v3270_v0 = vrot.slane %v12295_v61, %v13143_v39 }
 0x3f0   :  { %2592 = vmatpush1.bf16.msra.mxu0 %v1531_v57  ;;  %2756 = vmatpush1.bf16.msra.mxu1 %v1533_v58  ;;  %v699_v57 = vld [vmem:[#allocation6 + $0xdc0] sm:$0xff]  ;;  %v701_v58 = vld [vmem:[#allocation6 + $0xdd0] sm:$0xff] }
 0x3f1   :  { %2602 = vmatprep.subr.bf16.mxu0 %v1548_v59  ;;  %2766 = vmatprep.subr.bf16.mxu1 %v1550_v62 }
 0x3f3   :  { %2594 = vmatmul.mubr.bf16.vlgmr.msra.gmra.mrb[8].mxu0 %v13060_v60  ;;  %2758 = vmatmul.mubr.bf16.vlgmr.msra.gmra.mrb[8].mxu1 %v13060_v60 }
 0x3f4   :  { %2603 = vmatpush1.bf16.msra.mxu0 %v1547_v1  ;;  %2767 = vmatpush1.bf16.msra.mxu1 %v1549_v2 }
 0x3f5   :  { %2604 = vmatprep.subr.bf16.mxu0 %v1564_v3  ;;  %2768 = vmatprep.subr.bf16.mxu1 %v1566_v17 }
 0x3f6   :  { %2634 = vmatprep.mubr.bf16.mxu0 %v13069_v4  ;;  %2798 = vmatprep.mubr.bf16.mxu1 %v13069_v4 }
 0x3f8   :  { %2605 = vmatpush1.bf16.msra.mxu0 %v1563_v7  ;;  %2769 = vmatpush1.bf16.msra.mxu1 %v1565_v8 }
 0x3f9   :  { %2606 = vmatprep.subr.bf16.mxu0 %v1580_v10  ;;  %2770 = vmatprep.subr.bf16.mxu1 %v1582_v11  ;;  %v1643_v10 = vunpack.c.l.s8.bf16 %v699_v57  ;;  %v1645_v11 = vunpack.c.l.s8.bf16 %v701_v58 }
 0x3fc   :  { %2607 = vmatpush1.bf16.msra.mxu0 %v1579_v14  ;;  %2771 = vmatpush1.bf16.msra.mxu1 %v1581_v15 }
 0x3fd   :  { %2608 = vmatprep.subr.bf16.mxu0 %v1596_v20  ;;  %2772 = vmatprep.subr.bf16.mxu1 %v1598_v21  ;;  %v1660_v20 = vunpack.c.h.s8.bf16 %v700_v45  ;;  %v1662_v21 = vunpack.c.h.s8.bf16 %v702_v46  ;;  %v715_v45 = vld [vmem:[#allocation6 + $0xe40] sm:$0xff]  ;;  %v717_v46 = vld [vmem:[#allocation6 + $0xe50] sm:$0xff] }
 0x400   :  { %2609 = vmatpush1.bf16.msra.mxu0 %v1595_v26  ;;  %2773 = vmatpush1.bf16.msra.mxu1 %v1597_v27  ;;  %v716_v26 = vld [vmem:[#allocation6 + $0xe48] sm:$0xff]  ;;  %v718_v27 = vld [vmem:[#allocation6 + $0xe58] sm:$0xff] }
 0x401   :  { %2610 = vmatprep.subr.bf16.mxu0 %v1612_v28  ;;  %2774 = vmatprep.subr.bf16.mxu1 %v1614_v29  ;;  %v1676_v47 = vunpack.c.l.s8.bf16 %v716_v26 }
 0x404   :  { %2611 = vmatpush1.bf16.msra.mxu0 %v1611_v36  ;;  %2775 = vmatpush1.bf16.msra.mxu1 %v1613_v37  ;;  %v1659_v36 = vunpack.c.h.s8.bf16 %v699_v57  ;;  %v1661_v37 = vunpack.c.h.s8.bf16 %v701_v58  ;;  %v732_v57 = vld [vmem:[#allocation6 + $0xec8] sm:$0xff]  ;;  %v734_v58 = vld [vmem:[#allocation6 + $0xed8] sm:$0xff] }
 0x405   :  { %2612 = vmatprep.subr.bf16.mxu0 %v1628_v40  ;;  %2776 = vmatprep.subr.bf16.mxu1 %v1630_v41 }
 0x406   :  { %v2308_v59 = vpop.f32.mrb[4].mxu0  ;;  %v2472_v62 = vpop.f32.mrb[4].mxu1 }
 0x407   :  { %v3223_v1 = vmul.f32 %v3158_v48, %v2308_v59  ;;  %v3225_v2 = vmul.f32 %v3166_v49, %v2472_v62  ;;  %v2310_v3 = vpop.f32.mrb[5].mxu0  ;;  %v2474_v17 = vpop.f32.mrb[5].mxu1  ;;  %v1678_v48 = vunpack.c.l.s8.bf16 %v718_v27  ;;  %v1691_v59 = vunpack.c.h.s8.bf16 %v715_v45 }
 0x408   :  { %v3224_v5 = vmul.f32 %v3162_v30, %v2310_v3  ;;  %v3226_v6 = vmul.f32 %v3170_v51, %v2474_v17  ;;  %v2312_v7 = vpop.f32.mrb[6].mxu0  ;;  %v2476_v8 = vpop.f32.mrb[6].mxu1  ;;  %2613 = vmatpush1.bf16.msra.mxu0 %v1627_v52  ;;  %2777 = vmatpush1.bf16.msra.mxu1 %v1629_v9  ;;  %v1693_v62 = vunpack.c.h.s8.bf16 %v717_v46 }
 0x409   :  { %v3323_v12 = vadd.f32 %v3258_v53, %v3223_v1  ;;  %v3325_v13 = vadd.f32 %v3266_v54, %v3225_v2  ;;  %v2313_v14 = vpop.f32.mrb[7].mxu0  ;;  %v2477_v15 = vpop.f32.mrb[7].mxu1  ;;  %2614 = vmatprep.subr.bf16.mxu0 %v1644_v55  ;;  %2778 = vmatprep.subr.bf16.mxu1 %v1646_v56  ;;  %v1675_v53 = vunpack.c.l.s8.bf16 %v715_v45  ;;  %v1677_v54 = vunpack.c.l.s8.bf16 %v717_v46  ;;  %v731_v1 = vld [vmem:[#allocation6 + $0xec0] sm:$0xff]  ;;  %v733_v2 = vld [vmem:[#allocation6 + $0xed0] sm:$0xff]  ;;  %v748_v7 = vld [vmem:[#allocation6 + $0xf48] sm:$0xff] }
 0x40a   :  { %v3324_v22 = vadd.f32 %v3262_v63, %v3224_v5  ;;  %v3326_v25 = vadd.f32 %v3270_v0, %v3226_v6  ;;  %v1692_v55 = vunpack.c.h.s8.bf16 %v716_v26  ;;  %v1694_v56 = vunpack.c.h.s8.bf16 %v718_v27  ;;  %v750_v8 = vld [vmem:[#allocation6 + $0xf58] sm:$0xff]  ;;  %v747_v14 = vld [vmem:[#allocation6 + $0xf40] sm:$0xff]  ;;  %v749_v15 = vld [vmem:[#allocation6 + $0xf50] sm:$0xff] }
 0x40b   :  { %v3339_v28 = vmax.f32 %v3323_v12, 0.0  ;;  %v3341_v29 = vmax.f32 %v3325_v13, 0.0  ;;  %v1708_v63 = vunpack.c.l.s8.bf16 %v732_v57  ;;  %v1710_v0 = vunpack.c.l.s8.bf16 %v734_v58  ;;  %v764_v26 = vld [vmem:[#allocation6 + $0xfc8] sm:$0xff]  ;;  %v766_v27 = vld [vmem:[#allocation6 + $0xfd8] sm:$0xff] }
 0x40c   :  { %v3340_v31 = vmax.f32 %v3324_v22, 0.0  ;;  %v3342_v32 = vmax.f32 %v3326_v25, 0.0  ;;  %2615 = vmatpush1.bf16.msra.mxu0 %v1643_v10  ;;  %2779 = vmatpush1.bf16.msra.mxu1 %v1645_v11  ;;  %v1707_v3 = vunpack.c.l.s8.bf16 %v731_v1  ;;  %v1709_v17 = vunpack.c.l.s8.bf16 %v733_v2  ;;  %v272_v45 = vld [vmem:[#allocation6 + $0x68] sm:$0xff]  ;;  %v274_v46 = vld [vmem:[#allocation6 + $0x78] sm:$0xff] }
 0x40d   :  { %v3355_v40 = vpack.c.bf16 %v3339_v28, %v3339_v28  ;;  %v3357_v41 = vpack.c.bf16 %v3341_v29, %v3341_v29  ;;  %2616 = vmatprep.subr.bf16.mxu0 %v1660_v20  ;;  %2780 = vmatprep.subr.bf16.mxu1 %v1662_v21  ;;  %v1724_v5 = vunpack.c.h.s8.bf16 %v732_v57  ;;  %v1726_v6 = vunpack.c.h.s8.bf16 %v734_v58  ;;  %v288_v57 = vld [vmem:[#allocation6 + $0xe8] sm:$0xff]  ;;  %v290_v58 = vld [vmem:[#allocation6 + $0xf8] sm:$0xff] }
 0x40e   :  { %v3356_v49 = vpack.c.bf16 %v3340_v31, %v3340_v31  ;;  %v3358_v30 = vpack.c.bf16 %v3342_v32, %v3342_v32  ;;  %v1723_v10 = vunpack.c.h.s8.bf16 %v731_v1  ;;  %v1725_v11 = vunpack.c.h.s8.bf16 %v733_v2  ;;  %v287_v1 = vld [vmem:[#allocation6 + $0xe0] sm:$0xff]  ;;  %v289_v2 = vld [vmem:[#allocation6 + $0xf0] sm:$0xff] }
 0x40f   :  { %v3375_v51 = vrot.slane %v3355_v40, 4  ;;  %v3377_v52 = vrot.slane %v3357_v41, 4  ;;  %v1740_v12 = vunpack.c.l.s8.bf16 %v748_v7  ;;  %v1742_v13 = vunpack.c.l.s8.bf16 %v750_v8 }
 0x410   :  { %v3376_v9 = vrot.slane %v3356_v49, 4  ;;  %v3378_v61 = vrot.slane %v3358_v30, 4  ;;  %2617 = vmatpush1.bf16.msra.mxu0 %v1659_v36  ;;  %2781 = vmatpush1.bf16.msra.mxu1 %v1661_v37  ;;  %v1739_v20 = vunpack.c.l.s8.bf16 %v747_v14  ;;  %v1741_v21 = vunpack.c.l.s8.bf16 %v749_v15  ;;  %v763_v36 = vld [vmem:[#allocation6 + $0xfc0] sm:$0xff]  ;;  %v765_v37 = vld [vmem:[#allocation6 + $0xfd0] sm:$0xff] }
 0x411   :  { %3383 = vst [vmem:[#allocation2] sm:$0xf0] %v3375_v51  ;;  %3385 = vst [vmem:[#allocation2 + $0x10] sm:$0xf0] %v3377_v52  ;;  %2618 = vmatprep.subr.bf16.mxu0 %v1676_v47  ;;  %2782 = vmatprep.subr.bf16.mxu1 %v1678_v48  ;;  %v1756_v22 = vunpack.c.h.s8.bf16 %v748_v7  ;;  %v1758_v25 = vunpack.c.h.s8.bf16 %v750_v8  ;;  %v1755_v28 = vunpack.c.h.s8.bf16 %v747_v14  ;;  %v1757_v29 = vunpack.c.h.s8.bf16 %v749_v15  ;;  %v304_v7 = vld [vmem:[#allocation6 + $0x168] sm:$0xff]  ;;  %v306_v8 = vld [vmem:[#allocation6 + $0x178] sm:$0xff] }
 0x412   :  { %3384 = vst [vmem:[#allocation2 + $0x8] sm:$0xf0] %v3376_v9  ;;  %3386 = vst [vmem:[#allocation2 + $0x18] sm:$0xf0] %v3378_v61  ;;  %v1772_v31 = vunpack.c.l.s8.bf16 %v764_v26  ;;  %v1774_v32 = vunpack.c.l.s8.bf16 %v766_v27  ;;  %v1771_v40 = vunpack.c.l.s8.bf16 %v763_v36  ;;  %v1773_v41 = vunpack.c.l.s8.bf16 %v765_v37  ;;  %v271_v9 = vld [vmem:[#allocation6 + $0x60] sm:$0xff]  ;;  %v273_v61 = vld [vmem:[#allocation6 + $0x70] sm:$0xff] }
 0x413   :  { %v1788_v47 = vunpack.c.h.s8.bf16 %v764_v26  ;;  %v1790_v48 = vunpack.c.h.s8.bf16 %v766_v27  ;;  %v1787_v49 = vunpack.c.h.s8.bf16 %v763_v36  ;;  %v1789_v30 = vunpack.c.h.s8.bf16 %v765_v37  ;;  %v303_v14 = vld [vmem:[#allocation6 + $0x160] sm:$0xff]  ;;  %v322_v26 = vld [vmem:[#allocation6 + $0x1f8] sm:$0xff]  ;;  %v321_v36 = vld [vmem:[#allocation6 + $0x1f0] sm:$0xff] }
 0x414   :  { %2619 = vmatpush1.bf16.msra.mxu0 %v1675_v53  ;;  %2783 = vmatpush1.bf16.msra.mxu1 %v1677_v54  ;;  %v784_v51 = vunpack.c.l.s8.bf16 %v272_v45  ;;  %v786_v52 = vunpack.c.l.s8.bf16 %v274_v46  ;;  %v783_v53 = vunpack.c.l.s8.bf16 %v271_v9  ;;  %v785_v54 = vunpack.c.l.s8.bf16 %v273_v61 }
 0x415   :  { %2620 = vmatprep.subr.bf16.mxu0 %v1692_v55  ;;  %2784 = vmatprep.subr.bf16.mxu1 %v1694_v56  ;;  %v800_v55 = vunpack.c.h.s8.bf16 %v272_v45  ;;  %v802_v56 = vunpack.c.h.s8.bf16 %v274_v46  ;;  %v847_v15 = vunpack.c.l.s8.bf16 %v303_v14  ;;  %v863_v27 = vunpack.c.h.s8.bf16 %v303_v14  ;;  %v338_v45 = vld [vmem:[#allocation6 + $0x278] sm:$0xff]  ;;  %v369_v14 = vld [vmem:[#allocation6 + $0x370] sm:$0xff] }
 0x418   :  { %2621 = vmatpush1.bf16.msra.mxu0 %v1691_v59  ;;  %2785 = vmatpush1.bf16.msra.mxu1 %v1693_v62  ;;  %v799_v59 = vunpack.c.h.s8.bf16 %v271_v9  ;;  %v801_v62 = vunpack.c.h.s8.bf16 %v273_v61  ;;  %v337_v9 = vld [vmem:[#allocation6 + $0x270] sm:$0xff] }
 0x419   :  { %2622 = vmatprep.subr.bf16.mxu0 %v1708_v63  ;;  %2786 = vmatprep.subr.bf16.mxu1 %v1710_v0  ;;  %v816_v63 = vunpack.c.l.s8.bf16 %v288_v57  ;;  %v818_v0 = vunpack.c.l.s8.bf16 %v290_v58 }
 0x41c   :  { %2623 = vmatpush1.bf16.msra.mxu0 %v1707_v3  ;;  %2787 = vmatpush1.bf16.msra.mxu1 %v1709_v17  ;;  %v815_v3 = vunpack.c.l.s8.bf16 %v287_v1  ;;  %v817_v17 = vunpack.c.l.s8.bf16 %v289_v2 }
 0x41d   :  { %2624 = vmatprep.subr.bf16.mxu0 %v1724_v5  ;;  %2788 = vmatprep.subr.bf16.mxu1 %v1726_v6  ;;  %v832_v5 = vunpack.c.h.s8.bf16 %v288_v57  ;;  %v834_v6 = vunpack.c.h.s8.bf16 %v290_v58  ;;  %v354_v57 = vld [vmem:[#allocation6 + $0x2f8] sm:$0xff] }
 0x420   :  { %2625 = vmatpush1.bf16.msra.mxu0 %v1723_v10  ;;  %2789 = vmatpush1.bf16.msra.mxu1 %v1725_v11  ;;  %v831_v10 = vunpack.c.h.s8.bf16 %v287_v1  ;;  %v833_v11 = vunpack.c.h.s8.bf16 %v289_v2  ;;  %v353_v1 = vld [vmem:[#allocation6 + $0x2f0] sm:$0xff] }
 0x421   :  { %2626 = vmatprep.subr.bf16.mxu0 %v1740_v12  ;;  %2790 = vmatprep.subr.bf16.mxu1 %v1742_v13  ;;  %v848_v12 = vunpack.c.l.s8.bf16 %v304_v7  ;;  %v850_v13 = vunpack.c.l.s8.bf16 %v306_v8 }
 0x424   :  { %2627 = vmatpush1.bf16.msra.mxu0 %v1739_v20  ;;  %2791 = vmatpush1.bf16.msra.mxu1 %v1741_v21  ;;  %v864_v21 = vunpack.c.h.s8.bf16 %v304_v7  ;;  %v370_v7 = vld [vmem:[#allocation6 + $0x378] sm:$0xff] }
 0x425   :  { %2628 = vmatprep.subr.bf16.mxu0 %v1756_v22  ;;  %2792 = vmatprep.subr.bf16.mxu1 %v1758_v25  ;;  %v866_v22 = vunpack.c.h.s8.bf16 %v306_v8  ;;  %v320_v25 = vld [vmem:[#allocation6 + $0x1e8] sm:$0xff] }
 0x428   :  { %2629 = vmatpush1.bf16.msra.mxu0 %v1755_v28  ;;  %2793 = vmatpush1.bf16.msra.mxu1 %v1757_v29  ;;  %v880_v29 = vunpack.c.l.s8.bf16 %v320_v25 }
 0x429   :  { %2630 = vmatprep.subr.bf16.mxu0 %v1772_v31  ;;  %2794 = vmatprep.subr.bf16.mxu1 %v1774_v32  ;;  %v882_v31 = vunpack.c.l.s8.bf16 %v322_v26  ;;  %v319_v32 = vld [vmem:[#allocation6 + $0x1e0] sm:$0xff] }
 0x42a   :  { %v879_v37 = vunpack.c.l.s8.bf16 %v319_v32  ;;  %v895_v46 = vunpack.c.h.s8.bf16 %v319_v32  ;;  %v385_v32 = vld [vmem:[#allocation6 + $0x3f0] sm:$0xff] }
 0x42c   :  { %2631 = vmatpush1.bf16.msra.mxu0 %v1771_v40  ;;  %2795 = vmatpush1.bf16.msra.mxu1 %v1773_v41  ;;  %v881_v40 = vunpack.c.l.s8.bf16 %v321_v36  ;;  %v896_v41 = vunpack.c.h.s8.bf16 %v320_v25  ;;  %v386_v25 = vld [vmem:[#allocation6 + $0x3f8] sm:$0xff] }
 0x42d   :  { %2632 = vmatprep.subr.bf16.mxu0 %v1788_v47  ;;  %2796 = vmatprep.subr.bf16.mxu1 %v1790_v48  ;;  %v898_v47 = vunpack.c.h.s8.bf16 %v322_v26  ;;  %v336_v48 = vld [vmem:[#allocation6 + $0x268] sm:$0xff] }
 0x430   :  { %2633 = vmatpush1.bf16.msra.mxu0 %v1787_v49  ;;  %2797 = vmatpush1.bf16.msra.mxu1 %v1789_v30  ;;  %v897_v49 = vunpack.c.h.s8.bf16 %v321_v36  ;;  %v912_v30 = vunpack.c.l.s8.bf16 %v336_v48 }
 0x431   :  { %2807 = vmatprep.subr.bf16.mxu0 %v784_v51  ;;  %2971 = vmatprep.subr.bf16.mxu1 %v786_v52  ;;  %v914_v51 = vunpack.c.l.s8.bf16 %v338_v45  ;;  %v335_v52 = vld [vmem:[#allocation6 + $0x260] sm:$0xff] }
 0x432   :  { %v911_v61 = vunpack.c.l.s8.bf16 %v335_v52  ;;  %v927_v58 = vunpack.c.h.s8.bf16 %v335_v52  ;;  %v401_v52 = vld [vmem:[#allocation6 + $0x470] sm:$0xff] }
 0x433   :  { %2635 = vmatmul.mubr.bf16.vlgmr.msra.gmra.mrb[8].mxu0 %v13077_v44  ;;  %2799 = vmatmul.mubr.bf16.vlgmr.msra.gmra.mrb[8].mxu1 %v13077_v44 }
 0x434   :  { %2808 = vmatpush1.bf16.msra.mxu0 %v783_v53  ;;  %2972 = vmatpush1.bf16.msra.mxu1 %v785_v54  ;;  %v913_v53 = vunpack.c.l.s8.bf16 %v337_v9  ;;  %v928_v54 = vunpack.c.h.s8.bf16 %v336_v48  ;;  %v402_v48 = vld [vmem:[#allocation6 + $0x478] sm:$0xff] }
 0x435   :  { %2809 = vmatprep.subr.bf16.mxu0 %v800_v55  ;;  %2973 = vmatprep.subr.bf16.mxu1 %v802_v56  ;;  %v930_v55 = vunpack.c.h.s8.bf16 %v338_v45  ;;  %v352_v56 = vld [vmem:[#allocation6 + $0x2e8] sm:$0xff] }
 0x436   :  { %2839 = vmatprep.mubr.bf16.mxu0 %v13020_v35  ;;  %3003 = vmatprep.mubr.bf16.mxu1 %v13020_v35  ;;  %v305_v35 = vld [vmem:[#allocation6 + $0x170] sm:$0xff] }
 0x437   :  { %v849_v20 = vunpack.c.l.s8.bf16 %v305_v35  ;;  %v865_v28 = vunpack.c.h.s8.bf16 %v305_v35 }
 0x438   :  { %2810 = vmatpush1.bf16.msra.mxu0 %v799_v59  ;;  %2974 = vmatpush1.bf16.msra.mxu1 %v801_v62  ;;  %v929_v59 = vunpack.c.h.s8.bf16 %v337_v9  ;;  %v944_v62 = vunpack.c.l.s8.bf16 %v352_v56 }
 0x439   :  { %2811 = vmatprep.subr.bf16.mxu0 %v816_v63  ;;  %2975 = vmatprep.subr.bf16.mxu1 %v818_v0  ;;  %v946_v63 = vunpack.c.l.s8.bf16 %v354_v57  ;;  %v351_v0 = vld [vmem:[#allocation6 + $0x2e0] sm:$0xff] }
 0x43a   :  { %v943_v2 = vunpack.c.l.s8.bf16 %v351_v0  ;;  %v959_v8 = vunpack.c.h.s8.bf16 %v351_v0  ;;  %v417_v0 = vld [vmem:[#allocation6 + $0x4f0] sm:$0xff] }
 0x43c   :  { %2812 = vmatpush1.bf16.msra.mxu0 %v815_v3  ;;  %2976 = vmatpush1.bf16.msra.mxu1 %v817_v17  ;;  %v945_v3 = vunpack.c.l.s8.bf16 %v353_v1  ;;  %v960_v17 = vunpack.c.h.s8.bf16 %v352_v56  ;;  %v418_v56 = vld [vmem:[#allocation6 + $0x4f8] sm:$0xff] }
 0x43d   :  { %2813 = vmatprep.subr.bf16.mxu0 %v832_v5  ;;  %2977 = vmatprep.subr.bf16.mxu1 %v834_v6  ;;  %v962_v5 = vunpack.c.h.s8.bf16 %v354_v57  ;;  %v368_v6 = vld [vmem:[#allocation6 + $0x368] sm:$0xff] }
 0x440   :  { %2814 = vmatpush1.bf16.msra.mxu0 %v831_v10  ;;  %2978 = vmatpush1.bf16.msra.mxu1 %v833_v11  ;;  %v961_v10 = vunpack.c.h.s8.bf16 %v353_v1  ;;  %v976_v11 = vunpack.c.l.s8.bf16 %v368_v6 }
 0x441   :  { %2815 = vmatprep.subr.bf16.mxu0 %v848_v12  ;;  %2979 = vmatprep.subr.bf16.mxu1 %v850_v13  ;;  %v978_v12 = vunpack.c.l.s8.bf16 %v370_v7  ;;  %v367_v13 = vld [vmem:[#allocation6 + $0x360] sm:$0xff] }
 0x442   :  { %v975_v35 = vunpack.c.l.s8.bf16 %v367_v13  ;;  %v991_v26 = vunpack.c.h.s8.bf16 %v367_v13 }
 0x444   :  { %2816 = vmatpush1.bf16.msra.mxu0 %v847_v15  ;;  %2980 = vmatpush1.bf16.msra.mxu1 %v849_v20  ;;  %v977_v15 = vunpack.c.l.s8.bf16 %v369_v14  ;;  %v992_v20 = vunpack.c.h.s8.bf16 %v368_v6 }
 0x445   :  { %2817 = vmatprep.subr.bf16.mxu0 %v864_v21  ;;  %2981 = vmatprep.subr.bf16.mxu1 %v866_v22  ;;  %v994_v21 = vunpack.c.h.s8.bf16 %v370_v7  ;;  %v384_v22 = vld [vmem:[#allocation6 + $0x3e8] sm:$0xff]  ;;  %v1089_v7 = vunpack.c.h.s8.bf16 %v417_v0 }
 0x448   :  { %2818 = vmatpush1.bf16.msra.mxu0 %v863_v27  ;;  %2982 = vmatpush1.bf16.msra.mxu1 %v865_v28  ;;  %v993_v27 = vunpack.c.h.s8.bf16 %v369_v14  ;;  %v1008_v28 = vunpack.c.l.s8.bf16 %v384_v22 }
 0x449   :  { %2819 = vmatprep.subr.bf16.mxu0 %v880_v29  ;;  %2983 = vmatprep.subr.bf16.mxu1 %v882_v31  ;;  %v1010_v29 = vunpack.c.l.s8.bf16 %v386_v25  ;;  %v383_v31 = vld [vmem:[#allocation6 + $0x3e0] sm:$0xff] }
 0x44a   :  { %v1007_v36 = vunpack.c.l.s8.bf16 %v383_v31  ;;  %v1023_v45 = vunpack.c.h.s8.bf16 %v383_v31 }
 0x44c   :  { %2820 = vmatpush1.bf16.msra.mxu0 %v879_v37  ;;  %2984 = vmatpush1.bf16.msra.mxu1 %v881_v40  ;;  %v1009_v37 = vunpack.c.l.s8.bf16 %v385_v32  ;;  %v1024_v40 = vunpack.c.h.s8.bf16 %v384_v22 }
 0x44d   :  { %2821 = vmatprep.subr.bf16.mxu0 %v896_v41  ;;  %2985 = vmatprep.subr.bf16.mxu1 %v898_v47  ;;  %v1026_v41 = vunpack.c.h.s8.bf16 %v386_v25  ;;  %v400_v47 = vld [vmem:[#allocation6 + $0x468] sm:$0xff] }
 0x450   :  { %2822 = vmatpush1.bf16.msra.mxu0 %v895_v46  ;;  %2986 = vmatpush1.bf16.msra.mxu1 %v897_v49  ;;  %v1025_v46 = vunpack.c.h.s8.bf16 %v385_v32  ;;  %v1040_v49 = vunpack.c.l.s8.bf16 %v400_v47 }
 0x451   :  { %2823 = vmatprep.subr.bf16.mxu0 %v912_v30  ;;  %2987 = vmatprep.subr.bf16.mxu1 %v914_v51  ;;  %v1042_v30 = vunpack.c.l.s8.bf16 %v402_v48  ;;  %v399_v51 = vld [vmem:[#allocation6 + $0x460] sm:$0xff] }
 0x452   :  { %v1039_v9 = vunpack.c.l.s8.bf16 %v399_v51  ;;  %v1055_v57 = vunpack.c.h.s8.bf16 %v399_v51 }
 0x454   :  { %2824 = vmatpush1.bf16.msra.mxu0 %v911_v61  ;;  %2988 = vmatpush1.bf16.msra.mxu1 %v913_v53  ;;  %v1041_v61 = vunpack.c.l.s8.bf16 %v401_v52  ;;  %v1056_v53 = vunpack.c.h.s8.bf16 %v400_v47 }
 0x455   :  { %2825 = vmatprep.subr.bf16.mxu0 %v928_v54  ;;  %2989 = vmatprep.subr.bf16.mxu1 %v930_v55  ;;  %v1058_v54 = vunpack.c.h.s8.bf16 %v402_v48  ;;  %v416_v55 = vld [vmem:[#allocation6 + $0x4e8] sm:$0xff] }
 0x458   :  { %2826 = vmatpush1.bf16.msra.mxu0 %v927_v58  ;;  %2990 = vmatpush1.bf16.msra.mxu1 %v929_v59  ;;  %v1057_v58 = vunpack.c.h.s8.bf16 %v401_v52  ;;  %v1072_v59 = vunpack.c.l.s8.bf16 %v416_v55 }
 0x459   :  { %2827 = vmatprep.subr.bf16.mxu0 %v944_v62  ;;  %2991 = vmatprep.subr.bf16.mxu1 %v946_v63  ;;  %v1074_v62 = vunpack.c.l.s8.bf16 %v418_v56  ;;  %v415_v63 = vld [vmem:[#allocation6 + $0x4e0] sm:$0xff] }
 0x45a   :  { %v1071_v1 = vunpack.c.l.s8.bf16 %v415_v63  ;;  %v1087_v6 = vunpack.c.h.s8.bf16 %v415_v63 }
 0x45c   :  { %2828 = vmatpush1.bf16.msra.mxu0 %v943_v2  ;;  %2992 = vmatpush1.bf16.msra.mxu1 %v945_v3  ;;  %v1073_v2 = vunpack.c.l.s8.bf16 %v417_v0  ;;  %v1090_v3 = vunpack.c.h.s8.bf16 %v418_v56 }
 0x45d   :  { %2829 = vmatprep.subr.bf16.mxu0 %v960_v17  ;;  %2993 = vmatprep.subr.bf16.mxu1 %v962_v5  ;;  %v432_v17 = vld [vmem:[#allocation6 + $0x568] sm:$0xff]  ;;  %v434_v5 = vld [vmem:[#allocation6 + $0x578] sm:$0xff] }
 0x45e   :  { %v1120_v14 = vunpack.c.h.s8.bf16 %v432_v17 }
 0x460   :  { %2830 = vmatpush1.bf16.msra.mxu0 %v959_v8  ;;  %2994 = vmatpush1.bf16.msra.mxu1 %v961_v10  ;;  %v1104_v8 = vunpack.c.l.s8.bf16 %v432_v17  ;;  %v1106_v10 = vunpack.c.l.s8.bf16 %v434_v5 }
 0x461   :  { %2831 = vmatprep.subr.bf16.mxu0 %v976_v11  ;;  %2995 = vmatprep.subr.bf16.mxu1 %v978_v12  ;;  %v431_v11 = vld [vmem:[#allocation6 + $0x560] sm:$0xff] }
 0x462   :  { %v1103_v12 = vunpack.c.l.s8.bf16 %v431_v11 }
 0x464   :  { %2832 = vmatpush1.bf16.msra.mxu0 %v975_v35  ;;  %2996 = vmatpush1.bf16.msra.mxu1 %v977_v15  ;;  %v1122_v35 = vunpack.c.h.s8.bf16 %v434_v5  ;;  %v448_v15 = vld [vmem:[#allocation6 + $0x5e8] sm:$0xff] }
 0x465   :  { %2833 = vmatprep.subr.bf16.mxu0 %v992_v20  ;;  %2997 = vmatprep.subr.bf16.mxu1 %v994_v21  ;;  %v450_v20 = vld [vmem:[#allocation6 + $0x5f8] sm:$0xff]  ;;  %v1119_v21 = vunpack.c.h.s8.bf16 %v431_v11  ;;  %v1136_v25 = vunpack.c.l.s8.bf16 %v448_v15  ;;  %v1152_v32 = vunpack.c.h.s8.bf16 %v448_v15 }
 0x468   :  { %2834 = vmatpush1.bf16.msra.mxu0 %v991_v26  ;;  %2998 = vmatpush1.bf16.msra.mxu1 %v993_v27  ;;  %v1138_v26 = vunpack.c.l.s8.bf16 %v450_v20  ;;  %v447_v27 = vld [vmem:[#allocation6 + $0x5e0] sm:$0xff] }
 0x469   :  { %2835 = vmatprep.subr.bf16.mxu0 %v1008_v28  ;;  %2999 = vmatprep.subr.bf16.mxu1 %v1010_v29  ;;  %v449_v28 = vld [vmem:[#allocation6 + $0x5f0] sm:$0xff]  ;;  %v1135_v29 = vunpack.c.l.s8.bf16 %v447_v27 }
 0x46a   :  { %v1137_v31 = vunpack.c.l.s8.bf16 %v449_v28  ;;  %v1153_v47 = vunpack.c.h.s8.bf16 %v449_v28 }
 0x46c   :  { %2836 = vmatpush1.bf16.msra.mxu0 %v1007_v36  ;;  %3000 = vmatpush1.bf16.msra.mxu1 %v1009_v37  ;;  %v1154_v36 = vunpack.c.h.s8.bf16 %v450_v20  ;;  %v464_v37 = vld [vmem:[#allocation6 + $0x668] sm:$0xff] }
 0x46d   :  { %2837 = vmatprep.subr.bf16.mxu0 %v1024_v40  ;;  %3001 = vmatprep.subr.bf16.mxu1 %v1026_v41  ;;  %v466_v40 = vld [vmem:[#allocation6 + $0x678] sm:$0xff]  ;;  %v1151_v41 = vunpack.c.h.s8.bf16 %v447_v27  ;;  %v1168_v48 = vunpack.c.l.s8.bf16 %v464_v37  ;;  %v1184_v52 = vunpack.c.h.s8.bf16 %v464_v37 }
 0x470   :  { %2838 = vmatpush1.bf16.msra.mxu0 %v1023_v45  ;;  %3002 = vmatpush1.bf16.msra.mxu1 %v1025_v46  ;;  %v1170_v45 = vunpack.c.l.s8.bf16 %v466_v40  ;;  %v463_v46 = vld [vmem:[#allocation6 + $0x660] sm:$0xff] }
 0x471   :  { %2848 = vmatprep.subr.bf16.mxu0 %v1040_v49  ;;  %3012 = vmatprep.subr.bf16.mxu1 %v1042_v30  ;;  %v465_v49 = vld [vmem:[#allocation6 + $0x670] sm:$0xff]  ;;  %v1167_v30 = vunpack.c.l.s8.bf16 %v463_v46 }
 0x472   :  { %v1169_v51 = vunpack.c.l.s8.bf16 %v465_v49 }
 0x473   :  { %2840 = vmatmul.mubr.bf16.vlgmr.msra.gmra.mrb[12].mxu0 %v13031_v43  ;;  %3004 = vmatmul.mubr.bf16.vlgmr.msra.gmra.mrb[12].mxu1 %v13031_v43  ;;  %v1088_v43 = vunpack.c.h.s8.bf16 %v416_v55  ;;  %v1185_v55 = vunpack.c.h.s8.bf16 %v465_v49 }
 0x474   :  { %2849 = vmatpush1.bf16.msra.mxu0 %v1039_v9  ;;  %3013 = vmatpush1.bf16.msra.mxu1 %v1041_v61  ;;  %v1186_v9 = vunpack.c.h.s8.bf16 %v466_v40  ;;  %v480_v61 = vld [vmem:[#allocation6 + $0x6e8] sm:$0xff] }
 0x475   :  { %2850 = vmatprep.subr.bf16.mxu0 %v1056_v53  ;;  %3014 = vmatprep.subr.bf16.mxu1 %v1058_v54  ;;  %v482_v53 = vld [vmem:[#allocation6 + $0x6f8] sm:$0xff]  ;;  %v1183_v54 = vunpack.c.h.s8.bf16 %v463_v46  ;;  %v1200_v56 = vunpack.c.l.s8.bf16 %v480_v61  ;;  %v1216_v0 = vunpack.c.h.s8.bf16 %v480_v61 }
 0x476   :  { %2880 = vmatprep.mubr.bf16.mxu0 %v13035_v50  ;;  %3044 = vmatprep.mubr.bf16.mxu1 %v13035_v50  ;;  %v433_v50 = vld [vmem:[#allocation6 + $0x570] sm:$0xff] }
 0x477   :  { %v1105_v13 = vunpack.c.l.s8.bf16 %v433_v50  ;;  %v1121_v22 = vunpack.c.h.s8.bf16 %v433_v50 }
 0x478   :  { %2851 = vmatpush1.bf16.msra.mxu0 %v1055_v57  ;;  %3015 = vmatpush1.bf16.msra.mxu1 %v1057_v58  ;;  %v1202_v57 = vunpack.c.l.s8.bf16 %v482_v53  ;;  %v479_v58 = vld [vmem:[#allocation6 + $0x6e0] sm:$0xff] }
 0x479   :  { %2852 = vmatprep.subr.bf16.mxu0 %v1072_v59  ;;  %3016 = vmatprep.subr.bf16.mxu1 %v1074_v62  ;;  %v481_v59 = vld [vmem:[#allocation6 + $0x6f0] sm:$0xff]  ;;  %v1199_v62 = vunpack.c.l.s8.bf16 %v479_v58 }
 0x47a   :  { %v1201_v63 = vunpack.c.l.s8.bf16 %v481_v59  ;;  %v1217_v17 = vunpack.c.h.s8.bf16 %v481_v59 }
 0x47c   :  { %2853 = vmatpush1.bf16.msra.mxu0 %v1071_v1  ;;  %3017 = vmatpush1.bf16.msra.mxu1 %v1073_v2  ;;  %v1218_v1 = vunpack.c.h.s8.bf16 %v482_v53  ;;  %v496_v2 = vld [vmem:[#allocation6 + $0x768] sm:$0xff] }
 0x47d   :  { %2854 = vmatprep.subr.bf16.mxu0 %v1088_v43  ;;  %3018 = vmatprep.subr.bf16.mxu1 %v1090_v3  ;;  %v498_v43 = vld [vmem:[#allocation6 + $0x778] sm:$0xff]  ;;  %v1215_v3 = vunpack.c.h.s8.bf16 %v479_v58  ;;  %v1232_v5 = vunpack.c.l.s8.bf16 %v496_v2  ;;  %v1248_v50 = vunpack.c.h.s8.bf16 %v496_v2 }
 0x480   :  { %2855 = vmatpush1.bf16.msra.mxu0 %v1087_v6  ;;  %3019 = vmatpush1.bf16.msra.mxu1 %v1089_v7  ;;  %v1234_v6 = vunpack.c.l.s8.bf16 %v498_v43  ;;  %v495_v7 = vld [vmem:[#allocation6 + $0x760] sm:$0xff] }
 0x481   :  { %2856 = vmatprep.subr.bf16.mxu0 %v1104_v8  ;;  %3020 = vmatprep.subr.bf16.mxu1 %v1106_v10  ;;  %v497_v8 = vld [vmem:[#allocation6 + $0x770] sm:$0xff]  ;;  %v1231_v10 = vunpack.c.l.s8.bf16 %v495_v7 }
 0x482   :  { %v1233_v11 = vunpack.c.l.s8.bf16 %v497_v8  ;;  %v1249_v15 = vunpack.c.h.s8.bf16 %v497_v8  ;;  %v576_v8 = vld [vmem:[#allocation6 + $0x9e8] sm:$0xff] }
 0x484   :  { %2857 = vmatpush1.bf16.msra.mxu0 %v1103_v12  ;;  %3021 = vmatpush1.bf16.msra.mxu1 %v1105_v13  ;;  %v1250_v12 = vunpack.c.h.s8.bf16 %v498_v43  ;;  %v512_v13 = vld [vmem:[#allocation6 + $0x7e8] sm:$0xff] }
 0x485   :  { %2858 = vmatprep.subr.bf16.mxu0 %v1120_v14  ;;  %3022 = vmatprep.subr.bf16.mxu1 %v1122_v35  ;;  %v514_v14 = vld [vmem:[#allocation6 + $0x7f8] sm:$0xff]  ;;  %v1247_v35 = vunpack.c.h.s8.bf16 %v495_v7  ;;  %v1264_v20 = vunpack.c.l.s8.bf16 %v512_v13  ;;  %v1280_v28 = vunpack.c.h.s8.bf16 %v512_v13 }
 0x488   :  { %2859 = vmatpush1.bf16.msra.mxu0 %v1119_v21  ;;  %3023 = vmatpush1.bf16.msra.mxu1 %v1121_v22  ;;  %v1266_v21 = vunpack.c.l.s8.bf16 %v514_v14  ;;  %v511_v22 = vld [vmem:[#allocation6 + $0x7e0] sm:$0xff] }
 0x489   :  { %2860 = vmatprep.subr.bf16.mxu0 %v1136_v25  ;;  %3024 = vmatprep.subr.bf16.mxu1 %v1138_v26  ;;  %v513_v25 = vld [vmem:[#allocation6 + $0x7f0] sm:$0xff]  ;;  %v1263_v26 = vunpack.c.l.s8.bf16 %v511_v22 }
 0x48a   :  { %v1265_v27 = vunpack.c.l.s8.bf16 %v513_v25  ;;  %v1281_v37 = vunpack.c.h.s8.bf16 %v513_v25  ;;  %v592_v25 = vld [vmem:[#allocation6 + $0xa68] sm:$0xff] }
 0x48c   :  { %2861 = vmatpush1.bf16.msra.mxu0 %v1135_v29  ;;  %3025 = vmatpush1.bf16.msra.mxu1 %v1137_v31  ;;  %v1282_v29 = vunpack.c.h.s8.bf16 %v514_v14  ;;  %v528_v31 = vld [vmem:[#allocation6 + $0x868] sm:$0xff]  ;;  %v575_v14 = vld [vmem:[#allocation6 + $0x9e0] sm:$0xff] }
 0x48d   :  { %2862 = vmatprep.subr.bf16.mxu0 %v1152_v32  ;;  %3026 = vmatprep.subr.bf16.mxu1 %v1154_v36  ;;  %v530_v32 = vld [vmem:[#allocation6 + $0x878] sm:$0xff]  ;;  %v1279_v36 = vunpack.c.h.s8.bf16 %v511_v22  ;;  %v1296_v40 = vunpack.c.l.s8.bf16 %v528_v31  ;;  %v1312_v49 = vunpack.c.h.s8.bf16 %v528_v31 }
 0x490   :  { %2863 = vmatpush1.bf16.msra.mxu0 %v1151_v41  ;;  %3027 = vmatpush1.bf16.msra.mxu1 %v1153_v47  ;;  %v1298_v41 = vunpack.c.l.s8.bf16 %v530_v32  ;;  %v527_v47 = vld [vmem:[#allocation6 + $0x860] sm:$0xff] }
 0x491   :  { %2864 = vmatprep.subr.bf16.mxu0 %v1168_v48  ;;  %3028 = vmatprep.subr.bf16.mxu1 %v1170_v45  ;;  %v529_v48 = vld [vmem:[#allocation6 + $0x870] sm:$0xff]  ;;  %v1295_v45 = vunpack.c.l.s8.bf16 %v527_v47 }
 0x492   :  { %v1297_v46 = vunpack.c.l.s8.bf16 %v529_v48  ;;  %v1313_v61 = vunpack.c.h.s8.bf16 %v529_v48  ;;  %v608_v48 = vld [vmem:[#allocation6 + $0xae8] sm:$0xff] }
 0x494   :  { %2865 = vmatpush1.bf16.msra.mxu0 %v1167_v30  ;;  %3029 = vmatpush1.bf16.msra.mxu1 %v1169_v51  ;;  %v1314_v30 = vunpack.c.h.s8.bf16 %v530_v32  ;;  %v544_v51 = vld [vmem:[#allocation6 + $0x8e8] sm:$0xff]  ;;  %v591_v32 = vld [vmem:[#allocation6 + $0xa60] sm:$0xff] }
 0x495   :  { %2866 = vmatprep.subr.bf16.mxu0 %v1184_v52  ;;  %3030 = vmatprep.subr.bf16.mxu1 %v1186_v9  ;;  %v546_v52 = vld [vmem:[#allocation6 + $0x8f8] sm:$0xff]  ;;  %v1311_v9 = vunpack.c.h.s8.bf16 %v527_v47  ;;  %v1328_v53 = vunpack.c.l.s8.bf16 %v544_v51 }
 0x496   :  { %v1346_v59 = vunpack.c.h.s8.bf16 %v546_v52 }
 0x498   :  { %2867 = vmatpush1.bf16.msra.mxu0 %v1183_v54  ;;  %3031 = vmatpush1.bf16.msra.mxu1 %v1185_v55  ;;  %v1330_v54 = vunpack.c.l.s8.bf16 %v546_v52  ;;  %v543_v55 = vld [vmem:[#allocation6 + $0x8e0] sm:$0xff] }
 0x499   :  { %2868 = vmatprep.subr.bf16.mxu0 %v1200_v56  ;;  %3032 = vmatprep.subr.bf16.mxu1 %v1202_v57  ;;  %v545_v56 = vld [vmem:[#allocation6 + $0x8f0] sm:$0xff]  ;;  %v1327_v57 = vunpack.c.l.s8.bf16 %v543_v55  ;;  %v607_v52 = vld [vmem:[#allocation6 + $0xae0] sm:$0xff] }
 0x49a   :  { %v1329_v58 = vunpack.c.l.s8.bf16 %v545_v56 }
 0x49c   :  { %2869 = vmatpush1.bf16.msra.mxu0 %v1199_v62  ;;  %3033 = vmatpush1.bf16.msra.mxu1 %v1201_v63  ;;  %v560_v62 = vld [vmem:[#allocation6 + $0x968] sm:$0xff]  ;;  %v562_v63 = vld [vmem:[#allocation6 + $0x978] sm:$0xff] }
 0x49d   :  { %2870 = vmatprep.subr.bf16.mxu0 %v1216_v0  ;;  %3034 = vmatprep.subr.bf16.mxu1 %v1218_v1  ;;  %v1343_v0 = vunpack.c.h.s8.bf16 %v543_v55  ;;  %v1345_v1 = vunpack.c.h.s8.bf16 %v545_v56  ;;  %v1360_v2 = vunpack.c.l.s8.bf16 %v560_v62  ;;  %v1362_v43 = vunpack.c.l.s8.bf16 %v562_v63  ;;  %v624_v56 = vld [vmem:[#allocation6 + $0xb68] sm:$0xff] }
 0x49e   :  { %v1378_v7 = vunpack.c.h.s8.bf16 %v562_v63  ;;  %v623_v63 = vld [vmem:[#allocation6 + $0xb60] sm:$0xff] }
 0x4a0   :  { %2871 = vmatpush1.bf16.msra.mxu0 %v1215_v3  ;;  %3035 = vmatpush1.bf16.msra.mxu1 %v1217_v17  ;;  %v559_v3 = vld [vmem:[#allocation6 + $0x960] sm:$0xff] }
 0x4a1   :  { %2872 = vmatprep.subr.bf16.mxu0 %v1232_v5  ;;  %3036 = vmatprep.subr.bf16.mxu1 %v1234_v6  ;;  %v1359_v17 = vunpack.c.l.s8.bf16 %v559_v3  ;;  %v1376_v6 = vunpack.c.h.s8.bf16 %v560_v62 }
 0x4a4   :  { %2873 = vmatpush1.bf16.msra.mxu0 %v1231_v10  ;;  %3037 = vmatpush1.bf16.msra.mxu1 %v1233_v11  ;;  %v578_v10 = vld [vmem:[#allocation6 + $0x9f8] sm:$0xff]  ;;  %v1375_v11 = vunpack.c.h.s8.bf16 %v559_v3 }
 0x4a5   :  { %2874 = vmatprep.subr.bf16.mxu0 %v1248_v50  ;;  %3038 = vmatprep.subr.bf16.mxu1 %v1250_v12  ;;  %v1392_v12 = vunpack.c.l.s8.bf16 %v576_v8  ;;  %v1394_v13 = vunpack.c.l.s8.bf16 %v578_v10  ;;  %v1410_v22 = vunpack.c.h.s8.bf16 %v578_v10  ;;  %v639_v10 = vld [vmem:[#allocation6 + $0xbe0] sm:$0xff] }
 0x4a8   :  { %2875 = vmatpush1.bf16.msra.mxu0 %v1247_v35  ;;  %3039 = vmatpush1.bf16.msra.mxu1 %v1249_v15  ;;  %v577_v35 = vld [vmem:[#allocation6 + $0x9f0] sm:$0xff]  ;;  %v1391_v15 = vunpack.c.l.s8.bf16 %v575_v14 }
 0x4a9   :  { %2876 = vmatprep.subr.bf16.mxu0 %v1264_v20  ;;  %3040 = vmatprep.subr.bf16.mxu1 %v1266_v21  ;;  %v1393_v20 = vunpack.c.l.s8.bf16 %v577_v35  ;;  %v1408_v21 = vunpack.c.h.s8.bf16 %v576_v8 }
 0x4ac   :  { %2877 = vmatpush1.bf16.msra.mxu0 %v1263_v26  ;;  %3041 = vmatpush1.bf16.msra.mxu1 %v1265_v27  ;;  %v594_v26 = vld [vmem:[#allocation6 + $0xa78] sm:$0xff]  ;;  %v1407_v27 = vunpack.c.h.s8.bf16 %v575_v14 }
 0x4ad   :  { %2878 = vmatprep.subr.bf16.mxu0 %v1280_v28  ;;  %3042 = vmatprep.subr.bf16.mxu1 %v1282_v29  ;;  %v1409_v28 = vunpack.c.h.s8.bf16 %v577_v35  ;;  %v1424_v29 = vunpack.c.l.s8.bf16 %v592_v25  ;;  %v1426_v31 = vunpack.c.l.s8.bf16 %v594_v26  ;;  %v1442_v47 = vunpack.c.h.s8.bf16 %v594_v26  ;;  %v656_v35 = vld [vmem:[#allocation6 + $0xc68] sm:$0xff]  ;;  %v655_v26 = vld [vmem:[#allocation6 + $0xc60] sm:$0xff] }
 0x4b0   :  { %2879 = vmatpush1.bf16.msra.mxu0 %v1279_v36  ;;  %3043 = vmatpush1.bf16.msra.mxu1 %v1281_v37  ;;  %v593_v36 = vld [vmem:[#allocation6 + $0xa70] sm:$0xff]  ;;  %v1423_v37 = vunpack.c.l.s8.bf16 %v591_v32 }
 0x4b1   :  { %2889 = vmatprep.subr.bf16.mxu0 %v1296_v40  ;;  %3053 = vmatprep.subr.bf16.mxu1 %v1298_v41  ;;  %v1425_v40 = vunpack.c.l.s8.bf16 %v593_v36  ;;  %v1440_v41 = vunpack.c.h.s8.bf16 %v592_v25 }
 0x4b3   :  { %2881 = vmatmul.mubr.bf16.vlgmr.msra.gmra.mrb[12].mxu0 %v13043_v16  ;;  %3045 = vmatmul.mubr.bf16.vlgmr.msra.gmra.mrb[12].mxu1 %v13043_v16  ;;  %v1344_v16 = vunpack.c.h.s8.bf16 %v544_v51 }
 0x4b4   :  { %2890 = vmatpush1.bf16.msra.mxu0 %v1295_v45  ;;  %3054 = vmatpush1.bf16.msra.mxu1 %v1297_v46  ;;  %v610_v45 = vld [vmem:[#allocation6 + $0xaf8] sm:$0xff]  ;;  %v1439_v46 = vunpack.c.h.s8.bf16 %v591_v32 }
 0x4b5   :  { %2891 = vmatprep.subr.bf16.mxu0 %v1312_v49  ;;  %3055 = vmatprep.subr.bf16.mxu1 %v1314_v30  ;;  %v1441_v49 = vunpack.c.h.s8.bf16 %v593_v36  ;;  %v1456_v30 = vunpack.c.l.s8.bf16 %v608_v48  ;;  %v1458_v51 = vunpack.c.l.s8.bf16 %v610_v45  ;;  %v1474_v55 = vunpack.c.h.s8.bf16 %v610_v45  ;;  %v672_v36 = vld [vmem:[#allocation6 + $0xce8] sm:$0xff]  ;;  %v671_v45 = vld [vmem:[#allocation6 + $0xce0] sm:$0xff] }
 0x4b6   :  { %2921 = vmatprep.mubr.bf16.mxu0 %v13052_v24  ;;  %3085 = vmatprep.mubr.bf16.mxu1 %v13052_v24  ;;  %v561_v24 = vld [vmem:[#allocation6 + $0x970] sm:$0xff] }
 0x4b7   :  { %v1361_v5 = vunpack.c.l.s8.bf16 %v561_v24  ;;  %v1377_v50 = vunpack.c.h.s8.bf16 %v561_v24  ;;  %v640_v24 = vld [vmem:[#allocation6 + $0xbe8] sm:$0xff] }
 0x4b8   :  { %2892 = vmatpush1.bf16.msra.mxu0 %v1311_v9  ;;  %3056 = vmatpush1.bf16.msra.mxu1 %v1313_v61  ;;  %v609_v9 = vld [vmem:[#allocation6 + $0xaf0] sm:$0xff]  ;;  %v1455_v61 = vunpack.c.l.s8.bf16 %v607_v52 }
 0x4b9   :  { %2893 = vmatprep.subr.bf16.mxu0 %v1328_v53  ;;  %3057 = vmatprep.subr.bf16.mxu1 %v1330_v54  ;;  %v1457_v53 = vunpack.c.l.s8.bf16 %v609_v9  ;;  %v1472_v54 = vunpack.c.h.s8.bf16 %v608_v48 }
 0x4bc   :  { %2894 = vmatpush1.bf16.msra.mxu0 %v1327_v57  ;;  %3058 = vmatpush1.bf16.msra.mxu1 %v1329_v58  ;;  %v626_v57 = vld [vmem:[#allocation6 + $0xb78] sm:$0xff]  ;;  %v1471_v58 = vunpack.c.h.s8.bf16 %v607_v52  ;;  %v688_v52 = vld [vmem:[#allocation6 + $0xd68] sm:$0xff] }
 0x4bd   :  { %2895 = vmatprep.subr.bf16.mxu0 %v1344_v16  ;;  %3059 = vmatprep.subr.bf16.mxu1 %v1346_v59  ;;  %v1473_v16 = vunpack.c.h.s8.bf16 %v609_v9  ;;  %v1488_v59 = vunpack.c.l.s8.bf16 %v624_v56  ;;  %v1490_v62 = vunpack.c.l.s8.bf16 %v626_v57  ;;  %v1506_v3 = vunpack.c.h.s8.bf16 %v626_v57  ;;  %v690_v9 = vld [vmem:[#allocation6 + $0xd78] sm:$0xff] }
 0x4c0   :  { %2896 = vmatpush1.bf16.msra.mxu0 %v1343_v0  ;;  %3060 = vmatpush1.bf16.msra.mxu1 %v1345_v1  ;;  %v625_v0 = vld [vmem:[#allocation6 + $0xb70] sm:$0xff]  ;;  %v1487_v1 = vunpack.c.l.s8.bf16 %v623_v63 }
 0x4c1   :  { %2897 = vmatprep.subr.bf16.mxu0 %v1360_v2  ;;  %3061 = vmatprep.subr.bf16.mxu1 %v1362_v43  ;;  %v1489_v2 = vunpack.c.l.s8.bf16 %v625_v0  ;;  %v1504_v43 = vunpack.c.h.s8.bf16 %v624_v56  ;;  %v687_v56 = vld [vmem:[#allocation6 + $0xd60] sm:$0xff] }
 0x4c2   :  { %v1615_v57 = vunpack.c.l.s8.bf16 %v687_v56 }
 0x4c4   :  { %2898 = vmatpush1.bf16.msra.mxu0 %v1359_v17  ;;  %3062 = vmatpush1.bf16.msra.mxu1 %v1361_v5  ;;  %v642_v17 = vld [vmem:[#allocation6 + $0xbf8] sm:$0xff]  ;;  %v1503_v5 = vunpack.c.h.s8.bf16 %v623_v63 }
 0x4c5   :  { %2899 = vmatprep.subr.bf16.mxu0 %v1376_v6  ;;  %3063 = vmatprep.subr.bf16.mxu1 %v1378_v7  ;;  %v1505_v6 = vunpack.c.h.s8.bf16 %v625_v0  ;;  %v1520_v7 = vunpack.c.l.s8.bf16 %v640_v24  ;;  %v1522_v8 = vunpack.c.l.s8.bf16 %v642_v17  ;;  %v1538_v14 = vunpack.c.h.s8.bf16 %v642_v17  ;;  %v3236_v63 = vld [vmem:[#allocation10 + $0x8] sm:$0xff]  ;;  %v704_v0 = vld [vmem:[#allocation6 + $0xde8] sm:$0xff] }
 0x4c6   :  { %v1631_v17 = vunpack.c.h.s8.bf16 %v687_v56 }
 0x4c8   :  { %2900 = vmatpush1.bf16.msra.mxu0 %v1375_v11  ;;  %3064 = vmatpush1.bf16.msra.mxu1 %v1377_v50  ;;  %v641_v11 = vld [vmem:[#allocation6 + $0xbf0] sm:$0xff]  ;;  %v1519_v50 = vunpack.c.l.s8.bf16 %v639_v10 }
 0x4c9   :  { %2901 = vmatprep.subr.bf16.mxu0 %v1392_v12  ;;  %3065 = vmatprep.subr.bf16.mxu1 %v1394_v13  ;;  %v1521_v12 = vunpack.c.l.s8.bf16 %v641_v11  ;;  %v1536_v13 = vunpack.c.h.s8.bf16 %v640_v24 }
 0x4cc   :  { %2902 = vmatpush1.bf16.msra.mxu0 %v1391_v15  ;;  %3066 = vmatpush1.bf16.msra.mxu1 %v1393_v20  ;;  %v658_v15 = vld [vmem:[#allocation6 + $0xc78] sm:$0xff]  ;;  %v1535_v20 = vunpack.c.h.s8.bf16 %v639_v10 }
 0x4cd   :  { %2903 = vmatprep.subr.bf16.mxu0 %v1408_v21  ;;  %3067 = vmatprep.subr.bf16.mxu1 %v1410_v22  ;;  %v1537_v21 = vunpack.c.h.s8.bf16 %v641_v11  ;;  %v1552_v22 = vunpack.c.l.s8.bf16 %v656_v35  ;;  %v1554_v25 = vunpack.c.l.s8.bf16 %v658_v15  ;;  %v1570_v32 = vunpack.c.h.s8.bf16 %v658_v15  ;;  %v703_v11 = vld [vmem:[#allocation6 + $0xde0] sm:$0xff] }
 0x4d0   :  { %2904 = vmatpush1.bf16.msra.mxu0 %v1407_v27  ;;  %3068 = vmatpush1.bf16.msra.mxu1 %v1409_v28  ;;  %v657_v27 = vld [vmem:[#allocation6 + $0xc70] sm:$0xff]  ;;  %v1551_v28 = vunpack.c.l.s8.bf16 %v655_v26 }
 0x4d1   :  { %2905 = vmatprep.subr.bf16.mxu0 %v1424_v29  ;;  %3069 = vmatprep.subr.bf16.mxu1 %v1426_v31  ;;  %v1553_v29 = vunpack.c.l.s8.bf16 %v657_v27  ;;  %v1568_v31 = vunpack.c.h.s8.bf16 %v656_v35  ;;  %v3286_v35 = vrot.slane %v3236_v63, %v13107_v42 }
 0x4d4   :  { %2906 = vmatpush1.bf16.msra.mxu0 %v1423_v37  ;;  %3070 = vmatpush1.bf16.msra.mxu1 %v1425_v40  ;;  %v674_v37 = vld [vmem:[#allocation6 + $0xcf8] sm:$0xff]  ;;  %v1567_v40 = vunpack.c.h.s8.bf16 %v655_v26 }
 0x4d5   :  { %2907 = vmatprep.subr.bf16.mxu0 %v1440_v41  ;;  %3071 = vmatprep.subr.bf16.mxu1 %v1442_v47  ;;  %v1569_v41 = vunpack.c.h.s8.bf16 %v657_v27  ;;  %v1584_v47 = vunpack.c.l.s8.bf16 %v672_v36  ;;  %v1586_v48 = vunpack.c.l.s8.bf16 %v674_v37 }
 0x4d8   :  { %2908 = vmatpush1.bf16.msra.mxu0 %v1439_v46  ;;  %3072 = vmatpush1.bf16.msra.mxu1 %v1441_v49  ;;  %v673_v46 = vld [vmem:[#allocation6 + $0xcf0] sm:$0xff]  ;;  %v1583_v49 = vunpack.c.l.s8.bf16 %v671_v45 }
 0x4d9   :  { %2909 = vmatprep.subr.bf16.mxu0 %v1456_v30  ;;  %3073 = vmatprep.subr.bf16.mxu1 %v1458_v51  ;;  %v1585_v30 = vunpack.c.l.s8.bf16 %v673_v46  ;;  %v1602_v51 = vunpack.c.h.s8.bf16 %v674_v37 }
 0x4dc   :  { %2910 = vmatpush1.bf16.msra.mxu0 %v1455_v61  ;;  %3074 = vmatpush1.bf16.msra.mxu1 %v1457_v53  ;;  %v1599_v61 = vunpack.c.h.s8.bf16 %v671_v45  ;;  %v1601_v53 = vunpack.c.h.s8.bf16 %v673_v46  ;;  %v720_v46 = vld [vmem:[#allocation6 + $0xe68] sm:$0xff] }
 0x4dd   :  { %2911 = vmatprep.subr.bf16.mxu0 %v1472_v54  ;;  %3075 = vmatprep.subr.bf16.mxu1 %v1474_v55  ;;  %v1616_v54 = vunpack.c.l.s8.bf16 %v688_v52  ;;  %v1618_v55 = vunpack.c.l.s8.bf16 %v690_v9 }
 0x4e0   :  { %2912 = vmatpush1.bf16.msra.mxu0 %v1471_v58  ;;  %3076 = vmatpush1.bf16.msra.mxu1 %v1473_v16  ;;  %v3136_v16 = vld [vmem:[#allocation8 + $0x8] sm:$0xff] }
 0x4e1   :  { %2913 = vmatprep.subr.bf16.mxu0 %v1488_v59  ;;  %3077 = vmatprep.subr.bf16.mxu1 %v1490_v62  ;;  %v1632_v59 = vunpack.c.h.s8.bf16 %v688_v52  ;;  %v1634_v62 = vunpack.c.h.s8.bf16 %v690_v9  ;;  %v3186_v24 = vrot.slane %v3136_v16, %v13107_v42  ;;  %v1663_v9 = vunpack.c.h.s8.bf16 %v703_v11 }
 0x4e4   :  { %2914 = vmatpush1.bf16.msra.mxu0 %v1487_v1  ;;  %3078 = vmatpush1.bf16.msra.mxu1 %v1489_v2  ;;  %v706_v1 = vld [vmem:[#allocation6 + $0xdf8] sm:$0xff]  ;;  %v3174_v2 = vrot.slane %v3136_v16, %v13098_v18 }
 0x4e5   :  { %2915 = vmatprep.subr.bf16.mxu0 %v1504_v43  ;;  %3079 = vmatprep.subr.bf16.mxu1 %v1506_v3  ;;  %v3182_v43 = vrot.slane %v3136_v16, %v13101_v19  ;;  %v3178_v3 = vrot.slane %v3136_v16, %v13104_v23  ;;  %v1650_v10 = vunpack.c.l.s8.bf16 %v706_v1 }
 0x4e8   :  { %2916 = vmatpush1.bf16.msra.mxu0 %v1503_v5  ;;  %3080 = vmatpush1.bf16.msra.mxu1 %v1505_v6  ;;  %v3274_v6 = vrot.slane %v3236_v63, %v13098_v18 }
 0x4e9   :  { %2917 = vmatprep.subr.bf16.mxu0 %v1520_v7  ;;  %3081 = vmatprep.subr.bf16.mxu1 %v1522_v8  ;;  %v3282_v7 = vrot.slane %v3236_v63, %v13101_v19  ;;  %v1648_v8 = vunpack.c.l.s8.bf16 %v704_v0 }
 0x4ec   :  { %2918 = vmatpush1.bf16.msra.mxu0 %v1519_v50  ;;  %3082 = vmatpush1.bf16.msra.mxu1 %v1521_v12  ;;  %v705_v50 = vld [vmem:[#allocation6 + $0xdf0] sm:$0xff] }
 0x4ed   :  { %2919 = vmatprep.subr.bf16.mxu0 %v1536_v13  ;;  %3083 = vmatprep.subr.bf16.mxu1 %v1538_v14  ;;  %v3278_v14 = vrot.slane %v3236_v63, %v13104_v23  ;;  %v1696_v63 = vunpack.c.h.s8.bf16 %v720_v46 }
 0x4f0   :  { %2920 = vmatpush1.bf16.msra.mxu0 %v1535_v20  ;;  %3084 = vmatpush1.bf16.msra.mxu1 %v1537_v21 }
 0x4f1   :  { %2930 = vmatprep.subr.bf16.mxu0 %v1552_v22  ;;  %3094 = vmatprep.subr.bf16.mxu1 %v1554_v25 }
 0x4f3   :  { %2922 = vmatmul.mubr.bf16.vlgmr.msra.gmra.mrb[12].mxu0 %v13060_v60  ;;  %3086 = vmatmul.mubr.bf16.vlgmr.msra.gmra.mrb[12].mxu1 %v13060_v60  ;;  %v1600_v60 = vunpack.c.h.s8.bf16 %v672_v36 }
 0x4f4   :  { %2931 = vmatpush1.bf16.msra.mxu0 %v1551_v28  ;;  %3095 = vmatpush1.bf16.msra.mxu1 %v1553_v29  ;;  %v1647_v29 = vunpack.c.l.s8.bf16 %v703_v11 }
 0x4f5   :  { %2932 = vmatprep.subr.bf16.mxu0 %v1568_v31  ;;  %3096 = vmatprep.subr.bf16.mxu1 %v1570_v32  ;;  %v1649_v31 = vunpack.c.l.s8.bf16 %v705_v50 }
 0x4f6   :  { %2962 = vmatprep.mubr.bf16.mxu0 %v13069_v4  ;;  %3126 = vmatprep.mubr.bf16.mxu1 %v13069_v4  ;;  %v689_v4 = vld [vmem:[#allocation6 + $0xd70] sm:$0xff] }
 0x4f7   :  { %v1617_v58 = vunpack.c.l.s8.bf16 %v689_v4  ;;  %v1633_v5 = vunpack.c.h.s8.bf16 %v689_v4  ;;  %v719_v4 = vld [vmem:[#allocation6 + $0xe60] sm:$0xff] }
 0x4f8   :  { %2933 = vmatpush1.bf16.msra.mxu0 %v1567_v40  ;;  %3097 = vmatpush1.bf16.msra.mxu1 %v1569_v41  ;;  %v1664_v41 = vunpack.c.h.s8.bf16 %v704_v0 }
 0x4f9   :  { %2934 = vmatprep.subr.bf16.mxu0 %v1584_v47  ;;  %3098 = vmatprep.subr.bf16.mxu1 %v1586_v48  ;;  %v1666_v47 = vunpack.c.h.s8.bf16 %v706_v1  ;;  %v736_v1 = vld [vmem:[#allocation6 + $0xee8] sm:$0xff] }
 0x4fc   :  { %2935 = vmatpush1.bf16.msra.mxu0 %v1583_v49  ;;  %3099 = vmatpush1.bf16.msra.mxu1 %v1585_v30  ;;  %v722_v49 = vld [vmem:[#allocation6 + $0xe78] sm:$0xff] }
 0x4fd   :  { %2936 = vmatprep.subr.bf16.mxu0 %v1600_v60  ;;  %3100 = vmatprep.subr.bf16.mxu1 %v1602_v51  ;;  %v1682_v56 = vunpack.c.l.s8.bf16 %v722_v49  ;;  %v1698_v0 = vunpack.c.h.s8.bf16 %v722_v49  ;;  %v3415_v49 = vld [vmem:[#allocation11] sm:$0xff] }
 0x500   :  { %2937 = vmatpush1.bf16.msra.mxu0 %v1599_v61  ;;  %3101 = vmatpush1.bf16.msra.mxu1 %v1601_v53  ;;  %v1665_v61 = vunpack.c.h.s8.bf16 %v705_v50  ;;  %v752_v50 = vld [vmem:[#allocation6 + $0xf68] sm:$0xff] }
 0x501   :  { %2938 = vmatprep.subr.bf16.mxu0 %v1616_v54  ;;  %3102 = vmatprep.subr.bf16.mxu1 %v1618_v55  ;;  %v1680_v55 = vunpack.c.l.s8.bf16 %v720_v46 }
 0x504   :  { %2939 = vmatpush1.bf16.msra.mxu0 %v1615_v57  ;;  %3103 = vmatpush1.bf16.msra.mxu1 %v1617_v58  ;;  %v721_v57 = vld [vmem:[#allocation6 + $0xe70] sm:$0xff] }
 0x505   :  { %2940 = vmatprep.subr.bf16.mxu0 %v1632_v59  ;;  %3104 = vmatprep.subr.bf16.mxu1 %v1634_v62  ;;  %v1679_v59 = vunpack.c.l.s8.bf16 %v719_v4  ;;  %v1681_v62 = vunpack.c.l.s8.bf16 %v721_v57 }
 0x506   :  { %v2636_v12 = vpop.f32.mrb[8].mxu0  ;;  %v2800_v13 = vpop.f32.mrb[8].mxu1 }
 0x507   :  { %v3227_v15 = vmul.f32 %v3174_v2, %v2636_v12  ;;  %v3229_v20 = vmul.f32 %v3182_v43, %v2800_v13  ;;  %v2638_v21 = vpop.f32.mrb[9].mxu0  ;;  %v2802_v22 = vpop.f32.mrb[9].mxu1  ;;  %v738_v2 = vld [vmem:[#allocation6 + $0xef8] sm:$0xff]  ;;  %v1695_v43 = vunpack.c.h.s8.bf16 %v719_v4  ;;  %v3428_v4 = vld [vmem:[#allocation11 + $0x68] sm:$0xff] }
 0x508   :  { %v3228_v25 = vmul.f32 %v3178_v3, %v2638_v21  ;;  %v3230_v26 = vmul.f32 %v3186_v24, %v2802_v22  ;;  %v2640_v27 = vpop.f32.mrb[10].mxu0  ;;  %v2804_v28 = vpop.f32.mrb[10].mxu1  ;;  %2941 = vmatpush1.bf16.msra.mxu0 %v1631_v17  ;;  %3105 = vmatpush1.bf16.msra.mxu1 %v1633_v5  ;;  %v1697_v3 = vunpack.c.h.s8.bf16 %v721_v57  ;;  %v1712_v24 = vunpack.c.l.s8.bf16 %v736_v1  ;;  %v735_v5 = vld [vmem:[#allocation6 + $0xee0] sm:$0xff]  ;;  %v754_v12 = vld [vmem:[#allocation6 + $0xf78] sm:$0xff]  ;;  %v753_v21 = vld [vmem:[#allocation6 + $0xf70] sm:$0xff] }
 0x509   :  { %v3327_v32 = vadd.f32 %v3274_v6, %v3227_v15  ;;  %v3329_v36 = vadd.f32 %v3282_v7, %v3229_v20  ;;  %v2641_v37 = vpop.f32.mrb[11].mxu0  ;;  %v2805_v40 = vpop.f32.mrb[11].mxu1  ;;  %2942 = vmatprep.subr.bf16.mxu0 %v1648_v8  ;;  %3106 = vmatprep.subr.bf16.mxu1 %v1650_v10  ;;  %v1714_v17 = vunpack.c.l.s8.bf16 %v738_v2  ;;  %v737_v6 = vld [vmem:[#allocation6 + $0xef0] sm:$0xff]  ;;  %v1711_v7 = vunpack.c.l.s8.bf16 %v735_v5  ;;  %v751_v20 = vld [vmem:[#allocation6 + $0xf60] sm:$0xff]  ;;  %v768_v28 = vld [vmem:[#allocation6 + $0xfe8] sm:$0xff] }
 0x50a   :  { %v3328_v48 = vadd.f32 %v3278_v14, %v3228_v25  ;;  %v3330_v45 = vadd.f32 %v3286_v35, %v3230_v26  ;;  %v1713_v8 = vunpack.c.l.s8.bf16 %v737_v6  ;;  %v1728_v10 = vunpack.c.h.s8.bf16 %v736_v1  ;;  %v767_v40 = vld [vmem:[#allocation6 + $0xfe0] sm:$0xff]  ;;  %v3432_v1 = vld [vmem:[#allocation11 + $0x88] sm:$0xff] }
 0x50b   :  { %v3343_v30 = vmax.f32 %v3327_v32, 0.0  ;;  %v3345_v60 = vmax.f32 %v3329_v36, 0.0  ;;  %v1730_v11 = vunpack.c.h.s8.bf16 %v738_v2  ;;  %v1727_v13 = vunpack.c.h.s8.bf16 %v735_v5  ;;  %v3436_v2 = vld [vmem:[#allocation11 + $0xa8] sm:$0xff]  ;;  %v3439_v5 = vld [vmem:[#allocation11 + $0xc0] sm:$0xff] }
 0x50c   :  { %v3344_v51 = vmax.f32 %v3328_v48, 0.0  ;;  %v3346_v52 = vmax.f32 %v3330_v45, 0.0  ;;  %2943 = vmatpush1.bf16.msra.mxu0 %v1647_v29  ;;  %3107 = vmatpush1.bf16.msra.mxu1 %v1649_v31  ;;  %v1729_v14 = vunpack.c.h.s8.bf16 %v737_v6  ;;  %v1744_v35 = vunpack.c.l.s8.bf16 %v752_v50  ;;  %v770_v29 = vld [vmem:[#allocation6 + $0xff8] sm:$0xff]  ;;  %v3443_v6 = vld [vmem:[#allocation11 + $0xe0] sm:$0xff] }
 0x50d   :  { %v3359_v53 = vpack.c.bf16 %v3343_v30, %v3343_v30  ;;  %v3361_v54 = vpack.c.bf16 %v3345_v60, %v3345_v60  ;;  %2944 = vmatprep.subr.bf16.mxu0 %v1664_v41  ;;  %3108 = vmatprep.subr.bf16.mxu1 %v1666_v47  ;;  %v1746_v15 = vunpack.c.l.s8.bf16 %v754_v12  ;;  %v1743_v22 = vunpack.c.l.s8.bf16 %v751_v20  ;;  %v769_v41 = vld [vmem:[#allocation6 + $0xff0] sm:$0xff]  ;;  %v3419_v30 = vld [vmem:[#allocation11 + $0x20] sm:$0xff]  ;;  %v3416_v60 = vld [vmem:[#allocation11 + $0x8] sm:$0xff] }
 0x50e   :  { %v3360_v58 = vpack.c.bf16 %v3344_v51, %v3344_v51  ;;  %v3362_v16 = vpack.c.bf16 %v3346_v52, %v3346_v52  ;;  %v1745_v25 = vunpack.c.l.s8.bf16 %v753_v21  ;;  %v1760_v26 = vunpack.c.h.s8.bf16 %v752_v50  ;;  %v3420_v51 = vld [vmem:[#allocation11 + $0x28] sm:$0xff] }
 0x50f   :  { %3387 = vst [vmem:[#allocation2 + $0x20] sm:$0xf] %v3359_v53  ;;  %3389 = vst [vmem:[#allocation2 + $0x30] sm:$0xf] %v3361_v54  ;;  %v1762_v27 = vunpack.c.h.s8.bf16 %v754_v12  ;;  %v1759_v31 = vunpack.c.h.s8.bf16 %v751_v20  ;;  %v1761_v32 = vunpack.c.h.s8.bf16 %v753_v21  ;;  %v1776_v36 = vunpack.c.l.s8.bf16 %v768_v28  ;;  %v3423_v54 = vld [vmem:[#allocation11 + $0x40] sm:$0xff] }
 0x510   :  { %3388 = vst [vmem:[#allocation2 + $0x28] sm:$0xf] %v3360_v58  ;;  %3390 = vst [vmem:[#allocation2 + $0x38] sm:$0xf] %v3362_v16  ;;  %2945 = vmatpush1.bf16.msra.mxu0 %v1663_v9  ;;  %3109 = vmatpush1.bf16.msra.mxu1 %v1665_v61  ;;  %v1778_v37 = vunpack.c.l.s8.bf16 %v770_v29  ;;  %v1775_v47 = vunpack.c.l.s8.bf16 %v767_v40  ;;  %v1777_v48 = vunpack.c.l.s8.bf16 %v769_v41  ;;  %v1792_v45 = vunpack.c.h.s8.bf16 %v768_v28  ;;  %v3447_v12 = vld [vmem:[#allocation11 + $0x100] sm:$0xff]  ;;  %v3460_v28 = vld [vmem:[#allocation11 + $0x168] sm:$0xff] }
 0x511   :  { %2946 = vmatprep.subr.bf16.mxu0 %v1680_v55  ;;  %3110 = vmatprep.subr.bf16.mxu1 %v1682_v56  ;;  %v1794_v46 = vunpack.c.h.s8.bf16 %v770_v29  ;;  %v1791_v52 = vunpack.c.h.s8.bf16 %v767_v40  ;;  %v1793_v9 = vunpack.c.h.s8.bf16 %v769_v41  ;;  %v11067_v61 = vcombine.high %v3415_v49, %v3419_v30  ;;  %v3427_v55 = vld [vmem:[#allocation11 + $0x60] sm:$0xff]  ;;  %v3424_v56 = vld [vmem:[#allocation11 + $0x48] sm:$0xff] }
 0x512   :  { %v11069_v53 = vcombine.high %v3416_v60, %v3420_v51  ;;  %v11066_v57 = vcombine.low %v3415_v49, %v3419_v30  ;;  %v11068_v58 = vcombine.low %v3416_v60, %v3420_v51  ;;  %v11075_v16 = vcombine.high %v3423_v54, %v3427_v55  ;;  %v3467_v40 = vld [vmem:[#allocation11 + $0x1a0] sm:$0xff]  ;;  %v3464_v41 = vld [vmem:[#allocation11 + $0x188] sm:$0xff] }
 0x513   :  { %v3471_v30 = vld [vmem:[#allocation11 + $0x1c0] sm:$0xff]  ;;  %v3472_v51 = vld [vmem:[#allocation11 + $0x1c8] sm:$0xff] }
 0x514   :  { %2947 = vmatpush1.bf16.msra.mxu0 %v1679_v59  ;;  %3111 = vmatpush1.bf16.msra.mxu1 %v1681_v62  ;;  %v11077_v59 = vcombine.high %v3424_v56, %v3428_v4  ;;  %v3431_v62 = vld [vmem:[#allocation11 + $0x80] sm:$0xff] }
 0x515   :  { %2948 = vmatprep.subr.bf16.mxu0 %v1696_v63  ;;  %3112 = vmatprep.subr.bf16.mxu1 %v1698_v0  ;;  %v3435_v63 = vld [vmem:[#allocation11 + $0xa0] sm:$0xff]  ;;  %v13179_v0 = vld [vmem:[#allocation2 + $0x8] sm:$0xff] }
 0x516   :  { %v3475_v60 = vld [vmem:[#allocation11 + $0x1e0] sm:$0xff] }
 0x518   :  { %2949 = vmatpush1.bf16.msra.mxu0 %v1695_v43  ;;  %3113 = vmatpush1.bf16.msra.mxu1 %v1697_v3  ;;  %v11074_v43 = vcombine.low %v3423_v54, %v3427_v55  ;;  %v11076_v3 = vcombine.low %v3424_v56, %v3428_v4  ;;  %v3479_v55 = vld [vmem:[#allocation11 + $0x200] sm:$0xff]  ;;  %v3480_v4 = vld [vmem:[#allocation11 + $0x208] sm:$0xff] }
 0x519   :  { %2950 = vmatprep.subr.bf16.mxu0 %v1712_v24  ;;  %3114 = vmatprep.subr.bf16.mxu1 %v1714_v17  ;;  %v11083_v24 = vcombine.high %v3431_v62, %v3435_v63  ;;  %v11085_v17 = vcombine.high %v3432_v1, %v3436_v2  ;;  %v3483_v56 = vld [vmem:[#allocation11 + $0x220] sm:$0xff] }
 0x51c   :  { %2951 = vmatpush1.bf16.msra.mxu0 %v1711_v7  ;;  %3115 = vmatpush1.bf16.msra.mxu1 %v1713_v8  ;;  %v3440_v7 = vld [vmem:[#allocation11 + $0xc8] sm:$0xff]  ;;  %v11082_v8 = vcombine.low %v3431_v62, %v3435_v63  ;;  %v3487_v63 = vld [vmem:[#allocation11 + $0x240] sm:$0xff] }
 0x51d   :  { %2952 = vmatprep.subr.bf16.mxu0 %v1728_v10  ;;  %3116 = vmatprep.subr.bf16.mxu1 %v1730_v11  ;;  %v11084_v10 = vcombine.low %v3432_v1, %v3436_v2  ;;  %v11091_v11 = vcombine.high %v3439_v5, %v3443_v6  ;;  %v3491_v1 = vld [vmem:[#allocation11 + $0x260] sm:$0xff]  ;;  %v3488_v2 = vld [vmem:[#allocation11 + $0x248] sm:$0xff] }
 0x520   :  { %2953 = vmatpush1.bf16.msra.mxu0 %v1727_v13  ;;  %3117 = vmatpush1.bf16.msra.mxu1 %v1729_v14  ;;  %v3451_v13 = vld [vmem:[#allocation11 + $0x120] sm:$0xff]  ;;  %v3448_v14 = vld [vmem:[#allocation11 + $0x108] sm:$0xff] }
 0x521   :  { %2954 = vmatprep.subr.bf16.mxu0 %v1744_v35  ;;  %3118 = vmatprep.subr.bf16.mxu1 %v1746_v15  ;;  %v3452_v35 = vld [vmem:[#allocation11 + $0x128] sm:$0xff]  ;;  %v11090_v15 = vcombine.low %v3439_v5, %v3443_v6  ;;  %v11099_v21 = vcombine.high %v3447_v12, %v3451_v13  ;;  %v11098_v29 = vcombine.low %v3447_v12, %v3451_v13  ;;  %v3495_v6 = vld [vmem:[#allocation11 + $0x280] sm:$0xff] }
 0x522   :  { %v3503_v13 = vld [vmem:[#allocation11 + $0x2c0] sm:$0xff] }
 0x524   :  { %2955 = vmatpush1.bf16.msra.mxu0 %v1743_v22  ;;  %3119 = vmatpush1.bf16.msra.mxu1 %v1745_v25  ;;  %v11101_v22 = vcombine.high %v3448_v14, %v3452_v35  ;;  %v3455_v25 = vld [vmem:[#allocation11 + $0x140] sm:$0xff] }
 0x525   :  { %2956 = vmatprep.subr.bf16.mxu0 %v1760_v26  ;;  %3120 = vmatprep.subr.bf16.mxu1 %v1762_v27  ;;  %v3459_v26 = vld [vmem:[#allocation11 + $0x160] sm:$0xff]  ;;  %v3456_v27 = vld [vmem:[#allocation11 + $0x148] sm:$0xff] }
 0x528   :  { %2957 = vmatpush1.bf16.msra.mxu0 %v1759_v31  ;;  %3121 = vmatpush1.bf16.msra.mxu1 %v1761_v32  ;;  %v11100_v31 = vcombine.low %v3448_v14, %v3452_v35  ;;  %v11107_v32 = vcombine.high %v3455_v25, %v3459_v26  ;;  %v3507_v14 = vld [vmem:[#allocation11 + $0x2e0] sm:$0xff]  ;;  %v3504_v35 = vld [vmem:[#allocation11 + $0x2c8] sm:$0xff] }
 0x529   :  { %2958 = vmatprep.subr.bf16.mxu0 %v1776_v36  ;;  %3122 = vmatprep.subr.bf16.mxu1 %v1778_v37  ;;  %v11109_v36 = vcombine.high %v3456_v27, %v3460_v28  ;;  %v3463_v37 = vld [vmem:[#allocation11 + $0x180] sm:$0xff] }
 0x52c   :  { %2959 = vmatpush1.bf16.msra.mxu0 %v1775_v47  ;;  %3123 = vmatpush1.bf16.msra.mxu1 %v1777_v48  ;;  %v3468_v47 = vld [vmem:[#allocation11 + $0x1a8] sm:$0xff]  ;;  %v11106_v48 = vcombine.low %v3455_v25, %v3459_v26  ;;  %v3511_v26 = vld [vmem:[#allocation11 + $0x300] sm:$0xff] }
 0x52d   :  { %2960 = vmatprep.subr.bf16.mxu0 %v1792_v45  ;;  %3124 = vmatprep.subr.bf16.mxu1 %v1794_v46  ;;  %v11108_v45 = vcombine.low %v3456_v27, %v3460_v28  ;;  %v11115_v46 = vcombine.high %v3463_v37, %v3467_v40  ;;  %v11117_v49 = vcombine.high %v3464_v41, %v3468_v47  ;;  %v3515_v27 = vld [vmem:[#allocation11 + $0x320] sm:$0xff]  ;;  %v3512_v28 = vld [vmem:[#allocation11 + $0x308] sm:$0xff] }
 0x530   :  { %2961 = vmatpush1.bf16.msra.mxu0 %v1791_v52  ;;  %3125 = vmatpush1.bf16.msra.mxu1 %v1793_v9  ;;  %v3476_v52 = vld [vmem:[#allocation11 + $0x1e8] sm:$0xff]  ;;  %v11114_v9 = vcombine.low %v3463_v37, %v3467_v40  ;;  %v3519_v40 = vld [vmem:[#allocation11 + $0x340] sm:$0xff] }
 0x531   :  { %4951 = vmatprep.subr.bf16.mxu0 %v11067_v61  ;;  %5057 = vmatprep.subr.bf16.mxu1 %v11069_v53  ;;  %v11116_v61 = vcombine.low %v3464_v41, %v3468_v47  ;;  %v11123_v53 = vcombine.high %v3471_v30, %v3475_v60  ;;  %v11125_v54 = vcombine.high %v3472_v51, %v3476_v52  ;;  %v3523_v41 = vld [vmem:[#allocation11 + $0x360] sm:$0xff]  ;;  %v3520_v47 = vld [vmem:[#allocation11 + $0x348] sm:$0xff] }
 0x533   :  { %2963 = vmatmul.mubr.bf16.vlgmr.msra.gmra.mrb[12].mxu0 %v13077_v44  ;;  %3127 = vmatmul.mubr.bf16.vlgmr.msra.gmra.mrb[12].mxu1 %v13077_v44  ;;  %v3444_v44 = vld [vmem:[#allocation11 + $0xe8] sm:$0xff] }
 0x534   :  { %4952 = vmatpush1.bf16.msra.mxu0 %v11066_v57  ;;  %4983 = vmatprep.mubr.bf16.mxu0 %v13179_v0  ;;  %v11093_v50 = vcombine.high %v3440_v7, %v3444_v44  ;;  %v11092_v20 = vcombine.low %v3440_v7, %v3444_v44  ;;  %v3484_v57 = vld [vmem:[#allocation11 + $0x228] sm:$0xff]  ;;  %v3499_v7 = vld [vmem:[#allocation11 + $0x2a0] sm:$0xff] }
 0x535   :  { %5058 = vmatpush1.bf16.msra.mxu1 %v11068_v58  ;;  %5089 = vmatprep.mubr.bf16.mxu1 %v13179_v0  ;;  %v11122_v58 = vcombine.low %v3471_v30, %v3475_v60  ;;  %v11133_v62 = vcombine.high %v3480_v4, %v3484_v57  ;;  %v3496_v44 = vld [vmem:[#allocation11 + $0x288] sm:$0xff]  ;;  %v3527_v60 = vld [vmem:[#allocation11 + $0x380] sm:$0xff] }
 0x536   :  { %4953 = vmatprep.subr.bf16.mxu0 %v11075_v16  ;;  %5059 = vmatprep.subr.bf16.mxu1 %v11077_v59  ;;  %v11124_v16 = vcombine.low %v3472_v51, %v3476_v52  ;;  %v11131_v59 = vcombine.high %v3479_v55, %v3483_v56  ;;  %v3531_v51 = vld [vmem:[#allocation11 + $0x3a0] sm:$0xff]  ;;  %v3528_v52 = vld [vmem:[#allocation11 + $0x388] sm:$0xff] }
 0x538   :  { %4954 = vmatpush1.bf16.msra.mxu0 %v11074_v43  ;;  %v3492_v43 = vld [vmem:[#allocation11 + $0x268] sm:$0xff] }
 0x539   :  { %5060 = vmatpush1.bf16.msra.mxu1 %v11076_v3  ;;  %4955 = vmatprep.subr.bf16.mxu0 %v11083_v24  ;;  %v11130_v3 = vcombine.low %v3479_v55, %v3483_v56  ;;  %v11132_v24 = vcombine.low %v3480_v4, %v3484_v57  ;;  %v11141_v5 = vcombine.high %v3488_v2, %v3492_v43  ;;  %v3535_v56 = vld [vmem:[#allocation11 + $0x3c0] sm:$0xff]  ;;  %v3536_v57 = vld [vmem:[#allocation11 + $0x3c8] sm:$0xff] }
 0x53a   :  { %5061 = vmatprep.subr.bf16.mxu1 %v11085_v17  ;;  %v11139_v17 = vcombine.high %v3487_v63, %v3491_v1  ;;  %v3539_v4 = vld [vmem:[#allocation11 + $0x3e0] sm:$0xff] }
 0x53c   :  { %4956 = vmatpush1.bf16.msra.mxu0 %v11082_v8  ;;  %v3500_v8 = vld [vmem:[#allocation11 + $0x2a8] sm:$0xff] }
 0x53d   :  { %5062 = vmatpush1.bf16.msra.mxu1 %v11084_v10  ;;  %4957 = vmatprep.subr.bf16.mxu0 %v11091_v11  ;;  %v11138_v10 = vcombine.low %v3487_v63, %v3491_v1  ;;  %v11140_v11 = vcombine.low %v3488_v2, %v3492_v43  ;;  %v11149_v12 = vcombine.high %v3496_v44, %v3500_v8  ;;  %v3543_v1 = vld [vmem:[#allocation11 + $0x400] sm:$0xff]  ;;  %v3544_v43 = vld [vmem:[#allocation11 + $0x408] sm:$0xff] }
 0x53e   :  { %5063 = vmatprep.subr.bf16.mxu1 %v11093_v50  ;;  %v11147_v50 = vcombine.high %v3495_v6, %v3499_v7  ;;  %v3547_v2 = vld [vmem:[#allocation11 + $0x420] sm:$0xff] }
 0x540   :  { %4958 = vmatpush1.bf16.msra.mxu0 %v11090_v15  ;;  %v3508_v15 = vld [vmem:[#allocation11 + $0x2e8] sm:$0xff] }
 0x541   :  { %5064 = vmatpush1.bf16.msra.mxu1 %v11092_v20  ;;  %4959 = vmatprep.subr.bf16.mxu0 %v11099_v21  ;;  %v11146_v20 = vcombine.low %v3495_v6, %v3499_v7  ;;  %v11148_v21 = vcombine.low %v3496_v44, %v3500_v8  ;;  %v11157_v25 = vcombine.high %v3504_v35, %v3508_v15  ;;  %v3551_v7 = vld [vmem:[#allocation11 + $0x440] sm:$0xff]  ;;  %v3552_v8 = vld [vmem:[#allocation11 + $0x448] sm:$0xff] }
 0x542   :  { %5065 = vmatprep.subr.bf16.mxu1 %v11101_v22  ;;  %v11155_v22 = vcombine.high %v3503_v13, %v3507_v14  ;;  %v3555_v44 = vld [vmem:[#allocation11 + $0x460] sm:$0xff] }
 0x544   :  { %4960 = vmatpush1.bf16.msra.mxu0 %v11098_v29  ;;  %v3516_v29 = vld [vmem:[#allocation11 + $0x328] sm:$0xff] }
 0x545   :  { %5066 = vmatpush1.bf16.msra.mxu1 %v11100_v31  ;;  %4961 = vmatprep.subr.bf16.mxu0 %v11107_v32  ;;  %v11154_v31 = vcombine.low %v3503_v13, %v3507_v14  ;;  %v11156_v32 = vcombine.low %v3504_v35, %v3508_v15  ;;  %v11165_v37 = vcombine.high %v3512_v28, %v3516_v29  ;;  %v13183_v13 = vld [vmem:[#allocation2] sm:$0xff] }
 0x546   :  { %5067 = vmatprep.subr.bf16.mxu1 %v11109_v36  ;;  %v11163_v36 = vcombine.high %v3511_v26, %v3515_v27  ;;  %v3559_v35 = vld [vmem:[#allocation11 + $0x480] sm:$0xff] }
 0x547   :  { %v3563_v15 = vld [vmem:[#allocation11 + $0x4a0] sm:$0xff] }
 0x548   :  { %4962 = vmatpush1.bf16.msra.mxu0 %v11106_v48  ;;  %v3524_v48 = vld [vmem:[#allocation11 + $0x368] sm:$0xff] }
 0x549   :  { %5068 = vmatpush1.bf16.msra.mxu1 %v11108_v45  ;;  %4963 = vmatprep.subr.bf16.mxu0 %v11115_v46  ;;  %v11162_v45 = vcombine.low %v3511_v26, %v3515_v27  ;;  %v11164_v46 = vcombine.low %v3512_v28, %v3516_v29  ;;  %v11173_v30 = vcombine.high %v3520_v47, %v3524_v48  ;;  %v3567_v28 = vld [vmem:[#allocation11 + $0x4c0] sm:$0xff] }
 0x54a   :  { %5069 = vmatprep.subr.bf16.mxu1 %v11117_v49  ;;  %v11171_v49 = vcombine.high %v3519_v40, %v3523_v41  ;;  %v11211_v26 = vcombine.high %v3559_v35, %v3563_v15  ;;  %v3571_v29 = vld [vmem:[#allocation11 + $0x4e0] sm:$0xff] }
 0x54c   :  { %4964 = vmatpush1.bf16.msra.mxu0 %v11114_v9  ;;  %v3532_v9 = vld [vmem:[#allocation11 + $0x3a8] sm:$0xff] }
 0x54d   :  { %5070 = vmatpush1.bf16.msra.mxu1 %v11116_v61  ;;  %4965 = vmatprep.subr.bf16.mxu0 %v11123_v53  ;;  %v11170_v61 = vcombine.low %v3519_v40, %v3523_v41  ;;  %v11172_v53 = vcombine.low %v3520_v47, %v3524_v48  ;;  %v11181_v55 = vcombine.high %v3528_v52, %v3532_v9  ;;  %v3575_v47 = vld [vmem:[#allocation11 + $0x500] sm:$0xff] }
 0x54e   :  { %5071 = vmatprep.subr.bf16.mxu1 %v11125_v54  ;;  %v11179_v54 = vcombine.high %v3527_v60, %v3531_v51  ;;  %v11219_v40 = vcombine.high %v3567_v28, %v3571_v29  ;;  %v3579_v48 = vld [vmem:[#allocation11 + $0x520] sm:$0xff] }
 0x550   :  { %4966 = vmatpush1.bf16.msra.mxu0 %v11122_v58  ;;  %v3540_v58 = vld [vmem:[#allocation11 + $0x3e8] sm:$0xff] }
 0x551   :  { %5072 = vmatpush1.bf16.msra.mxu1 %v11124_v16  ;;  %4967 = vmatprep.subr.bf16.mxu0 %v11131_v59  ;;  %v11178_v16 = vcombine.low %v3527_v60, %v3531_v51  ;;  %v11180_v59 = vcombine.low %v3528_v52, %v3532_v9  ;;  %v11189_v63 = vcombine.high %v3536_v57, %v3540_v58  ;;  %v3583_v52 = vld [vmem:[#allocation11 + $0x540] sm:$0xff] }
 0x552   :  { %5073 = vmatprep.subr.bf16.mxu1 %v11133_v62  ;;  %v11187_v62 = vcombine.high %v3535_v56, %v3539_v4  ;;  %v11227_v60 = vcombine.high %v3575_v47, %v3579_v48  ;;  %v3587_v9 = vld [vmem:[#allocation11 + $0x560] sm:$0xff] }
 0x554   :  { %4968 = vmatpush1.bf16.msra.mxu0 %v11130_v3  ;;  %v3548_v3 = vld [vmem:[#allocation11 + $0x428] sm:$0xff] }
 0x555   :  { %5074 = vmatpush1.bf16.msra.mxu1 %v11132_v24  ;;  %4969 = vmatprep.subr.bf16.mxu0 %v11139_v17  ;;  %v11186_v24 = vcombine.low %v3535_v56, %v3539_v4  ;;  %v11188_v17 = vcombine.low %v3536_v57, %v3540_v58  ;;  %v11197_v6 = vcombine.high %v3544_v43, %v3548_v3  ;;  %v3591_v57 = vld [vmem:[#allocation11 + $0x580] sm:$0xff] }
 0x556   :  { %5075 = vmatprep.subr.bf16.mxu1 %v11141_v5  ;;  %v11195_v5 = vcombine.high %v3543_v1, %v3547_v2  ;;  %v11235_v56 = vcombine.high %v3583_v52, %v3587_v9  ;;  %v3595_v58 = vld [vmem:[#allocation11 + $0x5a0] sm:$0xff] }
 0x558   :  { %4970 = vmatpush1.bf16.msra.mxu0 %v11138_v10  ;;  %v3556_v10 = vld [vmem:[#allocation11 + $0x468] sm:$0xff] }
 0x559   :  { %5076 = vmatpush1.bf16.msra.mxu1 %v11140_v11  ;;  %4971 = vmatprep.subr.bf16.mxu0 %v11147_v50  ;;  %v11194_v11 = vcombine.low %v3543_v1, %v3547_v2  ;;  %v11196_v50 = vcombine.low %v3544_v43, %v3548_v3  ;;  %v11205_v14 = vcombine.high %v3552_v8, %v3556_v10  ;;  %v3599_v43 = vld [vmem:[#allocation11 + $0x5c0] sm:$0xff] }
 0x55a   :  { %5077 = vmatprep.subr.bf16.mxu1 %v11149_v12  ;;  %v11203_v12 = vcombine.high %v3551_v7, %v3555_v44  ;;  %v11243_v1 = vcombine.high %v3591_v57, %v3595_v58  ;;  %v3603_v3 = vld [vmem:[#allocation11 + $0x5e0] sm:$0xff] }
 0x55c   :  { %4972 = vmatpush1.bf16.msra.mxu0 %v11146_v20  ;;  %v3560_v20 = vld [vmem:[#allocation11 + $0x488] sm:$0xff] }
 0x55d   :  { %5078 = vmatpush1.bf16.msra.mxu1 %v11148_v21  ;;  %4973 = vmatprep.subr.bf16.mxu0 %v11155_v22  ;;  %v3564_v21 = vld [vmem:[#allocation11 + $0x4a8] sm:$0xff]  ;;  %v11202_v22 = vcombine.low %v3551_v7, %v3555_v44  ;;  %v11251_v7 = vcombine.high %v3599_v43, %v3603_v3 }
 0x55e   :  { %5079 = vmatprep.subr.bf16.mxu1 %v11157_v25  ;;  %v11204_v25 = vcombine.low %v3552_v8, %v3556_v10  ;;  %v11213_v27 = vcombine.high %v3560_v20, %v3564_v21  ;;  %v3607_v8 = vld [vmem:[#allocation11 + $0x600] sm:$0xff] }
 0x55f   :  { %v3611_v10 = vld [vmem:[#allocation11 + $0x620] sm:$0xff] }
 0x560   :  { %4974 = vmatpush1.bf16.msra.mxu0 %v11154_v31  ;;  %v3568_v31 = vld [vmem:[#allocation11 + $0x4c8] sm:$0xff] }
 0x561   :  { %5080 = vmatpush1.bf16.msra.mxu1 %v11156_v32  ;;  %4975 = vmatprep.subr.bf16.mxu0 %v11163_v36  ;;  %v3572_v32 = vld [vmem:[#allocation11 + $0x4e8] sm:$0xff]  ;;  %v11210_v36 = vcombine.low %v3559_v35, %v3563_v15  ;;  %v11259_v35 = vcombine.high %v3607_v8, %v3611_v10 }
 0x562   :  { %5081 = vmatprep.subr.bf16.mxu1 %v11165_v37  ;;  %v11212_v37 = vcombine.low %v3560_v20, %v3564_v21  ;;  %v11221_v41 = vcombine.high %v3568_v31, %v3572_v32  ;;  %v3615_v20 = vld [vmem:[#allocation11 + $0x640] sm:$0xff] }
 0x563   :  { %v3619_v21 = vld [vmem:[#allocation11 + $0x660] sm:$0xff] }
 0x564   :  { %4976 = vmatpush1.bf16.msra.mxu0 %v11162_v45  ;;  %v3576_v45 = vld [vmem:[#allocation11 + $0x508] sm:$0xff] }
 0x565   :  { %5082 = vmatpush1.bf16.msra.mxu1 %v11164_v46  ;;  %4977 = vmatprep.subr.bf16.mxu0 %v11171_v49  ;;  %v3580_v46 = vld [vmem:[#allocation11 + $0x528] sm:$0xff]  ;;  %v11218_v49 = vcombine.low %v3567_v28, %v3571_v29  ;;  %v11267_v28 = vcombine.high %v3615_v20, %v3619_v21 }
 0x566   :  { %5083 = vmatprep.subr.bf16.mxu1 %v11173_v30  ;;  %v11220_v30 = vcombine.low %v3568_v31, %v3572_v32  ;;  %v11229_v51 = vcombine.high %v3576_v45, %v3580_v46  ;;  %v3623_v31 = vld [vmem:[#allocation11 + $0x680] sm:$0xff] }
 0x567   :  { %v3627_v32 = vld [vmem:[#allocation11 + $0x6a0] sm:$0xff] }
 0x568   :  { %4978 = vmatpush1.bf16.msra.mxu0 %v11170_v61  ;;  %v3584_v61 = vld [vmem:[#allocation11 + $0x548] sm:$0xff] }
 0x569   :  { %5084 = vmatpush1.bf16.msra.mxu1 %v11172_v53  ;;  %4979 = vmatprep.subr.bf16.mxu0 %v11179_v54  ;;  %v3588_v53 = vld [vmem:[#allocation11 + $0x568] sm:$0xff]  ;;  %v11226_v54 = vcombine.low %v3575_v47, %v3579_v48  ;;  %v11275_v47 = vcombine.high %v3623_v31, %v3627_v32 }
 0x56a   :  { %5085 = vmatprep.subr.bf16.mxu1 %v11181_v55  ;;  %v11228_v55 = vcombine.low %v3576_v45, %v3580_v46  ;;  %v11237_v4 = vcombine.high %v3584_v61, %v3588_v53  ;;  %v3631_v45 = vld [vmem:[#allocation11 + $0x6c0] sm:$0xff] }
 0x56b   :  { %v3635_v46 = vld [vmem:[#allocation11 + $0x6e0] sm:$0xff] }
 0x56c   :  { %4980 = vmatpush1.bf16.msra.mxu0 %v11178_v16  ;;  %v3592_v16 = vld [vmem:[#allocation11 + $0x588] sm:$0xff] }
 0x56d   :  { %5086 = vmatpush1.bf16.msra.mxu1 %v11180_v59  ;;  %4981 = vmatprep.subr.bf16.mxu0 %v11187_v62  ;;  %v3596_v59 = vld [vmem:[#allocation11 + $0x5a8] sm:$0xff]  ;;  %v11234_v62 = vcombine.low %v3583_v52, %v3587_v9  ;;  %v11283_v52 = vcombine.high %v3631_v45, %v3635_v46 }
 0x56e   :  { %5087 = vmatprep.subr.bf16.mxu1 %v11189_v63  ;;  %v11236_v63 = vcombine.low %v3584_v61, %v3588_v53  ;;  %v11245_v2 = vcombine.high %v3592_v16, %v3596_v59  ;;  %v3639_v61 = vld [vmem:[#allocation11 + $0x700] sm:$0xff] }
 0x56f   :  { %v3643_v53 = vld [vmem:[#allocation11 + $0x720] sm:$0xff] }
 0x570   :  { %4982 = vmatpush1.bf16.msra.mxu0 %v11186_v24  ;;  %v3600_v24 = vld [vmem:[#allocation11 + $0x5c8] sm:$0xff] }
 0x571   :  { %5088 = vmatpush1.bf16.msra.mxu1 %v11188_v17  ;;  %5004 = vmatprep.subr.bf16.mxu0 %v11195_v5  ;;  %v3604_v17 = vld [vmem:[#allocation11 + $0x5e8] sm:$0xff]  ;;  %v11242_v5 = vcombine.low %v3591_v57, %v3595_v58  ;;  %v11291_v57 = vcombine.high %v3639_v61, %v3643_v53  ;;  %v3647_v58 = vld [vmem:[#allocation11 + $0x740] sm:$0xff] }
 0x572   :  { %5110 = vmatprep.subr.bf16.mxu1 %v11197_v6  ;;  %v11244_v6 = vcombine.low %v3592_v16, %v3596_v59  ;;  %v11253_v44 = vcombine.high %v3600_v24, %v3604_v17  ;;  %v13187_v16 = vld [vmem:[#allocation11 + $0x10] sm:$0xff] }
 0x573   :  { %4984 = vmatmul.mubr.bf16.vlgmr.msra.gmra.mrb[16].mxu0 %v13183_v13  ;;  %v13189_v59 = vld [vmem:[#allocation11 + $0x30] sm:$0xff] }
 0x574   :  { %5090 = vmatmul.mubr.bf16.vlgmr.msra.gmra.mrb[16].mxu1 %v13183_v13  ;;  %5005 = vmatpush1.bf16.msra.mxu0 %v11194_v11  ;;  %v3608_v11 = vld [vmem:[#allocation11 + $0x608] sm:$0xff] }
 0x575   :  { %5111 = vmatpush1.bf16.msra.mxu1 %v11196_v50  ;;  %5006 = vmatprep.subr.bf16.mxu0 %v11203_v12  ;;  %v3612_v50 = vld [vmem:[#allocation11 + $0x628] sm:$0xff]  ;;  %v11250_v12 = vcombine.low %v3599_v43, %v3603_v3  ;;  %v13195_v43 = vld [vmem:[#allocation11 + $0x38] sm:$0xff] }
 0x576   :  { %5112 = vmatprep.subr.bf16.mxu1 %v11205_v14  ;;  %v11252_v14 = vcombine.low %v3600_v24, %v3604_v17  ;;  %v11261_v15 = vcombine.high %v3608_v11, %v3612_v50  ;;  %v3648_v3 = vld [vmem:[#allocation11 + $0x748] sm:$0xff] }
 0x577   :  { %v3652_v24 = vld [vmem:[#allocation11 + $0x768] sm:$0xff] }
 0x578   :  { %5007 = vmatpush1.bf16.msra.mxu0 %v11202_v22  ;;  %v3616_v22 = vld [vmem:[#allocation11 + $0x648] sm:$0xff] }
 0x579   :  { %5113 = vmatpush1.bf16.msra.mxu1 %v11204_v25  ;;  %5008 = vmatprep.subr.bf16.mxu0 %v11211_v26  ;;  %v3620_v25 = vld [vmem:[#allocation11 + $0x668] sm:$0xff]  ;;  %v11258_v26 = vcombine.low %v3607_v8, %v3611_v10  ;;  %v3655_v8 = vld [vmem:[#allocation11 + $0x780] sm:$0xff] }
 0x57a   :  { %5114 = vmatprep.subr.bf16.mxu1 %v11213_v27  ;;  %v11260_v27 = vcombine.low %v3608_v11, %v3612_v50  ;;  %v11269_v29 = vcombine.high %v3616_v22, %v3620_v25  ;;  %v3659_v10 = vld [vmem:[#allocation11 + $0x7a0] sm:$0xff]  ;;  %v3656_v11 = vld [vmem:[#allocation11 + $0x788] sm:$0xff] }
 0x57b   :  { %v3660_v50 = vld [vmem:[#allocation11 + $0x7a8] sm:$0xff] }
 0x57c   :  { %5009 = vmatpush1.bf16.msra.mxu0 %v11210_v36  ;;  %v3624_v36 = vld [vmem:[#allocation11 + $0x688] sm:$0xff] }
 0x57d   :  { %5115 = vmatpush1.bf16.msra.mxu1 %v11212_v37  ;;  %5010 = vmatprep.subr.bf16.mxu0 %v11219_v40  ;;  %v3628_v37 = vld [vmem:[#allocation11 + $0x6a8] sm:$0xff]  ;;  %v11266_v40 = vcombine.low %v3615_v20, %v3619_v21  ;;  %v3663_v20 = vld [vmem:[#allocation11 + $0x7c0] sm:$0xff] }
 0x57e   :  { %5116 = vmatprep.subr.bf16.mxu1 %v11221_v41  ;;  %v11268_v41 = vcombine.low %v3616_v22, %v3620_v25  ;;  %v11277_v48 = vcombine.high %v3624_v36, %v3628_v37  ;;  %v3667_v21 = vld [vmem:[#allocation11 + $0x7e0] sm:$0xff]  ;;  %v3664_v22 = vld [vmem:[#allocation11 + $0x7c8] sm:$0xff] }
 0x57f   :  { %v3668_v25 = vld [vmem:[#allocation11 + $0x7e8] sm:$0xff] }
 0x580   :  { %5011 = vmatpush1.bf16.msra.mxu0 %v11218_v49  ;;  %v3632_v49 = vld [vmem:[#allocation11 + $0x6c8] sm:$0xff] }
 0x581   :  { %5117 = vmatpush1.bf16.msra.mxu1 %v11220_v30  ;;  %5012 = vmatprep.subr.bf16.mxu0 %v11227_v60  ;;  %v3636_v30 = vld [vmem:[#allocation11 + $0x6e8] sm:$0xff]  ;;  %v11274_v60 = vcombine.low %v3623_v31, %v3627_v32  ;;  %v11314_v31 = vcombine.low %v3663_v20, %v3667_v21  ;;  %v11316_v32 = vcombine.low %v3664_v22, %v3668_v25 }
 0x582   :  { %5118 = vmatprep.subr.bf16.mxu1 %v11229_v51  ;;  %v11276_v51 = vcombine.low %v3624_v36, %v3628_v37  ;;  %v11285_v9 = vcombine.high %v3632_v49, %v3636_v30  ;;  %v11071_v36 = vcombine.high %v13187_v16, %v13189_v59 }
 0x584   :  { %5013 = vmatpush1.bf16.msra.mxu0 %v11226_v54  ;;  %v3640_v54 = vld [vmem:[#allocation11 + $0x708] sm:$0xff] }
 0x585   :  { %5119 = vmatpush1.bf16.msra.mxu1 %v11228_v55  ;;  %5014 = vmatprep.subr.bf16.mxu0 %v11235_v56  ;;  %v3644_v55 = vld [vmem:[#allocation11 + $0x728] sm:$0xff]  ;;  %v11282_v56 = vcombine.low %v3631_v45, %v3635_v46  ;;  %v12297_v46 = vld [vmem:[#allocation10 + $0x8] sm:$0xff] }
 0x586   :  { %5120 = vmatprep.subr.bf16.mxu1 %v11237_v4  ;;  %v11284_v4 = vcombine.low %v3632_v49, %v3636_v30  ;;  %v3290_v49 = vrot.slane %v12297_v46, %v13134_v33  ;;  %v3298_v30 = vrot.slane %v12297_v46, %v13137_v34 }
 0x588   :  { %5015 = vmatpush1.bf16.msra.mxu0 %v11234_v62  ;;  %v11293_v62 = vcombine.high %v3640_v54, %v3644_v55 }
 0x589   :  { %5121 = vmatpush1.bf16.msra.mxu1 %v11236_v63  ;;  %5016 = vmatprep.subr.bf16.mxu0 %v11243_v1  ;;  %v3651_v63 = vld [vmem:[#allocation11 + $0x760] sm:$0xff]  ;;  %v11070_v1 = vcombine.low %v13187_v16, %v13189_v59  ;;  %v3442_v16 = vld [vmem:[#allocation11 + $0xd8] sm:$0xff] }
 0x58a   :  { %5122 = vmatprep.subr.bf16.mxu1 %v11245_v2  ;;  %v13193_v2 = vld [vmem:[#allocation11 + $0x18] sm:$0xff] }
 0x58b   :  { %v11072_v17 = vcombine.low %v13193_v2, %v13195_v43  ;;  %v11073_v37 = vcombine.high %v13193_v2, %v13195_v43  ;;  %v3446_v59 = vld [vmem:[#allocation11 + $0xf8] sm:$0xff]  ;;  %v3449_v43 = vld [vmem:[#allocation11 + $0x110] sm:$0xff] }
 0x58c   :  { %5017 = vmatpush1.bf16.msra.mxu0 %v11242_v5  ;;  %v11290_v5 = vcombine.low %v3639_v61, %v3643_v53 }
 0x58d   :  { %5123 = vmatpush1.bf16.msra.mxu1 %v11244_v6  ;;  %5018 = vmatprep.subr.bf16.mxu0 %v11251_v7  ;;  %v11292_v6 = vcombine.low %v3640_v54, %v3644_v55  ;;  %v11299_v7 = vcombine.high %v3647_v58, %v3651_v63 }
 0x58e   :  { %5124 = vmatprep.subr.bf16.mxu1 %v11253_v44  ;;  %v11301_v44 = vcombine.high %v3648_v3, %v3652_v24 }
 0x590   :  { %5019 = vmatpush1.bf16.msra.mxu0 %v11250_v12  ;;  %v11298_v12 = vcombine.low %v3647_v58, %v3651_v63 }
 0x591   :  { %5125 = vmatpush1.bf16.msra.mxu1 %v11252_v14  ;;  %5020 = vmatprep.subr.bf16.mxu0 %v11259_v35  ;;  %v11300_v14 = vcombine.low %v3648_v3, %v3652_v24  ;;  %v11307_v35 = vcombine.high %v3655_v8, %v3659_v10 }
 0x592   :  { %5126 = vmatprep.subr.bf16.mxu1 %v11261_v15  ;;  %v11309_v15 = vcombine.high %v3656_v11, %v3660_v50 }
 0x594   :  { %5021 = vmatpush1.bf16.msra.mxu0 %v11258_v26  ;;  %v11306_v26 = vcombine.low %v3655_v8, %v3659_v10 }
 0x595   :  { %5127 = vmatpush1.bf16.msra.mxu1 %v11260_v27  ;;  %5022 = vmatprep.subr.bf16.mxu0 %v11267_v28  ;;  %v11308_v27 = vcombine.low %v3656_v11, %v3660_v50  ;;  %v11315_v28 = vcombine.high %v3663_v20, %v3667_v21 }
 0x596   :  { %5128 = vmatprep.subr.bf16.mxu1 %v11269_v29  ;;  %v11317_v29 = vcombine.high %v3664_v22, %v3668_v25 }
 0x598   :  { %5023 = vmatpush1.bf16.msra.mxu0 %v11266_v40  ;;  %v12296_v40 = vld [vmem:[#allocation8 + $0x8] sm:$0xff] }
 0x599   :  { %5129 = vmatpush1.bf16.msra.mxu1 %v11268_v41  ;;  %5024 = vmatprep.subr.bf16.mxu0 %v11275_v47  ;;  %v3190_v41 = vrot.slane %v12296_v40, %v13134_v33  ;;  %v3198_v47 = vrot.slane %v12296_v40, %v13137_v34  ;;  %v3202_v45 = vrot.slane %v12296_v40, %v13143_v39 }
 0x59a   :  { %5130 = vmatprep.subr.bf16.mxu1 %v11277_v48  ;;  %v3194_v48 = vrot.slane %v12296_v40, %v13140_v38 }
 0x59c   :  { %5025 = vmatpush1.bf16.msra.mxu0 %v11274_v60 }
 0x59d   :  { %5131 = vmatpush1.bf16.msra.mxu1 %v11276_v51  ;;  %5026 = vmatprep.subr.bf16.mxu0 %v11283_v52  ;;  %v3294_v52 = vrot.slane %v12297_v46, %v13140_v38 }
 0x59e   :  { %5132 = vmatprep.subr.bf16.mxu1 %v11285_v9  ;;  %v3302_v9 = vrot.slane %v12297_v46, %v13143_v39 }
 0x5a0   :  { %5027 = vmatpush1.bf16.msra.mxu0 %v11282_v56 }
 0x5a1   :  { %5133 = vmatpush1.bf16.msra.mxu1 %v11284_v4  ;;  %5028 = vmatprep.subr.bf16.mxu0 %v11291_v57 }
 0x5a2   :  { %5134 = vmatprep.subr.bf16.mxu1 %v11293_v62 }
 0x5a4   :  { %5029 = vmatpush1.bf16.msra.mxu0 %v11290_v5 }
 0x5a5   :  { %5135 = vmatpush1.bf16.msra.mxu1 %v11292_v6  ;;  %5030 = vmatprep.subr.bf16.mxu0 %v11299_v7 }
 0x5a6   :  { %5136 = vmatprep.subr.bf16.mxu1 %v11301_v44 }
 0x5a8   :  { %5031 = vmatpush1.bf16.msra.mxu0 %v11298_v12 }
 0x5a9   :  { %5137 = vmatpush1.bf16.msra.mxu1 %v11300_v14  ;;  %5032 = vmatprep.subr.bf16.mxu0 %v11307_v35 }
 0x5aa   :  { %5138 = vmatprep.subr.bf16.mxu1 %v11309_v15 }
 0x5ac   :  { %5033 = vmatpush1.bf16.msra.mxu0 %v11306_v26  ;;  %v13219_v26 = vld [vmem:[#allocation2 + $0x18] sm:$0xff] }
 0x5ad   :  { %5139 = vmatpush1.bf16.msra.mxu1 %v11308_v27  ;;  %5034 = vmatprep.subr.bf16.mxu0 %v11315_v28  ;;  %v3425_v27 = vld [vmem:[#allocation11 + $0x50] sm:$0xff] }
 0x5ae   :  { %5140 = vmatprep.subr.bf16.mxu1 %v11317_v29  ;;  %v3429_v28 = vld [vmem:[#allocation11 + $0x70] sm:$0xff]  ;;  %v3426_v29 = vld [vmem:[#allocation11 + $0x58] sm:$0xff] }
 0x5af   :  { %v11078_v46 = vcombine.low %v3425_v27, %v3429_v28 }
 0x5b0   :  { %5035 = vmatpush1.bf16.msra.mxu0 %v11314_v31  ;;  %v3430_v31 = vld [vmem:[#allocation11 + $0x78] sm:$0xff] }
 0x5b1   :  { %5141 = vmatpush1.bf16.msra.mxu1 %v11316_v32  ;;  %5163 = vmatprep.subr.bf16.mxu0 %v11071_v36  ;;  %v13223_v32 = vld [vmem:[#allocation2 + $0x10] sm:$0xff]  ;;  %v11081_v40 = vcombine.high %v3426_v29, %v3430_v31 }
 0x5b2   :  { %5269 = vmatprep.subr.bf16.mxu1 %v11073_v37  ;;  %v3433_v36 = vld [vmem:[#allocation11 + $0x90] sm:$0xff]  ;;  %v11079_v37 = vcombine.high %v3425_v27, %v3429_v28  ;;  %v3478_v27 = vld [vmem:[#allocation11 + $0x1f8] sm:$0xff] }
 0x606   :  { %v2964_v60 = vpop.f32.mrb[12].mxu0  ;;  %v3128_v51 = vpop.f32.mrb[12].mxu1 }
 0x607   :  { %v3231_v61 = vmul.f32 %v3190_v41, %v2964_v60  ;;  %v3233_v53 = vmul.f32 %v3198_v47, %v3128_v51  ;;  %v2966_v54 = vpop.f32.mrb[13].mxu0  ;;  %v3130_v55 = vpop.f32.mrb[13].mxu1  ;;  %v3437_v41 = vld [vmem:[#allocation11 + $0xb0] sm:$0xff]  ;;  %v3434_v47 = vld [vmem:[#allocation11 + $0x98] sm:$0xff] }
 0x608   :  { %v3232_v56 = vmul.f32 %v3194_v48, %v2966_v54  ;;  %v3234_v4 = vmul.f32 %v3202_v45, %v3130_v55  ;;  %v2968_v57 = vpop.f32.mrb[14].mxu0  ;;  %v3132_v58 = vpop.f32.mrb[14].mxu1  ;;  %v3438_v48 = vld [vmem:[#allocation11 + $0xb8] sm:$0xff]  ;;  %v3441_v51 = vld [vmem:[#allocation11 + $0xd0] sm:$0xff] }
 0x609   :  { %v3331_v62 = vadd.f32 %v3290_v49, %v3231_v61  ;;  %v3333_v63 = vadd.f32 %v3298_v30, %v3233_v53  ;;  %v2969_v3 = vpop.f32.mrb[15].mxu0  ;;  %v3133_v24 = vpop.f32.mrb[15].mxu1  ;;  %v11080_v49 = vcombine.low %v3426_v29, %v3430_v31  ;;  %v11087_v30 = vcombine.high %v3433_v36, %v3437_v41  ;;  %v3450_v54 = vld [vmem:[#allocation11 + $0x118] sm:$0xff] }
 0x60a   :  { %v3332_v5 = vadd.f32 %v3294_v52, %v3232_v56  ;;  %v3334_v6 = vadd.f32 %v3302_v9, %v3234_v4  ;;  %v11089_v60 = vcombine.high %v3434_v47, %v3438_v48  ;;  %v3445_v52 = vld [vmem:[#allocation11 + $0xf0] sm:$0xff]  ;;  %v11088_v2 = vcombine.low %v3434_v47, %v3438_v48  ;;  %v3454_v55 = vld [vmem:[#allocation11 + $0x138] sm:$0xff] }
 0x60b   :  { %v3347_v7 = vmax.f32 %v3331_v62, 0.0  ;;  %v3349_v44 = vmax.f32 %v3333_v63, 0.0  ;;  %v11095_v61 = vcombine.high %v3441_v51, %v3445_v52  ;;  %v11097_v53 = vcombine.high %v3442_v16, %v3446_v59  ;;  %v3457_v62 = vld [vmem:[#allocation11 + $0x150] sm:$0xff]  ;;  %v3458_v3 = vld [vmem:[#allocation11 + $0x158] sm:$0xff] }
 0x60c   :  { %v3348_v8 = vmax.f32 %v3332_v5, 0.0  ;;  %v3350_v10 = vmax.f32 %v3334_v6, 0.0  ;;  %v11094_v56 = vcombine.low %v3441_v51, %v3445_v52  ;;  %v11096_v4 = vcombine.low %v3442_v16, %v3446_v59  ;;  %v3461_v63 = vld [vmem:[#allocation11 + $0x170] sm:$0xff]  ;;  %v3462_v24 = vld [vmem:[#allocation11 + $0x178] sm:$0xff] }
 0x60d   :  { %v3363_v11 = vpack.c.bf16 %v3347_v7, %v3347_v7  ;;  %v3365_v50 = vpack.c.bf16 %v3349_v44, %v3349_v44  ;;  %v11105_v58 = vcombine.high %v3450_v54, %v3454_v55  ;;  %v11104_v6 = vcombine.low %v3450_v54, %v3454_v55  ;;  %v3486_v47 = vld [vmem:[#allocation11 + $0x238] sm:$0xff]  ;;  %v3493_v51 = vld [vmem:[#allocation11 + $0x270] sm:$0xff] }
 0x60e   :  { %v3364_v12 = vpack.c.bf16 %v3348_v8, %v3348_v8  ;;  %v3366_v14 = vpack.c.bf16 %v3350_v10, %v3350_v10  ;;  %v11111_v7 = vcombine.high %v3457_v62, %v3461_v63  ;;  %v11113_v44 = vcombine.high %v3458_v3, %v3462_v24  ;;  %v3465_v8 = vld [vmem:[#allocation11 + $0x190] sm:$0xff]  ;;  %v3490_v52 = vld [vmem:[#allocation11 + $0x258] sm:$0xff] }
 0x60f   :  { %v3395_v35 = vrot.slane %v3363_v11, 4  ;;  %v3397_v15 = vrot.slane %v3365_v50, 4  ;;  %v3469_v10 = vld [vmem:[#allocation11 + $0x1b0] sm:$0xff]  ;;  %v3466_v11 = vld [vmem:[#allocation11 + $0x198] sm:$0xff]  ;;  %v11110_v50 = vcombine.low %v3457_v62, %v3461_v63 }
 0x610   :  { %v3396_v20 = vrot.slane %v3364_v12, 4  ;;  %v3398_v21 = vrot.slane %v3366_v14, 4  ;;  %v11112_v12 = vcombine.low %v3458_v3, %v3462_v24  ;;  %v11119_v14 = vcombine.high %v3465_v8, %v3469_v10  ;;  %v3494_v16 = vld [vmem:[#allocation11 + $0x278] sm:$0xff]  ;;  %v3509_v62 = vld [vmem:[#allocation11 + $0x2f0] sm:$0xff] }
 0x611   :  { %3403 = vst [vmem:[#allocation2 + $0x20] sm:$0xf0] %v3395_v35  ;;  %3405 = vst [vmem:[#allocation2 + $0x30] sm:$0xf0] %v3397_v15  ;;  %v3473_v15 = vld [vmem:[#allocation11 + $0x1d0] sm:$0xff]  ;;  %v11118_v28 = vcombine.low %v3465_v8, %v3469_v10  ;;  %v3502_v54 = vld [vmem:[#allocation11 + $0x2b8] sm:$0xff] }
 0x612   :  { %3404 = vst [vmem:[#allocation2 + $0x28] sm:$0xf0] %v3396_v20  ;;  %3406 = vst [vmem:[#allocation2 + $0x38] sm:$0xf0] %v3398_v21  ;;  %v3477_v20 = vld [vmem:[#allocation11 + $0x1f0] sm:$0xff]  ;;  %v3474_v21 = vld [vmem:[#allocation11 + $0x1d8] sm:$0xff] }
 0x613   :  { %v11127_v31 = vcombine.high %v3473_v15, %v3477_v20  ;;  %v11126_v48 = vcombine.low %v3473_v15, %v3477_v20  ;;  %v3506_v63 = vld [vmem:[#allocation11 + $0x2d8] sm:$0xff]  ;;  %v3517_v8 = vld [vmem:[#allocation11 + $0x330] sm:$0xff] }
 0x614   :  { %v3510_v3 = vld [vmem:[#allocation11 + $0x2f8] sm:$0xff]  ;;  %v3525_v15 = vld [vmem:[#allocation11 + $0x370] sm:$0xff] }
 0x615   :  { %v3514_v10 = vld [vmem:[#allocation11 + $0x318] sm:$0xff] }
 0x616   :  { %v3522_v20 = vld [vmem:[#allocation11 + $0x358] sm:$0xff] }
 0x618   :  { %v13215_v25 = vld [vmem:[#allocation2 + $0x20] sm:$0xff]  ;;  %v13237_v9 = vld [vmem:[#allocation2 + $0x30] sm:$0xff] }
 0x619   :  { %v13211_v22 = vld [vmem:[#allocation2 + $0x28] sm:$0xff]  ;;  %v13233_v45 = vld [vmem:[#allocation2 + $0x38] sm:$0xff] }
 0x61a   :  { %4993 = vmatprep.mubr.bf16.mxu0 %v13211_v22  ;;  %5099 = vmatprep.mubr.bf16.mxu1 %v13211_v22 }
 0x61b   :  { %4994 = vmatmul.mubr.bf16.gmra.mrb[20].mxu0 %v13215_v25  ;;  %5100 = vmatmul.mubr.bf16.gmra.mrb[20].mxu1 %v13215_v25 }
 0x61c   :  { %5036 = vmatprep.mubr.bf16.mxu0 %v13219_v26  ;;  %5142 = vmatprep.mubr.bf16.mxu1 %v13219_v26 }
 0x623   :  { %5037 = vmatmul.mubr.bf16.vlgmr.msra.gmra.mrb[16].mxu0 %v13223_v32  ;;  %5143 = vmatmul.mubr.bf16.vlgmr.msra.gmra.mrb[16].mxu1 %v13223_v32 }
 0x624   :  { %5164 = vmatpush1.bf16.msra.mxu0 %v11070_v1  ;;  %5270 = vmatpush1.bf16.msra.mxu1 %v11072_v17  ;;  %v11086_v1 = vcombine.low %v3433_v36, %v3437_v41  ;;  %v3453_v17 = vld [vmem:[#allocation11 + $0x130] sm:$0xff]  ;;  %v11129_v36 = vcombine.high %v3474_v21, %v3478_v27  ;;  %v3482_v41 = vld [vmem:[#allocation11 + $0x218] sm:$0xff] }
 0x625   :  { %5046 = vmatprep.mubr.bf16.mxu0 %v13233_v45  ;;  %5152 = vmatprep.mubr.bf16.mxu1 %v13233_v45  ;;  %v11103_v57 = vcombine.high %v3449_v43, %v3453_v17  ;;  %v11102_v5 = vcombine.low %v3449_v43, %v3453_v17  ;;  %v11145_v43 = vcombine.high %v3490_v52, %v3494_v16  ;;  %v3497_v17 = vld [vmem:[#allocation11 + $0x290] sm:$0xff] }
 0x626   :  { %5165 = vmatprep.subr.bf16.mxu0 %v11079_v37  ;;  %5271 = vmatprep.subr.bf16.mxu1 %v11081_v40  ;;  %v3481_v37 = vld [vmem:[#allocation11 + $0x210] sm:$0xff] }
 0x627   :  { %v3485_v40 = vld [vmem:[#allocation11 + $0x230] sm:$0xff] }
 0x628   :  { %5166 = vmatpush1.bf16.msra.mxu0 %v11078_v46  ;;  %5272 = vmatpush1.bf16.msra.mxu1 %v11080_v49  ;;  %v11128_v46 = vcombine.low %v3474_v21, %v3478_v27  ;;  %v11135_v49 = vcombine.high %v3481_v37, %v3485_v40  ;;  %v11134_v59 = vcombine.low %v3481_v37, %v3485_v40  ;;  %v3526_v21 = vld [vmem:[#allocation11 + $0x378] sm:$0xff]  ;;  %v3533_v37 = vld [vmem:[#allocation11 + $0x3b0] sm:$0xff] }
 0x629   :  { %5167 = vmatprep.subr.bf16.mxu0 %v11087_v30  ;;  %5273 = vmatprep.subr.bf16.mxu1 %v11089_v60  ;;  %v11137_v30 = vcombine.high %v3482_v41, %v3486_v47  ;;  %v3489_v60 = vld [vmem:[#allocation11 + $0x250] sm:$0xff]  ;;  %v3530_v40 = vld [vmem:[#allocation11 + $0x398] sm:$0xff] }
 0x62a   :  { %v11142_v55 = vcombine.low %v3489_v60, %v3493_v51 }
 0x62b   :  { %5047 = vmatmul.mubr.bf16.gmra.mrb[20].mxu0 %v13237_v9  ;;  %5153 = vmatmul.mubr.bf16.gmra.mrb[20].mxu1 %v13237_v9 }
 0x62c   :  { %5168 = vmatpush1.bf16.msra.mxu0 %v11086_v1  ;;  %5274 = vmatpush1.bf16.msra.mxu1 %v11088_v2  ;;  %v11136_v1 = vcombine.low %v3482_v41, %v3486_v47  ;;  %v11143_v2 = vcombine.high %v3489_v60, %v3493_v51  ;;  %v3534_v41 = vld [vmem:[#allocation11 + $0x3b8] sm:$0xff]  ;;  %v3541_v60 = vld [vmem:[#allocation11 + $0x3f0] sm:$0xff] }
 0x62d   :  { %5195 = vmatprep.mubr.bf16.mxu0 %v13179_v0  ;;  %5301 = vmatprep.mubr.bf16.mxu1 %v13179_v0  ;;  %v3470_v0 = vld [vmem:[#allocation11 + $0x1b8] sm:$0xff] }
 0x62e   :  { %5169 = vmatprep.subr.bf16.mxu0 %v11095_v61  ;;  %5275 = vmatprep.subr.bf16.mxu1 %v11097_v53  ;;  %v11121_v35 = vcombine.high %v3466_v11, %v3470_v0  ;;  %v11120_v29 = vcombine.low %v3466_v11, %v3470_v0  ;;  %v3501_v61 = vld [vmem:[#allocation11 + $0x2b0] sm:$0xff]  ;;  %v3498_v53 = vld [vmem:[#allocation11 + $0x298] sm:$0xff] }
 0x62f   :  { %v11150_v24 = vcombine.low %v3497_v17, %v3501_v61  ;;  %v3518_v11 = vld [vmem:[#allocation11 + $0x338] sm:$0xff] }
 0x630   :  { %5170 = vmatpush1.bf16.msra.mxu0 %v11094_v56  ;;  %5276 = vmatpush1.bf16.msra.mxu1 %v11096_v4  ;;  %v11144_v56 = vcombine.low %v3490_v52, %v3494_v16  ;;  %v11151_v4 = vcombine.high %v3497_v17, %v3501_v61  ;;  %v3538_v51 = vld [vmem:[#allocation11 + $0x3d8] sm:$0xff]  ;;  %v3549_v17 = vld [vmem:[#allocation11 + $0x430] sm:$0xff] }
 0x631   :  { %5171 = vmatprep.subr.bf16.mxu0 %v11103_v57  ;;  %5277 = vmatprep.subr.bf16.mxu1 %v11105_v58  ;;  %v11153_v57 = vcombine.high %v3498_v53, %v3502_v54  ;;  %v3505_v58 = vld [vmem:[#allocation11 + $0x2d0] sm:$0xff]  ;;  %v3542_v52 = vld [vmem:[#allocation11 + $0x3f8] sm:$0xff] }
 0x632   :  { %v11158_v0 = vcombine.low %v3505_v58, %v3509_v62  ;;  %v3546_v61 = vld [vmem:[#allocation11 + $0x418] sm:$0xff] }
 0x634   :  { %5172 = vmatpush1.bf16.msra.mxu0 %v11102_v5  ;;  %5278 = vmatpush1.bf16.msra.mxu1 %v11104_v6  ;;  %v11152_v5 = vcombine.low %v3498_v53, %v3502_v54  ;;  %v11159_v6 = vcombine.high %v3505_v58, %v3509_v62  ;;  %v3550_v53 = vld [vmem:[#allocation11 + $0x438] sm:$0xff]  ;;  %v3557_v58 = vld [vmem:[#allocation11 + $0x470] sm:$0xff] }
 0x635   :  { %5173 = vmatprep.subr.bf16.mxu0 %v11111_v7  ;;  %5279 = vmatprep.subr.bf16.mxu1 %v11113_v44  ;;  %v11161_v7 = vcombine.high %v3506_v63, %v3510_v3  ;;  %v3513_v44 = vld [vmem:[#allocation11 + $0x310] sm:$0xff]  ;;  %v3554_v62 = vld [vmem:[#allocation11 + $0x458] sm:$0xff] }
 0x636   :  { %v11166_v27 = vcombine.low %v3513_v44, %v3517_v8 }
 0x638   :  { %5174 = vmatpush1.bf16.msra.mxu0 %v11110_v50  ;;  %5280 = vmatpush1.bf16.msra.mxu1 %v11112_v12  ;;  %v11160_v50 = vcombine.low %v3506_v63, %v3510_v3  ;;  %v11167_v12 = vcombine.high %v3513_v44, %v3517_v8  ;;  %v3558_v63 = vld [vmem:[#allocation11 + $0x478] sm:$0xff]  ;;  %v3565_v44 = vld [vmem:[#allocation11 + $0x4b0] sm:$0xff] }
 0x639   :  { %5175 = vmatprep.subr.bf16.mxu0 %v11119_v14  ;;  %5281 = vmatprep.subr.bf16.mxu1 %v11121_v35  ;;  %v11169_v14 = vcombine.high %v3514_v10, %v3518_v11  ;;  %v3521_v35 = vld [vmem:[#allocation11 + $0x350] sm:$0xff]  ;;  %v3562_v8 = vld [vmem:[#allocation11 + $0x498] sm:$0xff] }
 0x63a   :  { %v11174_v47 = vcombine.low %v3521_v35, %v3525_v15 }
 0x63c   :  { %5176 = vmatpush1.bf16.msra.mxu0 %v11118_v28  ;;  %5282 = vmatpush1.bf16.msra.mxu1 %v11120_v29  ;;  %v11168_v28 = vcombine.low %v3514_v10, %v3518_v11  ;;  %v11175_v29 = vcombine.high %v3521_v35, %v3525_v15  ;;  %v3566_v10 = vld [vmem:[#allocation11 + $0x4b8] sm:$0xff]  ;;  %v3573_v35 = vld [vmem:[#allocation11 + $0x4f0] sm:$0xff] }
 0x63d   :  { %5177 = vmatprep.subr.bf16.mxu0 %v11127_v31  ;;  %5283 = vmatprep.subr.bf16.mxu1 %v11129_v36  ;;  %v11177_v31 = vcombine.high %v3522_v20, %v3526_v21  ;;  %v3529_v36 = vld [vmem:[#allocation11 + $0x390] sm:$0xff]  ;;  %v3570_v15 = vld [vmem:[#allocation11 + $0x4d8] sm:$0xff] }
 0x63e   :  { %v11182_v16 = vcombine.low %v3529_v36, %v3533_v37 }
 0x640   :  { %5178 = vmatpush1.bf16.msra.mxu0 %v11126_v48  ;;  %5284 = vmatpush1.bf16.msra.mxu1 %v11128_v46  ;;  %v11176_v48 = vcombine.low %v3522_v20, %v3526_v21  ;;  %v11183_v46 = vcombine.high %v3529_v36, %v3533_v37  ;;  %v3574_v20 = vld [vmem:[#allocation11 + $0x4f8] sm:$0xff]  ;;  %v11216_v21 = vcombine.low %v3562_v8, %v3566_v10 }
 0x641   :  { %5179 = vmatprep.subr.bf16.mxu0 %v11135_v49  ;;  %5285 = vmatprep.subr.bf16.mxu1 %v11137_v30  ;;  %v11185_v49 = vcombine.high %v3530_v40, %v3534_v41  ;;  %v3537_v30 = vld [vmem:[#allocation11 + $0x3d0] sm:$0xff]  ;;  %v3582_v36 = vld [vmem:[#allocation11 + $0x538] sm:$0xff] }
 0x642   :  { %v11190_v54 = vcombine.low %v3537_v30, %v3541_v60 }
 0x644   :  { %5180 = vmatpush1.bf16.msra.mxu0 %v11134_v59  ;;  %5286 = vmatpush1.bf16.msra.mxu1 %v11136_v1  ;;  %v11184_v59 = vcombine.low %v3530_v40, %v3534_v41  ;;  %v11191_v1 = vcombine.high %v3537_v30, %v3541_v60  ;;  %v11224_v40 = vcombine.low %v3570_v15, %v3574_v20  ;;  %v3590_v30 = vld [vmem:[#allocation11 + $0x578] sm:$0xff] }
 0x645   :  { %5181 = vmatprep.subr.bf16.mxu0 %v11143_v2  ;;  %5287 = vmatprep.subr.bf16.mxu1 %v11145_v43  ;;  %v11193_v2 = vcombine.high %v3538_v51, %v3542_v52  ;;  %v3545_v43 = vld [vmem:[#allocation11 + $0x410] sm:$0xff] }
 0x646   :  { %v11198_v3 = vcombine.low %v3545_v43, %v3549_v17 }
 0x648   :  { %5182 = vmatpush1.bf16.msra.mxu0 %v11142_v55  ;;  %5288 = vmatpush1.bf16.msra.mxu1 %v11144_v56  ;;  %v11192_v55 = vcombine.low %v3538_v51, %v3542_v52  ;;  %v11199_v56 = vcombine.high %v3545_v43, %v3549_v17 }
 0x649   :  { %5183 = vmatprep.subr.bf16.mxu0 %v11151_v4  ;;  %5289 = vmatprep.subr.bf16.mxu1 %v11153_v57  ;;  %v11201_v4 = vcombine.high %v3546_v61, %v3550_v53  ;;  %v3553_v57 = vld [vmem:[#allocation11 + $0x450] sm:$0xff] }
 0x64a   :  { %v11206_v11 = vcombine.low %v3553_v57, %v3557_v58 }
 0x64c   :  { %5184 = vmatpush1.bf16.msra.mxu0 %v11150_v24  ;;  %5290 = vmatpush1.bf16.msra.mxu1 %v11152_v5  ;;  %v11200_v24 = vcombine.low %v3546_v61, %v3550_v53  ;;  %v11207_v5 = vcombine.high %v3553_v57, %v3557_v58  ;;  %v3601_v53 = vld [vmem:[#allocation11 + $0x5d0] sm:$0xff] }
 0x64d   :  { %5185 = vmatprep.subr.bf16.mxu0 %v11159_v6  ;;  %5291 = vmatprep.subr.bf16.mxu1 %v11161_v7  ;;  %v11209_v6 = vcombine.high %v3554_v62, %v3558_v63  ;;  %v3561_v7 = vld [vmem:[#allocation11 + $0x490] sm:$0xff] }
 0x650   :  { %5186 = vmatpush1.bf16.msra.mxu0 %v11158_v0  ;;  %5292 = vmatpush1.bf16.msra.mxu1 %v11160_v50  ;;  %v11208_v0 = vcombine.low %v3554_v62, %v3558_v63  ;;  %v11215_v50 = vcombine.high %v3561_v7, %v3565_v44  ;;  %v3609_v63 = vld [vmem:[#allocation11 + $0x610] sm:$0xff] }
 0x651   :  { %5187 = vmatprep.subr.bf16.mxu0 %v11167_v12  ;;  %5293 = vmatprep.subr.bf16.mxu1 %v11169_v14  ;;  %v11217_v12 = vcombine.high %v3562_v8, %v3566_v10  ;;  %v3569_v14 = vld [vmem:[#allocation11 + $0x4d0] sm:$0xff] }
 0x652   :  { %v11222_v37 = vcombine.low %v3569_v14, %v3573_v35  ;;  %v3617_v10 = vld [vmem:[#allocation11 + $0x650] sm:$0xff] }
 0x654   :  { %5188 = vmatpush1.bf16.msra.mxu0 %v11166_v27  ;;  %5294 = vmatpush1.bf16.msra.mxu1 %v11168_v28  ;;  %v11223_v27 = vcombine.high %v3569_v14, %v3573_v35  ;;  %v11225_v28 = vcombine.high %v3570_v15, %v3574_v20  ;;  %v3625_v20 = vld [vmem:[#allocation11 + $0x690] sm:$0xff] }
 0x655   :  { %5189 = vmatprep.subr.bf16.mxu0 %v11175_v29  ;;  %5295 = vmatprep.subr.bf16.mxu1 %v11177_v31  ;;  %v3577_v29 = vld [vmem:[#allocation11 + $0x510] sm:$0xff]  ;;  %v3578_v31 = vld [vmem:[#allocation11 + $0x518] sm:$0xff] }
 0x656   :  { %v11232_v60 = vcombine.low %v3578_v31, %v3582_v36 }
 0x658   :  { %5190 = vmatpush1.bf16.msra.mxu0 %v11174_v47  ;;  %5296 = vmatpush1.bf16.msra.mxu1 %v11176_v48  ;;  %v11233_v47 = vcombine.high %v3578_v31, %v3582_v36  ;;  %v3585_v48 = vld [vmem:[#allocation11 + $0x550] sm:$0xff] }
 0x659   :  { %5191 = vmatprep.subr.bf16.mxu0 %v11183_v46  ;;  %5297 = vmatprep.subr.bf16.mxu1 %v11185_v49  ;;  %v3589_v46 = vld [vmem:[#allocation11 + $0x570] sm:$0xff]  ;;  %v3586_v49 = vld [vmem:[#allocation11 + $0x558] sm:$0xff] }
 0x65a   :  { %v11239_v51 = vcombine.high %v3585_v48, %v3589_v46  ;;  %v11241_v52 = vcombine.high %v3586_v49, %v3590_v30  ;;  %v11240_v43 = vcombine.low %v3586_v49, %v3590_v30  ;;  %v3633_v36 = vld [vmem:[#allocation11 + $0x6d0] sm:$0xff] }
 0x65b   :  { %v3641_v30 = vld [vmem:[#allocation11 + $0x710] sm:$0xff] }
 0x65c   :  { %5192 = vmatpush1.bf16.msra.mxu0 %v11182_v16  ;;  %5298 = vmatpush1.bf16.msra.mxu1 %v11184_v59  ;;  %v3593_v16 = vld [vmem:[#allocation11 + $0x590] sm:$0xff] }
 0x65d   :  { %5193 = vmatprep.subr.bf16.mxu0 %v11191_v1  ;;  %5299 = vmatprep.subr.bf16.mxu1 %v11193_v2  ;;  %v3597_v59 = vld [vmem:[#allocation11 + $0x5b0] sm:$0xff]  ;;  %v3598_v1 = vld [vmem:[#allocation11 + $0x5b8] sm:$0xff]  ;;  %v11238_v2 = vcombine.low %v3585_v48, %v3589_v46 }
 0x65e   :  { %v11247_v17 = vcombine.high %v3593_v16, %v3597_v59 }
 0x660   :  { %5194 = vmatpush1.bf16.msra.mxu0 %v11190_v54  ;;  %5300 = vmatpush1.bf16.msra.mxu1 %v11192_v55  ;;  %v3605_v54 = vld [vmem:[#allocation11 + $0x5f0] sm:$0xff]  ;;  %v3602_v55 = vld [vmem:[#allocation11 + $0x5d8] sm:$0xff] }
 0x661   :  { %5216 = vmatprep.subr.bf16.mxu0 %v11199_v56  ;;  %5322 = vmatprep.subr.bf16.mxu1 %v11201_v4  ;;  %v3606_v56 = vld [vmem:[#allocation11 + $0x5f8] sm:$0xff]  ;;  %v11246_v4 = vcombine.low %v3593_v16, %v3597_v59  ;;  %v11255_v58 = vcombine.high %v3601_v53, %v3605_v54 }
 0x662   :  { %v11257_v62 = vcombine.high %v3602_v55, %v3606_v56 }
 0x663   :  { %5196 = vmatmul.mubr.bf16.vlgmr.msra.gmra.mrb[24].mxu0 %v13183_v13  ;;  %5302 = vmatmul.mubr.bf16.vlgmr.msra.gmra.mrb[24].mxu1 %v13183_v13  ;;  %v11214_v13 = vcombine.low %v3561_v7, %v3565_v44  ;;  %v11256_v7 = vcombine.low %v3602_v55, %v3606_v56  ;;  %v3657_v56 = vld [vmem:[#allocation11 + $0x790] sm:$0xff] }
 0x664   :  { %5205 = vmatprep.mubr.bf16.mxu0 %v13211_v22  ;;  %5217 = vmatpush1.bf16.msra.mxu0 %v11198_v3  ;;  %v3613_v3 = vld [vmem:[#allocation11 + $0x630] sm:$0xff] }
 0x665   :  { %5311 = vmatprep.mubr.bf16.mxu1 %v13211_v22  ;;  %5323 = vmatpush1.bf16.msra.mxu1 %v11200_v24  ;;  %v3581_v22 = vld [vmem:[#allocation11 + $0x530] sm:$0xff]  ;;  %v3610_v24 = vld [vmem:[#allocation11 + $0x618] sm:$0xff]  ;;  %v11263_v44 = vcombine.high %v3609_v63, %v3613_v3 }
 0x666   :  { %5218 = vmatprep.subr.bf16.mxu0 %v11207_v5  ;;  %5324 = vmatprep.subr.bf16.mxu1 %v11209_v6  ;;  %v11231_v41 = vcombine.high %v3577_v29, %v3581_v22  ;;  %v3614_v5 = vld [vmem:[#allocation11 + $0x638] sm:$0xff]  ;;  %v11254_v6 = vcombine.low %v3601_v53, %v3605_v54 }
 0x667   :  { %v11265_v8 = vcombine.high %v3610_v24, %v3614_v5  ;;  %v11264_v14 = vcombine.low %v3610_v24, %v3614_v5  ;;  %v3665_v5 = vld [vmem:[#allocation11 + $0x7d0] sm:$0xff] }
 0x668   :  { %5219 = vmatpush1.bf16.msra.mxu0 %v11206_v11  ;;  %v3621_v11 = vld [vmem:[#allocation11 + $0x670] sm:$0xff] }
 0x669   :  { %5325 = vmatpush1.bf16.msra.mxu1 %v11208_v0  ;;  %5220 = vmatprep.subr.bf16.mxu0 %v11215_v50  ;;  %v3618_v0 = vld [vmem:[#allocation11 + $0x658] sm:$0xff]  ;;  %v11271_v35 = vcombine.high %v3617_v10, %v3621_v11 }
 0x66a   :  { %5326 = vmatprep.subr.bf16.mxu1 %v11217_v12  ;;  %v3622_v50 = vld [vmem:[#allocation11 + $0x678] sm:$0xff]  ;;  %v11262_v12 = vcombine.low %v3609_v63, %v3613_v3 }
 0x66b   :  { %5206 = vmatmul.mubr.bf16.gmra.mrb[28].mxu0 %v13215_v25  ;;  %5312 = vmatmul.mubr.bf16.gmra.mrb[28].mxu1 %v13215_v25  ;;  %v11230_v25 = vcombine.low %v3577_v29, %v3581_v22  ;;  %v11273_v15 = vcombine.high %v3618_v0, %v3622_v50  ;;  %v11272_v29 = vcombine.low %v3618_v0, %v3622_v50 }
 0x66c   :  { %5221 = vmatpush1.bf16.msra.mxu0 %v11214_v13  ;;  %5248 = vmatprep.mubr.bf16.mxu0 %v13219_v26  ;;  %v3629_v13 = vld [vmem:[#allocation11 + $0x6b0] sm:$0xff] }
 0x66d   :  { %5327 = vmatpush1.bf16.msra.mxu1 %v11216_v21  ;;  %5354 = vmatprep.mubr.bf16.mxu1 %v13219_v26  ;;  %v3594_v26 = vld [vmem:[#allocation11 + $0x598] sm:$0xff]  ;;  %v11279_v22 = vcombine.high %v3625_v20, %v3629_v13 }
 0x66e   :  { %5222 = vmatprep.subr.bf16.mxu0 %v11223_v27  ;;  %5328 = vmatprep.subr.bf16.mxu1 %v11225_v28  ;;  %v11249_v61 = vcombine.high %v3594_v26, %v3598_v1  ;;  %v11248_v57 = vcombine.low %v3594_v26, %v3598_v1  ;;  %v3626_v21 = vld [vmem:[#allocation11 + $0x698] sm:$0xff]  ;;  %v11270_v28 = vcombine.low %v3617_v10, %v3621_v11  ;;  %v3649_v1 = vld [vmem:[#allocation11 + $0x750] sm:$0xff] }
 0x66f   :  { %v3630_v27 = vld [vmem:[#allocation11 + $0x6b8] sm:$0xff] }
 0x670   :  { %5223 = vmatpush1.bf16.msra.mxu0 %v11222_v37  ;;  %v11281_v31 = vcombine.high %v3626_v21, %v3630_v27  ;;  %v3637_v37 = vld [vmem:[#allocation11 + $0x6f0] sm:$0xff]  ;;  %v11280_v48 = vcombine.low %v3626_v21, %v3630_v27  ;;  %v12153_v21 = vld [vmem:[#allocation16 + $0x2c] ss:$16 sps:$4 sm:$0xff]  }
 0x671   :  { %5329 = vmatpush1.bf16.msra.mxu1 %v11224_v40  ;;  %5224 = vmatprep.subr.bf16.mxu0 %v11231_v41  ;;  %v3634_v40 = vld [vmem:[#allocation11 + $0x6d8] sm:$0xff]  ;;  %v11287_v46 = vcombine.high %v3633_v36, %v3637_v37  ;;  %v12148_v27 = vld [vmem:[#allocation16 + $0x20] ss:$16 sps:$4 sm:$0xff]  }
 0x672   :  { %5330 = vmatprep.subr.bf16.mxu1 %v11233_v47  ;;  %v3638_v41 = vld [vmem:[#allocation11 + $0x6f8] sm:$0xff]  ;;  %v11278_v47 = vcombine.low %v3625_v20, %v3629_v13  ;;  %v12150_v13 = vld [vmem:[#allocation16 + $0x24] ss:$16 sps:$4 sm:$0xff]  }
 0x673   :  { %v11289_v49 = vcombine.high %v3634_v40, %v3638_v41  ;;  %v11288_v16 = vcombine.low %v3634_v40, %v3638_v41  ;;  %v12145_v20 = vld [vmem:[#allocation16 + $0x8] ss:$16 sps:$4 sm:$0xff]   ;;  %v12168_v41 = vld [vmem:[#allocation16 + $0x84] ss:$16 sps:$4 sm:$0xff]  }
 0x674   :  { %5225 = vmatpush1.bf16.msra.mxu0 %v11230_v25  ;;  %v3645_v25 = vld [vmem:[#allocation11 + $0x730] sm:$0xff]  ;;  %v12163_v40 = vld [vmem:[#allocation16 + $0x68] ss:$16 sps:$4 sm:$0xff]  }
 0x675   :  { %5331 = vmatpush1.bf16.msra.mxu1 %v11232_v60  ;;  %5226 = vmatprep.subr.bf16.mxu0 %v11239_v51  ;;  %v3642_v60 = vld [vmem:[#allocation11 + $0x718] sm:$0xff]  ;;  %v11295_v59 = vcombine.high %v3641_v30, %v3645_v25 }
 0x676   :  { %5332 = vmatprep.subr.bf16.mxu1 %v11241_v52  ;;  %v3646_v51 = vld [vmem:[#allocation11 + $0x738] sm:$0xff]  ;;  %v11286_v52 = vcombine.low %v3633_v36, %v3637_v37  ;;  %v12162_v37 = vld [vmem:[#allocation16 + $0x64] ss:$16 sps:$4 sm:$0xff]  }
 0x677   :  { %v11297_v26 = vcombine.high %v3642_v60, %v3646_v51  ;;  %v11296_v53 = vcombine.low %v3642_v60, %v3646_v51  ;;  %v12157_v36 = vld [vmem:[#allocation16 + $0x48] ss:$16 sps:$4 sm:$0xff]   ;;  %v12180_v60 = vld [vmem:[#allocation16 + $0xc4] ss:$16 sps:$4 sm:$0xff]   ;;  %v12183_v51 = vld [vmem:[#allocation16 + $0xcc] ss:$16 sps:$4 sm:$0xff]  }
 0x678   :  { %5227 = vmatpush1.bf16.msra.mxu0 %v11238_v2  ;;  %v3653_v2 = vld [vmem:[#allocation11 + $0x770] sm:$0xff] }
 0x679   :  { %5333 = vmatpush1.bf16.msra.mxu1 %v11240_v43  ;;  %5228 = vmatprep.subr.bf16.mxu0 %v11247_v17  ;;  %v3650_v43 = vld [vmem:[#allocation11 + $0x758] sm:$0xff]  ;;  %v11303_v54 = vcombine.high %v3649_v1, %v3653_v2 }
 0x67a   :  { %5334 = vmatprep.subr.bf16.mxu1 %v11249_v61  ;;  %v3654_v17 = vld [vmem:[#allocation11 + $0x778] sm:$0xff]  ;;  %v11294_v61 = vcombine.low %v3641_v30, %v3645_v25  ;;  %v12172_v25 = vld [vmem:[#allocation16 + $0xa0] ss:$16 sps:$4 sm:$0xff]  }
 0x67b   :  { %v11305_v55 = vcombine.high %v3650_v43, %v3654_v17  ;;  %v11304_v63 = vcombine.low %v3650_v43, %v3654_v17  ;;  %v12177_v30 = vld [vmem:[#allocation16 + $0xac] ss:$16 sps:$4 sm:$0xff]   ;;  %v12192_v43 = vld [vmem:[#allocation16 + $0x104] ss:$16 sps:$4 sm:$0xff]  }
 0x67c   :  { %5229 = vmatpush1.bf16.msra.mxu0 %v11246_v4  ;;  %v3661_v4 = vld [vmem:[#allocation11 + $0x7b0] sm:$0xff]  ;;  %v12195_v17 = vld [vmem:[#allocation16 + $0x10c] ss:$16 sps:$4 sm:$0xff]  }
 0x67d   :  { %5335 = vmatpush1.bf16.msra.mxu1 %v11248_v57  ;;  %5230 = vmatprep.subr.bf16.mxu0 %v11255_v58  ;;  %v3658_v57 = vld [vmem:[#allocation11 + $0x798] sm:$0xff]  ;;  %v11311_v3 = vcombine.high %v3657_v56, %v3661_v4 }
 0x67e   :  { %5336 = vmatprep.subr.bf16.mxu1 %v11257_v62  ;;  %v3662_v58 = vld [vmem:[#allocation11 + $0x7b8] sm:$0xff]  ;;  %v11302_v62 = vcombine.low %v3649_v1, %v3653_v2  ;;  %v12184_v1 = vld [vmem:[#allocation16 + $0xe0] ss:$16 sps:$4 sm:$0xff]  }
 0x67f   :  { %v11313_v24 = vcombine.high %v3658_v57, %v3662_v58  ;;  %v11312_v10 = vcombine.low %v3658_v57, %v3662_v58  ;;  %v12187_v2 = vld [vmem:[#allocation16 + $0xe8] ss:$16 sps:$4 sm:$0xff]   ;;  %v12204_v57 = vld [vmem:[#allocation16 + $0x144] ss:$16 sps:$4 sm:$0xff]   ;;  %v12207_v58 = vld [vmem:[#allocation16 + $0x14c] ss:$16 sps:$4 sm:$0xff]  }
 0x680   :  { %5231 = vmatpush1.bf16.msra.mxu0 %v11254_v6  ;;  %v3669_v6 = vld [vmem:[#allocation11 + $0x7f0] sm:$0xff] }
 0x681   :  { %5337 = vmatpush1.bf16.msra.mxu1 %v11256_v7  ;;  %5232 = vmatprep.subr.bf16.mxu0 %v11263_v44  ;;  %v3666_v7 = vld [vmem:[#allocation11 + $0x7d8] sm:$0xff]  ;;  %v11319_v11 = vcombine.high %v3665_v5, %v3669_v6  ;;  %v11318_v50 = vcombine.low %v3665_v5, %v3669_v6  ;;  %v12208_v5 = vld [vmem:[#allocation16 + $0x160] ss:$16 sps:$4 sm:$0xff]  }
 0x682   :  { %5338 = vmatprep.subr.bf16.mxu1 %v11265_v8  ;;  %v3670_v44 = vld [vmem:[#allocation11 + $0x7f8] sm:$0xff]  ;;  %v11310_v8 = vcombine.low %v3657_v56, %v3661_v4  ;;  %v12196_v56 = vld [vmem:[#allocation16 + $0x120] ss:$16 sps:$4 sm:$0xff]  }
 0x683   :  { %v11321_v0 = vcombine.high %v3666_v7, %v3670_v44  ;;  %v12199_v4 = vld [vmem:[#allocation16 + $0x128] ss:$16 sps:$4 sm:$0xff]  }
 0x684   :  { %5233 = vmatpush1.bf16.msra.mxu0 %v11262_v12  ;;  %v11320_v12 = vcombine.low %v3666_v7, %v3670_v44  ;;  %v12211_v6 = vld [vmem:[#allocation16 + $0x168] ss:$16 sps:$4 sm:$0xff]   ;;  %v12216_v7 = vld [vmem:[#allocation16 + $0x184] ss:$16 sps:$4 sm:$0xff]   ;;  %v12219_v44 = vld [vmem:[#allocation16 + $0x18c] ss:$16 sps:$4 sm:$0xff]  }
 0x685   :  { %5339 = vmatpush1.bf16.msra.mxu1 %v11264_v14  ;;  %5234 = vmatprep.subr.bf16.mxu0 %v11271_v35  ;;  %v12144_v14 = vld [vmem:[#allocation16 + $0x4] ss:$16 sps:$4 sm:$0xff]   ;;  %v12147_v35 = vld [vmem:[#allocation16 + $0xc] ss:$16 sps:$4 sm:$0xff]  }
 0x686   :  { %5340 = vmatprep.subr.bf16.mxu1 %v11273_v15  ;;  %v12142_v15 = vld [vmem:[#allocation16] ss:$16 sps:$4 sm:$0xff]  }
 0x688   :  { %5235 = vmatpush1.bf16.msra.mxu0 %v11270_v28  ;;  %v12151_v28 = vld [vmem:[#allocation16 + $0x28] ss:$16 sps:$4 sm:$0xff]  }
 0x689   :  { %5341 = vmatpush1.bf16.msra.mxu1 %v11272_v29  ;;  %5236 = vmatprep.subr.bf16.mxu0 %v11279_v22  ;;  %v12156_v29 = vld [vmem:[#allocation16 + $0x44] ss:$16 sps:$4 sm:$0xff]   ;;  %v12159_v22 = vld [vmem:[#allocation16 + $0x4c] ss:$16 sps:$4 sm:$0xff]  }
 0x68a   :  { %5342 = vmatprep.subr.bf16.mxu1 %v11281_v31  ;;  %v12154_v31 = vld [vmem:[#allocation16 + $0x40] ss:$16 sps:$4 sm:$0xff]  }
 0x68c   :  { %5237 = vmatpush1.bf16.msra.mxu0 %v11278_v47  ;;  %v12171_v47 = vld [vmem:[#allocation16 + $0x8c] ss:$16 sps:$4 sm:$0xff]  }
 0x68d   :  { %5343 = vmatpush1.bf16.msra.mxu1 %v11280_v48  ;;  %5238 = vmatprep.subr.bf16.mxu0 %v11287_v46  ;;  %v12166_v48 = vld [vmem:[#allocation16 + $0x80] ss:$16 sps:$4 sm:$0xff]   ;;  %v12169_v46 = vld [vmem:[#allocation16 + $0x88] ss:$16 sps:$4 sm:$0xff]  }
 0x68e   :  { %5344 = vmatprep.subr.bf16.mxu1 %v11289_v49  ;;  %v12174_v49 = vld [vmem:[#allocation16 + $0xa4] ss:$16 sps:$4 sm:$0xff]  }
 0x690   :  { %5239 = vmatpush1.bf16.msra.mxu0 %v11286_v52  ;;  %v12178_v52 = vld [vmem:[#allocation16 + $0xc0] ss:$16 sps:$4 sm:$0xff]  }
 0x691   :  { %5345 = vmatpush1.bf16.msra.mxu1 %v11288_v16  ;;  %5240 = vmatprep.subr.bf16.mxu0 %v11295_v59  ;;  %v12181_v16 = vld [vmem:[#allocation16 + $0xc8] ss:$16 sps:$4 sm:$0xff]   ;;  %v12186_v59 = vld [vmem:[#allocation16 + $0xe4] ss:$16 sps:$4 sm:$0xff]  }
 0x692   :  { %5346 = vmatprep.subr.bf16.mxu1 %v11297_v26  ;;  %v12189_v26 = vld [vmem:[#allocation16 + $0xec] ss:$16 sps:$4 sm:$0xff]  }
 0x694   :  { %5241 = vmatpush1.bf16.msra.mxu0 %v11294_v61  ;;  %v12190_v61 = vld [vmem:[#allocation16 + $0x100] ss:$16 sps:$4 sm:$0xff]  }
 0x695   :  { %5347 = vmatpush1.bf16.msra.mxu1 %v11296_v53  ;;  %5242 = vmatprep.subr.bf16.mxu0 %v11303_v54  ;;  %v12193_v53 = vld [vmem:[#allocation16 + $0x108] ss:$16 sps:$4 sm:$0xff]   ;;  %v12198_v54 = vld [vmem:[#allocation16 + $0x124] ss:$16 sps:$4 sm:$0xff]  }
 0x696   :  { %5348 = vmatprep.subr.bf16.mxu1 %v11305_v55  ;;  %v12201_v55 = vld [vmem:[#allocation16 + $0x12c] ss:$16 sps:$4 sm:$0xff]  }
 0x698   :  { %5243 = vmatpush1.bf16.msra.mxu0 %v11302_v62  ;;  %v12202_v62 = vld [vmem:[#allocation16 + $0x140] ss:$16 sps:$4 sm:$0xff]  }
 0x699   :  { %5349 = vmatpush1.bf16.msra.mxu1 %v11304_v63  ;;  %5244 = vmatprep.subr.bf16.mxu0 %v11311_v3  ;;  %v12205_v63 = vld [vmem:[#allocation16 + $0x148] ss:$16 sps:$4 sm:$0xff]   ;;  %v12210_v3 = vld [vmem:[#allocation16 + $0x164] ss:$16 sps:$4 sm:$0xff]  }
 0x69a   :  { %5350 = vmatprep.subr.bf16.mxu1 %v11313_v24  ;;  %v12213_v24 = vld [vmem:[#allocation16 + $0x16c] ss:$16 sps:$4 sm:$0xff]  }
 0x69c   :  { %5245 = vmatpush1.bf16.msra.mxu0 %v11310_v8  ;;  %v12214_v8 = vld [vmem:[#allocation16 + $0x180] ss:$16 sps:$4 sm:$0xff]  }
 0x69d   :  { %5351 = vmatpush1.bf16.msra.mxu1 %v11312_v10  ;;  %5246 = vmatprep.subr.bf16.mxu0 %v11319_v11  ;;  %v12217_v10 = vld [vmem:[#allocation16 + $0x188] ss:$16 sps:$4 sm:$0xff]   ;;  %v12222_v11 = vld [vmem:[#allocation16 + $0x1a4] ss:$16 sps:$4 sm:$0xff]  }
 0x69e   :  { %5352 = vmatprep.subr.bf16.mxu1 %v11321_v0  ;;  %v12225_v0 = vld [vmem:[#allocation16 + $0x1ac] ss:$16 sps:$4 sm:$0xff]  }
 0x6a0   :  { %5247 = vmatpush1.bf16.msra.mxu0 %v11318_v50  ;;  %v12220_v50 = vld [vmem:[#allocation16 + $0x1a0] ss:$16 sps:$4 sm:$0xff]  }
 0x6a1   :  { %5353 = vmatpush1.bf16.msra.mxu1 %v11320_v12  ;;  %5987 = vmatprep.subr.bf16.mxu0 %v12144_v14  ;;  %v12223_v12 = vld [vmem:[#allocation16 + $0x1a8] ss:$16 sps:$4 sm:$0xff]   ;;  %v12228_v14 = vld [vmem:[#allocation16 + $0x1c4] ss:$16 sps:$4 sm:$0xff]  }
 0x6a2   :  { %6100 = vmatprep.subr.bf16.mxu1 %v12147_v35  ;;  %v12231_v35 = vld [vmem:[#allocation16 + $0x1cc] ss:$16 sps:$4 sm:$0xff]  }
 0x6a3   :  { %5249 = vmatmul.mubr.bf16.vlgmr.msra.gmra.mrb[24].mxu0 %v13223_v32 }
 0x6a4   :  { %5355 = vmatmul.mubr.bf16.vlgmr.msra.gmra.mrb[24].mxu1 %v13223_v32  ;;  %5258 = vmatprep.mubr.bf16.mxu0 %v13233_v45  ;;  %v12165_v32 = vld [vmem:[#allocation16 + $0x6c] ss:$16 sps:$4 sm:$0xff]  }
 0x6a5   :  { %5364 = vmatprep.mubr.bf16.mxu1 %v13233_v45  ;;  %5988 = vmatpush1.bf16.msra.mxu0 %v12142_v15  ;;  %v12160_v45 = vld [vmem:[#allocation16 + $0x60] ss:$16 sps:$4 sm:$0xff]  }
 0x6a6   :  { %6101 = vmatpush1.bf16.msra.mxu1 %v12145_v20  ;;  %5989 = vmatprep.subr.bf16.mxu0 %v12150_v13  ;;  %v12226_v15 = vld [vmem:[#allocation16 + $0x1c0] ss:$16 sps:$4 sm:$0xff]   ;;  %v12229_v20 = vld [vmem:[#allocation16 + $0x1c8] ss:$16 sps:$4 sm:$0xff]   ;;  %v12234_v13 = vld [vmem:[#allocation16 + $0x1e4] ss:$16 sps:$4 sm:$0xff]  }
 0x6a7   :  { %6102 = vmatprep.subr.bf16.mxu1 %v12153_v21  ;;  %v12237_v21 = vld [vmem:[#allocation16 + $0x1ec] ss:$16 sps:$4 sm:$0xff]  }
 0x6a9   :  { %5990 = vmatpush1.bf16.msra.mxu0 %v12148_v27  ;;  %v12232_v27 = vld [vmem:[#allocation16 + $0x1e0] ss:$16 sps:$4 sm:$0xff]  }
 0x6aa   :  { %6103 = vmatpush1.bf16.msra.mxu1 %v12151_v28  ;;  %5991 = vmatprep.subr.bf16.mxu0 %v12156_v29  ;;  %v12235_v28 = vld [vmem:[#allocation16 + $0x1e8] ss:$16 sps:$4 sm:$0xff]   ;;  %v13257_v29 = vld [vmem:[#allocation13] sm:$0xff] }
 0x6ab   :  { %5259 = vmatmul.mubr.bf16.gmra.mrb[28].mxu0 %v13237_v9  ;;  %6104 = vmatprep.subr.bf16.mxu1 %v12159_v22  ;;  %v13259_v22 = vld [vmem:[#allocation14] sm:$0xff] }
 0x6ac   :  { %5365 = vmatmul.mubr.bf16.gmra.mrb[28].mxu1 %v13237_v9  ;;  %v12175_v9 = vld [vmem:[#allocation16 + $0xa8] ss:$16 sps:$4 sm:$0xff]  }
 0x6ad   :  { %5992 = vmatpush1.bf16.msra.mxu0 %v12154_v31  ;;  %v5380_v31 = vrot.slane %v13257_v29, %v13098_v18 }
 0x6ae   :  { %6105 = vmatpush1.bf16.msra.mxu1 %v12157_v36  ;;  %5993 = vmatprep.subr.bf16.mxu0 %v12162_v37  ;;  %v5388_v36 = vrot.slane %v13257_v29, %v13101_v19  ;;  %v5384_v37 = vrot.slane %v13257_v29, %v13104_v23 }
 0x6af   :  { %6106 = vmatprep.subr.bf16.mxu1 %v12165_v32  ;;  %v5392_v32 = vrot.slane %v13257_v29, %v13107_v42 }
 0x6b1   :  { %5994 = vmatpush1.bf16.msra.mxu0 %v12160_v45  ;;  %v5454_v45 = vrot.slane %v13259_v22, %v13098_v18 }
 0x6b2   :  { %6107 = vmatpush1.bf16.msra.mxu1 %v12163_v40  ;;  %5995 = vmatprep.subr.bf16.mxu0 %v12168_v41  ;;  %v5462_v40 = vrot.slane %v13259_v22, %v13101_v19 }
 0x6b3   :  { %6108 = vmatprep.subr.bf16.mxu1 %v12171_v47 }
 0x6b5   :  { %5996 = vmatpush1.bf16.msra.mxu0 %v12166_v48  ;;  %v5458_v48 = vrot.slane %v13259_v22, %v13104_v23 }
 0x6b6   :  { %6109 = vmatpush1.bf16.msra.mxu1 %v12169_v46  ;;  %5997 = vmatprep.subr.bf16.mxu0 %v12174_v49  ;;  %v5466_v46 = vrot.slane %v13259_v22, %v13107_v42 }
 0x6b7   :  { %6110 = vmatprep.subr.bf16.mxu1 %v12177_v30 }
 0x6b9   :  { %5998 = vmatpush1.bf16.msra.mxu0 %v12172_v25 }
 0x6ba   :  { %6111 = vmatpush1.bf16.msra.mxu1 %v12175_v9  ;;  %5999 = vmatprep.subr.bf16.mxu0 %v12180_v60 }
 0x6bb   :  { %6112 = vmatprep.subr.bf16.mxu1 %v12183_v51 }
 0x6bd   :  { %6000 = vmatpush1.bf16.msra.mxu0 %v12178_v52 }
 0x6be   :  { %6113 = vmatpush1.bf16.msra.mxu1 %v12181_v16  ;;  %6001 = vmatprep.subr.bf16.mxu0 %v12186_v59 }
 0x6bf   :  { %6114 = vmatprep.subr.bf16.mxu1 %v12189_v26 }
 0x6c1   :  { %6002 = vmatpush1.bf16.msra.mxu0 %v12184_v1 }
 0x6c2   :  { %6115 = vmatpush1.bf16.msra.mxu1 %v12187_v2  ;;  %6003 = vmatprep.subr.bf16.mxu0 %v12192_v43 }
 0x6c3   :  { %6116 = vmatprep.subr.bf16.mxu1 %v12195_v17 }
 0x6c5   :  { %6004 = vmatpush1.bf16.msra.mxu0 %v12190_v61 }
 0x6c6   :  { %6117 = vmatpush1.bf16.msra.mxu1 %v12193_v53  ;;  %6005 = vmatprep.subr.bf16.mxu0 %v12198_v54 }
 0x6c7   :  { %6118 = vmatprep.subr.bf16.mxu1 %v12201_v55 }
 0x6c9   :  { %6006 = vmatpush1.bf16.msra.mxu0 %v12196_v56 }
 0x6ca   :  { %6119 = vmatpush1.bf16.msra.mxu1 %v12199_v4  ;;  %6007 = vmatprep.subr.bf16.mxu0 %v12204_v57 }
 0x6cb   :  { %6120 = vmatprep.subr.bf16.mxu1 %v12207_v58 }
 0x6cd   :  { %6008 = vmatpush1.bf16.msra.mxu0 %v12202_v62 }
 0x6ce   :  { %6121 = vmatpush1.bf16.msra.mxu1 %v12205_v63  ;;  %6009 = vmatprep.subr.bf16.mxu0 %v12210_v3 }
 0x6cf   :  { %6122 = vmatprep.subr.bf16.mxu1 %v12213_v24 }
 0x6d1   :  { %6010 = vmatpush1.bf16.msra.mxu0 %v12208_v5 }
 0x6d2   :  { %6123 = vmatpush1.bf16.msra.mxu1 %v12211_v6  ;;  %6011 = vmatprep.subr.bf16.mxu0 %v12216_v7 }
 0x6d3   :  { %6124 = vmatprep.subr.bf16.mxu1 %v12219_v44 }
 0x6d5   :  { %6012 = vmatpush1.bf16.msra.mxu0 %v12214_v8 }
 0x6d6   :  { %6125 = vmatpush1.bf16.msra.mxu1 %v12217_v10  ;;  %6013 = vmatprep.subr.bf16.mxu0 %v12222_v11 }
 0x6d7   :  { %6126 = vmatprep.subr.bf16.mxu1 %v12225_v0 }
 0x6d9   :  { %6014 = vmatpush1.bf16.msra.mxu0 %v12220_v50 }
 0x6da   :  { %6127 = vmatpush1.bf16.msra.mxu1 %v12223_v12  ;;  %6015 = vmatprep.subr.bf16.mxu0 %v12228_v14 }
 0x6db   :  { %6128 = vmatprep.subr.bf16.mxu1 %v12231_v35 }
 0x6dd   :  { %6016 = vmatpush1.bf16.msra.mxu0 %v12226_v15 }
 0x6de   :  { %6129 = vmatpush1.bf16.msra.mxu1 %v12229_v20  ;;  %6017 = vmatprep.subr.bf16.mxu0 %v12234_v13 }
 0x6df   :  { %6130 = vmatprep.subr.bf16.mxu1 %v12237_v21 }
 0x6e1   :  { %6018 = vmatpush1.bf16.msra.mxu0 %v12232_v27 }
 0x6e2   :  { %6131 = vmatpush1.bf16.msra.mxu1 %v12235_v28 }
 0x6f6   :  { %v5038_v41 = vpop.f32.mrb[16].mxu0  ;;  %v5144_v47 = vpop.f32.mrb[16].mxu1 }
 0x6f7   :  { %v5417_v49 = vmul.f32 %v5380_v31, %v5038_v41  ;;  %v5419_v30 = vmul.f32 %v5388_v36, %v5144_v47  ;;  %v5040_v25 = vpop.f32.mrb[17].mxu0  ;;  %v5146_v9 = vpop.f32.mrb[17].mxu1 }
 0x6f8   :  { %v5418_v60 = vmul.f32 %v5384_v37, %v5040_v25  ;;  %v5420_v51 = vmul.f32 %v5392_v32, %v5146_v9  ;;  %v5042_v52 = vpop.f32.mrb[18].mxu0  ;;  %v5148_v16 = vpop.f32.mrb[18].mxu1 }
 0x6f9   :  { %v5491_v59 = vadd.f32 %v5454_v45, %v5417_v49  ;;  %v5493_v26 = vadd.f32 %v5462_v40, %v5419_v30  ;;  %v5425_v1 = vmul.f32 %v5380_v31, %v5042_v52  ;;  %v5427_v2 = vmul.f32 %v5388_v36, %v5148_v16  ;;  %v5044_v43 = vpop.f32.mrb[19].mxu0  ;;  %v5150_v17 = vpop.f32.mrb[19].mxu1 }
 0x6fa   :  { %v5492_v61 = vadd.f32 %v5458_v48, %v5418_v60  ;;  %v5494_v53 = vadd.f32 %v5466_v46, %v5420_v51  ;;  %v5426_v54 = vmul.f32 %v5384_v37, %v5044_v43  ;;  %v5428_v55 = vmul.f32 %v5392_v32, %v5150_v17 }
 0x6fb   :  { %v5499_v56 = vadd.f32 %v5454_v45, %v5425_v1  ;;  %v5501_v4 = vadd.f32 %v5462_v40, %v5427_v2  ;;  %v5523_v62 = vmax.f32 %v5491_v59, 0.0  ;;  %v5525_v63 = vmax.f32 %v5493_v26, 0.0 }
 0x6fc   :  { %v5500_v57 = vadd.f32 %v5458_v48, %v5426_v54  ;;  %v5502_v58 = vadd.f32 %v5466_v46, %v5428_v55  ;;  %v5526_v5 = vmax.f32 %v5494_v53, 0.0  ;;  %v5524_v8 = vmax.f32 %v5492_v61, 0.0 }
 0x6fd   :  { %v5531_v3 = vmax.f32 %v5499_v56, 0.0  ;;  %v5533_v24 = vmax.f32 %v5501_v4, 0.0 }
 0x6fe   :  { %v5534_v6 = vmax.f32 %v5502_v58, 0.0  ;;  %v5048_v7 = vpop.f32.mrb[20].mxu0  ;;  %v5154_v44 = vpop.f32.mrb[20].mxu1  ;;  %v5532_v10 = vmax.f32 %v5500_v57, 0.0  ;;  %v12246_v57 = vld [vmem:[#allocation20 + $0x24] ss:$16 sps:$4 sm:$0xff]  }
 0x6ff   :  { %v5555_v11 = vpack.c.bf16 %v5531_v3, %v5523_v62  ;;  %v5433_v0 = vmul.f32 %v5380_v31, %v5048_v7  ;;  %v5435_v50 = vmul.f32 %v5388_v36, %v5154_v44  ;;  %v5050_v12 = vpop.f32.mrb[21].mxu0  ;;  %v5156_v14 = vpop.f32.mrb[21].mxu1  ;;  %v5557_v35 = vpack.c.bf16 %v5533_v24, %v5525_v63  ;;  %v12249_v58 = vld [vmem:[#allocation20 + $0x2c] ss:$16 sps:$4 sm:$0xff]   ;;  %v12244_v62 = vld [vmem:[#allocation20 + $0x20] ss:$16 sps:$4 sm:$0xff]  }
 0x700   :  { %v5434_v15 = vmul.f32 %v5384_v37, %v5050_v12  ;;  %v5436_v20 = vmul.f32 %v5392_v32, %v5156_v14  ;;  %v5052_v13 = vpop.f32.mrb[22].mxu0  ;;  %v5158_v21 = vpop.f32.mrb[22].mxu1  ;;  %v5556_v27 = vpack.c.bf16 %v5532_v10, %v5524_v8  ;;  %v5558_v28 = vpack.c.bf16 %v5534_v6, %v5526_v5  ;;  %v12247_v63 = vld [vmem:[#allocation20 + $0x28] ss:$16 sps:$4 sm:$0xff]   ;;  %v12252_v3 = vld [vmem:[#allocation20 + $0x44] ss:$16 sps:$4 sm:$0xff]  }
 0x701   :  { %v5507_v41 = vadd.f32 %v5454_v45, %v5433_v0  ;;  %v5509_v47 = vadd.f32 %v5462_v40, %v5435_v50  ;;  %v5441_v49 = vmul.f32 %v5380_v31, %v5052_v13  ;;  %v5443_v30 = vmul.f32 %v5388_v36, %v5158_v21  ;;  %v5054_v25 = vpop.f32.mrb[23].mxu0  ;;  %v5160_v9 = vpop.f32.mrb[23].mxu1  ;;  %v12255_v24 = vld [vmem:[#allocation20 + $0x4c] ss:$16 sps:$4 sm:$0xff]   ;;  %v12250_v5 = vld [vmem:[#allocation20 + $0x40] ss:$16 sps:$4 sm:$0xff]  }
 0x702   :  { %v5508_v60 = vadd.f32 %v5458_v48, %v5434_v15  ;;  %v5510_v51 = vadd.f32 %v5466_v46, %v5436_v20  ;;  %v5442_v52 = vmul.f32 %v5384_v37, %v5054_v25  ;;  %v5444_v16 = vmul.f32 %v5392_v32, %v5160_v9  ;;  %6019 = vmatprep.mubr.bf16.mxu0 %v5556_v27  ;;  %v12253_v6 = vld [vmem:[#allocation20 + $0x48] ss:$16 sps:$4 sm:$0xff]   ;;  %v12258_v7 = vld [vmem:[#allocation20 + $0x64] ss:$16 sps:$4 sm:$0xff]   ;;  %v12261_v44 = vld [vmem:[#allocation20 + $0x6c] ss:$16 sps:$4 sm:$0xff]  }
 0x703   :  { %v5515_v59 = vadd.f32 %v5454_v45, %v5441_v49  ;;  %v5517_v26 = vadd.f32 %v5462_v40, %v5443_v30  ;;  %6132 = vmatprep.mubr.bf16.mxu1 %v5556_v27  ;;  %6020 = vmatmul.mubr.bf16.vlgmr.msra.gmra.mrb[32].mxu0 %v5555_v11  ;;  %v5541_v43 = vmax.f32 %v5509_v47, 0.0  ;;  %v5539_v61 = vmax.f32 %v5507_v41, 0.0  ;;  %v12238_v45 = vld [vmem:[#allocation20] ss:$16 sps:$4 sm:$0xff]   ;;  %v12240_v40 = vld [vmem:[#allocation20 + $0x4] ss:$16 sps:$4 sm:$0xff]  }
 0x704   :  { %v5516_v1 = vadd.f32 %v5458_v48, %v5442_v52  ;;  %v5518_v2 = vadd.f32 %v5466_v46, %v5444_v16  ;;  %6133 = vmatmul.mubr.bf16.vlgmr.msra.gmra.mrb[32].mxu1 %v5555_v11  ;;  %v5542_v31 = vmax.f32 %v5510_v51, 0.0  ;;  %v5540_v54 = vmax.f32 %v5508_v60, 0.0  ;;  %v12241_v48 = vld [vmem:[#allocation20 + $0x8] ss:$16 sps:$4 sm:$0xff]   ;;  %v12243_v46 = vld [vmem:[#allocation20 + $0xc] ss:$16 sps:$4 sm:$0xff]   ;;  %6737 = vmatprep.subr.bf16.mxu0 %v12240_v40 }
 0x705   :  { %v5549_v17 = vmax.f32 %v5517_v26, 0.0  ;;  %v5547_v53 = vmax.f32 %v5515_v59, 0.0  ;;  %7090 = vmatprep.subr.bf16.mxu1 %v12243_v46  ;;  %6738 = vmatpush1.bf16.msra.mxu0 %v12238_v45  ;;  %v12256_v8 = vld [vmem:[#allocation20 + $0x60] ss:$16 sps:$4 sm:$0xff]   ;;  %v12259_v10 = vld [vmem:[#allocation20 + $0x68] ss:$16 sps:$4 sm:$0xff]   ;;  %v5396_v9 = vrot.slane %v13257_v29, %v13134_v33  ;;  %v5404_v60 = vrot.slane %v13257_v29, %v13137_v34 }
 0x706   :  { %v5550_v36 = vmax.f32 %v5518_v2, 0.0  ;;  %v5548_v55 = vmax.f32 %v5516_v1, 0.0  ;;  %7091 = vmatpush1.bf16.msra.mxu1 %v12241_v48  ;;  %6739 = vmatprep.subr.bf16.mxu0 %v12246_v57  ;;  %v12264_v11 = vld [vmem:[#allocation20 + $0x84] ss:$16 sps:$4 sm:$0xff]   ;;  %v12267_v0 = vld [vmem:[#allocation20 + $0x8c] ss:$16 sps:$4 sm:$0xff]   ;;  %v5400_v51 = vrot.slane %v13257_v29, %v13140_v38  ;;  %v5470_v52 = vrot.slane %v13259_v22, %v13134_v33 }
 0x707   :  { %v5563_v56 = vpack.c.bf16 %v5547_v53, %v5539_v61  ;;  %v5565_v4 = vpack.c.bf16 %v5549_v17, %v5541_v43  ;;  %7092 = vmatprep.subr.bf16.mxu1 %v12249_v58  ;;  %v12262_v50 = vld [vmem:[#allocation20 + $0x80] ss:$16 sps:$4 sm:$0xff]   ;;  %v12265_v12 = vld [vmem:[#allocation20 + $0x88] ss:$16 sps:$4 sm:$0xff]   ;;  %v12270_v14 = vld [vmem:[#allocation20 + $0xa4] ss:$16 sps:$4 sm:$0xff]   ;;  %v5408_v16 = vrot.slane %v13257_v29, %v13143_v39  ;;  %v5478_v26 = vrot.slane %v13259_v22, %v13137_v34 }
 0x708   :  { %v5564_v37 = vpack.c.bf16 %v5548_v55, %v5540_v54  ;;  %v5566_v32 = vpack.c.bf16 %v5550_v36, %v5542_v31  ;;  %v12268_v15 = vld [vmem:[#allocation20 + $0xa0] ss:$16 sps:$4 sm:$0xff]   ;;  %v12271_v20 = vld [vmem:[#allocation20 + $0xa8] ss:$16 sps:$4 sm:$0xff]   ;;  %v12276_v13 = vld [vmem:[#allocation20 + $0xc4] ss:$16 sps:$4 sm:$0xff]   ;;  %v5474_v1 = vrot.slane %v13259_v22, %v13140_v38  ;;  %v5482_v61 = vrot.slane %v13259_v22, %v13143_v39 }
 0x709   :  { %6740 = vmatpush1.bf16.msra.mxu0 %v12244_v62  ;;  %v12279_v21 = vld [vmem:[#allocation20 + $0xcc] ss:$16 sps:$4 sm:$0xff]   ;;  %v12274_v27 = vld [vmem:[#allocation20 + $0xc0] ss:$16 sps:$4 sm:$0xff]   ;;  %v12282_v41 = vld [vmem:[#allocation20 + $0xe4] ss:$16 sps:$4 sm:$0xff]  }
 0x70a   :  { %6029 = vmatprep.mubr.bf16.mxu0 %v5564_v37  ;;  %6142 = vmatprep.mubr.bf16.mxu1 %v5564_v37  ;;  %v12285_v47 = vld [vmem:[#allocation20 + $0xec] ss:$16 sps:$4 sm:$0xff]   ;;  %v12280_v49 = vld [vmem:[#allocation20 + $0xe0] ss:$16 sps:$4 sm:$0xff]   ;;  %v12283_v30 = vld [vmem:[#allocation20 + $0xe8] ss:$16 sps:$4 sm:$0xff]  }
 0x70b   :  { %6030 = vmatmul.mubr.bf16.gmra.mrb[36].mxu0 %v5563_v56  ;;  %7093 = vmatpush1.bf16.msra.mxu1 %v12247_v63  ;;  %v12698_v25 = vmov 0  }
 0x70c   :  { %6143 = vmatmul.mubr.bf16.gmra.mrb[36].mxu1 %v5563_v56  ;;  %6039 = vmatprep.mubr.bf16.mxu0 %v5558_v28 }
 0x70d   :  { %6152 = vmatprep.mubr.bf16.mxu1 %v5558_v28  ;;  %6741 = vmatprep.subr.bf16.mxu0 %v12252_v3  ;;  %v12277_v28 = vld [vmem:[#allocation20 + $0xc8] ss:$16 sps:$4 sm:$0xff]  }
 0x70e   :  { %7094 = vmatprep.subr.bf16.mxu1 %v12255_v24  ;;  %6742 = vmatpush1.bf16.msra.mxu0 %v12250_v5 }
 0x70f   :  { %7095 = vmatpush1.bf16.msra.mxu1 %v12253_v6  ;;  %6743 = vmatprep.subr.bf16.mxu0 %v12258_v7 }
 0x710   :  { %7096 = vmatprep.subr.bf16.mxu1 %v12261_v44  ;;  %12133 = vset.pattern.permute.xlu0 %v12698_v25 }
 0x712   :  { %6744 = vmatpush1.bf16.msra.mxu0 %v12256_v8 }
 0x713   :  { %6040 = vmatmul.mubr.bf16.gmra.mrb[40].mxu0 %v5557_v35  ;;  %7097 = vmatpush1.bf16.msra.mxu1 %v12259_v10 }
 0x714   :  { %6153 = vmatmul.mubr.bf16.gmra.mrb[40].mxu1 %v5557_v35  ;;  %6049 = vmatprep.mubr.bf16.mxu0 %v5566_v32  ;;  %v12273_v35 = vld [vmem:[#allocation20 + $0xac] ss:$16 sps:$4 sm:$0xff]  }
 0x715   :  { %6162 = vmatprep.mubr.bf16.mxu1 %v5566_v32  ;;  %6745 = vmatprep.subr.bf16.mxu0 %v12264_v11 }
 0x716   :  { %7098 = vmatprep.subr.bf16.mxu1 %v12267_v0  ;;  %6746 = vmatpush1.bf16.msra.mxu0 %v12262_v50 }
 0x717   :  { %7099 = vmatpush1.bf16.msra.mxu1 %v12265_v12  ;;  %6747 = vmatprep.subr.bf16.mxu0 %v12270_v14 }
 0x718   :  { %7100 = vmatprep.subr.bf16.mxu1 %v12273_v35 }
 0x71a   :  { %6748 = vmatpush1.bf16.msra.mxu0 %v12268_v15 }
 0x71b   :  { %6050 = vmatmul.mubr.bf16.gmra.mrb[44].mxu0 %v5565_v4  ;;  %7101 = vmatpush1.bf16.msra.mxu1 %v12271_v20 }
 0x71c   :  { %6163 = vmatmul.mubr.bf16.gmra.mrb[44].mxu1 %v5565_v4  ;;  %6749 = vmatprep.subr.bf16.mxu0 %v12276_v13 }
 0x71d   :  { %7102 = vmatprep.subr.bf16.mxu1 %v12279_v21 }
 0x71e   :  { %6750 = vmatpush1.bf16.msra.mxu0 %v12274_v27 }
 0x71f   :  { %7103 = vmatpush1.bf16.msra.mxu1 %v12277_v28  ;;  %6751 = vmatprep.subr.bf16.mxu0 %v12282_v41 }
 0x720   :  { %7104 = vmatprep.subr.bf16.mxu1 %v12285_v47 }
 0x722   :  { %6752 = vmatpush1.bf16.msra.mxu0 %v12280_v49 }
 0x723   :  { %7105 = vmatpush1.bf16.msra.mxu1 %v12283_v30 }
 0x776   :  { %v5250_v59 = vpop.f32.mrb[24].mxu0 }
 0x777   :  { %v5421_v2 = vmul.f32 %v5396_v9, %v5250_v59  ;;  %v5356_v43 = vpop.f32.mrb[24].mxu1  ;;  %v5252_v17 = vpop.f32.mrb[25].mxu0 }
 0x778   :  { %v5423_v53 = vmul.f32 %v5404_v60, %v5356_v43  ;;  %v5422_v31 = vmul.f32 %v5400_v51, %v5252_v17  ;;  %v5358_v36 = vpop.f32.mrb[25].mxu1  ;;  %v5254_v33 = vpop.f32.mrb[26].mxu0 }
 0x779   :  { %v5495_v54 = vadd.f32 %v5470_v52, %v5421_v2  ;;  %v5424_v55 = vmul.f32 %v5408_v16, %v5358_v36  ;;  %v5429_v29 = vmul.f32 %v5396_v9, %v5254_v33  ;;  %v5360_v56 = vpop.f32.mrb[26].mxu1  ;;  %v5256_v4 = vpop.f32.mrb[27].mxu0 }
 0x77a   :  { %v5497_v37 = vadd.f32 %v5478_v26, %v5423_v53  ;;  %v5496_v34 = vadd.f32 %v5474_v1, %v5422_v31  ;;  %v5431_v32 = vmul.f32 %v5404_v60, %v5360_v56  ;;  %v5430_v45 = vmul.f32 %v5400_v51, %v5256_v4  ;;  %v5362_v38 = vpop.f32.mrb[27].mxu1 }
 0x77b   :  { %v5498_v40 = vadd.f32 %v5482_v61, %v5424_v55  ;;  %v5503_v48 = vadd.f32 %v5470_v52, %v5429_v29  ;;  %v5432_v46 = vmul.f32 %v5408_v16, %v5362_v38  ;;  %v5527_v22 = vmax.f32 %v5495_v54, 0.0 }
 0x77c   :  { %v5505_v57 = vadd.f32 %v5478_v26, %v5431_v32  ;;  %v5504_v58 = vadd.f32 %v5474_v1, %v5430_v45  ;;  %v5529_v63 = vmax.f32 %v5497_v37, 0.0  ;;  %v5528_v5 = vmax.f32 %v5496_v34, 0.0 }
 0x77d   :  { %v5506_v39 = vadd.f32 %v5482_v61, %v5432_v46  ;;  %v5535_v62 = vmax.f32 %v5503_v48, 0.0  ;;  %v5530_v7 = vmax.f32 %v5498_v40, 0.0 }
 0x77e   :  { %v5537_v3 = vmax.f32 %v5505_v57, 0.0  ;;  %v5260_v24 = vpop.f32.mrb[28].mxu0  ;;  %v5536_v6 = vmax.f32 %v5504_v58, 0.0 }
 0x77f   :  { %v5538_v44 = vmax.f32 %v5506_v39, 0.0  ;;  %v5437_v8 = vmul.f32 %v5396_v9, %v5260_v24  ;;  %v5366_v10 = vpop.f32.mrb[28].mxu1  ;;  %v5262_v11 = vpop.f32.mrb[29].mxu0  ;;  %v5559_v0 = vpack.c.bf16 %v5535_v62, %v5527_v22 }
 0x780   :  { %v5439_v50 = vmul.f32 %v5404_v60, %v5366_v10  ;;  %v5438_v12 = vmul.f32 %v5400_v51, %v5262_v11  ;;  %v5368_v14 = vpop.f32.mrb[29].mxu1  ;;  %v5264_v35 = vpop.f32.mrb[30].mxu0  ;;  %v5560_v15 = vpack.c.bf16 %v5536_v6, %v5528_v5  ;;  %v5561_v20 = vpack.c.bf16 %v5537_v3, %v5529_v63 }
 0x781   :  { %v5511_v13 = vadd.f32 %v5470_v52, %v5437_v8  ;;  %v5440_v21 = vmul.f32 %v5408_v16, %v5368_v14  ;;  %v5445_v27 = vmul.f32 %v5396_v9, %v5264_v35  ;;  %v5370_v28 = vpop.f32.mrb[30].mxu1  ;;  %v5266_v41 = vpop.f32.mrb[31].mxu0  ;;  %v5562_v47 = vpack.c.bf16 %v5538_v44, %v5530_v7 }
 0x782   :  { %v5513_v49 = vadd.f32 %v5478_v26, %v5439_v50  ;;  %v5512_v30 = vadd.f32 %v5474_v1, %v5438_v12  ;;  %v5447_v59 = vmul.f32 %v5404_v60, %v5370_v28  ;;  %v5446_v2 = vmul.f32 %v5400_v51, %v5266_v41  ;;  %v5372_v43 = vpop.f32.mrb[31].mxu1  ;;  %6059 = vmatprep.mubr.bf16.mxu0 %v5560_v15 }
 0x783   :  { %v5514_v17 = vadd.f32 %v5482_v61, %v5440_v21  ;;  %v5519_v53 = vadd.f32 %v5470_v52, %v5445_v27  ;;  %v5448_v31 = vmul.f32 %v5408_v16, %v5372_v43  ;;  %6172 = vmatprep.mubr.bf16.mxu1 %v5560_v15  ;;  %6060 = vmatmul.mubr.bf16.gmra.mrb[48].mxu0 %v5559_v0  ;;  %v5543_v55 = vmax.f32 %v5511_v13, 0.0  ;;  %v6213_v52 = vld [vmem:[#allocation17] sm:$0xf]  ;;  %v6299_v16 = vld [vmem:[#allocation19] sm:$0xf] }
 0x784   :  { %v5521_v36 = vadd.f32 %v5478_v26, %v5447_v59  ;;  %v5520_v33 = vadd.f32 %v5474_v1, %v5446_v2  ;;  %6173 = vmatmul.mubr.bf16.gmra.mrb[48].mxu1 %v5559_v0  ;;  %v5545_v29 = vmax.f32 %v5513_v49, 0.0  ;;  %v5544_v4 = vmax.f32 %v5512_v30, 0.0 }
 0x785   :  { %v5522_v54 = vadd.f32 %v5482_v61, %v5448_v31  ;;  %v5551_v9 = vmax.f32 %v5519_v53, 0.0  ;;  %v5546_v34 = vmax.f32 %v5514_v17, 0.0  ;;  %v13297_v26 = vrot.slane %v6213_v52, %v13098_v18 }
 0x786   :  { %v5553_v56 = vmax.f32 %v5521_v36, 0.0  ;;  %v5552_v37 = vmax.f32 %v5520_v33, 0.0  ;;  %v13300_v1 = vrot.slane %v6213_v52, %v13101_v19  ;;  %v13303_v61 = vrot.slane %v6213_v52, %v13104_v23 }
 0x787   :  { %v5554_v60 = vmax.f32 %v5522_v54, 0.0  ;;  %v5567_v51 = vpack.c.bf16 %v5551_v9, %v5543_v55  ;;  %v13306_v40 = vrot.slane %v6299_v16, %v13098_v18  ;;  %v13309_v46 = vrot.slane %v6299_v16, %v13101_v19 }
 0x788   :  { %v5568_v32 = vpack.c.bf16 %v5552_v37, %v5544_v4  ;;  %v5569_v45 = vpack.c.bf16 %v5553_v56, %v5545_v29  ;;  %v13312_v57 = vrot.slane %v6299_v16, %v13104_v23  ;;  %v13316_v62 = vrot.slane %v6213_v52, %v13107_v42 }
 0x789   :  { %v5570_v38 = vpack.c.bf16 %v5554_v60, %v5546_v34  ;;  %v13328_v35 = vrot.slane %v6299_v16, %v13107_v42 }
 0x78a   :  { %6069 = vmatprep.mubr.bf16.mxu0 %v5568_v32  ;;  %6182 = vmatprep.mubr.bf16.mxu1 %v5568_v32 }
 0x78b   :  { %6070 = vmatmul.mubr.bf16.gmra.mrb[52].mxu0 %v5567_v51 }
 0x78c   :  { %6183 = vmatmul.mubr.bf16.gmra.mrb[52].mxu1 %v5567_v51  ;;  %6079 = vmatprep.mubr.bf16.mxu0 %v5562_v47 }
 0x78d   :  { %6192 = vmatprep.mubr.bf16.mxu1 %v5562_v47 }
 0x793   :  { %6080 = vmatmul.mubr.bf16.gmra.mrb[56].mxu0 %v5561_v20 }
 0x794   :  { %6193 = vmatmul.mubr.bf16.gmra.mrb[56].mxu1 %v5561_v20  ;;  %6089 = vmatprep.mubr.bf16.mxu0 %v5570_v38 }
 0x795   :  { %6202 = vmatprep.mubr.bf16.mxu1 %v5570_v38 }
 0x79b   :  { %6090 = vmatmul.mubr.bf16.gmra.mrb[60].mxu0 %v5569_v45 }
 0x79c   :  { %6203 = vmatmul.mubr.bf16.gmra.mrb[60].mxu1 %v5569_v45  ;;  %6769 = vmatprep.mubr.bf16.mxu0 %v12698_v25 }
 0x79d   :  { %7122 = vmatprep.mubr.bf16.mxu1 %v12698_v25 }
 0x7d6   :  { %v6021_v48 = vpop.f32.mrb[32].mxu0 }
 0x7d7   :  { %v6235_v58 = vmul.f32 %v13297_v26, %v6021_v48  ;;  %v6134_v39 = vpop.f32.mrb[32].mxu1  ;;  %v6023_v22 = vpop.f32.mrb[33].mxu0 }
 0x7d8   :  { %v6237_v63 = vmul.f32 %v13300_v1, %v6134_v39  ;;  %v6236_v3 = vmul.f32 %v13303_v61, %v6023_v22  ;;  %v6136_v24 = vpop.f32.mrb[33].mxu1  ;;  %v6025_v5 = vpop.f32.mrb[34].mxu0 }
 0x7d9   :  { %v6321_v6 = vadd.f32 %v13306_v40, %v6235_v58  ;;  %v6239_v7 = vmul.f32 %v13297_v26, %v6025_v5  ;;  %v6138_v44 = vpop.f32.mrb[34].mxu1  ;;  %v6027_v8 = vpop.f32.mrb[35].mxu0  ;;  %v6238_v14 = vmul.f32 %v13316_v62, %v6136_v24 }
 0x7da   :  { %v6323_v10 = vadd.f32 %v13309_v46, %v6237_v63  ;;  %v6322_v11 = vadd.f32 %v13312_v57, %v6236_v3  ;;  %v6241_v0 = vmul.f32 %v13300_v1, %v6138_v44  ;;  %v6240_v50 = vmul.f32 %v13303_v61, %v6027_v8  ;;  %v6140_v12 = vpop.f32.mrb[35].mxu1 }
 0x7db   :  { %v6325_v15 = vadd.f32 %v13306_v40, %v6239_v7  ;;  %v6242_v20 = vmul.f32 %v13316_v62, %v6140_v12  ;;  %v6385_v27 = vmax.f32 %v6321_v6, 0.0  ;;  %v6324_v43 = vadd.f32 %v13328_v35, %v6238_v14 }
 0x7dc   :  { %v6327_v13 = vadd.f32 %v13309_v46, %v6241_v0  ;;  %v6326_v21 = vadd.f32 %v13312_v57, %v6240_v50  ;;  %v6387_v47 = vmax.f32 %v6323_v10, 0.0  ;;  %v6386_v59 = vmax.f32 %v6322_v11, 0.0 }
 0x7dd   :  { %v6389_v28 = vmax.f32 %v6325_v15, 0.0  ;;  %v6328_v41 = vadd.f32 %v13328_v35, %v6242_v20  ;;  %v6388_v48 = vmax.f32 %v6324_v43, 0.0 }
 0x7de   :  { %v6391_v49 = vmax.f32 %v6327_v13, 0.0  ;;  %v6031_v30 = vpop.f32.mrb[36].mxu0  ;;  %v6390_v2 = vmax.f32 %v6326_v21, 0.0 }
 0x7df   :  { %v6449_v17 = vpack.c.bf16 %v6389_v28, %v6385_v27  ;;  %v6243_v53 = vmul.f32 %v13297_v26, %v6031_v30  ;;  %v6144_v31 = vpop.f32.mrb[36].mxu1  ;;  %v6033_v36 = vpop.f32.mrb[37].mxu0  ;;  %v6392_v4 = vmax.f32 %v6328_v41, 0.0 }
 0x7e0   :  { %v6245_v33 = vmul.f32 %v13300_v1, %v6144_v31  ;;  %v6244_v54 = vmul.f32 %v13303_v61, %v6033_v36  ;;  %v6146_v55 = vpop.f32.mrb[37].mxu1  ;;  %v6035_v9 = vpop.f32.mrb[38].mxu0  ;;  %v13339_v29 = vpack.c.bf16 %v6390_v2, %v6386_v59  ;;  %v13341_v56 = vpack.c.bf16 %v6391_v49, %v6387_v47 }
 0x7e1   :  { %v6329_v37 = vadd.f32 %v13306_v40, %v6243_v53  ;;  %v6247_v34 = vmul.f32 %v13297_v26, %v6035_v9  ;;  %v6148_v60 = vpop.f32.mrb[38].mxu1  ;;  %v6037_v51 = vpop.f32.mrb[39].mxu0  ;;  %6770 = vmatmul.mubr.bf16.vlgmr.msra.gmra.mrb[64].mxu0 %v6449_v17  ;;  %7123 = vmatmul.mubr.bf16.vlgmr.msra.gmra.mrb[64].mxu1 %v6449_v17  ;;  %v6246_v58 = vmul.f32 %v13316_v62, %v6146_v55 }
 0x7e2   :  { %v6331_v32 = vadd.f32 %v13309_v46, %v6245_v33  ;;  %v6330_v45 = vadd.f32 %v13312_v57, %v6244_v54  ;;  %v6249_v38 = vmul.f32 %v13300_v1, %v6148_v60  ;;  %v6248_v52 = vmul.f32 %v13303_v61, %v6037_v51  ;;  %v6150_v16 = vpop.f32.mrb[39].mxu1  ;;  %6779 = vmatprep.mubr.bf16.mxu0 %v12698_v25 }
 0x7e3   :  { %v6333_v39 = vadd.f32 %v13306_v40, %v6247_v34  ;;  %v6250_v22 = vmul.f32 %v13316_v62, %v6150_v16  ;;  %7132 = vmatprep.mubr.bf16.mxu1 %v12698_v25  ;;  %v6393_v5 = vmax.f32 %v6329_v37, 0.0  ;;  %v13357_v7 = vpack.c.bf16 %v6392_v4, %v6388_v48 }
 0x7e4   :  { %v6335_v63 = vadd.f32 %v13309_v46, %v6249_v38  ;;  %v6334_v3 = vadd.f32 %v13312_v57, %v6248_v52  ;;  %v6395_v44 = vmax.f32 %v6331_v32, 0.0  ;;  %v6394_v11 = vmax.f32 %v6330_v45, 0.0 }
 0x7e5   :  { %v6336_v24 = vadd.f32 %v13328_v35, %v6250_v22  ;;  %v6397_v6 = vmax.f32 %v6333_v39, 0.0  ;;  %v6332_v50 = vadd.f32 %v13328_v35, %v6246_v58 }
 0x7e6   :  { %v6399_v8 = vmax.f32 %v6335_v63, 0.0  ;;  %v6041_v10 = vpop.f32.mrb[40].mxu0  ;;  %v6398_v0 = vmax.f32 %v6334_v3, 0.0 }
 0x7e7   :  { %v6251_v12 = vmul.f32 %v13297_v26, %v6041_v10  ;;  %v6154_v14 = vpop.f32.mrb[40].mxu1  ;;  %v6043_v15 = vpop.f32.mrb[41].mxu0  ;;  %v6453_v20 = vpack.c.bf16 %v6397_v6, %v6393_v5  ;;  %v6400_v49 = vmax.f32 %v6336_v24, 0.0  ;;  %v6396_v54 = vmax.f32 %v6332_v50, 0.0 }
 0x7e8   :  { %v6253_v13 = vmul.f32 %v13300_v1, %v6154_v14  ;;  %v6252_v21 = vmul.f32 %v13303_v61, %v6043_v15  ;;  %v6156_v27 = vpop.f32.mrb[41].mxu1  ;;  %v6045_v28 = vpop.f32.mrb[42].mxu0  ;;  %v13363_v41 = vpack.c.bf16 %v6398_v0, %v6394_v11  ;;  %v13365_v47 = vpack.c.bf16 %v6399_v8, %v6395_v44 }
 0x7e9   :  { %v6337_v30 = vadd.f32 %v13306_v40, %v6251_v12  ;;  %v6255_v59 = vmul.f32 %v13297_v26, %v6045_v28  ;;  %v6158_v2 = vpop.f32.mrb[42].mxu1  ;;  %v6047_v43 = vpop.f32.mrb[43].mxu0  ;;  %6780 = vmatmul.mubr.bf16.gmra.mrb[68].mxu0 %v6453_v20  ;;  %7133 = vmatmul.mubr.bf16.gmra.mrb[68].mxu1 %v6453_v20  ;;  %v6254_v55 = vmul.f32 %v13316_v62, %v6156_v27 }
 0x7ea   :  { %v6339_v17 = vadd.f32 %v13309_v46, %v6253_v13  ;;  %v6338_v53 = vadd.f32 %v13312_v57, %v6252_v21  ;;  %v6257_v31 = vmul.f32 %v13300_v1, %v6158_v2  ;;  %v6256_v36 = vmul.f32 %v13303_v61, %v6047_v43  ;;  %v6160_v33 = vpop.f32.mrb[43].mxu1  ;;  %6789 = vmatprep.mubr.bf16.mxu0 %v12698_v25 }
 0x7eb   :  { %v6341_v9 = vadd.f32 %v13306_v40, %v6255_v59  ;;  %v6258_v4 = vmul.f32 %v13316_v62, %v6160_v33  ;;  %7142 = vmatprep.mubr.bf16.mxu1 %v12698_v25  ;;  %v6401_v51 = vmax.f32 %v6337_v30, 0.0  ;;  %v13381_v45 = vpack.c.bf16 %v6400_v49, %v6396_v54 }
 0x7ec   :  { %v6343_v37 = vadd.f32 %v13309_v46, %v6257_v31  ;;  %v6342_v34 = vadd.f32 %v13312_v57, %v6256_v36  ;;  %v6403_v38 = vmax.f32 %v6339_v17, 0.0  ;;  %v6402_v48 = vmax.f32 %v6338_v53, 0.0 }
 0x7ed   :  { %v6344_v60 = vadd.f32 %v13328_v35, %v6258_v4  ;;  %v6405_v32 = vmax.f32 %v6341_v9, 0.0  ;;  %v6340_v39 = vadd.f32 %v13328_v35, %v6254_v55 }
 0x7ee   :  { %v6407_v52 = vmax.f32 %v6343_v37, 0.0  ;;  %v6051_v16 = vpop.f32.mrb[44].mxu0  ;;  %v6406_v58 = vmax.f32 %v6342_v34, 0.0 }
 0x7ef   :  { %v6259_v22 = vmul.f32 %v13297_v26, %v6051_v16  ;;  %v6164_v63 = vpop.f32.mrb[44].mxu1  ;;  %v6053_v3 = vpop.f32.mrb[45].mxu0  ;;  %v6457_v24 = vpack.c.bf16 %v6405_v32, %v6401_v51  ;;  %v6408_v0 = vmax.f32 %v6344_v60, 0.0  ;;  %v6404_v30 = vmax.f32 %v6340_v39, 0.0 }
 0x7f0   :  { %v6261_v5 = vmul.f32 %v13300_v1, %v6164_v63  ;;  %v6260_v6 = vmul.f32 %v13303_v61, %v6053_v3  ;;  %v6166_v44 = vpop.f32.mrb[45].mxu1  ;;  %v6055_v8 = vpop.f32.mrb[46].mxu0  ;;  %v13387_v10 = vpack.c.bf16 %v6406_v58, %v6402_v48  ;;  %v13389_v11 = vpack.c.bf16 %v6407_v52, %v6403_v38 }
 0x7f1   :  { %v6345_v50 = vadd.f32 %v13306_v40, %v6259_v22  ;;  %v6262_v12 = vmul.f32 %v13316_v62, %v6166_v44  ;;  %v6263_v14 = vmul.f32 %v13297_v26, %v6055_v8  ;;  %v6168_v15 = vpop.f32.mrb[46].mxu1  ;;  %v6057_v20 = vpop.f32.mrb[47].mxu0  ;;  %6790 = vmatmul.mubr.bf16.gmra.mrb[72].mxu0 %v6457_v24  ;;  %7143 = vmatmul.mubr.bf16.gmra.mrb[72].mxu1 %v6457_v24 }
 0x7f2   :  { %v6347_v13 = vadd.f32 %v13309_v46, %v6261_v5  ;;  %v6346_v21 = vadd.f32 %v13312_v57, %v6260_v6  ;;  %v6265_v27 = vmul.f32 %v13300_v1, %v6168_v15  ;;  %v6264_v28 = vmul.f32 %v13303_v61, %v6057_v20  ;;  %v6170_v49 = vpop.f32.mrb[47].mxu1  ;;  %6799 = vmatprep.mubr.bf16.mxu0 %v12698_v25 }
 0x7f3   :  { %v6348_v59 = vadd.f32 %v13328_v35, %v6262_v12  ;;  %v6349_v2 = vadd.f32 %v13306_v40, %v6263_v14  ;;  %v6266_v43 = vmul.f32 %v13316_v62, %v6170_v49  ;;  %7152 = vmatprep.mubr.bf16.mxu1 %v12698_v25  ;;  %v6409_v36 = vmax.f32 %v6345_v50, 0.0 }
 0x7f4   :  { %v6351_v17 = vadd.f32 %v13309_v46, %v6265_v27  ;;  %v6350_v53 = vadd.f32 %v13312_v57, %v6264_v28  ;;  %v13406_v54 = vpack.c.bf16 %v6408_v0, %v6404_v30  ;;  %v6411_v55 = vmax.f32 %v6347_v13, 0.0 }
 0x7f5   :  { %v6352_v31 = vadd.f32 %v13328_v35, %v6266_v43  ;;  %v6413_v33 = vmax.f32 %v6349_v2, 0.0  ;;  %v6410_v4 = vmax.f32 %v6346_v21, 0.0  ;;  %v6412_v34 = vmax.f32 %v6348_v59, 0.0 }
 0x7f6   :  { %v6415_v9 = vmax.f32 %v6351_v17, 0.0  ;;  %v6414_v37 = vmax.f32 %v6350_v53, 0.0 }
 0x7f7   :  { %v6416_v60 = vmax.f32 %v6352_v31, 0.0  ;;  %v6461_v51 = vpack.c.bf16 %v6413_v33, %v6409_v36 }
 0x7f8   :  { %v13408_v32 = vpack.c.bf16 %v6414_v37, %v6410_v4  ;;  %v13410_v38 = vpack.c.bf16 %v6415_v9, %v6411_v55 }
 0x7f9   :  { %6800 = vmatmul.mubr.bf16.gmra.mrb[76].mxu0 %v6461_v51  ;;  %7153 = vmatmul.mubr.bf16.gmra.mrb[76].mxu1 %v6461_v51  ;;  %v13412_v52 = vpack.c.bf16 %v6416_v60, %v6412_v34 }
 0x7fa   :  { %6809 = vmatprep.mubr.bf16.mxu0 %v12698_v25  ;;  %7162 = vmatprep.mubr.bf16.mxu1 %v12698_v25 }
 0x856   :  { %v6061_v16 = vpop.f32.mrb[48].mxu0 }
 0x857   :  { %v6267_v48 = vmul.f32 %v13297_v26, %v6061_v16  ;;  %v6174_v58 = vpop.f32.mrb[48].mxu1  ;;  %v6063_v39 = vpop.f32.mrb[49].mxu0 }
 0x858   :  { %v6269_v22 = vmul.f32 %v13300_v1, %v6174_v58  ;;  %v6268_v63 = vmul.f32 %v13303_v61, %v6063_v39  ;;  %v6176_v3 = vpop.f32.mrb[49].mxu1  ;;  %v6065_v24 = vpop.f32.mrb[50].mxu0 }
 0x859   :  { %v6353_v5 = vadd.f32 %v13306_v40, %v6267_v48  ;;  %v6271_v6 = vmul.f32 %v13297_v26, %v6065_v24  ;;  %v6178_v44 = vpop.f32.mrb[50].mxu1  ;;  %v6067_v8 = vpop.f32.mrb[51].mxu0  ;;  %v6270_v20 = vmul.f32 %v13316_v62, %v6176_v3 }
 0x85a   :  { %v6355_v0 = vadd.f32 %v13309_v46, %v6269_v22  ;;  %v6354_v50 = vadd.f32 %v13312_v57, %v6268_v63  ;;  %v6273_v12 = vmul.f32 %v13300_v1, %v6178_v44  ;;  %v6272_v14 = vmul.f32 %v13303_v61, %v6067_v8  ;;  %v6180_v15 = vpop.f32.mrb[51].mxu1 }
 0x85b   :  { %v6357_v13 = vadd.f32 %v13306_v40, %v6271_v6  ;;  %v6274_v21 = vmul.f32 %v13316_v62, %v6180_v15  ;;  %v6417_v30 = vmax.f32 %v6353_v5, 0.0  ;;  %v6356_v36 = vadd.f32 %v13328_v35, %v6270_v20 }
 0x85c   :  { %v6359_v27 = vadd.f32 %v13309_v46, %v6273_v12  ;;  %v6358_v28 = vadd.f32 %v13312_v57, %v6272_v14  ;;  %v6419_v2 = vmax.f32 %v6355_v0, 0.0  ;;  %v6418_v53 = vmax.f32 %v6354_v50, 0.0 }
 0x85d   :  { %v6360_v49 = vadd.f32 %v13328_v35, %v6274_v21  ;;  %v6421_v59 = vmax.f32 %v6357_v13, 0.0  ;;  %v6420_v0 = vmax.f32 %v6356_v36, 0.0 }
 0x85e   :  { %v6423_v43 = vmax.f32 %v6359_v27, 0.0  ;;  %v6071_v17 = vpop.f32.mrb[52].mxu0  ;;  %v6422_v31 = vmax.f32 %v6358_v28, 0.0 }
 0x85f   :  { %v6275_v33 = vmul.f32 %v13297_v26, %v6071_v17  ;;  %v6184_v55 = vpop.f32.mrb[52].mxu1  ;;  %v6073_v9 = vpop.f32.mrb[53].mxu0  ;;  %v6465_v4 = vpack.c.bf16 %v6421_v59, %v6417_v30  ;;  %v6424_v58 = vmax.f32 %v6360_v49, 0.0 }
 0x860   :  { %v6277_v37 = vmul.f32 %v13300_v1, %v6184_v55  ;;  %v6276_v34 = vmul.f32 %v13303_v61, %v6073_v9  ;;  %v6186_v60 = vpop.f32.mrb[53].mxu1  ;;  %v6075_v51 = vpop.f32.mrb[54].mxu0  ;;  %v13435_v16 = vpack.c.bf16 %v6422_v31, %v6418_v53  ;;  %v13437_v48 = vpack.c.bf16 %v6423_v43, %v6419_v2 }
 0x861   :  { %v6361_v39 = vadd.f32 %v13306_v40, %v6275_v33  ;;  %v6279_v22 = vmul.f32 %v13297_v26, %v6075_v51  ;;  %v6188_v63 = vpop.f32.mrb[54].mxu1  ;;  %v6077_v3 = vpop.f32.mrb[55].mxu0  ;;  %6810 = vmatmul.mubr.bf16.gmra.mrb[80].mxu0 %v6465_v4  ;;  %7163 = vmatmul.mubr.bf16.gmra.mrb[80].mxu1 %v6465_v4  ;;  %v6278_v50 = vmul.f32 %v13316_v62, %v6186_v60 }
 0x862   :  { %v6363_v24 = vadd.f32 %v13309_v46, %v6277_v37  ;;  %v6362_v5 = vadd.f32 %v13312_v57, %v6276_v34  ;;  %v6281_v6 = vmul.f32 %v13300_v1, %v6188_v63  ;;  %v6280_v44 = vmul.f32 %v13303_v61, %v6077_v3  ;;  %v6190_v8 = vpop.f32.mrb[55].mxu1  ;;  %6819 = vmatprep.mubr.bf16.mxu0 %v12698_v25 }
 0x863   :  { %v6365_v12 = vadd.f32 %v13306_v40, %v6279_v22  ;;  %v6282_v14 = vmul.f32 %v13316_v62, %v6190_v8  ;;  %7172 = vmatprep.mubr.bf16.mxu1 %v12698_v25  ;;  %v6425_v21 = vmax.f32 %v6361_v39, 0.0  ;;  %v13453_v28 = vpack.c.bf16 %v6424_v58, %v6420_v0 }
 0x864   :  { %v6367_v15 = vadd.f32 %v13309_v46, %v6281_v6  ;;  %v6366_v20 = vadd.f32 %v13312_v57, %v6280_v44  ;;  %v6427_v49 = vmax.f32 %v6363_v24, 0.0  ;;  %v6426_v2 = vmax.f32 %v6362_v5, 0.0 }
 0x865   :  { %v6368_v13 = vadd.f32 %v13328_v35, %v6282_v14  ;;  %v6429_v27 = vmax.f32 %v6365_v12, 0.0  ;;  %v6364_v17 = vadd.f32 %v13328_v35, %v6278_v50 }
 0x866   :  { %v6431_v30 = vmax.f32 %v6367_v15, 0.0  ;;  %v6081_v59 = vpop.f32.mrb[56].mxu0  ;;  %v6430_v43 = vmax.f32 %v6366_v20, 0.0 }
 0x867   :  { %v6283_v53 = vmul.f32 %v13297_v26, %v6081_v59  ;;  %v6194_v31 = vpop.f32.mrb[56].mxu1  ;;  %v6083_v36 = vpop.f32.mrb[57].mxu0  ;;  %v6469_v33 = vpack.c.bf16 %v6429_v27, %v6425_v21  ;;  %v6432_v51 = vmax.f32 %v6368_v13, 0.0  ;;  %v6428_v8 = vmax.f32 %v6364_v17, 0.0 }
 0x868   :  { %v6285_v55 = vmul.f32 %v13300_v1, %v6194_v31  ;;  %v6284_v9 = vmul.f32 %v13303_v61, %v6083_v36  ;;  %v6196_v4 = vpop.f32.mrb[57].mxu1  ;;  %v6085_v37 = vpop.f32.mrb[58].mxu0  ;;  %v13459_v34 = vpack.c.bf16 %v6430_v43, %v6426_v2  ;;  %v13461_v60 = vpack.c.bf16 %v6431_v30, %v6427_v49 }
 0x869   :  { %v6369_v58 = vadd.f32 %v13306_v40, %v6283_v53  ;;  %v6287_v39 = vmul.f32 %v13297_v26, %v6085_v37  ;;  %v6198_v22 = vpop.f32.mrb[58].mxu1  ;;  %v6087_v63 = vpop.f32.mrb[59].mxu0  ;;  %6820 = vmatmul.mubr.bf16.gmra.mrb[84].mxu0 %v6469_v33  ;;  %7173 = vmatmul.mubr.bf16.gmra.mrb[84].mxu1 %v6469_v33  ;;  %v6286_v0 = vmul.f32 %v13316_v62, %v6196_v4 }
 0x86a   :  { %v6371_v3 = vadd.f32 %v13309_v46, %v6285_v55  ;;  %v6370_v24 = vadd.f32 %v13312_v57, %v6284_v9  ;;  %v6289_v5 = vmul.f32 %v13300_v1, %v6198_v22  ;;  %v6288_v6 = vmul.f32 %v13303_v61, %v6087_v63  ;;  %v6200_v44 = vpop.f32.mrb[59].mxu1  ;;  %6829 = vmatprep.mubr.bf16.mxu0 %v12698_v25 }
 0x86b   :  { %v6373_v50 = vadd.f32 %v13306_v40, %v6287_v39  ;;  %v6290_v12 = vmul.f32 %v13316_v62, %v6200_v44  ;;  %7182 = vmatprep.mubr.bf16.mxu1 %v12698_v25  ;;  %v6433_v13 = vmax.f32 %v6369_v58, 0.0  ;;  %v13477_v27 = vpack.c.bf16 %v6432_v51, %v6428_v8 }
 0x86c   :  { %v6375_v14 = vadd.f32 %v13309_v46, %v6289_v5  ;;  %v6374_v15 = vadd.f32 %v13312_v57, %v6288_v6  ;;  %v6435_v49 = vmax.f32 %v6371_v3, 0.0  ;;  %v6434_v2 = vmax.f32 %v6370_v24, 0.0 }
 0x86d   :  { %v6376_v20 = vadd.f32 %v13328_v35, %v6290_v12  ;;  %v6437_v21 = vmax.f32 %v6373_v50, 0.0  ;;  %v6372_v17 = vadd.f32 %v13328_v35, %v6286_v0 }
 0x86e   :  { %v6439_v30 = vmax.f32 %v6375_v14, 0.0  ;;  %v6091_v59 = vpop.f32.mrb[60].mxu0  ;;  %v6438_v43 = vmax.f32 %v6374_v15, 0.0 }
 0x86f   :  { %v6291_v53 = vmul.f32 %v13297_v26, %v6091_v59  ;;  %v6204_v31 = vpop.f32.mrb[60].mxu1  ;;  %v6093_v36 = vpop.f32.mrb[61].mxu0  ;;  %v6473_v33 = vpack.c.bf16 %v6437_v21, %v6433_v13  ;;  %v6440_v39 = vmax.f32 %v6376_v20, 0.0  ;;  %v6436_v12 = vmax.f32 %v6372_v17, 0.0 }
 0x870   :  { %v6293_v55 = vmul.f32 %v13300_v1, %v6204_v31  ;;  %v6292_v9 = vmul.f32 %v13303_v61, %v6093_v36  ;;  %v6206_v4 = vpop.f32.mrb[61].mxu1  ;;  %v6095_v37 = vpop.f32.mrb[62].mxu0  ;;  %v13483_v51 = vpack.c.bf16 %v6438_v43, %v6434_v2  ;;  %v13485_v58 = vpack.c.bf16 %v6439_v30, %v6435_v49  ;;  %v12290_v36 = vld [vmem:[#allocation25 + $0x20] sm:$0xff]  }
 0x871   :  { %v6377_v22 = vadd.f32 %v13306_v40, %v6291_v53  ;;  %v6294_v63 = vmul.f32 %v13316_v62, %v6206_v4  ;;  %v6295_v3 = vmul.f32 %v13297_v26, %v6095_v37  ;;  %v6208_v24 = vpop.f32.mrb[62].mxu1  ;;  %v6097_v5 = vpop.f32.mrb[63].mxu0  ;;  %6830 = vmatmul.mubr.bf16.gmra.mrb[88].mxu0 %v6473_v33  ;;  %7183 = vmatmul.mubr.bf16.gmra.mrb[88].mxu1 %v6473_v33 }
 0x872   :  { %v6379_v6 = vadd.f32 %v13309_v46, %v6293_v55  ;;  %v6378_v44 = vadd.f32 %v13312_v57, %v6292_v9  ;;  %v6297_v8 = vmul.f32 %v13300_v1, %v6208_v24  ;;  %v6296_v0 = vmul.f32 %v13303_v61, %v6097_v5  ;;  %v6210_v50 = vpop.f32.mrb[63].mxu1  ;;  %6839 = vmatprep.mubr.bf16.mxu0 %v12698_v25 }
 0x873   :  { %v6380_v14 = vadd.f32 %v13328_v35, %v6294_v63  ;;  %v6381_v26 = vadd.f32 %v13306_v40, %v6295_v3  ;;  %v6298_v15 = vmul.f32 %v13316_v62, %v6210_v50  ;;  %7192 = vmatprep.mubr.bf16.mxu1 %v12698_v25  ;;  %v6441_v21 = vmax.f32 %v6377_v22, 0.0 }
 0x874   :  { %v6383_v20 = vadd.f32 %v13309_v46, %v6297_v8  ;;  %v6382_v13 = vadd.f32 %v13312_v57, %v6296_v0  ;;  %v13502_v49 = vpack.c.bf16 %v6440_v39, %v6436_v12  ;;  %v6443_v30 = vmax.f32 %v6379_v6, 0.0  ;;  %v12286_v57 = vld [vmem:[#allocation25] sm:$0xff]  }
 0x875   :  { %v6384_v1 = vadd.f32 %v13328_v35, %v6298_v15  ;;  %v6445_v61 = vmax.f32 %v6381_v26, 0.0  ;;  %v6442_v2 = vmax.f32 %v6378_v44, 0.0  ;;  %v6444_v17 = vmax.f32 %v6380_v14, 0.0  ;;  %11708 = vmatprep.subr.bf16.mxu0 %v12286_v57  ;;  %v12287_v35 = vld [vmem:[#allocation25 + $0x8] sm:$0xff]  }
 0x876   :  { %v6447_v59 = vmax.f32 %v6383_v20, 0.0  ;;  %v6446_v43 = vmax.f32 %v6382_v13, 0.0  ;;  %11709 = vmatpush3.bf16.msra.mxu0 %v12286_v57  ;;  %v12291_v13 = vld [vmem:[#allocation25 + $0x28] sm:$0xff]  }
 0x877   :  { %v6448_v40 = vmax.f32 %v6384_v1, 0.0  ;;  %v6477_v53 = vpack.c.bf16 %v6445_v61, %v6441_v21  ;;  %11710 = vmatprep.subr.bf16.mxu0 %v12287_v35 }
 0x878   :  { %v13504_v62 = vpack.c.bf16 %v6446_v43, %v6442_v2  ;;  %v13506_v31 = vpack.c.bf16 %v6447_v59, %v6443_v30 }
 0x879   :  { %6840 = vmatmul.mubr.bf16.gmra.mrb[92].mxu0 %v6477_v53  ;;  %7193 = vmatmul.mubr.bf16.gmra.mrb[92].mxu1 %v6477_v53  ;;  %v13508_v46 = vpack.c.bf16 %v6448_v40, %v6444_v17 }
 0x87a   :  { %6849 = vmatprep.mubr.bf16.mxu0 %v12698_v25  ;;  %7202 = vmatprep.mubr.bf16.mxu1 %v12698_v25 }
 0x87b   :  { %11711 = vmatpush3.bf16.msra.mxu0 %v12287_v35 }
 0x881   :  { %6850 = vmatmul.mubr.bf16.gmra.mrb[96].mxu0 %v13339_v29  ;;  %7203 = vmatmul.mubr.bf16.gmra.mrb[96].mxu1 %v13339_v29  ;;  %v12288_v29 = vld [vmem:[#allocation25 + $0x10] sm:$0xff]  }
 0x882   :  { %6859 = vmatprep.mubr.bf16.mxu0 %v12698_v25  ;;  %7212 = vmatprep.mubr.bf16.mxu1 %v12698_v25 }
 0x883   :  { %11712 = vmatprep.subr.bf16.mxu0 %v12288_v29 }
 0x884   :  { %11713 = vmatpush3.bf16.msra.mxu0 %v12288_v29  ;;  %v12292_v29 = vld [vmem:[#allocation25 + $0x30] sm:$0xff]  }
 0x889   :  { %6860 = vmatmul.mubr.bf16.gmra.mrb[100].mxu0 %v13363_v41  ;;  %7213 = vmatmul.mubr.bf16.gmra.mrb[100].mxu1 %v13363_v41  ;;  %v12289_v41 = vld [vmem:[#allocation25 + $0x18] sm:$0xff]  }
 0x88a   :  { %6869 = vmatprep.mubr.bf16.mxu0 %v12698_v25  ;;  %7222 = vmatprep.mubr.bf16.mxu1 %v12698_v25 }
 0x88b   :  { %11714 = vmatprep.subr.bf16.mxu0 %v12289_v41 }
 0x88c   :  { %11715 = vmatpush3.bf16.msra.mxu0 %v12289_v41 }
 0x88d   :  { %11716 = vmatprep.subr.bf16.mxu0 %v12290_v36 }
 0x890   :  { %11717 = vmatpush3.bf16.msra.mxu0 %v12290_v36 }
 0x891   :  { %6870 = vmatmul.mubr.bf16.gmra.mrb[104].mxu0 %v13387_v10  ;;  %7223 = vmatmul.mubr.bf16.gmra.mrb[104].mxu1 %v13387_v10  ;;  %v7443_v10 = vld [vmem:[#allocation22] sm:$0xf] }
 0x892   :  { %6879 = vmatprep.mubr.bf16.mxu0 %v12698_v25  ;;  %7232 = vmatprep.mubr.bf16.mxu1 %v12698_v25  ;;  %v13545_v33 = vrot.slane %v7443_v10, %v13104_v23  ;;  %v13548_v55 = vrot.slane %v7443_v10, %v13107_v42 }
 0x893   :  { %11718 = vmatprep.subr.bf16.mxu0 %v12291_v13 }
 0x894   :  { %11719 = vmatpush3.bf16.msra.mxu0 %v12291_v13 }
 0x895   :  { %11720 = vmatprep.subr.bf16.mxu0 %v12292_v29 }
 0x898   :  { %11721 = vmatpush3.bf16.msra.mxu0 %v12292_v29 }
 0x899   :  { %6880 = vmatmul.mubr.bf16.gmra.mrb[108].mxu0 %v13408_v32  ;;  %7233 = vmatmul.mubr.bf16.gmra.mrb[108].mxu1 %v13408_v32  ;;  %v7721_v32 = vld [vmem:[#allocation23] sm:$0xf] }
 0x89a   :  { %6889 = vmatprep.mubr.bf16.mxu0 %v12698_v25  ;;  %7242 = vmatprep.mubr.bf16.mxu1 %v12698_v25  ;;  %v13553_v9 = vrot.slane %v7721_v32, %v13098_v18  ;;  %v13556_v4 = vrot.slane %v7721_v32, %v13101_v19  ;;  %v13559_v39 = vrot.slane %v7721_v32, %v13104_v23 }
 0x89b   :  { %v13562_v22 = vrot.slane %v7721_v32, %v13107_v42 }
 0x8a1   :  { %6890 = vmatmul.mubr.bf16.gmra.mrb[112].mxu0 %v13435_v16  ;;  %7243 = vmatmul.mubr.bf16.gmra.mrb[112].mxu1 %v13435_v16  ;;  %v13537_v16 = vrot.slane %v7443_v10, %v13098_v18 }
 0x8a2   :  { %6899 = vmatprep.mubr.bf16.mxu0 %v12698_v25  ;;  %7252 = vmatprep.mubr.bf16.mxu1 %v12698_v25 }
 0x8a9   :  { %6900 = vmatmul.mubr.bf16.gmra.mrb[116].mxu0 %v13459_v34  ;;  %7253 = vmatmul.mubr.bf16.gmra.mrb[116].mxu1 %v13459_v34  ;;  %v13542_v34 = vrot.slane %v7443_v10, %v13101_v19 }
 0x8aa   :  { %6909 = vmatprep.mubr.bf16.mxu0 %v12698_v25  ;;  %7262 = vmatprep.mubr.bf16.mxu1 %v12698_v25 }
 0x8b1   :  { %6910 = vmatmul.mubr.bf16.gmra.mrb[120].mxu0 %v13483_v51  ;;  %7263 = vmatmul.mubr.bf16.gmra.mrb[120].mxu1 %v13483_v51 }
 0x8b2   :  { %6919 = vmatprep.mubr.bf16.mxu0 %v12698_v25  ;;  %7272 = vmatprep.mubr.bf16.mxu1 %v12698_v25 }
 0x8b4   :  { %v6771_v37 = vpop.f32.mrb[64].mxu0  ;;  %v7124_v51 = vpop.f32.mrb[64].mxu1 }
 0x8b5   :  { %v7465_v63 = vmul.f32 %v13537_v16, %v6771_v37  ;;  %v7467_v3 = vmul.f32 %v13542_v34, %v7124_v51  ;;  %v6773_v24 = vpop.f32.mrb[65].mxu0  ;;  %v7126_v18 = vpop.f32.mrb[65].mxu1 }
 0x8b6   :  { %v7466_v5 = vmul.f32 %v13545_v33, %v6773_v24  ;;  %v7468_v19 = vmul.f32 %v13548_v55, %v7126_v18  ;;  %v6775_v6 = vpop.f32.mrb[66].mxu0  ;;  %v7128_v44 = vpop.f32.mrb[66].mxu1 }
 0x8b7   :  { %v7743_v8 = vadd.f32 %v13553_v9, %v7465_v63  ;;  %v7745_v23 = vadd.f32 %v13556_v4, %v7467_v3  ;;  %v7469_v42 = vmul.f32 %v13537_v16, %v6775_v6  ;;  %v7471_v0 = vmul.f32 %v13542_v34, %v7128_v44  ;;  %v6777_v50 = vpop.f32.mrb[67].mxu0  ;;  %v7130_v12 = vpop.f32.mrb[67].mxu1 }
 0x8b8   :  { %v7744_v14 = vadd.f32 %v13559_v39, %v7466_v5  ;;  %v7746_v26 = vadd.f32 %v13562_v22, %v7468_v19  ;;  %v7470_v15 = vmul.f32 %v13545_v33, %v6777_v50  ;;  %v7472_v20 = vmul.f32 %v13548_v55, %v7130_v12 }
 0x8b9   :  { %v7747_v1 = vadd.f32 %v13553_v9, %v7469_v42  ;;  %v7749_v21 = vadd.f32 %v13556_v4, %v7471_v0  ;;  %6920 = vmatmul.mubr.bf16.gmra.mrb[124].mxu0 %v13504_v62  ;;  %7273 = vmatmul.mubr.bf16.gmra.mrb[124].mxu1 %v13504_v62  ;;  %v8001_v61 = vmax.f32 %v7745_v23, 0.0  ;;  %v7999_v17 = vmax.f32 %v7743_v8, 0.0 }
 0x8ba   :  { %v7748_v30 = vadd.f32 %v13559_v39, %v7470_v15  ;;  %v7750_v59 = vadd.f32 %v13562_v22, %v7472_v20  ;;  %6929 = vmatprep.mubr.bf16.mxu0 %v12698_v25  ;;  %7282 = vmatprep.mubr.bf16.mxu1 %v12698_v25  ;;  %v8002_v2 = vmax.f32 %v7746_v26, 0.0  ;;  %v8000_v62 = vmax.f32 %v7744_v14, 0.0  ;;  %v12293_v20 = vld [vmem:[#allocation25 + $0x38] sm:$0xff]  }
 0x8bb   :  { %v8005_v43 = vmax.f32 %v7749_v21, 0.0  ;;  %v8003_v40 = vmax.f32 %v7747_v1, 0.0  ;;  %11722 = vmatprep.subr.bf16.mxu0 %v12293_v20 }
 0x8bc   :  { %v8006_v53 = vmax.f32 %v7750_v59, 0.0  ;;  %v6781_v57 = vpop.f32.mrb[68].mxu0  ;;  %v7134_v35 = vpop.f32.mrb[68].mxu1  ;;  %v8004_v41 = vmax.f32 %v7748_v30, 0.0  ;;  %11723 = vmatpush3.bf16.msra.mxu0 %v12293_v20 }
 0x8bd   :  { %v7473_v10 = vmul.f32 %v13537_v16, %v6781_v57  ;;  %v7475_v32 = vmul.f32 %v13542_v34, %v7134_v35  ;;  %v6783_v36 = vpop.f32.mrb[69].mxu0  ;;  %v7136_v37 = vpop.f32.mrb[69].mxu1  ;;  %v13586_v51 = vpack.c.bf16 %v8003_v40, %v7999_v17  ;;  %v13588_v63 = vpack.c.bf16 %v8005_v43, %v8001_v61 }
 0x8be   :  { %v7474_v3 = vmul.f32 %v13545_v33, %v6783_v36  ;;  %v7476_v24 = vmul.f32 %v13548_v55, %v7136_v37  ;;  %v6785_v18 = vpop.f32.mrb[70].mxu0  ;;  %v7138_v5 = vpop.f32.mrb[70].mxu1  ;;  %v13592_v19 = vpack.c.bf16 %v8004_v41, %v8000_v62  ;;  %v13594_v6 = vpack.c.bf16 %v8006_v53, %v8002_v2 }
 0x8bf   :  { %v7751_v44 = vadd.f32 %v13553_v9, %v7473_v10  ;;  %v7753_v8 = vadd.f32 %v13556_v4, %v7475_v32  ;;  %v7477_v23 = vmul.f32 %v13537_v16, %v6785_v18  ;;  %v7479_v42 = vmul.f32 %v13542_v34, %v7138_v5  ;;  %v6787_v0 = vpop.f32.mrb[71].mxu0  ;;  %v7140_v50 = vpop.f32.mrb[71].mxu1 }
 0x8c0   :  { %15270 = vst [vmem:[#allocation40_spill] sm:$0xff] %v13594_v6  ;;  %v7752_v12 = vadd.f32 %v13559_v39, %v7474_v3  ;;  %v7754_v14 = vadd.f32 %v13562_v22, %v7476_v24  ;;  %v7478_v26 = vmul.f32 %v13545_v33, %v6787_v0  ;;  %v7480_v15 = vmul.f32 %v13548_v55, %v7140_v50 }
 0x8c1   :  { %v7755_v13 = vadd.f32 %v13553_v9, %v7477_v23  ;;  %v7757_v1 = vadd.f32 %v13556_v4, %v7479_v42  ;;  %6930 = vmatmul.mubr.bf16.gmra.mrb[128].mxu0 %v13341_v56  ;;  %7283 = vmatmul.mubr.bf16.gmra.mrb[128].mxu1 %v13341_v56  ;;  %v8007_v30 = vmax.f32 %v7751_v44, 0.0  ;;  %v8009_v59 = vmax.f32 %v7753_v8, 0.0 }
 0x8c2   :  { %v7756_v21 = vadd.f32 %v13559_v39, %v7478_v26  ;;  %v7758_v61 = vadd.f32 %v13562_v22, %v7480_v15  ;;  %6939 = vmatprep.mubr.bf16.mxu0 %v12698_v25  ;;  %7292 = vmatprep.mubr.bf16.mxu1 %v12698_v25  ;;  %v8008_v17 = vmax.f32 %v7752_v12, 0.0  ;;  %v8010_v40 = vmax.f32 %v7754_v14, 0.0 }
 0x8c3   :  { %v8011_v2 = vmax.f32 %v7755_v13, 0.0  ;;  %v8013_v43 = vmax.f32 %v7757_v1, 0.0 }
 0x8c4   :  { %v8012_v53 = vmax.f32 %v7756_v21, 0.0  ;;  %v8014_v57 = vmax.f32 %v7758_v61, 0.0  ;;  %v6791_v35 = vpop.f32.mrb[72].mxu0  ;;  %v7144_v29 = vpop.f32.mrb[72].mxu1 }
 0x8c5   :  { %v13612_v56 = vpack.c.bf16 %v8011_v2, %v8007_v30  ;;  %v13614_v62 = vpack.c.bf16 %v8013_v43, %v8009_v59  ;;  %v7481_v41 = vmul.f32 %v13537_v16, %v6791_v35  ;;  %v7483_v10 = vmul.f32 %v13542_v34, %v7144_v29  ;;  %v6793_v32 = vpop.f32.mrb[73].mxu0  ;;  %v7146_v36 = vpop.f32.mrb[73].mxu1 }
 0x8c6   :  { %v13618_v37 = vpack.c.bf16 %v8012_v53, %v8008_v17  ;;  %v13620_v3 = vpack.c.bf16 %v8014_v57, %v8010_v40  ;;  %v7482_v24 = vmul.f32 %v13545_v33, %v6793_v32  ;;  %v7484_v18 = vmul.f32 %v13548_v55, %v7146_v36  ;;  %v6795_v5 = vpop.f32.mrb[74].mxu0  ;;  %v7148_v44 = vpop.f32.mrb[74].mxu1 }
 0x8c7   :  { %15271 = vst [vmem:[#allocation41_spill] sm:$0xff] %v13614_v62  ;;  %v7759_v8 = vadd.f32 %v13553_v9, %v7481_v41  ;;  %v7761_v23 = vadd.f32 %v13556_v4, %v7483_v10  ;;  %v7485_v42 = vmul.f32 %v13537_v16, %v6795_v5  ;;  %v7487_v0 = vmul.f32 %v13542_v34, %v7148_v44  ;;  %v6797_v50 = vpop.f32.mrb[75].mxu0  ;;  %v7150_v12 = vpop.f32.mrb[75].mxu1 }
 0x8c8   :  { %15272 = vst [vmem:[#allocation42_spill] sm:$0xff] %v13620_v3  ;;  %v7760_v14 = vadd.f32 %v13559_v39, %v7482_v24  ;;  %v7762_v26 = vadd.f32 %v13562_v22, %v7484_v18  ;;  %v7486_v15 = vmul.f32 %v13545_v33, %v6797_v50  ;;  %v7488_v20 = vmul.f32 %v13548_v55, %v7150_v12 }
 0x8c9   :  { %v7763_v13 = vadd.f32 %v13553_v9, %v7485_v42  ;;  %v7765_v1 = vadd.f32 %v13556_v4, %v7487_v0  ;;  %6940 = vmatmul.mubr.bf16.gmra.mrb[132].mxu0 %v13365_v47  ;;  %7293 = vmatmul.mubr.bf16.gmra.mrb[132].mxu1 %v13365_v47  ;;  %v8017_v30 = vmax.f32 %v7761_v23, 0.0  ;;  %v8015_v2 = vmax.f32 %v7759_v8, 0.0 }
 0x8ca   :  { %v7764_v21 = vadd.f32 %v13559_v39, %v7486_v15  ;;  %v7766_v61 = vadd.f32 %v13562_v22, %v7488_v20  ;;  %6949 = vmatprep.mubr.bf16.mxu0 %v12698_v25  ;;  %7302 = vmatprep.mubr.bf16.mxu1 %v12698_v25  ;;  %v8018_v17 = vmax.f32 %v7762_v26, 0.0  ;;  %v8016_v35 = vmax.f32 %v7760_v14, 0.0 }
 0x8cb   :  { %v8021_v59 = vmax.f32 %v7765_v1, 0.0  ;;  %v8019_v43 = vmax.f32 %v7763_v13, 0.0 }
 0x8cc   :  { %v8022_v40 = vmax.f32 %v7766_v61, 0.0  ;;  %v6801_v53 = vpop.f32.mrb[76].mxu0  ;;  %v7154_v57 = vpop.f32.mrb[76].mxu1  ;;  %v8020_v29 = vmax.f32 %v7764_v21, 0.0 }
 0x8cd   :  { %v7489_v47 = vmul.f32 %v13537_v16, %v6801_v53  ;;  %v7491_v41 = vmul.f32 %v13542_v34, %v7154_v57  ;;  %v6803_v10 = vpop.f32.mrb[77].mxu0  ;;  %v7156_v32 = vpop.f32.mrb[77].mxu1  ;;  %v13642_v36 = vpack.c.bf16 %v8019_v43, %v8015_v2  ;;  %v13644_v24 = vpack.c.bf16 %v8021_v59, %v8017_v30 }
 0x8ce   :  { %v7490_v18 = vmul.f32 %v13545_v33, %v6803_v10  ;;  %v7492_v5 = vmul.f32 %v13548_v55, %v7156_v32  ;;  %v6805_v44 = vpop.f32.mrb[78].mxu0  ;;  %v7158_v8 = vpop.f32.mrb[78].mxu1  ;;  %v13648_v23 = vpack.c.bf16 %v8020_v29, %v8016_v35  ;;  %v13650_v42 = vpack.c.bf16 %v8022_v40, %v8018_v17 }
 0x8cf   :  { %15273 = vst [vmem:[#allocation43_spill] sm:$0xff] %v13644_v24  ;;  %v7767_v0 = vadd.f32 %v13553_v9, %v7489_v47  ;;  %v7769_v50 = vadd.f32 %v13556_v4, %v7491_v41  ;;  %v7493_v12 = vmul.f32 %v13537_v16, %v6805_v44  ;;  %v7495_v14 = vmul.f32 %v13542_v34, %v7158_v8  ;;  %v6807_v26 = vpop.f32.mrb[79].mxu0  ;;  %v7160_v15 = vpop.f32.mrb[79].mxu1 }
 0x8d0   :  { %15274 = vst [vmem:[#allocation44_spill] sm:$0xff] %v13650_v42  ;;  %v7768_v20 = vadd.f32 %v13559_v39, %v7490_v18  ;;  %v7770_v13 = vadd.f32 %v13562_v22, %v7492_v5  ;;  %v7494_v1 = vmul.f32 %v13545_v33, %v6807_v26  ;;  %v7496_v21 = vmul.f32 %v13548_v55, %v7160_v15 }
 0x8d1   :  { %v7771_v61 = vadd.f32 %v13553_v9, %v7493_v12  ;;  %v7773_v30 = vadd.f32 %v13556_v4, %v7495_v14  ;;  %6950 = vmatmul.mubr.bf16.gmra.mrb[136].mxu0 %v13389_v11  ;;  %7303 = vmatmul.mubr.bf16.gmra.mrb[136].mxu1 %v13389_v11  ;;  %v8025_v43 = vmax.f32 %v7769_v50, 0.0  ;;  %v8023_v40 = vmax.f32 %v7767_v0, 0.0 }
 0x8d2   :  { %v7772_v59 = vadd.f32 %v13559_v39, %v7494_v1  ;;  %v7774_v2 = vadd.f32 %v13562_v22, %v7496_v21  ;;  %6959 = vmatprep.mubr.bf16.mxu0 %v12698_v25  ;;  %7312 = vmatprep.mubr.bf16.mxu1 %v12698_v25  ;;  %v8024_v57 = vmax.f32 %v7768_v20, 0.0  ;;  %v8026_v35 = vmax.f32 %v7770_v13, 0.0 }
 0x8d3   :  { %v8029_v17 = vmax.f32 %v7773_v30, 0.0  ;;  %v8027_v53 = vmax.f32 %v7771_v61, 0.0 }
 0x8d4   :  { %v8028_v29 = vmax.f32 %v7772_v59, 0.0  ;;  %v8030_v47 = vmax.f32 %v7774_v2, 0.0 }
 0x8d5   :  { %v13668_v41 = vpack.c.bf16 %v8029_v17, %v8025_v43  ;;  %v13670_v10 = vpack.c.bf16 %v8027_v53, %v8023_v40 }
 0x8d6   :  { %v13672_v11 = vpack.c.bf16 %v8028_v29, %v8024_v57  ;;  %v13674_v32 = vpack.c.bf16 %v8030_v47, %v8026_v35 }
 0x8d7   :  { %15275 = vst [vmem:[#allocation45_spill] sm:$0xff] %v13668_v41 }
 0x8d8   :  { %15276 = vst [vmem:[#allocation46_spill] sm:$0xff] %v13674_v32 }
 0x8d9   :  { %6960 = vmatmul.mubr.bf16.gmra.mrb[140].mxu0 %v13410_v38  ;;  %7313 = vmatmul.mubr.bf16.gmra.mrb[140].mxu1 %v13410_v38 }
 0x8da   :  { %6969 = vmatprep.mubr.bf16.mxu0 %v12698_v25  ;;  %7322 = vmatprep.mubr.bf16.mxu1 %v12698_v25 }
 0x8e1   :  { %6970 = vmatmul.mubr.bf16.gmra.mrb[144].mxu0 %v13437_v48  ;;  %7323 = vmatmul.mubr.bf16.gmra.mrb[144].mxu1 %v13437_v48 }
 0x8e2   :  { %6979 = vmatprep.mubr.bf16.mxu0 %v12698_v25  ;;  %7332 = vmatprep.mubr.bf16.mxu1 %v12698_v25 }
 0x8e9   :  { %6980 = vmatmul.mubr.bf16.gmra.mrb[148].mxu0 %v13461_v60  ;;  %7333 = vmatmul.mubr.bf16.gmra.mrb[148].mxu1 %v13461_v60 }
 0x8ea   :  { %6989 = vmatprep.mubr.bf16.mxu0 %v12698_v25  ;;  %7342 = vmatprep.mubr.bf16.mxu1 %v12698_v25 }
 0x8f1   :  { %6990 = vmatmul.mubr.bf16.gmra.mrb[152].mxu0 %v13485_v58  ;;  %7343 = vmatmul.mubr.bf16.gmra.mrb[152].mxu1 %v13485_v58 }
 0x8f2   :  { %6999 = vmatprep.mubr.bf16.mxu0 %v12698_v25  ;;  %7352 = vmatprep.mubr.bf16.mxu1 %v12698_v25 }
 0x8f9   :  { %7000 = vmatmul.mubr.bf16.gmra.mrb[156].mxu0 %v13506_v31  ;;  %7353 = vmatmul.mubr.bf16.gmra.mrb[156].mxu1 %v13506_v31 }
 0x8fa   :  { %7009 = vmatprep.mubr.bf16.mxu0 %v12698_v25  ;;  %7362 = vmatprep.mubr.bf16.mxu1 %v12698_v25 }
 0x901   :  { %7010 = vmatmul.mubr.bf16.gmra.mrb[160].mxu0 %v13357_v7  ;;  %7363 = vmatmul.mubr.bf16.gmra.mrb[160].mxu1 %v13357_v7 }
 0x902   :  { %7019 = vmatprep.mubr.bf16.mxu0 %v12698_v25  ;;  %7372 = vmatprep.mubr.bf16.mxu1 %v12698_v25 }
 0x909   :  { %7020 = vmatmul.mubr.bf16.gmra.mrb[164].mxu0 %v13381_v45  ;;  %7373 = vmatmul.mubr.bf16.gmra.mrb[164].mxu1 %v13381_v45 }
 0x90a   :  { %7029 = vmatprep.mubr.bf16.mxu0 %v12698_v25  ;;  %7382 = vmatprep.mubr.bf16.mxu1 %v12698_v25 }
 0x911   :  { %7030 = vmatmul.mubr.bf16.gmra.mrb[168].mxu0 %v13406_v54  ;;  %7383 = vmatmul.mubr.bf16.gmra.mrb[168].mxu1 %v13406_v54 }
 0x912   :  { %7039 = vmatprep.mubr.bf16.mxu0 %v12698_v25  ;;  %7392 = vmatprep.mubr.bf16.mxu1 %v12698_v25 }
 0x919   :  { %7040 = vmatmul.mubr.bf16.gmra.mrb[172].mxu0 %v13412_v52  ;;  %7393 = vmatmul.mubr.bf16.gmra.mrb[172].mxu1 %v13412_v52 }
 0x91a   :  { %7049 = vmatprep.mubr.bf16.mxu0 %v12698_v25  ;;  %7402 = vmatprep.mubr.bf16.mxu1 %v12698_v25 }
 0x921   :  { %7050 = vmatmul.mubr.bf16.gmra.mrb[176].mxu0 %v13453_v28  ;;  %7403 = vmatmul.mubr.bf16.gmra.mrb[176].mxu1 %v13453_v28 }
 0x922   :  { %7059 = vmatprep.mubr.bf16.mxu0 %v12698_v25  ;;  %7412 = vmatprep.mubr.bf16.mxu1 %v12698_v25 }
 0x929   :  { %7060 = vmatmul.mubr.bf16.gmra.mrb[180].mxu0 %v13477_v27  ;;  %7413 = vmatmul.mubr.bf16.gmra.mrb[180].mxu1 %v13477_v27 }
 0x92a   :  { %7069 = vmatprep.mubr.bf16.mxu0 %v12698_v25  ;;  %7422 = vmatprep.mubr.bf16.mxu1 %v12698_v25 }
 0x931   :  { %7070 = vmatmul.mubr.bf16.gmra.mrb[184].mxu0 %v13502_v49  ;;  %7423 = vmatmul.mubr.bf16.gmra.mrb[184].mxu1 %v13502_v49 }
 0x932   :  { %7079 = vmatprep.mubr.bf16.mxu0 %v12698_v25  ;;  %7432 = vmatprep.mubr.bf16.mxu1 %v12698_v25 }
 0x934   :  { %v6811_v7 = vpop.f32.mrb[80].mxu0  ;;  %v7164_v45 = vpop.f32.mrb[80].mxu1 }
 0x935   :  { %v7497_v54 = vmul.f32 %v13537_v16, %v6811_v7  ;;  %v7499_v38 = vmul.f32 %v13542_v34, %v7164_v45  ;;  %v6813_v52 = vpop.f32.mrb[81].mxu0  ;;  %v7166_v48 = vpop.f32.mrb[81].mxu1 }
 0x936   :  { %v7498_v28 = vmul.f32 %v13545_v33, %v6813_v52  ;;  %v7500_v60 = vmul.f32 %v13548_v55, %v7166_v48  ;;  %v6815_v27 = vpop.f32.mrb[82].mxu0  ;;  %v7168_v58 = vpop.f32.mrb[82].mxu1 }
 0x937   :  { %v7775_v49 = vadd.f32 %v13553_v9, %v7497_v54  ;;  %v7777_v31 = vadd.f32 %v13556_v4, %v7499_v38  ;;  %v7501_v25 = vmul.f32 %v13537_v16, %v6815_v27  ;;  %v7503_v18 = vmul.f32 %v13542_v34, %v7168_v58  ;;  %v6817_v5 = vpop.f32.mrb[83].mxu0  ;;  %v7170_v44 = vpop.f32.mrb[83].mxu1 }
 0x938   :  { %v7776_v8 = vadd.f32 %v13559_v39, %v7498_v28  ;;  %v7778_v0 = vadd.f32 %v13562_v22, %v7500_v60  ;;  %v7502_v50 = vmul.f32 %v13545_v33, %v6817_v5  ;;  %v7504_v12 = vmul.f32 %v13548_v55, %v7170_v44 }
 0x939   :  { %v7779_v14 = vadd.f32 %v13553_v9, %v7501_v25  ;;  %v7781_v26 = vadd.f32 %v13556_v4, %v7503_v18  ;;  %7080 = vmatmul.mubr.bf16.gmra.mrb[188].mxu0 %v13508_v46  ;;  %7433 = vmatmul.mubr.bf16.gmra.mrb[188].mxu1 %v13508_v46  ;;  %v8033_v13 = vmax.f32 %v7777_v31, 0.0  ;;  %v8031_v21 = vmax.f32 %v7775_v49, 0.0 }
 0x93a   :  { %v7780_v15 = vadd.f32 %v13559_v39, %v7502_v50  ;;  %v7782_v20 = vadd.f32 %v13562_v22, %v7504_v12  ;;  %11724 = vmatprep.mubr.bf16.mxu0 %v13586_v51  ;;  %v8034_v30 = vmax.f32 %v7778_v0, 0.0  ;;  %v8032_v17 = vmax.f32 %v7776_v8, 0.0 }
 0x93b   :  { %v8037_v1 = vmax.f32 %v7781_v26, 0.0  ;;  %v8035_v61 = vmax.f32 %v7779_v14, 0.0 }
 0x93c   :  { %v8038_v59 = vmax.f32 %v7782_v20, 0.0  ;;  %v6821_v2 = vpop.f32.mrb[84].mxu0  ;;  %v7174_v43 = vpop.f32.mrb[84].mxu1  ;;  %v8036_v40 = vmax.f32 %v7780_v15, 0.0 }
 0x93d   :  { %v7505_v53 = vmul.f32 %v13537_v16, %v6821_v2  ;;  %v7507_v46 = vmul.f32 %v13542_v34, %v7174_v43  ;;  %v6823_v57 = vpop.f32.mrb[85].mxu0  ;;  %v7176_v35 = vpop.f32.mrb[85].mxu1  ;;  %v8271_v29 = vpack.c.bf16 %v8035_v61, %v8031_v21  ;;  %v13745_v47 = vpack.c.bf16 %v8037_v1, %v8033_v13 }
 0x93e   :  { %v7506_v51 = vmul.f32 %v13545_v33, %v6823_v57  ;;  %v7508_v7 = vmul.f32 %v13548_v55, %v7176_v35  ;;  %v6825_v45 = vpop.f32.mrb[86].mxu0  ;;  %v7178_v54 = vpop.f32.mrb[86].mxu1  ;;  %v13749_v38 = vpack.c.bf16 %v8036_v40, %v8032_v17  ;;  %v13751_v52 = vpack.c.bf16 %v8038_v59, %v8034_v30 }
 0x93f   :  { %15277 = vst [vmem:[#allocation47_spill] sm:$0xff] %v13745_v47  ;;  %v7783_v48 = vadd.f32 %v13553_v9, %v7505_v53  ;;  %v7785_v28 = vadd.f32 %v13556_v4, %v7507_v46  ;;  %v7509_v60 = vmul.f32 %v13537_v16, %v6825_v45  ;;  %v7511_v27 = vmul.f32 %v13542_v34, %v7178_v54  ;;  %v6827_v58 = vpop.f32.mrb[87].mxu0  ;;  %v7180_v49 = vpop.f32.mrb[87].mxu1 }
 0x940   :  { %15278 = vst [vmem:[#allocation48_spill] sm:$0xff] %v13751_v52  ;;  %v7784_v31 = vadd.f32 %v13559_v39, %v7506_v51  ;;  %v7786_v25 = vadd.f32 %v13562_v22, %v7508_v7  ;;  %v7510_v18 = vmul.f32 %v13545_v33, %v6827_v58  ;;  %v7512_v5 = vmul.f32 %v13548_v55, %v7180_v49 }
 0x941   :  { %v7787_v44 = vadd.f32 %v13553_v9, %v7509_v60  ;;  %v7789_v8 = vadd.f32 %v13556_v4, %v7511_v27  ;;  %11725 = vmatmul.mubr.bf16.vlgmr.msra.gmra.mrb[192].mxu0 %v13612_v56  ;;  %v8041_v12 = vmax.f32 %v7785_v28, 0.0  ;;  %v8039_v26 = vmax.f32 %v7783_v48, 0.0 }
 0x942   :  { %v7788_v0 = vadd.f32 %v13559_v39, %v7510_v18  ;;  %v7790_v50 = vadd.f32 %v13562_v22, %v7512_v5  ;;  %11728 = vmatprep.mubr.bf16.mxu0 %v13642_v36  ;;  %v8040_v20 = vmax.f32 %v7784_v31, 0.0  ;;  %v8042_v13 = vmax.f32 %v7786_v25, 0.0 }
 0x943   :  { %v8045_v14 = vmax.f32 %v7789_v8, 0.0  ;;  %v8043_v15 = vmax.f32 %v7787_v44, 0.0 }
 0x944   :  { %v8044_v1 = vmax.f32 %v7788_v0, 0.0  ;;  %v8046_v21 = vmax.f32 %v7790_v50, 0.0  ;;  %v6831_v61 = vpop.f32.mrb[88].mxu0  ;;  %v7184_v30 = vpop.f32.mrb[88].mxu1 }
 0x945   :  { %v13767_v59 = vpack.c.bf16 %v8045_v14, %v8041_v12  ;;  %v7513_v56 = vmul.f32 %v13537_v16, %v6831_v61  ;;  %v7515_v2 = vmul.f32 %v13542_v34, %v7184_v30  ;;  %v6833_v43 = vpop.f32.mrb[89].mxu0  ;;  %v7186_v17 = vpop.f32.mrb[89].mxu1  ;;  %v8275_v40 = vpack.c.bf16 %v8043_v15, %v8039_v26 }
 0x946   :  { %v13771_v36 = vpack.c.bf16 %v8044_v1, %v8040_v20  ;;  %v13773_v53 = vpack.c.bf16 %v8046_v21, %v8042_v13  ;;  %v7514_v46 = vmul.f32 %v13545_v33, %v6833_v43  ;;  %v7516_v57 = vmul.f32 %v13548_v55, %v7186_v17  ;;  %v6835_v35 = vpop.f32.mrb[90].mxu0  ;;  %v7188_v51 = vpop.f32.mrb[90].mxu1 }
 0x947   :  { %15279 = vst [vmem:[#allocation49_spill] sm:$0xff] %v13767_v59  ;;  %v7791_v7 = vadd.f32 %v13553_v9, %v7513_v56  ;;  %v7793_v45 = vadd.f32 %v13556_v4, %v7515_v2  ;;  %v7517_v54 = vmul.f32 %v13537_v16, %v6835_v35  ;;  %v7519_v48 = vmul.f32 %v13542_v34, %v7188_v51  ;;  %v6837_v28 = vpop.f32.mrb[91].mxu0  ;;  %v7190_v60 = vpop.f32.mrb[91].mxu1 }
 0x948   :  { %15280 = vst [vmem:[#allocation50_spill] sm:$0xff] %v13773_v53  ;;  %v7792_v27 = vadd.f32 %v13559_v39, %v7514_v46  ;;  %v7794_v58 = vadd.f32 %v13562_v22, %v7516_v57  ;;  %v7518_v49 = vmul.f32 %v13545_v33, %v6837_v28  ;;  %v7520_v31 = vmul.f32 %v13548_v55, %v7190_v60 }
 0x949   :  { %v7795_v25 = vadd.f32 %v13553_v9, %v7517_v54  ;;  %v7797_v18 = vadd.f32 %v13556_v4, %v7519_v48  ;;  %11729 = vmatmul.mubr.bf16.gmra.mrb[196].mxu0 %v13670_v10  ;;  %v8049_v8 = vmax.f32 %v7793_v45, 0.0  ;;  %v8047_v50 = vmax.f32 %v7791_v7, 0.0 }
 0x94a   :  { %v7796_v5 = vadd.f32 %v13559_v39, %v7518_v49  ;;  %v7798_v44 = vadd.f32 %v13562_v22, %v7520_v31  ;;  %11732 = vmatprep.mubr.bf16.mxu0 %v8271_v29  ;;  %v8050_v14 = vmax.f32 %v7794_v58, 0.0  ;;  %v8048_v13 = vmax.f32 %v7792_v27, 0.0 }
 0x94b   :  { %v8053_v0 = vmax.f32 %v7797_v18, 0.0  ;;  %v8051_v12 = vmax.f32 %v7795_v25, 0.0 }
 0x94c   :  { %v8054_v26 = vmax.f32 %v7798_v44, 0.0  ;;  %v6841_v15 = vpop.f32.mrb[92].mxu0  ;;  %v7194_v20 = vpop.f32.mrb[92].mxu1  ;;  %v8052_v1 = vmax.f32 %v7796_v5, 0.0 }
 0x94d   :  { %v7521_v21 = vmul.f32 %v13537_v16, %v6841_v15  ;;  %v7523_v61 = vmul.f32 %v13542_v34, %v7194_v20  ;;  %v6843_v10 = vpop.f32.mrb[93].mxu0  ;;  %v7196_v30 = vpop.f32.mrb[93].mxu1  ;;  %v8279_v56 = vpack.c.bf16 %v8051_v12, %v8047_v50  ;;  %v13792_v2 = vpack.c.bf16 %v8053_v0, %v8049_v8 }
 0x94e   :  { %v7522_v29 = vmul.f32 %v13545_v33, %v6843_v10  ;;  %v7524_v43 = vmul.f32 %v13548_v55, %v7196_v30  ;;  %v6845_v17 = vpop.f32.mrb[94].mxu0  ;;  %v7198_v46 = vpop.f32.mrb[94].mxu1  ;;  %v13796_v57 = vpack.c.bf16 %v8052_v1, %v8048_v13  ;;  %v13798_v35 = vpack.c.bf16 %v8054_v26, %v8050_v14 }
 0x94f   :  { %15281 = vst [vmem:[#allocation51_spill] sm:$0xff] %v13792_v2  ;;  %v7799_v51 = vadd.f32 %v13553_v9, %v7521_v21  ;;  %v7801_v7 = vadd.f32 %v13556_v4, %v7523_v61  ;;  %v7525_v45 = vmul.f32 %v13537_v16, %v6845_v17  ;;  %v7527_v54 = vmul.f32 %v13542_v34, %v7198_v46  ;;  %v6847_v48 = vpop.f32.mrb[95].mxu0  ;;  %v7200_v28 = vpop.f32.mrb[95].mxu1 }
 0x950   :  { %15282 = vst [vmem:[#allocation52_spill] sm:$0xff] %v13798_v35  ;;  %v7800_v60 = vadd.f32 %v13559_v39, %v7522_v29  ;;  %v7802_v27 = vadd.f32 %v13562_v22, %v7524_v43  ;;  %v7526_v58 = vmul.f32 %v13545_v33, %v6847_v48  ;;  %v7528_v49 = vmul.f32 %v13548_v55, %v7200_v28 }
 0x951   :  { %v7803_v31 = vadd.f32 %v13553_v9, %v7525_v45  ;;  %v7805_v25 = vadd.f32 %v13556_v4, %v7527_v54  ;;  %11733 = vmatmul.mubr.bf16.gmra.mrb[200].mxu0 %v8275_v40  ;;  %v8057_v44 = vmax.f32 %v7801_v7, 0.0  ;;  %v8055_v0 = vmax.f32 %v7799_v51, 0.0 }
 0x952   :  { %v7804_v18 = vadd.f32 %v13559_v39, %v7526_v58  ;;  %v7806_v5 = vadd.f32 %v13562_v22, %v7528_v49  ;;  %11736 = vmatprep.mubr.bf16.mxu0 %v8279_v56  ;;  %v8056_v12 = vmax.f32 %v7800_v60, 0.0  ;;  %v8058_v14 = vmax.f32 %v7802_v27, 0.0 }
 0x953   :  { %v8061_v8 = vmax.f32 %v7805_v25, 0.0  ;;  %v8059_v50 = vmax.f32 %v7803_v31, 0.0 }
 0x954   :  { %v8060_v26 = vmax.f32 %v7804_v18, 0.0  ;;  %v8062_v15 = vmax.f32 %v7806_v5, 0.0  ;;  %v6851_v20 = vpop.f32.mrb[96].mxu0  ;;  %v7204_v13 = vpop.f32.mrb[96].mxu1 }
 0x955   :  { %v13812_v1 = vpack.c.bf16 %v8061_v8, %v8057_v44  ;;  %v7529_v21 = vmul.f32 %v13537_v16, %v6851_v20  ;;  %v7531_v40 = vmul.f32 %v13542_v34, %v7204_v13  ;;  %v6853_v61 = vpop.f32.mrb[97].mxu0  ;;  %v7206_v10 = vpop.f32.mrb[97].mxu1  ;;  %v8283_v30 = vpack.c.bf16 %v8059_v50, %v8055_v0 }
 0x956   :  { %v13816_v56 = vpack.c.bf16 %v8060_v26, %v8056_v12  ;;  %v13818_v29 = vpack.c.bf16 %v8062_v15, %v8058_v14  ;;  %v7530_v43 = vmul.f32 %v13545_v33, %v6853_v61  ;;  %v7532_v17 = vmul.f32 %v13548_v55, %v7206_v10  ;;  %v6855_v46 = vpop.f32.mrb[98].mxu0  ;;  %v7208_v51 = vpop.f32.mrb[98].mxu1 }
 0x957   :  { %15283 = vst [vmem:[#allocation53_spill] sm:$0xff] %v13812_v1  ;;  %v7807_v7 = vadd.f32 %v13553_v9, %v7529_v21  ;;  %v7809_v45 = vadd.f32 %v13556_v4, %v7531_v40  ;;  %v7533_v54 = vmul.f32 %v13537_v16, %v6855_v46  ;;  %v7535_v48 = vmul.f32 %v13542_v34, %v7208_v51  ;;  %v6857_v28 = vpop.f32.mrb[99].mxu0  ;;  %v7210_v60 = vpop.f32.mrb[99].mxu1 }
 0x958   :  { %15284 = vst [vmem:[#allocation54_spill] sm:$0xff] %v13818_v29  ;;  %v7808_v27 = vadd.f32 %v13559_v39, %v7530_v43  ;;  %v7810_v58 = vadd.f32 %v13562_v22, %v7532_v17  ;;  %v7534_v49 = vmul.f32 %v13545_v33, %v6857_v28  ;;  %v7536_v31 = vmul.f32 %v13548_v55, %v7210_v60 }
 0x959   :  { %v7811_v25 = vadd.f32 %v13553_v9, %v7533_v54  ;;  %v7813_v18 = vadd.f32 %v13556_v4, %v7535_v48  ;;  %11737 = vmatmul.mubr.bf16.gmra.mrb[204].mxu0 %v8283_v30  ;;  %v8065_v8 = vmax.f32 %v7809_v45, 0.0  ;;  %v8063_v50 = vmax.f32 %v7807_v7, 0.0 }
 0x95a   :  { %v7812_v5 = vadd.f32 %v13559_v39, %v7534_v49  ;;  %v7814_v44 = vadd.f32 %v13562_v22, %v7536_v31  ;;  %v8066_v14 = vmax.f32 %v7810_v58, 0.0  ;;  %v8064_v13 = vmax.f32 %v7808_v27, 0.0 }
 0x95b   :  { %v8069_v0 = vmax.f32 %v7813_v18, 0.0  ;;  %v8067_v12 = vmax.f32 %v7811_v25, 0.0 }
 0x95c   :  { %v8070_v26 = vmax.f32 %v7814_v44, 0.0  ;;  %v6861_v15 = vpop.f32.mrb[100].mxu0  ;;  %v7214_v20 = vpop.f32.mrb[100].mxu1  ;;  %v8068_v21 = vmax.f32 %v7812_v5, 0.0 }
 0x95d   :  { %v7537_v40 = vmul.f32 %v13537_v16, %v6861_v15  ;;  %v7539_v61 = vmul.f32 %v13542_v34, %v7214_v20  ;;  %v6863_v10 = vpop.f32.mrb[101].mxu0  ;;  %v7216_v30 = vpop.f32.mrb[101].mxu1  ;;  %v8287_v43 = vpack.c.bf16 %v8067_v12, %v8063_v50  ;;  %v13836_v17 = vpack.c.bf16 %v8069_v0, %v8065_v8 }
 0x95e   :  { %v7538_v46 = vmul.f32 %v13545_v33, %v6863_v10  ;;  %v7540_v51 = vmul.f32 %v13548_v55, %v7216_v30  ;;  %v6865_v7 = vpop.f32.mrb[102].mxu0  ;;  %v7218_v45 = vpop.f32.mrb[102].mxu1  ;;  %v13840_v54 = vpack.c.bf16 %v8068_v21, %v8064_v13  ;;  %v13842_v48 = vpack.c.bf16 %v8070_v26, %v8066_v14 }
 0x95f   :  { %15285 = vst [vmem:[#allocation55_spill] sm:$0xff] %v13836_v17  ;;  %v7815_v28 = vadd.f32 %v13553_v9, %v7537_v40  ;;  %v7817_v60 = vadd.f32 %v13556_v4, %v7539_v61  ;;  %v7541_v27 = vmul.f32 %v13537_v16, %v6865_v7  ;;  %v7543_v58 = vmul.f32 %v13542_v34, %v7218_v45  ;;  %v6867_v49 = vpop.f32.mrb[103].mxu0  ;;  %v7220_v31 = vpop.f32.mrb[103].mxu1 }
 0x960   :  { %15286 = vst [vmem:[#allocation56_spill] sm:$0xff] %v13842_v48  ;;  %11740 = vmatprep.mubr.bf16.mxu0 %v8287_v43  ;;  %v7816_v25 = vadd.f32 %v13559_v39, %v7538_v46  ;;  %v7818_v18 = vadd.f32 %v13562_v22, %v7540_v51  ;;  %v7542_v5 = vmul.f32 %v13545_v33, %v6867_v49 }
 0x961   :  { %v7544_v44 = vmul.f32 %v13548_v55, %v7220_v31  ;;  %v7819_v8 = vadd.f32 %v13553_v9, %v7541_v27  ;;  %v7821_v0 = vadd.f32 %v13556_v4, %v7543_v58  ;;  %v8073_v14 = vmax.f32 %v7817_v60, 0.0 }
 0x962   :  { %v7820_v50 = vadd.f32 %v13559_v39, %v7542_v5  ;;  %v8071_v15 = vmax.f32 %v7815_v28, 0.0  ;;  %v8072_v13 = vmax.f32 %v7816_v25, 0.0  ;;  %v8074_v21 = vmax.f32 %v7818_v18, 0.0 }
 0x963   :  { %v7822_v12 = vadd.f32 %v13562_v22, %v7544_v44  ;;  %v8077_v26 = vmax.f32 %v7821_v0, 0.0  ;;  %v8075_v20 = vmax.f32 %v7819_v8, 0.0 }
 0x964   :  { %v8076_v40 = vmax.f32 %v7820_v50, 0.0  ;;  %v6871_v10 = vpop.f32.mrb[104].mxu0  ;;  %v7224_v30 = vpop.f32.mrb[104].mxu1 }
 0x965   :  { %v8078_v61 = vmax.f32 %v7822_v12, 0.0  ;;  %v13856_v43 = vpack.c.bf16 %v8077_v26, %v8073_v14  ;;  %v7545_v46 = vmul.f32 %v13537_v16, %v6871_v10  ;;  %v7547_v51 = vmul.f32 %v13542_v34, %v7224_v30  ;;  %v6873_v7 = vpop.f32.mrb[105].mxu0  ;;  %v7226_v45 = vpop.f32.mrb[105].mxu1 }
 0x966   :  { %v8291_v27 = vpack.c.bf16 %v8075_v20, %v8071_v15  ;;  %v13860_v58 = vpack.c.bf16 %v8076_v40, %v8072_v13  ;;  %v7546_v28 = vmul.f32 %v13545_v33, %v6873_v7  ;;  %v7548_v49 = vmul.f32 %v13548_v55, %v7226_v45  ;;  %v6875_v31 = vpop.f32.mrb[106].mxu0  ;;  %v7228_v25 = vpop.f32.mrb[106].mxu1 }
 0x967   :  { %15287 = vst [vmem:[#allocation57_spill] sm:$0xff] %v13856_v43  ;;  %v13862_v60 = vpack.c.bf16 %v8078_v61, %v8074_v21  ;;  %v7823_v18 = vadd.f32 %v13553_v9, %v7545_v46  ;;  %v7825_v5 = vadd.f32 %v13556_v4, %v7547_v51  ;;  %v7549_v44 = vmul.f32 %v13537_v16, %v6875_v31  ;;  %v6877_v0 = vpop.f32.mrb[107].mxu0  ;;  %v7230_v50 = vpop.f32.mrb[107].mxu1 }
 0x968   :  { %v7551_v8 = vmul.f32 %v13542_v34, %v7228_v25  ;;  %11741 = vmatmul.mubr.bf16.gmra.mrb[208].mxu0 %v8291_v27  ;;  %v7824_v12 = vadd.f32 %v13559_v39, %v7546_v28  ;;  %v7826_v14 = vadd.f32 %v13562_v22, %v7548_v49  ;;  %v7550_v26 = vmul.f32 %v13545_v33, %v6877_v0 }
 0x969   :  { %15288 = vst [vmem:[#allocation58_spill] sm:$0xff] %v13862_v60  ;;  %v7552_v15 = vmul.f32 %v13548_v55, %v7230_v50  ;;  %v7827_v20 = vadd.f32 %v13553_v9, %v7549_v44  ;;  %v8081_v61 = vmax.f32 %v7825_v5, 0.0  ;;  %v8079_v30 = vmax.f32 %v7823_v18, 0.0 }
 0x96a   :  { %v7829_v13 = vadd.f32 %v13556_v4, %v7551_v8  ;;  %v7828_v21 = vadd.f32 %v13559_v39, %v7550_v26  ;;  %v8082_v51 = vmax.f32 %v7826_v14, 0.0  ;;  %v8080_v28 = vmax.f32 %v7824_v12, 0.0 }
 0x96b   :  { %v7830_v40 = vadd.f32 %v13562_v22, %v7552_v15  ;;  %v8083_v46 = vmax.f32 %v7827_v20, 0.0 }
 0x96c   :  { %v8085_v10 = vmax.f32 %v7829_v13, 0.0  ;;  %v6881_v45 = vpop.f32.mrb[108].mxu0  ;;  %v7234_v27 = vpop.f32.mrb[108].mxu1  ;;  %v8084_v49 = vmax.f32 %v7828_v21, 0.0 }
 0x96d   :  { %v8086_v7 = vmax.f32 %v7830_v40, 0.0  ;;  %v7553_v31 = vmul.f32 %v13537_v16, %v6881_v45  ;;  %v7555_v25 = vmul.f32 %v13542_v34, %v7234_v27  ;;  %v6883_v44 = vpop.f32.mrb[109].mxu0  ;;  %v7236_v8 = vpop.f32.mrb[109].mxu1  ;;  %v8295_v0 = vpack.c.bf16 %v8083_v46, %v8079_v30 }
 0x96e   :  { %v13880_v50 = vpack.c.bf16 %v8085_v10, %v8081_v61  ;;  %v7554_v5 = vmul.f32 %v13545_v33, %v6883_v44  ;;  %v7556_v18 = vmul.f32 %v13548_v55, %v7236_v8  ;;  %v6885_v26 = vpop.f32.mrb[110].mxu0  ;;  %v7238_v14 = vpop.f32.mrb[110].mxu1  ;;  %v13884_v15 = vpack.c.bf16 %v8084_v49, %v8080_v28 }
 0x96f   :  { %v13886_v20 = vpack.c.bf16 %v8086_v7, %v8082_v51  ;;  %v7831_v12 = vadd.f32 %v13553_v9, %v7553_v31  ;;  %v7833_v13 = vadd.f32 %v13556_v4, %v7555_v25  ;;  %v7557_v21 = vmul.f32 %v13537_v16, %v6885_v26  ;;  %v6887_v61 = vpop.f32.mrb[111].mxu0  ;;  %v7240_v10 = vpop.f32.mrb[111].mxu1  ;;  %11744 = vmatprep.mubr.bf16.mxu0 %v8295_v0 }
 0x970   :  { %15289 = vst [vmem:[#allocation59_spill] sm:$0xff] %v13880_v50  ;;  %v7559_v40 = vmul.f32 %v13542_v34, %v7238_v14  ;;  %v7832_v30 = vadd.f32 %v13559_v39, %v7554_v5  ;;  %v7834_v46 = vadd.f32 %v13562_v22, %v7556_v18  ;;  %v7558_v45 = vmul.f32 %v13545_v33, %v6887_v61 }
 0x971   :  { %15290 = vst [vmem:[#allocation60_spill] sm:$0xff] %v13886_v20  ;;  %v7560_v51 = vmul.f32 %v13548_v55, %v7240_v10  ;;  %v7835_v7 = vadd.f32 %v13553_v9, %v7557_v21  ;;  %v8089_v31 = vmax.f32 %v7833_v13, 0.0  ;;  %v8087_v44 = vmax.f32 %v7831_v12, 0.0 }
 0x972   :  { %v7837_v27 = vadd.f32 %v13556_v4, %v7559_v40  ;;  %v7836_v28 = vadd.f32 %v13559_v39, %v7558_v45  ;;  %v8088_v0 = vmax.f32 %v7832_v30, 0.0  ;;  %v8090_v5 = vmax.f32 %v7834_v46, 0.0 }
 0x973   :  { %v7838_v49 = vadd.f32 %v13562_v22, %v7560_v51  ;;  %v8091_v8 = vmax.f32 %v7835_v7, 0.0 }
 0x974   :  { %v8093_v25 = vmax.f32 %v7837_v27, 0.0  ;;  %v8092_v26 = vmax.f32 %v7836_v28, 0.0  ;;  %v6891_v14 = vpop.f32.mrb[112].mxu0  ;;  %v7244_v61 = vpop.f32.mrb[112].mxu1 }
 0x975   :  { %v8094_v18 = vmax.f32 %v7838_v49, 0.0  ;;  %v7561_v21 = vmul.f32 %v13537_v16, %v6891_v14  ;;  %v7563_v40 = vmul.f32 %v13542_v34, %v7244_v61  ;;  %v6893_v10 = vpop.f32.mrb[113].mxu0  ;;  %v7246_v45 = vpop.f32.mrb[113].mxu1  ;;  %v8299_v60 = vpack.c.bf16 %v8091_v8, %v8087_v44 }
 0x976   :  { %v13900_v20 = vpack.c.bf16 %v8093_v25, %v8089_v31  ;;  %v13904_v51 = vpack.c.bf16 %v8092_v26, %v8088_v0  ;;  %v7562_v12 = vmul.f32 %v13545_v33, %v6893_v10  ;;  %v7564_v30 = vmul.f32 %v13548_v55, %v7246_v45  ;;  %v6895_v46 = vpop.f32.mrb[114].mxu0  ;;  %v7248_v7 = vpop.f32.mrb[114].mxu1 }
 0x977   :  { %v13906_v13 = vpack.c.bf16 %v8094_v18, %v8090_v5  ;;  %v7839_v27 = vadd.f32 %v13553_v9, %v7561_v21  ;;  %v7841_v28 = vadd.f32 %v13556_v4, %v7563_v40  ;;  %v7565_v49 = vmul.f32 %v13537_v16, %v6895_v46  ;;  %v6897_v25 = vpop.f32.mrb[115].mxu0  ;;  %v7250_v44 = vpop.f32.mrb[115].mxu1  ;;  %11745 = vmatmul.mubr.bf16.gmra.mrb[212].mxu0 %v8299_v60 }
 0x978   :  { %15291 = vst [vmem:[#allocation61_spill] sm:$0xff] %v13900_v20  ;;  %v7567_v31 = vmul.f32 %v13542_v34, %v7248_v7  ;;  %v7840_v8 = vadd.f32 %v13559_v39, %v7562_v12  ;;  %v7842_v0 = vadd.f32 %v13562_v22, %v7564_v30  ;;  %v7566_v5 = vmul.f32 %v13545_v33, %v6897_v25 }
 0x979   :  { %15292 = vst [vmem:[#allocation62_spill] sm:$0xff] %v13906_v13  ;;  %v7568_v26 = vmul.f32 %v13548_v55, %v7250_v44  ;;  %v7843_v18 = vadd.f32 %v13553_v9, %v7565_v49  ;;  %v8097_v40 = vmax.f32 %v7841_v28, 0.0  ;;  %v8095_v45 = vmax.f32 %v7839_v27, 0.0 }
 0x97a   :  { %v7845_v14 = vadd.f32 %v13556_v4, %v7567_v31  ;;  %v7844_v61 = vadd.f32 %v13559_v39, %v7566_v5  ;;  %v8098_v46 = vmax.f32 %v7842_v0, 0.0  ;;  %v8096_v13 = vmax.f32 %v7840_v8, 0.0 }
 0x97b   :  { %v7846_v21 = vadd.f32 %v13562_v22, %v7568_v26  ;;  %v8099_v60 = vmax.f32 %v7843_v18, 0.0 }
 0x97c   :  { %v8101_v10 = vmax.f32 %v7845_v14, 0.0  ;;  %v6901_v7 = vpop.f32.mrb[116].mxu0  ;;  %v7254_v30 = vpop.f32.mrb[116].mxu1  ;;  %v8100_v25 = vmax.f32 %v7844_v61, 0.0 }
 0x97d   :  { %v8102_v12 = vmax.f32 %v7846_v21, 0.0  ;;  %v7569_v44 = vmul.f32 %v13537_v16, %v6901_v7  ;;  %v7571_v49 = vmul.f32 %v13542_v34, %v7254_v30  ;;  %v6903_v48 = vpop.f32.mrb[117].mxu0  ;;  %v7256_v31 = vpop.f32.mrb[117].mxu1  ;;  %v8303_v29 = vpack.c.bf16 %v8099_v60, %v8095_v45 }
 0x97e   :  { %v13924_v5 = vpack.c.bf16 %v8101_v10, %v8097_v40  ;;  %v7570_v28 = vmul.f32 %v13545_v33, %v6903_v48  ;;  %v7572_v27 = vmul.f32 %v13548_v55, %v7256_v31  ;;  %v6905_v26 = vpop.f32.mrb[118].mxu0  ;;  %v7258_v0 = vpop.f32.mrb[118].mxu1  ;;  %v13928_v18 = vpack.c.bf16 %v8100_v25, %v8096_v13 }
 0x97f   :  { %v13930_v14 = vpack.c.bf16 %v8102_v12, %v8098_v46  ;;  %v7847_v8 = vadd.f32 %v13553_v9, %v7569_v44  ;;  %v7849_v61 = vadd.f32 %v13556_v4, %v7571_v49  ;;  %v7573_v21 = vmul.f32 %v13537_v16, %v6905_v26  ;;  %v6907_v40 = vpop.f32.mrb[119].mxu0  ;;  %v7260_v10 = vpop.f32.mrb[119].mxu1  ;;  %11748 = vmatprep.mubr.bf16.mxu0 %v8303_v29 }
 0x980   :  { %15293 = vst [vmem:[#allocation63_spill] sm:$0xff] %v13924_v5  ;;  %v7575_v45 = vmul.f32 %v13542_v34, %v7258_v0  ;;  %v7848_v48 = vadd.f32 %v13559_v39, %v7570_v28  ;;  %v7850_v60 = vadd.f32 %v13562_v22, %v7572_v27  ;;  %v7574_v13 = vmul.f32 %v13545_v33, %v6907_v40 }
 0x981   :  { %15294 = vst [vmem:[#allocation64_spill] sm:$0xff] %v13930_v14  ;;  %v7576_v46 = vmul.f32 %v13548_v55, %v7260_v10  ;;  %v7851_v12 = vadd.f32 %v13553_v9, %v7573_v21  ;;  %v8105_v44 = vmax.f32 %v7849_v61, 0.0  ;;  %v8103_v31 = vmax.f32 %v7847_v8, 0.0 }
 0x982   :  { %v7853_v7 = vadd.f32 %v13556_v4, %v7575_v45  ;;  %v7852_v30 = vadd.f32 %v13559_v39, %v7574_v13  ;;  %v8104_v26 = vmax.f32 %v7848_v48, 0.0  ;;  %v8106_v28 = vmax.f32 %v7850_v60, 0.0 }
 0x983   :  { %v7854_v25 = vadd.f32 %v13562_v22, %v7576_v46  ;;  %v8107_v29 = vmax.f32 %v7851_v12, 0.0 }
 0x984   :  { %v8109_v49 = vmax.f32 %v7853_v7, 0.0  ;;  %v8108_v0 = vmax.f32 %v7852_v30, 0.0  ;;  %v6911_v14 = vpop.f32.mrb[120].mxu0  ;;  %v7264_v40 = vpop.f32.mrb[120].mxu1 }
 0x985   :  { %v8110_v27 = vmax.f32 %v7854_v25, 0.0  ;;  %v7577_v21 = vmul.f32 %v13537_v16, %v6911_v14  ;;  %v7579_v45 = vmul.f32 %v13542_v34, %v7264_v40  ;;  %v6913_v10 = vpop.f32.mrb[121].mxu0  ;;  %v7266_v13 = vpop.f32.mrb[121].mxu1  ;;  %v8307_v53 = vpack.c.bf16 %v8107_v29, %v8103_v31 }
 0x986   :  { %v13944_v35 = vpack.c.bf16 %v8109_v49, %v8105_v44  ;;  %v13948_v46 = vpack.c.bf16 %v8108_v0, %v8104_v26  ;;  %v7578_v8 = vmul.f32 %v13545_v33, %v6913_v10  ;;  %v7580_v48 = vmul.f32 %v13548_v55, %v7266_v13  ;;  %v6915_v60 = vpop.f32.mrb[122].mxu0  ;;  %v7268_v12 = vpop.f32.mrb[122].mxu1 }
 0x987   :  { %v13950_v61 = vpack.c.bf16 %v8110_v27, %v8106_v28  ;;  %v7855_v7 = vadd.f32 %v13553_v9, %v7577_v21  ;;  %v7857_v30 = vadd.f32 %v13556_v4, %v7579_v45  ;;  %v7581_v14 = vmul.f32 %v13537_v16, %v6915_v60  ;;  %v6917_v44 = vpop.f32.mrb[123].mxu0  ;;  %v7270_v49 = vpop.f32.mrb[123].mxu1  ;;  %11749 = vmatmul.mubr.bf16.gmra.mrb[216].mxu0 %v8307_v53 }
 0x988   :  { %15295 = vst [vmem:[#allocation65_spill] sm:$0xff] %v13944_v35  ;;  %v7583_v25 = vmul.f32 %v13542_v34, %v7268_v12  ;;  %v7856_v31 = vadd.f32 %v13559_v39, %v7578_v8  ;;  %v7858_v29 = vadd.f32 %v13562_v22, %v7580_v48  ;;  %v7582_v26 = vmul.f32 %v13545_v33, %v6917_v44 }
 0x989   :  { %15296 = vst [vmem:[#allocation66_spill] sm:$0xff] %v13950_v61  ;;  %v7584_v28 = vmul.f32 %v13548_v55, %v7270_v49  ;;  %v7859_v0 = vadd.f32 %v13553_v9, %v7581_v14  ;;  %v8113_v45 = vmax.f32 %v7857_v30, 0.0  ;;  %v8111_v13 = vmax.f32 %v7855_v7, 0.0 }
 0x98a   :  { %v7861_v27 = vadd.f32 %v13556_v4, %v7583_v25  ;;  %v7860_v40 = vadd.f32 %v13559_v39, %v7582_v26  ;;  %v8114_v60 = vmax.f32 %v7858_v29, 0.0  ;;  %v8112_v61 = vmax.f32 %v7856_v31, 0.0 }
 0x98b   :  { %v7862_v21 = vadd.f32 %v13562_v22, %v7584_v28  ;;  %v8115_v53 = vmax.f32 %v7859_v0, 0.0 }
 0x98c   :  { %v8117_v10 = vmax.f32 %v7861_v27, 0.0  ;;  %v6921_v12 = vpop.f32.mrb[124].mxu0  ;;  %v7274_v48 = vpop.f32.mrb[124].mxu1  ;;  %v8116_v44 = vmax.f32 %v7860_v40, 0.0 }
 0x98d   :  { %v8118_v8 = vmax.f32 %v7862_v21, 0.0  ;;  %v7585_v49 = vmul.f32 %v13537_v16, %v6921_v12  ;;  %v7587_v14 = vmul.f32 %v13542_v34, %v7274_v48  ;;  %v6923_v52 = vpop.f32.mrb[125].mxu0  ;;  %v7276_v25 = vpop.f32.mrb[125].mxu1  ;;  %v8311_v32 = vpack.c.bf16 %v8115_v53, %v8111_v13 }
 0x98e   :  { %v13968_v26 = vpack.c.bf16 %v8117_v10, %v8113_v45  ;;  %v7586_v30 = vmul.f32 %v13545_v33, %v6923_v52  ;;  %v7588_v7 = vmul.f32 %v13548_v55, %v7276_v25  ;;  %v6925_v28 = vpop.f32.mrb[126].mxu0  ;;  %v7278_v29 = vpop.f32.mrb[126].mxu1  ;;  %v13972_v0 = vpack.c.bf16 %v8116_v44, %v8112_v61 }
 0x98f   :  { %v13974_v27 = vpack.c.bf16 %v8118_v8, %v8114_v60  ;;  %v7863_v31 = vadd.f32 %v13553_v9, %v7585_v49  ;;  %v7865_v40 = vadd.f32 %v13556_v4, %v7587_v14  ;;  %v7589_v21 = vmul.f32 %v13537_v16, %v6925_v28  ;;  %v6927_v45 = vpop.f32.mrb[127].mxu0  ;;  %v7280_v10 = vpop.f32.mrb[127].mxu1  ;;  %11752 = vmatprep.mubr.bf16.mxu0 %v8311_v32 }
 0x990   :  { %15297 = vst [vmem:[#allocation67_spill] sm:$0xff] %v13968_v26  ;;  %v7591_v13 = vmul.f32 %v13542_v34, %v7278_v29  ;;  %v7864_v52 = vadd.f32 %v13559_v39, %v7586_v30  ;;  %v7866_v53 = vadd.f32 %v13562_v22, %v7588_v7  ;;  %v7590_v61 = vmul.f32 %v13545_v33, %v6927_v45 }
 0x991   :  { %15298 = vst [vmem:[#allocation68_spill] sm:$0xff] %v13974_v27  ;;  %v7592_v60 = vmul.f32 %v13548_v55, %v7280_v10  ;;  %v7867_v8 = vadd.f32 %v13553_v9, %v7589_v21  ;;  %v8121_v49 = vmax.f32 %v7865_v40, 0.0  ;;  %v8119_v25 = vmax.f32 %v7863_v31, 0.0 }
 0x992   :  { %v7869_v12 = vadd.f32 %v13556_v4, %v7591_v13  ;;  %v7868_v48 = vadd.f32 %v13559_v39, %v7590_v61  ;;  %v8120_v28 = vmax.f32 %v7864_v52, 0.0  ;;  %v8122_v30 = vmax.f32 %v7866_v53, 0.0 }
 0x993   :  { %v7870_v44 = vadd.f32 %v13562_v22, %v7592_v60  ;;  %v8123_v32 = vmax.f32 %v7867_v8, 0.0 }
 0x994   :  { %v8125_v14 = vmax.f32 %v7869_v12, 0.0  ;;  %v8124_v29 = vmax.f32 %v7868_v48, 0.0  ;;  %v6931_v27 = vpop.f32.mrb[128].mxu0  ;;  %v7284_v45 = vpop.f32.mrb[128].mxu1 }
 0x995   :  { %v8126_v7 = vmax.f32 %v7870_v44, 0.0  ;;  %v7593_v21 = vmul.f32 %v13537_v16, %v6931_v27  ;;  %v7595_v13 = vmul.f32 %v13542_v34, %v7284_v45  ;;  %v6933_v10 = vpop.f32.mrb[129].mxu0  ;;  %v7286_v61 = vpop.f32.mrb[129].mxu1  ;;  %v8315_v3 = vpack.c.bf16 %v8123_v32, %v8119_v25 }
 0x996   :  { %v13988_v42 = vpack.c.bf16 %v8125_v14, %v8121_v49  ;;  %v13992_v60 = vpack.c.bf16 %v8124_v29, %v8120_v28  ;;  %v7594_v31 = vmul.f32 %v13545_v33, %v6933_v10  ;;  %v7596_v52 = vmul.f32 %v13548_v55, %v7286_v61  ;;  %v6935_v53 = vpop.f32.mrb[130].mxu0  ;;  %v7288_v8 = vpop.f32.mrb[130].mxu1 }
 0x997   :  { %v13994_v40 = vpack.c.bf16 %v8126_v7, %v8122_v30  ;;  %v7871_v12 = vadd.f32 %v13553_v9, %v7593_v21  ;;  %v7873_v48 = vadd.f32 %v13556_v4, %v7595_v13  ;;  %v7597_v27 = vmul.f32 %v13537_v16, %v6935_v53  ;;  %v6937_v49 = vpop.f32.mrb[131].mxu0  ;;  %v7290_v14 = vpop.f32.mrb[131].mxu1  ;;  %11753 = vmatmul.mubr.bf16.gmra.mrb[220].mxu0 %v8315_v3 }
 0x998   :  { %15299 = vst [vmem:[#allocation69_spill] sm:$0xff] %v13988_v42  ;;  %v7599_v44 = vmul.f32 %v13542_v34, %v7288_v8  ;;  %v7872_v25 = vadd.f32 %v13559_v39, %v7594_v31  ;;  %v7874_v32 = vadd.f32 %v13562_v22, %v7596_v52  ;;  %v7598_v28 = vmul.f32 %v13545_v33, %v6937_v49 }
 0x999   :  { %15300 = vst [vmem:[#allocation70_spill] sm:$0xff] %v13994_v40  ;;  %v7600_v30 = vmul.f32 %v13548_v55, %v7290_v14  ;;  %v7875_v29 = vadd.f32 %v13553_v9, %v7597_v27  ;;  %v8129_v13 = vmax.f32 %v7873_v48, 0.0  ;;  %v8127_v61 = vmax.f32 %v7871_v12, 0.0 }
 0x99a   :  { %v7877_v7 = vadd.f32 %v13556_v4, %v7599_v44  ;;  %v7876_v45 = vadd.f32 %v13559_v39, %v7598_v28  ;;  %v8130_v53 = vmax.f32 %v7874_v32, 0.0  ;;  %v8128_v40 = vmax.f32 %v7872_v25, 0.0 }
 0x99b   :  { %v7878_v21 = vadd.f32 %v13562_v22, %v7600_v30  ;;  %v8131_v3 = vmax.f32 %v7875_v29, 0.0 }
 0x99c   :  { %v8133_v10 = vmax.f32 %v7877_v7, 0.0  ;;  %v6941_v8 = vpop.f32.mrb[132].mxu0  ;;  %v7294_v52 = vpop.f32.mrb[132].mxu1  ;;  %v8132_v49 = vmax.f32 %v7876_v45, 0.0 }
 0x99d   :  { %v8134_v31 = vmax.f32 %v7878_v21, 0.0  ;;  %v7601_v14 = vmul.f32 %v13537_v16, %v6941_v8  ;;  %v7603_v27 = vmul.f32 %v13542_v34, %v7294_v52  ;;  %v6943_v6 = vpop.f32.mrb[133].mxu0  ;;  %v7296_v44 = vpop.f32.mrb[133].mxu1  ;;  %v8319_v42 = vpack.c.bf16 %v8131_v3, %v8127_v61 }
 0x99e   :  { %v14012_v28 = vpack.c.bf16 %v8133_v10, %v8129_v13  ;;  %v7602_v48 = vmul.f32 %v13545_v33, %v6943_v6  ;;  %v7604_v12 = vmul.f32 %v13548_v55, %v7296_v44  ;;  %v6945_v30 = vpop.f32.mrb[134].mxu0  ;;  %v7298_v32 = vpop.f32.mrb[134].mxu1  ;;  %v14016_v29 = vpack.c.bf16 %v8132_v49, %v8128_v40 }
 0x99f   :  { %v14018_v7 = vpack.c.bf16 %v8134_v31, %v8130_v53  ;;  %v7879_v25 = vadd.f32 %v13553_v9, %v7601_v14  ;;  %v7881_v45 = vadd.f32 %v13556_v4, %v7603_v27  ;;  %v7605_v21 = vmul.f32 %v13537_v16, %v6945_v30  ;;  %v6947_v13 = vpop.f32.mrb[135].mxu0  ;;  %v7300_v10 = vpop.f32.mrb[135].mxu1  ;;  %11756 = vmatprep.mubr.bf16.mxu0 %v8319_v42 }
 0x9a0   :  { %15301 = vst [vmem:[#allocation71_spill] sm:$0xff] %v14012_v28  ;;  %v7607_v61 = vmul.f32 %v13542_v34, %v7298_v32  ;;  %v7880_v6 = vadd.f32 %v13559_v39, %v7602_v48  ;;  %v7882_v3 = vadd.f32 %v13562_v22, %v7604_v12  ;;  %v7606_v40 = vmul.f32 %v13545_v33, %v6947_v13 }
 0x9a1   :  { %15302 = vst [vmem:[#allocation72_spill] sm:$0xff] %v14018_v7  ;;  %v7608_v53 = vmul.f32 %v13548_v55, %v7300_v10  ;;  %v7883_v31 = vadd.f32 %v13553_v9, %v7605_v21  ;;  %v8137_v14 = vmax.f32 %v7881_v45, 0.0  ;;  %v8135_v44 = vmax.f32 %v7879_v25, 0.0 }
 0x9a2   :  { %v7885_v8 = vadd.f32 %v13556_v4, %v7607_v61  ;;  %v7884_v52 = vadd.f32 %v13559_v39, %v7606_v40  ;;  %v8136_v30 = vmax.f32 %v7880_v6, 0.0  ;;  %v8138_v48 = vmax.f32 %v7882_v3, 0.0 }
 0x9a3   :  { %v7886_v49 = vadd.f32 %v13562_v22, %v7608_v53  ;;  %v8139_v42 = vmax.f32 %v7883_v31, 0.0 }
 0x9a4   :  { %v8141_v27 = vmax.f32 %v7885_v8, 0.0  ;;  %v8140_v32 = vmax.f32 %v7884_v52, 0.0  ;;  %v6951_v7 = vpop.f32.mrb[136].mxu0  ;;  %v7304_v13 = vpop.f32.mrb[136].mxu1 }
 0x9a5   :  { %v8142_v12 = vmax.f32 %v7886_v49, 0.0  ;;  %v7609_v21 = vmul.f32 %v13537_v16, %v6951_v7  ;;  %v7611_v61 = vmul.f32 %v13542_v34, %v7304_v13  ;;  %v6953_v10 = vpop.f32.mrb[137].mxu0  ;;  %v7306_v40 = vpop.f32.mrb[137].mxu1  ;;  %v8323_v26 = vpack.c.bf16 %v8139_v42, %v8135_v44 }
 0x9a6   :  { %v14032_v28 = vpack.c.bf16 %v8141_v27, %v8137_v14  ;;  %v14036_v53 = vpack.c.bf16 %v8140_v32, %v8136_v30  ;;  %v7610_v25 = vmul.f32 %v13545_v33, %v6953_v10  ;;  %v7612_v6 = vmul.f32 %v13548_v55, %v7306_v40  ;;  %v6955_v3 = vpop.f32.mrb[138].mxu0  ;;  %v7308_v31 = vpop.f32.mrb[138].mxu1 }
 0x9a7   :  { %v14038_v45 = vpack.c.bf16 %v8142_v12, %v8138_v48  ;;  %v7887_v8 = vadd.f32 %v13553_v9, %v7609_v21  ;;  %v7889_v52 = vadd.f32 %v13556_v4, %v7611_v61  ;;  %v7613_v7 = vmul.f32 %v13537_v16, %v6955_v3  ;;  %v6957_v14 = vpop.f32.mrb[139].mxu0  ;;  %v7310_v27 = vpop.f32.mrb[139].mxu1  ;;  %11757 = vmatmul.mubr.bf16.gmra.mrb[224].mxu0 %v8323_v26 }
 0x9a8   :  { %15303 = vst [vmem:[#allocation73_spill] sm:$0xff] %v14032_v28  ;;  %v7615_v49 = vmul.f32 %v13542_v34, %v7308_v31  ;;  %v7888_v44 = vadd.f32 %v13559_v39, %v7610_v25  ;;  %v7890_v42 = vadd.f32 %v13562_v22, %v7612_v6  ;;  %v7614_v30 = vmul.f32 %v13545_v33, %v6957_v14 }
 0x9a9   :  { %15304 = vst [vmem:[#allocation74_spill] sm:$0xff] %v14038_v45  ;;  %v7616_v48 = vmul.f32 %v13548_v55, %v7310_v27  ;;  %v7891_v32 = vadd.f32 %v13553_v9, %v7613_v7  ;;  %v8145_v61 = vmax.f32 %v7889_v52, 0.0  ;;  %v8143_v40 = vmax.f32 %v7887_v8, 0.0 }
 0x9aa   :  { %v7893_v12 = vadd.f32 %v13556_v4, %v7615_v49  ;;  %v7892_v13 = vadd.f32 %v13559_v39, %v7614_v30  ;;  %v8146_v3 = vmax.f32 %v7890_v42, 0.0  ;;  %v8144_v45 = vmax.f32 %v7888_v44, 0.0 }
 0x9ab   :  { %v7894_v21 = vadd.f32 %v13562_v22, %v7616_v48  ;;  %v8147_v26 = vmax.f32 %v7891_v32, 0.0 }
 0x9ac   :  { %v8149_v10 = vmax.f32 %v7893_v12, 0.0  ;;  %v6961_v31 = vpop.f32.mrb[140].mxu0  ;;  %v7314_v6 = vpop.f32.mrb[140].mxu1  ;;  %v8148_v14 = vmax.f32 %v7892_v13, 0.0 }
 0x9ad   :  { %v8150_v25 = vmax.f32 %v7894_v21, 0.0  ;;  %v7617_v27 = vmul.f32 %v13537_v16, %v6961_v31  ;;  %v7619_v7 = vmul.f32 %v13542_v34, %v7314_v6  ;;  %v6963_v28 = vpop.f32.mrb[141].mxu0  ;;  %v7316_v49 = vpop.f32.mrb[141].mxu1  ;;  %v8327_v35 = vpack.c.bf16 %v8147_v26, %v8143_v40 }
 0x9ae   :  { %v14056_v30 = vpack.c.bf16 %v8149_v10, %v8145_v61  ;;  %v7618_v52 = vmul.f32 %v13545_v33, %v6963_v28  ;;  %v7620_v8 = vmul.f32 %v13548_v55, %v7316_v49  ;;  %v6965_v48 = vpop.f32.mrb[142].mxu0  ;;  %v7318_v42 = vpop.f32.mrb[142].mxu1  ;;  %v14060_v32 = vpack.c.bf16 %v8148_v14, %v8144_v45 }
 0x9af   :  { %v14062_v12 = vpack.c.bf16 %v8150_v25, %v8146_v3  ;;  %v7895_v44 = vadd.f32 %v13553_v9, %v7617_v27  ;;  %v7897_v13 = vadd.f32 %v13556_v4, %v7619_v7  ;;  %v7621_v21 = vmul.f32 %v13537_v16, %v6965_v48  ;;  %v6967_v61 = vpop.f32.mrb[143].mxu0  ;;  %v7320_v10 = vpop.f32.mrb[143].mxu1  ;;  %11760 = vmatprep.mubr.bf16.mxu0 %v8327_v35 }
 0x9b0   :  { %15305 = vst [vmem:[#allocation75_spill] sm:$0xff] %v14056_v30  ;;  %v7623_v40 = vmul.f32 %v13542_v34, %v7318_v42  ;;  %v7896_v28 = vadd.f32 %v13559_v39, %v7618_v52  ;;  %v7898_v26 = vadd.f32 %v13562_v22, %v7620_v8  ;;  %v7622_v45 = vmul.f32 %v13545_v33, %v6967_v61 }
 0x9b1   :  { %15306 = vst [vmem:[#allocation76_spill] sm:$0xff] %v14062_v12  ;;  %v7624_v3 = vmul.f32 %v13548_v55, %v7320_v10  ;;  %v7899_v25 = vadd.f32 %v13553_v9, %v7621_v21  ;;  %v8153_v27 = vmax.f32 %v7897_v13, 0.0  ;;  %v8151_v49 = vmax.f32 %v7895_v44, 0.0 }
 0x9b2   :  { %v7901_v31 = vadd.f32 %v13556_v4, %v7623_v40  ;;  %v7900_v6 = vadd.f32 %v13559_v39, %v7622_v45  ;;  %v8152_v48 = vmax.f32 %v7896_v28, 0.0  ;;  %v8154_v52 = vmax.f32 %v7898_v26, 0.0 }
 0x9b3   :  { %v7902_v14 = vadd.f32 %v13562_v22, %v7624_v3  ;;  %v8155_v35 = vmax.f32 %v7899_v25, 0.0 }
 0x9b4   :  { %v8157_v7 = vmax.f32 %v7901_v31, 0.0  ;;  %v8156_v42 = vmax.f32 %v7900_v6, 0.0  ;;  %v6971_v12 = vpop.f32.mrb[144].mxu0  ;;  %v7324_v61 = vpop.f32.mrb[144].mxu1 }
 0x9b5   :  { %v8158_v8 = vmax.f32 %v7902_v14, 0.0  ;;  %v7625_v21 = vmul.f32 %v13537_v16, %v6971_v12  ;;  %v7627_v40 = vmul.f32 %v13542_v34, %v7324_v61  ;;  %v6973_v10 = vpop.f32.mrb[145].mxu0  ;;  %v7326_v45 = vpop.f32.mrb[145].mxu1  ;;  %v8331_v5 = vpack.c.bf16 %v8155_v35, %v8151_v49 }
 0x9b6   :  { %v14076_v30 = vpack.c.bf16 %v8157_v7, %v8153_v27  ;;  %v14080_v3 = vpack.c.bf16 %v8156_v42, %v8152_v48  ;;  %v7626_v44 = vmul.f32 %v13545_v33, %v6973_v10  ;;  %v7628_v28 = vmul.f32 %v13548_v55, %v7326_v45  ;;  %v6975_v26 = vpop.f32.mrb[146].mxu0  ;;  %v7328_v25 = vpop.f32.mrb[146].mxu1 }
 0x9b7   :  { %v14082_v13 = vpack.c.bf16 %v8158_v8, %v8154_v52  ;;  %v7903_v31 = vadd.f32 %v13553_v9, %v7625_v21  ;;  %v7905_v6 = vadd.f32 %v13556_v4, %v7627_v40  ;;  %v7629_v12 = vmul.f32 %v13537_v16, %v6975_v26  ;;  %v6977_v27 = vpop.f32.mrb[147].mxu0  ;;  %v7330_v7 = vpop.f32.mrb[147].mxu1  ;;  %11761 = vmatmul.mubr.bf16.gmra.mrb[228].mxu0 %v8331_v5 }
 0x9b8   :  { %15307 = vst [vmem:[#allocation77_spill] sm:$0xff] %v14076_v30  ;;  %v7631_v14 = vmul.f32 %v13542_v34, %v7328_v25  ;;  %v7904_v49 = vadd.f32 %v13559_v39, %v7626_v44  ;;  %v7906_v35 = vadd.f32 %v13562_v22, %v7628_v28  ;;  %v7630_v48 = vmul.f32 %v13545_v33, %v6977_v27 }
 0x9b9   :  { %15308 = vst [vmem:[#allocation78_spill] sm:$0xff] %v14082_v13  ;;  %v7632_v52 = vmul.f32 %v13548_v55, %v7330_v7  ;;  %v7907_v42 = vadd.f32 %v13553_v9, %v7629_v12  ;;  %v8161_v40 = vmax.f32 %v7905_v6, 0.0  ;;  %v8159_v45 = vmax.f32 %v7903_v31, 0.0 }
 0x9ba   :  { %v7909_v8 = vadd.f32 %v13556_v4, %v7631_v14  ;;  %v7908_v61 = vadd.f32 %v13559_v39, %v7630_v48  ;;  %v8162_v26 = vmax.f32 %v7906_v35, 0.0  ;;  %v8160_v13 = vmax.f32 %v7904_v49, 0.0 }
 0x9bb   :  { %v7910_v21 = vadd.f32 %v13562_v22, %v7632_v52  ;;  %v8163_v5 = vmax.f32 %v7907_v42, 0.0 }
 0x9bc   :  { %v8165_v10 = vmax.f32 %v7909_v8, 0.0  ;;  %v6981_v25 = vpop.f32.mrb[148].mxu0  ;;  %v7334_v28 = vpop.f32.mrb[148].mxu1  ;;  %v8164_v27 = vmax.f32 %v7908_v61, 0.0 }
 0x9bd   :  { %v8166_v44 = vmax.f32 %v7910_v21, 0.0  ;;  %v7633_v7 = vmul.f32 %v13537_v16, %v6981_v25  ;;  %v7635_v12 = vmul.f32 %v13542_v34, %v7334_v28  ;;  %v6983_v30 = vpop.f32.mrb[149].mxu0  ;;  %v7336_v14 = vpop.f32.mrb[149].mxu1  ;;  %v8335_v20 = vpack.c.bf16 %v8163_v5, %v8159_v45 }
 0x9be   :  { %v14100_v48 = vpack.c.bf16 %v8165_v10, %v8161_v40  ;;  %v7634_v6 = vmul.f32 %v13545_v33, %v6983_v30  ;;  %v7636_v31 = vmul.f32 %v13548_v55, %v7336_v14  ;;  %v6985_v52 = vpop.f32.mrb[150].mxu0  ;;  %v7338_v35 = vpop.f32.mrb[150].mxu1  ;;  %v14104_v42 = vpack.c.bf16 %v8164_v27, %v8160_v13 }
 0x9bf   :  { %v14106_v8 = vpack.c.bf16 %v8166_v44, %v8162_v26  ;;  %v7911_v49 = vadd.f32 %v13553_v9, %v7633_v7  ;;  %v7913_v61 = vadd.f32 %v13556_v4, %v7635_v12  ;;  %v7637_v21 = vmul.f32 %v13537_v16, %v6985_v52  ;;  %v6987_v40 = vpop.f32.mrb[151].mxu0  ;;  %v7340_v10 = vpop.f32.mrb[151].mxu1  ;;  %11764 = vmatprep.mubr.bf16.mxu0 %v8335_v20 }
 0x9c0   :  { %15309 = vst [vmem:[#allocation79_spill] sm:$0xff] %v14100_v48  ;;  %v7639_v45 = vmul.f32 %v13542_v34, %v7338_v35  ;;  %v7912_v30 = vadd.f32 %v13559_v39, %v7634_v6  ;;  %v7914_v5 = vadd.f32 %v13562_v22, %v7636_v31  ;;  %v7638_v13 = vmul.f32 %v13545_v33, %v6987_v40 }
 0x9c1   :  { %15310 = vst [vmem:[#allocation80_spill] sm:$0xff] %v14106_v8  ;;  %v7640_v26 = vmul.f32 %v13548_v55, %v7340_v10  ;;  %v7915_v44 = vadd.f32 %v13553_v9, %v7637_v21  ;;  %v8169_v7 = vmax.f32 %v7913_v61, 0.0  ;;  %v8167_v14 = vmax.f32 %v7911_v49, 0.0 }
 0x9c2   :  { %v7917_v25 = vadd.f32 %v13556_v4, %v7639_v45  ;;  %v7916_v28 = vadd.f32 %v13559_v39, %v7638_v13  ;;  %v8168_v52 = vmax.f32 %v7912_v30, 0.0  ;;  %v8170_v6 = vmax.f32 %v7914_v5, 0.0 }
 0x9c3   :  { %v7918_v27 = vadd.f32 %v13562_v22, %v7640_v26  ;;  %v8171_v20 = vmax.f32 %v7915_v44, 0.0 }
 0x9c4   :  { %v8173_v12 = vmax.f32 %v7917_v25, 0.0  ;;  %v8172_v35 = vmax.f32 %v7916_v28, 0.0  ;;  %v6991_v8 = vpop.f32.mrb[152].mxu0  ;;  %v7344_v40 = vpop.f32.mrb[152].mxu1 }
 0x9c5   :  { %v8174_v31 = vmax.f32 %v7918_v27, 0.0  ;;  %v7641_v21 = vmul.f32 %v13537_v16, %v6991_v8  ;;  %v7643_v45 = vmul.f32 %v13542_v34, %v7344_v40  ;;  %v6993_v10 = vpop.f32.mrb[153].mxu0  ;;  %v7346_v13 = vpop.f32.mrb[153].mxu1  ;;  %v8339_v50 = vpack.c.bf16 %v8171_v20, %v8167_v14 }
 0x9c6   :  { %v14120_v48 = vpack.c.bf16 %v8173_v12, %v8169_v7  ;;  %v14124_v26 = vpack.c.bf16 %v8172_v35, %v8168_v52  ;;  %v7642_v49 = vmul.f32 %v13545_v33, %v6993_v10  ;;  %v7644_v30 = vmul.f32 %v13548_v55, %v7346_v13  ;;  %v6995_v5 = vpop.f32.mrb[154].mxu0  ;;  %v7348_v44 = vpop.f32.mrb[154].mxu1 }
 0x9c7   :  { %v14126_v61 = vpack.c.bf16 %v8174_v31, %v8170_v6  ;;  %v7919_v25 = vadd.f32 %v13553_v9, %v7641_v21  ;;  %v7921_v28 = vadd.f32 %v13556_v4, %v7643_v45  ;;  %v7645_v8 = vmul.f32 %v13537_v16, %v6995_v5  ;;  %v6997_v7 = vpop.f32.mrb[155].mxu0  ;;  %v7350_v12 = vpop.f32.mrb[155].mxu1  ;;  %11765 = vmatmul.mubr.bf16.gmra.mrb[232].mxu0 %v8339_v50 }
 0x9c8   :  { %15311 = vst [vmem:[#allocation81_spill] sm:$0xff] %v14120_v48  ;;  %v7647_v27 = vmul.f32 %v13542_v34, %v7348_v44  ;;  %v7920_v14 = vadd.f32 %v13559_v39, %v7642_v49  ;;  %v7922_v20 = vadd.f32 %v13562_v22, %v7644_v30  ;;  %v7646_v52 = vmul.f32 %v13545_v33, %v6997_v7 }
 0x9c9   :  { %15312 = vst [vmem:[#allocation82_spill] sm:$0xff] %v14126_v61  ;;  %v7648_v6 = vmul.f32 %v13548_v55, %v7350_v12  ;;  %v7923_v35 = vadd.f32 %v13553_v9, %v7645_v8  ;;  %v8177_v45 = vmax.f32 %v7921_v28, 0.0  ;;  %v8175_v13 = vmax.f32 %v7919_v25, 0.0 }
 0x9ca   :  { %v7925_v31 = vadd.f32 %v13556_v4, %v7647_v27  ;;  %v7924_v40 = vadd.f32 %v13559_v39, %v7646_v52  ;;  %v8178_v5 = vmax.f32 %v7922_v20, 0.0  ;;  %v8176_v61 = vmax.f32 %v7920_v14, 0.0 }
 0x9cb   :  { %v7926_v21 = vadd.f32 %v13562_v22, %v7648_v6  ;;  %v8179_v50 = vmax.f32 %v7923_v35, 0.0 }
 0x9cc   :  { %v8181_v10 = vmax.f32 %v7925_v31, 0.0  ;;  %v7001_v44 = vpop.f32.mrb[156].mxu0  ;;  %v7354_v30 = vpop.f32.mrb[156].mxu1  ;;  %v8180_v7 = vmax.f32 %v7924_v40, 0.0 }
 0x9cd   :  { %v8182_v49 = vmax.f32 %v7926_v21, 0.0  ;;  %v7649_v12 = vmul.f32 %v13537_v16, %v7001_v44  ;;  %v7651_v8 = vmul.f32 %v13542_v34, %v7354_v30  ;;  %v7003_v48 = vpop.f32.mrb[157].mxu0  ;;  %v7356_v27 = vpop.f32.mrb[157].mxu1  ;;  %v8343_v43 = vpack.c.bf16 %v8179_v50, %v8175_v13 }
 0x9ce   :  { %v14144_v52 = vpack.c.bf16 %v8181_v10, %v8177_v45  ;;  %v7650_v28 = vmul.f32 %v13545_v33, %v7003_v48  ;;  %v7652_v25 = vmul.f32 %v13548_v55, %v7356_v27  ;;  %v7005_v6 = vpop.f32.mrb[158].mxu0  ;;  %v7358_v20 = vpop.f32.mrb[158].mxu1  ;;  %v14148_v35 = vpack.c.bf16 %v8180_v7, %v8176_v61 }
 0x9cf   :  { %v14150_v31 = vpack.c.bf16 %v8182_v49, %v8178_v5  ;;  %v7927_v14 = vadd.f32 %v13553_v9, %v7649_v12  ;;  %v7929_v40 = vadd.f32 %v13556_v4, %v7651_v8  ;;  %v7653_v21 = vmul.f32 %v13537_v16, %v7005_v6  ;;  %v7007_v45 = vpop.f32.mrb[159].mxu0  ;;  %v7360_v10 = vpop.f32.mrb[159].mxu1  ;;  %11768 = vmatprep.mubr.bf16.mxu0 %v8343_v43 }
 0x9d0   :  { %15313 = vst [vmem:[#allocation83_spill] sm:$0xff] %v14144_v52  ;;  %v7655_v13 = vmul.f32 %v13542_v34, %v7358_v20  ;;  %v7928_v48 = vadd.f32 %v13559_v39, %v7650_v28  ;;  %v7930_v50 = vadd.f32 %v13562_v22, %v7652_v25  ;;  %v7654_v61 = vmul.f32 %v13545_v33, %v7007_v45 }
 0x9d1   :  { %15314 = vst [vmem:[#allocation84_spill] sm:$0xff] %v14150_v31  ;;  %v7656_v5 = vmul.f32 %v13548_v55, %v7360_v10  ;;  %v7931_v49 = vadd.f32 %v13553_v9, %v7653_v21  ;;  %v8185_v12 = vmax.f32 %v7929_v40, 0.0  ;;  %v8183_v27 = vmax.f32 %v7927_v14, 0.0 }
 0x9d2   :  { %v7933_v44 = vadd.f32 %v13556_v4, %v7655_v13  ;;  %v7932_v30 = vadd.f32 %v13559_v39, %v7654_v61  ;;  %v8184_v6 = vmax.f32 %v7928_v48, 0.0  ;;  %v8186_v28 = vmax.f32 %v7930_v50, 0.0 }
 0x9d3   :  { %v7934_v7 = vadd.f32 %v13562_v22, %v7656_v5  ;;  %v8187_v43 = vmax.f32 %v7931_v49, 0.0 }
 0x9d4   :  { %v8189_v8 = vmax.f32 %v7933_v44, 0.0  ;;  %v8188_v20 = vmax.f32 %v7932_v30, 0.0  ;;  %v7011_v31 = vpop.f32.mrb[160].mxu0  ;;  %v7364_v45 = vpop.f32.mrb[160].mxu1 }
 0x9d5   :  { %v8190_v25 = vmax.f32 %v7934_v7, 0.0  ;;  %v7657_v21 = vmul.f32 %v13537_v16, %v7011_v31  ;;  %v7659_v13 = vmul.f32 %v13542_v34, %v7364_v45  ;;  %v7013_v10 = vpop.f32.mrb[161].mxu0  ;;  %v7366_v61 = vpop.f32.mrb[161].mxu1  ;;  %v8347_v17 = vpack.c.bf16 %v8187_v43, %v8183_v27 }
 0x9d6   :  { %v14164_v52 = vpack.c.bf16 %v8189_v8, %v8185_v12  ;;  %v14168_v5 = vpack.c.bf16 %v8188_v20, %v8184_v6  ;;  %v7658_v14 = vmul.f32 %v13545_v33, %v7013_v10  ;;  %v7660_v48 = vmul.f32 %v13548_v55, %v7366_v61  ;;  %v7015_v50 = vpop.f32.mrb[162].mxu0  ;;  %v7368_v49 = vpop.f32.mrb[162].mxu1 }
 0x9d7   :  { %v14170_v40 = vpack.c.bf16 %v8190_v25, %v8186_v28  ;;  %v7935_v44 = vadd.f32 %v13553_v9, %v7657_v21  ;;  %v7937_v30 = vadd.f32 %v13556_v4, %v7659_v13  ;;  %v7661_v31 = vmul.f32 %v13537_v16, %v7015_v50  ;;  %v7017_v12 = vpop.f32.mrb[163].mxu0  ;;  %v7370_v8 = vpop.f32.mrb[163].mxu1  ;;  %11769 = vmatmul.mubr.bf16.gmra.mrb[236].mxu0 %v8347_v17 }
 0x9d8   :  { %15315 = vst [vmem:[#allocation85_spill] sm:$0xff] %v14164_v52  ;;  %v7663_v7 = vmul.f32 %v13542_v34, %v7368_v49  ;;  %v7936_v27 = vadd.f32 %v13559_v39, %v7658_v14  ;;  %v7938_v43 = vadd.f32 %v13562_v22, %v7660_v48  ;;  %v7662_v6 = vmul.f32 %v13545_v33, %v7017_v12 }
 0x9d9   :  { %15316 = vst [vmem:[#allocation86_spill] sm:$0xff] %v14170_v40  ;;  %v7664_v28 = vmul.f32 %v13548_v55, %v7370_v8  ;;  %v7939_v20 = vadd.f32 %v13553_v9, %v7661_v31  ;;  %v8193_v13 = vmax.f32 %v7937_v30, 0.0  ;;  %v8191_v61 = vmax.f32 %v7935_v44, 0.0 }
 0x9da   :  { %v7941_v25 = vadd.f32 %v13556_v4, %v7663_v7  ;;  %v7940_v45 = vadd.f32 %v13559_v39, %v7662_v6  ;;  %v8194_v50 = vmax.f32 %v7938_v43, 0.0  ;;  %v8192_v40 = vmax.f32 %v7936_v27, 0.0 }
 0x9db   :  { %v7942_v21 = vadd.f32 %v13562_v22, %v7664_v28  ;;  %v8195_v17 = vmax.f32 %v7939_v20, 0.0 }
 0x9dc   :  { %v8197_v10 = vmax.f32 %v7941_v25, 0.0  ;;  %v7021_v49 = vpop.f32.mrb[164].mxu0  ;;  %v7374_v48 = vpop.f32.mrb[164].mxu1  ;;  %v8196_v12 = vmax.f32 %v7940_v45, 0.0 }
 0x9dd   :  { %v8198_v14 = vmax.f32 %v7942_v21, 0.0  ;;  %v7665_v8 = vmul.f32 %v13537_v16, %v7021_v49  ;;  %v7667_v31 = vmul.f32 %v13542_v34, %v7374_v48  ;;  %v7023_v52 = vpop.f32.mrb[165].mxu0  ;;  %v7376_v7 = vpop.f32.mrb[165].mxu1  ;;  %v8351_v1 = vpack.c.bf16 %v8195_v17, %v8191_v61 }
 0x9de   :  { %v14188_v6 = vpack.c.bf16 %v8197_v10, %v8193_v13  ;;  %v7666_v30 = vmul.f32 %v13545_v33, %v7023_v52  ;;  %v7668_v44 = vmul.f32 %v13548_v55, %v7376_v7  ;;  %v7025_v28 = vpop.f32.mrb[166].mxu0  ;;  %v7378_v43 = vpop.f32.mrb[166].mxu1  ;;  %v14192_v20 = vpack.c.bf16 %v8196_v12, %v8192_v40 }
 0x9df   :  { %v14194_v25 = vpack.c.bf16 %v8198_v14, %v8194_v50  ;;  %v7943_v27 = vadd.f32 %v13553_v9, %v7665_v8  ;;  %v7945_v45 = vadd.f32 %v13556_v4, %v7667_v31  ;;  %v7669_v21 = vmul.f32 %v13537_v16, %v7025_v28  ;;  %v7027_v13 = vpop.f32.mrb[167].mxu0  ;;  %v7380_v10 = vpop.f32.mrb[167].mxu1  ;;  %11772 = vmatprep.mubr.bf16.mxu0 %v8351_v1 }
 0x9e0   :  { %15317 = vst [vmem:[#allocation87_spill] sm:$0xff] %v14188_v6  ;;  %v7671_v61 = vmul.f32 %v13542_v34, %v7378_v43  ;;  %v7944_v52 = vadd.f32 %v13559_v39, %v7666_v30  ;;  %v7946_v17 = vadd.f32 %v13562_v22, %v7668_v44  ;;  %v7670_v40 = vmul.f32 %v13545_v33, %v7027_v13 }
 0x9e1   :  { %15318 = vst [vmem:[#allocation88_spill] sm:$0xff] %v14194_v25  ;;  %v7672_v50 = vmul.f32 %v13548_v55, %v7380_v10  ;;  %v7947_v14 = vadd.f32 %v13553_v9, %v7669_v21  ;;  %v8201_v8 = vmax.f32 %v7945_v45, 0.0  ;;  %v8199_v7 = vmax.f32 %v7943_v27, 0.0 }
 0x9e2   :  { %v7949_v49 = vadd.f32 %v13556_v4, %v7671_v61  ;;  %v7948_v48 = vadd.f32 %v13559_v39, %v7670_v40  ;;  %v8200_v28 = vmax.f32 %v7944_v52, 0.0  ;;  %v8202_v30 = vmax.f32 %v7946_v17, 0.0 }
 0x9e3   :  { %v7950_v12 = vadd.f32 %v13562_v22, %v7672_v50  ;;  %v8203_v1 = vmax.f32 %v7947_v14, 0.0 }
 0x9e4   :  { %v8205_v31 = vmax.f32 %v7949_v49, 0.0  ;;  %v8204_v43 = vmax.f32 %v7948_v48, 0.0  ;;  %v7031_v25 = vpop.f32.mrb[168].mxu0  ;;  %v7384_v13 = vpop.f32.mrb[168].mxu1 }
 0x9e5   :  { %v8206_v44 = vmax.f32 %v7950_v12, 0.0  ;;  %v7673_v21 = vmul.f32 %v13537_v16, %v7031_v25  ;;  %v7675_v61 = vmul.f32 %v13542_v34, %v7384_v13  ;;  %v7033_v10 = vpop.f32.mrb[169].mxu0  ;;  %v7386_v40 = vpop.f32.mrb[169].mxu1  ;;  %v8355_v2 = vpack.c.bf16 %v8203_v1, %v8199_v7 }
 0x9e6   :  { %v14208_v6 = vpack.c.bf16 %v8205_v31, %v8201_v8  ;;  %v14212_v50 = vpack.c.bf16 %v8204_v43, %v8200_v28  ;;  %v7674_v27 = vmul.f32 %v13545_v33, %v7033_v10  ;;  %v7676_v52 = vmul.f32 %v13548_v55, %v7386_v40  ;;  %v7035_v17 = vpop.f32.mrb[170].mxu0  ;;  %v7388_v14 = vpop.f32.mrb[170].mxu1 }
 0x9e7   :  { %v14214_v45 = vpack.c.bf16 %v8206_v44, %v8202_v30  ;;  %v7951_v49 = vadd.f32 %v13553_v9, %v7673_v21  ;;  %v7953_v48 = vadd.f32 %v13556_v4, %v7675_v61  ;;  %v7677_v25 = vmul.f32 %v13537_v16, %v7035_v17  ;;  %v7037_v8 = vpop.f32.mrb[171].mxu0  ;;  %v7390_v31 = vpop.f32.mrb[171].mxu1  ;;  %11773 = vmatmul.mubr.bf16.gmra.mrb[240].mxu0 %v8355_v2 }
 0x9e8   :  { %15319 = vst [vmem:[#allocation89_spill] sm:$0xff] %v14208_v6  ;;  %v7679_v12 = vmul.f32 %v13542_v34, %v7388_v14  ;;  %v7952_v7 = vadd.f32 %v13559_v39, %v7674_v27  ;;  %v7954_v1 = vadd.f32 %v13562_v22, %v7676_v52  ;;  %v7678_v28 = vmul.f32 %v13545_v33, %v7037_v8 }
 0x9e9   :  { %15320 = vst [vmem:[#allocation90_spill] sm:$0xff] %v14214_v45  ;;  %v7680_v30 = vmul.f32 %v13548_v55, %v7390_v31  ;;  %v7955_v43 = vadd.f32 %v13553_v9, %v7677_v25  ;;  %v8209_v61 = vmax.f32 %v7953_v48, 0.0  ;;  %v8207_v40 = vmax.f32 %v7951_v49, 0.0 }
 0x9ea   :  { %v7957_v44 = vadd.f32 %v13556_v4, %v7679_v12  ;;  %v7956_v13 = vadd.f32 %v13559_v39, %v7678_v28  ;;  %v8210_v17 = vmax.f32 %v7954_v1, 0.0  ;;  %v8208_v45 = vmax.f32 %v7952_v7, 0.0 }
 0x9eb   :  { %v7958_v21 = vadd.f32 %v13562_v22, %v7680_v30  ;;  %v8211_v2 = vmax.f32 %v7955_v43, 0.0 }
 0x9ec   :  { %v8213_v10 = vmax.f32 %v7957_v44, 0.0  ;;  %v7041_v14 = vpop.f32.mrb[172].mxu0  ;;  %v7394_v52 = vpop.f32.mrb[172].mxu1  ;;  %v8212_v8 = vmax.f32 %v7956_v13, 0.0 }
 0x9ed   :  { %v8214_v27 = vmax.f32 %v7958_v21, 0.0  ;;  %v7681_v31 = vmul.f32 %v13537_v16, %v7041_v14  ;;  %v7683_v25 = vmul.f32 %v13542_v34, %v7394_v52  ;;  %v7043_v6 = vpop.f32.mrb[173].mxu0  ;;  %v7396_v12 = vpop.f32.mrb[173].mxu1  ;;  %v8359_v59 = vpack.c.bf16 %v8211_v2, %v8207_v40 }
 0x9ee   :  { %v14232_v28 = vpack.c.bf16 %v8213_v10, %v8209_v61  ;;  %v7682_v48 = vmul.f32 %v13545_v33, %v7043_v6  ;;  %v7684_v49 = vmul.f32 %v13548_v55, %v7396_v12  ;;  %v7045_v30 = vpop.f32.mrb[174].mxu0  ;;  %v7398_v1 = vpop.f32.mrb[174].mxu1  ;;  %v14236_v43 = vpack.c.bf16 %v8212_v8, %v8208_v45 }
 0x9ef   :  { %v14238_v44 = vpack.c.bf16 %v8214_v27, %v8210_v17  ;;  %v7959_v7 = vadd.f32 %v13553_v9, %v7681_v31  ;;  %v7961_v13 = vadd.f32 %v13556_v4, %v7683_v25  ;;  %v7685_v21 = vmul.f32 %v13537_v16, %v7045_v30  ;;  %v7047_v61 = vpop.f32.mrb[175].mxu0  ;;  %v7400_v10 = vpop.f32.mrb[175].mxu1  ;;  %11776 = vmatprep.mubr.bf16.mxu0 %v8359_v59 }
 0x9f0   :  { %15321 = vst [vmem:[#allocation91_spill] sm:$0xff] %v14232_v28  ;;  %v7687_v40 = vmul.f32 %v13542_v34, %v7398_v1  ;;  %v7960_v6 = vadd.f32 %v13559_v39, %v7682_v48  ;;  %v7962_v2 = vadd.f32 %v13562_v22, %v7684_v49  ;;  %v7686_v45 = vmul.f32 %v13545_v33, %v7047_v61 }
 0x9f1   :  { %15322 = vst [vmem:[#allocation92_spill] sm:$0xff] %v14238_v44  ;;  %v7688_v17 = vmul.f32 %v13548_v55, %v7400_v10  ;;  %v7963_v27 = vadd.f32 %v13553_v9, %v7685_v21  ;;  %v8217_v31 = vmax.f32 %v7961_v13, 0.0  ;;  %v8215_v12 = vmax.f32 %v7959_v7, 0.0 }
 0x9f2   :  { %v7965_v14 = vadd.f32 %v13556_v4, %v7687_v40  ;;  %v7964_v52 = vadd.f32 %v13559_v39, %v7686_v45  ;;  %v8216_v30 = vmax.f32 %v7960_v6, 0.0  ;;  %v8218_v48 = vmax.f32 %v7962_v2, 0.0 }
 0x9f3   :  { %v7966_v8 = vadd.f32 %v13562_v22, %v7688_v17  ;;  %v8219_v59 = vmax.f32 %v7963_v27, 0.0 }
 0x9f4   :  { %v8221_v25 = vmax.f32 %v7965_v14, 0.0  ;;  %v8220_v1 = vmax.f32 %v7964_v52, 0.0  ;;  %v7051_v44 = vpop.f32.mrb[176].mxu0  ;;  %v7404_v61 = vpop.f32.mrb[176].mxu1 }
 0x9f5   :  { %v8222_v49 = vmax.f32 %v7966_v8, 0.0  ;;  %v7689_v21 = vmul.f32 %v13537_v16, %v7051_v44  ;;  %v7691_v40 = vmul.f32 %v13542_v34, %v7404_v61  ;;  %v7053_v10 = vpop.f32.mrb[177].mxu0  ;;  %v7406_v45 = vpop.f32.mrb[177].mxu1  ;;  %v8363_v47 = vpack.c.bf16 %v8219_v59, %v8215_v12 }
 0x9f6   :  { %v14252_v28 = vpack.c.bf16 %v8221_v25, %v8217_v31  ;;  %v14256_v17 = vpack.c.bf16 %v8220_v1, %v8216_v30  ;;  %v7690_v7 = vmul.f32 %v13545_v33, %v7053_v10  ;;  %v7692_v6 = vmul.f32 %v13548_v55, %v7406_v45  ;;  %v7055_v2 = vpop.f32.mrb[178].mxu0  ;;  %v7408_v27 = vpop.f32.mrb[178].mxu1 }
 0x9f7   :  { %v14258_v13 = vpack.c.bf16 %v8222_v49, %v8218_v48  ;;  %v7967_v14 = vadd.f32 %v13553_v9, %v7689_v21  ;;  %v7969_v52 = vadd.f32 %v13556_v4, %v7691_v40  ;;  %v7693_v44 = vmul.f32 %v13537_v16, %v7055_v2  ;;  %v7057_v31 = vpop.f32.mrb[179].mxu0  ;;  %v7410_v25 = vpop.f32.mrb[179].mxu1  ;;  %11777 = vmatmul.mubr.bf16.gmra.mrb[244].mxu0 %v8363_v47 }
 0x9f8   :  { %15323 = vst [vmem:[#allocation93_spill] sm:$0xff] %v14252_v28  ;;  %v7695_v8 = vmul.f32 %v13542_v34, %v7408_v27  ;;  %v7968_v12 = vadd.f32 %v13559_v39, %v7690_v7  ;;  %v7970_v59 = vadd.f32 %v13562_v22, %v7692_v6  ;;  %v7694_v30 = vmul.f32 %v13545_v33, %v7057_v31 }
 0x9f9   :  { %15324 = vst [vmem:[#allocation94_spill] sm:$0xff] %v14258_v13  ;;  %v7696_v48 = vmul.f32 %v13548_v55, %v7410_v25  ;;  %v7971_v1 = vadd.f32 %v13553_v9, %v7693_v44  ;;  %v8225_v40 = vmax.f32 %v7969_v52, 0.0  ;;  %v8223_v45 = vmax.f32 %v7967_v14, 0.0 }
 0x9fa   :  { %v7973_v49 = vadd.f32 %v13556_v4, %v7695_v8  ;;  %v7972_v61 = vadd.f32 %v13559_v39, %v7694_v30  ;;  %v8226_v2 = vmax.f32 %v7970_v59, 0.0  ;;  %v8224_v13 = vmax.f32 %v7968_v12, 0.0 }
 0x9fb   :  { %v7974_v21 = vadd.f32 %v13562_v22, %v7696_v48  ;;  %v8227_v47 = vmax.f32 %v7971_v1, 0.0 }
 0x9fc   :  { %v8229_v10 = vmax.f32 %v7973_v49, 0.0  ;;  %v7061_v27 = vpop.f32.mrb[180].mxu0  ;;  %v7414_v6 = vpop.f32.mrb[180].mxu1  ;;  %v8228_v31 = vmax.f32 %v7972_v61, 0.0 }
 0x9fd   :  { %v8230_v7 = vmax.f32 %v7974_v21, 0.0  ;;  %v7697_v25 = vmul.f32 %v13537_v16, %v7061_v27  ;;  %v7699_v44 = vmul.f32 %v13542_v34, %v7414_v6  ;;  %v7063_v28 = vpop.f32.mrb[181].mxu0  ;;  %v7416_v8 = vpop.f32.mrb[181].mxu1  ;;  %v8367_v41 = vpack.c.bf16 %v8227_v47, %v8223_v45 }
 0x9fe   :  { %v14276_v30 = vpack.c.bf16 %v8229_v10, %v8225_v40  ;;  %v7698_v52 = vmul.f32 %v13545_v33, %v7063_v28  ;;  %v7700_v14 = vmul.f32 %v13548_v55, %v7416_v8  ;;  %v7065_v48 = vpop.f32.mrb[182].mxu0  ;;  %v7418_v59 = vpop.f32.mrb[182].mxu1  ;;  %v14280_v1 = vpack.c.bf16 %v8228_v31, %v8224_v13 }
 0x9ff   :  { %v14282_v49 = vpack.c.bf16 %v8230_v7, %v8226_v2  ;;  %v7975_v12 = vadd.f32 %v13553_v9, %v7697_v25  ;;  %v7977_v61 = vadd.f32 %v13556_v4, %v7699_v44  ;;  %v7701_v21 = vmul.f32 %v13537_v16, %v7065_v48  ;;  %v7067_v40 = vpop.f32.mrb[183].mxu0  ;;  %v7420_v10 = vpop.f32.mrb[183].mxu1  ;;  %11780 = vmatprep.mubr.bf16.mxu0 %v8367_v41 }
 0xa00   :  { %15325 = vst [vmem:[#allocation95_spill] sm:$0xff] %v14276_v30  ;;  %v7703_v45 = vmul.f32 %v13542_v34, %v7418_v59  ;;  %v7976_v28 = vadd.f32 %v13559_v39, %v7698_v52  ;;  %v7978_v47 = vadd.f32 %v13562_v22, %v7700_v14  ;;  %v7702_v13 = vmul.f32 %v13545_v33, %v7067_v40 }
 0xa01   :  { %15326 = vst [vmem:[#allocation96_spill] sm:$0xff] %v14282_v49  ;;  %v7704_v2 = vmul.f32 %v13548_v55, %v7420_v10  ;;  %v7979_v7 = vadd.f32 %v13553_v9, %v7701_v21  ;;  %v8233_v25 = vmax.f32 %v7977_v61, 0.0  ;;  %v8231_v8 = vmax.f32 %v7975_v12, 0.0 }
 0xa02   :  { %v7981_v27 = vadd.f32 %v13556_v4, %v7703_v45  ;;  %v7980_v6 = vadd.f32 %v13559_v39, %v7702_v13  ;;  %v8232_v48 = vmax.f32 %v7976_v28, 0.0  ;;  %v8234_v52 = vmax.f32 %v7978_v47, 0.0 }
 0xa03   :  { %v7982_v31 = vadd.f32 %v13562_v22, %v7704_v2  ;;  %v8235_v41 = vmax.f32 %v7979_v7, 0.0 }
 0xa04   :  { %v8237_v44 = vmax.f32 %v7981_v27, 0.0  ;;  %v8236_v59 = vmax.f32 %v7980_v6, 0.0  ;;  %v7071_v49 = vpop.f32.mrb[184].mxu0  ;;  %v7424_v40 = vpop.f32.mrb[184].mxu1 }
 0xa05   :  { %v8238_v14 = vmax.f32 %v7982_v31, 0.0  ;;  %v7705_v21 = vmul.f32 %v13537_v16, %v7071_v49  ;;  %v7707_v45 = vmul.f32 %v13542_v34, %v7424_v40  ;;  %v7073_v10 = vpop.f32.mrb[185].mxu0  ;;  %v7426_v13 = vpop.f32.mrb[185].mxu1  ;;  %v8371_v24 = vpack.c.bf16 %v8235_v41, %v8231_v8 }
 0xa06   :  { %v14296_v30 = vpack.c.bf16 %v8237_v44, %v8233_v25  ;;  %v14300_v2 = vpack.c.bf16 %v8236_v59, %v8232_v48  ;;  %v7706_v12 = vmul.f32 %v13545_v33, %v7073_v10  ;;  %v7708_v28 = vmul.f32 %v13548_v55, %v7426_v13  ;;  %v7075_v47 = vpop.f32.mrb[186].mxu0  ;;  %v7428_v7 = vpop.f32.mrb[186].mxu1 }
 0xa07   :  { %v14302_v61 = vpack.c.bf16 %v8238_v14, %v8234_v52  ;;  %v7983_v27 = vadd.f32 %v13553_v9, %v7705_v21  ;;  %v7985_v6 = vadd.f32 %v13556_v4, %v7707_v45  ;;  %v7709_v49 = vmul.f32 %v13537_v16, %v7075_v47  ;;  %v7077_v25 = vpop.f32.mrb[187].mxu0  ;;  %v7430_v44 = vpop.f32.mrb[187].mxu1  ;;  %11781 = vmatmul.mubr.bf16.gmra.mrb[248].mxu0 %v8371_v24 }
 0xa08   :  { %15327 = vst [vmem:[#allocation97_spill] sm:$0xff] %v14296_v30  ;;  %v7711_v31 = vmul.f32 %v13542_v34, %v7428_v7  ;;  %v7984_v8 = vadd.f32 %v13559_v39, %v7706_v12  ;;  %v7986_v41 = vadd.f32 %v13562_v22, %v7708_v28  ;;  %v7710_v48 = vmul.f32 %v13545_v33, %v7077_v25 }
 0xa09   :  { %15328 = vst [vmem:[#allocation98_spill] sm:$0xff] %v14302_v61  ;;  %v7712_v52 = vmul.f32 %v13548_v55, %v7430_v44  ;;  %v7987_v59 = vadd.f32 %v13553_v9, %v7709_v49  ;;  %v8241_v45 = vmax.f32 %v7985_v6, 0.0  ;;  %v8239_v13 = vmax.f32 %v7983_v27, 0.0 }
 0xa0a   :  { %v7989_v14 = vadd.f32 %v13556_v4, %v7711_v31  ;;  %v7988_v40 = vadd.f32 %v13559_v39, %v7710_v48  ;;  %v8242_v47 = vmax.f32 %v7986_v41, 0.0  ;;  %v8240_v61 = vmax.f32 %v7984_v8, 0.0 }
 0xa0b   :  { %v7990_v21 = vadd.f32 %v13562_v22, %v7712_v52  ;;  %v8243_v24 = vmax.f32 %v7987_v59, 0.0 }
 0xa0c   :  { %v8245_v10 = vmax.f32 %v7989_v14, 0.0  ;;  %v7081_v7 = vpop.f32.mrb[188].mxu0  ;;  %v7434_v28 = vpop.f32.mrb[188].mxu1  ;;  %v8244_v25 = vmax.f32 %v7988_v40, 0.0 }
 0xa0d   :  { %v8246_v12 = vmax.f32 %v7990_v21, 0.0  ;;  %v7713_v44 = vmul.f32 %v13537_v16, %v7081_v7  ;;  %v7715_v49 = vmul.f32 %v13542_v34, %v7434_v28  ;;  %v7083_v30 = vpop.f32.mrb[189].mxu0  ;;  %v7436_v31 = vpop.f32.mrb[189].mxu1  ;;  %v8375_v62 = vpack.c.bf16 %v8243_v24, %v8239_v13 }
 0xa0e   :  { %v14320_v48 = vpack.c.bf16 %v8245_v10, %v8241_v45  ;;  %v7714_v6 = vmul.f32 %v13545_v33, %v7083_v30  ;;  %v7716_v27 = vmul.f32 %v13548_v55, %v7436_v31  ;;  %v7085_v52 = vpop.f32.mrb[190].mxu0  ;;  %v7438_v41 = vpop.f32.mrb[190].mxu1  ;;  %v14324_v59 = vpack.c.bf16 %v8244_v25, %v8240_v61 }
 0xa0f   :  { %v14326_v14 = vpack.c.bf16 %v8246_v12, %v8242_v47  ;;  %v7991_v8 = vadd.f32 %v13553_v9, %v7713_v44  ;;  %v7993_v40 = vadd.f32 %v13556_v4, %v7715_v49  ;;  %v7717_v21 = vmul.f32 %v13537_v16, %v7085_v52  ;;  %v7087_v45 = vpop.f32.mrb[191].mxu0  ;;  %v7440_v10 = vpop.f32.mrb[191].mxu1  ;;  %11784 = vmatprep.mubr.bf16.mxu0 %v8375_v62  ;;  %v14342_v44 = vld [vmem:[#allocation28] ss:$0 sm:$0xff] }
 0xa10   :  { %v7719_v13 = vmul.f32 %v13542_v34, %v7438_v41  ;;  %v7992_v30 = vadd.f32 %v13559_v39, %v7714_v6  ;;  %v7994_v24 = vadd.f32 %v13562_v22, %v7716_v27  ;;  %v7718_v61 = vmul.f32 %v13545_v33, %v7087_v45  ;;  %v14340_v34 = vld [vmem:[#allocation26] ss:$0 sm:$0xff] }
 0xa11   :  { %v7720_v47 = vmul.f32 %v13548_v55, %v7440_v10  ;;  %v7995_v12 = vadd.f32 %v13553_v9, %v7717_v21  ;;  %v8249_v25 = vmax.f32 %v7993_v40, 0.0  ;;  %v8247_v49 = vmax.f32 %v7991_v8, 0.0 }
 0xa12   :  { %v7997_v7 = vadd.f32 %v13556_v4, %v7719_v13  ;;  %v7996_v28 = vadd.f32 %v13559_v39, %v7718_v61  ;;  %v8248_v6 = vmax.f32 %v7992_v30, 0.0  ;;  %v8250_v33 = vmax.f32 %v7994_v24, 0.0 }
 0xa13   :  { %v7998_v16 = vadd.f32 %v13562_v22, %v7720_v47  ;;  %v8251_v31 = vmax.f32 %v7995_v12, 0.0 }
 0xa14   :  { %v8253_v62 = vmax.f32 %v7997_v7, 0.0  ;;  %v8252_v27 = vmax.f32 %v7996_v28, 0.0  ;;  %v11726_v52 = vpop.f32.mrb[192].mxu0 }
 0xa15   :  { %v8254_v55 = vmax.f32 %v7998_v16, 0.0  ;;  %v9769_v4 = vmul.f32 %v11726_v52, %v14340_v34  ;;  %v8737_v39 = vpop.f32.mrb[193].mxu0  ;;  %v8379_v41 = vpack.c.bf16 %v8251_v31, %v8247_v49 }
 0xa16   :  { %v14344_v9 = vpack.c.bf16 %v8253_v62, %v8249_v25  ;;  %v14347_v22 = vpack.c.bf16 %v8252_v27, %v8248_v6  ;;  %v9767_v40 = vmul.f32 %v14340_v34, %v8737_v39  ;;  %v11727_v13 = vpop.f32.mrb[194].mxu0 }
 0xa17   :  { %v14349_v21 = vpack.c.bf16 %v8254_v55, %v8250_v33  ;;  %v10032_v8 = vadd.f32 %v14342_v44, %v9769_v4  ;;  %v9770_v45 = vmul.f32 %v11727_v13, %v14340_v34  ;;  %v8740_v10 = vpop.f32.mrb[195].mxu0  ;;  %11785 = vmatmul.mubr.bf16.gmra.mrb[252].mxu0 %v8379_v41 }
 0xa18   :  { %v10030_v30 = vadd.f32 %v14342_v44, %v9767_v40  ;;  %v9768_v24 = vmul.f32 %v14340_v34, %v8740_v10  ;;  %11788 = vmatprep.mubr.bf16.mxu0 %v13592_v19 }
 0xa19   :  { %v10033_v61 = vadd.f32 %v14342_v44, %v9770_v45  ;;  %v10288_v12 = vmax.f32 %v10032_v8, 0.0 }
 0xa1a   :  { %v10031_v47 = vadd.f32 %v14342_v44, %v9768_v24  ;;  %v10286_v28 = vmax.f32 %v10030_v30, 0.0 }
 0xa1b   :  { %v10289_v7 = vmax.f32 %v10033_v61, 0.0 }
 0xa1c   :  { %v10287_v16 = vmax.f32 %v10031_v47, 0.0  ;;  %v11730_v25 = vpop.f32.mrb[196].mxu0 }
 0xa1d   :  { %v14359_v62 = vpack.c.bf16 %v10289_v7, %v10288_v12  ;;  %v9773_v49 = vmul.f32 %v11730_v25, %v14340_v34  ;;  %v8753_v31 = vpop.f32.mrb[197].mxu0 }
 0xa1e   :  { %v14362_v6 = vpack.c.bf16 %v10287_v16, %v10286_v28  ;;  %v9771_v33 = vmul.f32 %v14340_v34, %v8753_v31  ;;  %v11731_v27 = vpop.f32.mrb[198].mxu0 }
 0xa1f   :  { %v10036_v19 = vadd.f32 %v14342_v44, %v9773_v49  ;;  %v9774_v55 = vmul.f32 %v11731_v27, %v14340_v34  ;;  %v8756_v52 = vpop.f32.mrb[199].mxu0  ;;  %11789 = vmatmul.mubr.bf16.gmra.mrb[0].mxu0 %v13618_v37 }
 0xa20   :  { %v10034_v4 = vadd.f32 %v14342_v44, %v9771_v33  ;;  %v9772_v39 = vmul.f32 %v14340_v34, %v8756_v52  ;;  %11792 = vmatprep.mubr.bf16.mxu0 %v13648_v23 }
 0xa21   :  { %v10037_v41 = vadd.f32 %v14342_v44, %v9774_v55  ;;  %v10292_v13 = vmax.f32 %v10036_v19, 0.0 }
 0xa22   :  { %v10035_v40 = vadd.f32 %v14342_v44, %v9772_v39  ;;  %v10290_v45 = vmax.f32 %v10034_v4, 0.0 }
 0xa23   :  { %v10293_v8 = vmax.f32 %v10037_v41, 0.0 }
 0xa24   :  { %v10291_v10 = vmax.f32 %v10035_v40, 0.0  ;;  %v11734_v30 = vpop.f32.mrb[200].mxu0 }
 0xa25   :  { %v14373_v24 = vpack.c.bf16 %v10293_v8, %v10292_v13  ;;  %v9777_v61 = vmul.f32 %v11734_v30, %v14340_v34  ;;  %v8769_v37 = vpop.f32.mrb[201].mxu0 }
 0xa26   :  { %v14376_v47 = vpack.c.bf16 %v10291_v10, %v10290_v45  ;;  %v9775_v12 = vmul.f32 %v14340_v34, %v8769_v37  ;;  %v11735_v7 = vpop.f32.mrb[202].mxu0 }
 0xa27   :  { %v10040_v23 = vadd.f32 %v14342_v44, %v9777_v61  ;;  %v9778_v28 = vmul.f32 %v11735_v7, %v14340_v34  ;;  %v8772_v16 = vpop.f32.mrb[203].mxu0  ;;  %11793 = vmatmul.mubr.bf16.gmra.mrb[4].mxu0 %v13672_v11 }
 0xa28   :  { %v10038_v25 = vadd.f32 %v14342_v44, %v9775_v12  ;;  %v9776_v49 = vmul.f32 %v14340_v34, %v8772_v16  ;;  %11796 = vmatprep.mubr.bf16.mxu0 %v13749_v38 }
 0xa29   :  { %v10041_v31 = vadd.f32 %v14342_v44, %v9778_v28  ;;  %v10296_v27 = vmax.f32 %v10040_v23, 0.0 }
 0xa2a   :  { %v10039_v33 = vadd.f32 %v14342_v44, %v9776_v49  ;;  %v10294_v55 = vmax.f32 %v10038_v25, 0.0 }
 0xa2b   :  { %v10297_v19 = vmax.f32 %v10041_v31, 0.0 }
 0xa2c   :  { %v10295_v52 = vmax.f32 %v10039_v33, 0.0  ;;  %v11738_v4 = vpop.f32.mrb[204].mxu0 }
 0xa2d   :  { %v14387_v39 = vpack.c.bf16 %v10297_v19, %v10296_v27  ;;  %v9781_v41 = vmul.f32 %v11738_v4, %v14340_v34  ;;  %v8785_v11 = vpop.f32.mrb[205].mxu0 }
 0xa2e   :  { %v14390_v40 = vpack.c.bf16 %v10295_v52, %v10294_v55  ;;  %v9779_v13 = vmul.f32 %v14340_v34, %v8785_v11  ;;  %v11739_v8 = vpop.f32.mrb[206].mxu0 }
 0xa2f   :  { %v10044_v38 = vadd.f32 %v14342_v44, %v9781_v41  ;;  %v9782_v45 = vmul.f32 %v11739_v8, %v14340_v34  ;;  %v8788_v10 = vpop.f32.mrb[207].mxu0  ;;  %11797 = vmatmul.mubr.bf16.gmra.mrb[8].mxu0 %v13771_v36 }
 0xa30   :  { %v10042_v30 = vadd.f32 %v14342_v44, %v9779_v13  ;;  %v9780_v61 = vmul.f32 %v14340_v34, %v8788_v10  ;;  %11800 = vmatprep.mubr.bf16.mxu0 %v13796_v57 }
 0xa31   :  { %v10045_v37 = vadd.f32 %v14342_v44, %v9782_v45  ;;  %v10300_v7 = vmax.f32 %v10044_v38, 0.0  ;;  %v14417_v45 = vld [vmem:[#allocation29] sm:$0x3] }
 0xa32   :  { %v10043_v12 = vadd.f32 %v14342_v44, %v9780_v61  ;;  %v10298_v28 = vmax.f32 %v10042_v30, 0.0  ;;  %11580 = vmatprep.mubr.bf16.mxu1 %v14417_v45 }
 0xa33   :  { %v10301_v23 = vmax.f32 %v10045_v37, 0.0 }
 0xa34   :  { %v10299_v16 = vmax.f32 %v10043_v12, 0.0 }
 0xa35   :  { %v14401_v25 = vpack.c.bf16 %v10301_v23, %v10300_v7 }
 0xa36   :  { %v14403_v49 = vpack.c.bf16 %v10299_v16, %v10298_v28 }
 0xa37   :  { %11801 = vmatmul.mubr.bf16.gmra.mrb[12].mxu0 %v13816_v56 }
 0xa38   :  { %11804 = vmatprep.mubr.bf16.mxu0 %v13840_v54 }
 0xa3b   :  { %v11742_v36 = vpop.f32.mrb[208].mxu0 }
 0xa3c   :  { %v9785_v31 = vmul.f32 %v11742_v36, %v14340_v34  ;;  %v8801_v57 = vpop.f32.mrb[209].mxu0 }
 0xa3d   :  { %v9783_v33 = vmul.f32 %v14340_v34, %v8801_v57  ;;  %v11743_v27 = vpop.f32.mrb[210].mxu0 }
 0xa3e   :  { %v10048_v19 = vadd.f32 %v14342_v44, %v9785_v31  ;;  %v9786_v55 = vmul.f32 %v11743_v27, %v14340_v34  ;;  %v8804_v52 = vpop.f32.mrb[211].mxu0 }
 0xa3f   :  { %v10046_v4 = vadd.f32 %v14342_v44, %v9783_v33  ;;  %v9784_v41 = vmul.f32 %v14340_v34, %v8804_v52  ;;  %11805 = vmatmul.mubr.bf16.gmra.mrb[16].mxu0 %v13860_v58 }
 0xa40   :  { %v10049_v56 = vadd.f32 %v14342_v44, %v9786_v55  ;;  %11808 = vmatprep.mubr.bf16.mxu0 %v13884_v15  ;;  %v10304_v11 = vmax.f32 %v10048_v19, 0.0 }
 0xa41   :  { %v10047_v54 = vadd.f32 %v14342_v44, %v9784_v41  ;;  %v10302_v8 = vmax.f32 %v10046_v4, 0.0 }
 0xa42   :  { %v10305_v13 = vmax.f32 %v10049_v56, 0.0 }
 0xa43   :  { %v10303_v38 = vmax.f32 %v10047_v54, 0.0 }
 0xa44   :  { %v10551_v10 = vpack.c.bf16 %v10305_v13, %v10304_v11 }
 0xa45   :  { %v10550_v30 = vpack.c.bf16 %v10303_v38, %v10302_v8 }
 0xa47   :  { %11564 = vmatprep.subr.bf16.mxu1 %v10550_v30  ;;  %11809 = vmatmul.mubr.bf16.gmra.mrb[20].mxu0 %v13904_v51 }
 0xa48   :  { %11565 = vmatpush3.bf16.xpose.msra.mxu1 %v14362_v6  ;;  %11812 = vmatprep.mubr.bf16.mxu0 %v13928_v18 }
 0xa49   :  { %11566 = vmatprep.subr.bf16.mxu1 %v10551_v10 }
 0xa4a   :  { %v11746_v58 = vpop.f32.mrb[212].mxu0 }
 0xa4b   :  { %v9789_v15 = vmul.f32 %v11746_v58, %v14340_v34  ;;  %v8817_v61 = vpop.f32.mrb[213].mxu0 }
 0xa4c   :  { %v9787_v37 = vmul.f32 %v14340_v34, %v8817_v61  ;;  %v11747_v12 = vpop.f32.mrb[214].mxu0 }
 0xa4d   :  { %v10052_v7 = vadd.f32 %v14342_v44, %v9789_v15  ;;  %v9790_v23 = vmul.f32 %v11747_v12, %v14340_v34  ;;  %v8820_v28 = vpop.f32.mrb[215].mxu0 }
 0xa4e   :  { %v10050_v16 = vadd.f32 %v14342_v44, %v9787_v37  ;;  %v9788_v51 = vmul.f32 %v14340_v34, %v8820_v28 }
 0xa4f   :  { %v10053_v6 = vadd.f32 %v14342_v44, %v9790_v23  ;;  %11813 = vmatmul.mubr.bf16.gmra.mrb[24].mxu0 %v13948_v46  ;;  %v10308_v36 = vmax.f32 %v10052_v7, 0.0 }
 0xa50   :  { %11567 = vmatpush3.bf16.xpose.msra.mxu1 %v14359_v62  ;;  %v10051_v18 = vadd.f32 %v14342_v44, %v9788_v51  ;;  %11816 = vmatprep.mubr.bf16.mxu0 %v13972_v0  ;;  %v10306_v57 = vmax.f32 %v10050_v16, 0.0 }
 0xa51   :  { %v10309_v31 = vmax.f32 %v10053_v6, 0.0 }
 0xa52   :  { %v10307_v33 = vmax.f32 %v10051_v18, 0.0 }
 0xa53   :  { %v10553_v27 = vpack.c.bf16 %v10309_v31, %v10308_v36 }
 0xa54   :  { %v10552_v19 = vpack.c.bf16 %v10307_v33, %v10306_v57 }
 0xa56   :  { %11568 = vmatprep.subr.bf16.mxu1 %v10552_v19 }
 0xa57   :  { %11817 = vmatmul.mubr.bf16.gmra.mrb[28].mxu0 %v13992_v60 }
 0xa58   :  { %11569 = vmatpush3.bf16.xpose.msra.mxu1 %v14376_v47  ;;  %11820 = vmatprep.mubr.bf16.mxu0 %v14016_v29 }
 0xa59   :  { %11570 = vmatprep.subr.bf16.mxu1 %v10553_v27 }
 0xa5a   :  { %v11750_v46 = vpop.f32.mrb[216].mxu0 }
 0xa5b   :  { %v9793_v62 = vmul.f32 %v11750_v46, %v14340_v34  ;;  %v8833_v55 = vpop.f32.mrb[217].mxu0 }
 0xa5c   :  { %v9791_v0 = vmul.f32 %v14340_v34, %v8833_v55  ;;  %v11751_v52 = vpop.f32.mrb[218].mxu0 }
 0xa5d   :  { %v10056_v4 = vadd.f32 %v14342_v44, %v9793_v62  ;;  %v9794_v41 = vmul.f32 %v11751_v52, %v14340_v34  ;;  %v8836_v56 = vpop.f32.mrb[219].mxu0 }
 0xa5e   :  { %v10054_v54 = vadd.f32 %v14342_v44, %v9791_v0  ;;  %v9792_v60 = vmul.f32 %v14340_v34, %v8836_v56 }
 0xa5f   :  { %v10057_v47 = vadd.f32 %v14342_v44, %v9794_v41  ;;  %11821 = vmatmul.mubr.bf16.gmra.mrb[32].mxu0 %v14036_v53  ;;  %v10312_v11 = vmax.f32 %v10056_v4, 0.0 }
 0xa60   :  { %11571 = vmatpush3.bf16.xpose.msra.mxu1 %v14373_v24  ;;  %v10055_v29 = vadd.f32 %v14342_v44, %v9792_v60  ;;  %11824 = vmatprep.mubr.bf16.mxu0 %v14060_v32  ;;  %v10310_v8 = vmax.f32 %v10054_v54, 0.0 }
 0xa61   :  { %v10313_v13 = vmax.f32 %v10057_v47, 0.0 }
 0xa62   :  { %v10311_v38 = vmax.f32 %v10055_v29, 0.0 }
 0xa63   :  { %v10555_v10 = vpack.c.bf16 %v10313_v13, %v10312_v11 }
 0xa64   :  { %v10554_v30 = vpack.c.bf16 %v10311_v38, %v10310_v8 }
 0xa66   :  { %11572 = vmatprep.subr.bf16.mxu1 %v10554_v30 }
 0xa67   :  { %11825 = vmatmul.mubr.bf16.gmra.mrb[36].mxu0 %v14080_v3 }
 0xa68   :  { %11573 = vmatpush3.bf16.xpose.msra.mxu1 %v14390_v40  ;;  %11828 = vmatprep.mubr.bf16.mxu0 %v14104_v42 }
 0xa69   :  { %11574 = vmatprep.subr.bf16.mxu1 %v10555_v10 }
 0xa6a   :  { %v11754_v53 = vpop.f32.mrb[220].mxu0 }
 0xa6b   :  { %v9797_v24 = vmul.f32 %v11754_v53, %v14340_v34  ;;  %v8849_v58 = vpop.f32.mrb[221].mxu0 }
 0xa6c   :  { %v9795_v32 = vmul.f32 %v14340_v34, %v8849_v58  ;;  %v11755_v15 = vpop.f32.mrb[222].mxu0 }
 0xa6d   :  { %v10060_v61 = vadd.f32 %v14342_v44, %v9797_v24  ;;  %v9798_v37 = vmul.f32 %v11755_v15, %v14340_v34  ;;  %v8852_v12 = vpop.f32.mrb[223].mxu0 }
 0xa6e   :  { %v10058_v7 = vadd.f32 %v14342_v44, %v9795_v32  ;;  %v9796_v3 = vmul.f32 %v14340_v34, %v8852_v12 }
 0xa6f   :  { %v10061_v40 = vadd.f32 %v14342_v44, %v9798_v37  ;;  %11829 = vmatmul.mubr.bf16.gmra.mrb[40].mxu0 %v14124_v26  ;;  %v10316_v23 = vmax.f32 %v10060_v61, 0.0 }
 0xa70   :  { %11575 = vmatpush3.bf16.xpose.msra.mxu1 %v14387_v39  ;;  %v10059_v42 = vadd.f32 %v14342_v44, %v9796_v3  ;;  %11832 = vmatprep.mubr.bf16.mxu0 %v14148_v35  ;;  %v10314_v16 = vmax.f32 %v10058_v7, 0.0  ;;  %v15329_v3 = vld [vmem:[#allocation41_spill] sm:$0xff] }
 0xa71   :  { %v10317_v28 = vmax.f32 %v10061_v40, 0.0  ;;  %v15330_v40 = vld [vmem:[#allocation43_spill] sm:$0xff] }
 0xa72   :  { %v10315_v51 = vmax.f32 %v10059_v42, 0.0 }
 0xa73   :  { %v10557_v6 = vpack.c.bf16 %v10317_v28, %v10316_v23 }
 0xa74   :  { %v10556_v18 = vpack.c.bf16 %v10315_v51, %v10314_v16 }
 0xa76   :  { %11576 = vmatprep.subr.bf16.mxu1 %v10556_v18  ;;  %v15331_v18 = vld [vmem:[#allocation45_spill] sm:$0xff] }
 0xa77   :  { %11833 = vmatmul.mubr.bf16.gmra.mrb[44].mxu0 %v14168_v5 }
 0xa78   :  { %11577 = vmatpush3.bf16.xpose.msra.mxu1 %v14403_v49  ;;  %11836 = vmatprep.mubr.bf16.mxu0 %v14192_v20 }
 0xa79   :  { %11578 = vmatprep.subr.bf16.mxu1 %v10557_v6 }
 0xa7a   :  { %v11758_v26 = vpop.f32.mrb[224].mxu0 }
 0xa7b   :  { %v9801_v39 = vmul.f32 %v11758_v26, %v14340_v34  ;;  %v8865_v36 = vpop.f32.mrb[225].mxu0  ;;  %v15332_v26 = vld [vmem:[#allocation47_spill] sm:$0xff] }
 0xa7c   :  { %v9799_v35 = vmul.f32 %v14340_v34, %v8865_v36  ;;  %v11759_v31 = vpop.f32.mrb[226].mxu0 }
 0xa7d   :  { %v10064_v57 = vadd.f32 %v14342_v44, %v9801_v39  ;;  %v9802_v33 = vmul.f32 %v11759_v31, %v14340_v34  ;;  %v8868_v27 = vpop.f32.mrb[227].mxu0 }
 0xa7e   :  { %v10062_v19 = vadd.f32 %v14342_v44, %v9799_v35  ;;  %v9800_v5 = vmul.f32 %v14340_v34, %v8868_v27 }
 0xa7f   :  { %v10065_v49 = vadd.f32 %v14342_v44, %v9802_v33  ;;  %11837 = vmatmul.mubr.bf16.gmra.mrb[48].mxu0 %v14212_v50  ;;  %v10320_v46 = vmax.f32 %v10064_v57, 0.0 }
 0xa80   :  { %11579 = vmatpush3.bf16.xpose.msra.mxu1 %v14401_v25  ;;  %v10063_v20 = vadd.f32 %v14342_v44, %v9800_v5  ;;  %11840 = vmatprep.mubr.bf16.mxu0 %v14236_v43  ;;  %v10318_v55 = vmax.f32 %v10062_v19, 0.0 }
 0xa81   :  { %v10321_v62 = vmax.f32 %v10065_v49, 0.0 }
 0xa82   :  { %v10319_v0 = vmax.f32 %v10063_v20, 0.0 }
 0xa83   :  { %v14476_v52 = vpack.c.bf16 %v10321_v62, %v10320_v46  ;;  %v15333_v46 = vld [vmem:[#allocation49_spill] sm:$0xff] }
 0xa84   :  { %v14478_v4 = vpack.c.bf16 %v10319_v0, %v10318_v55  ;;  %v15334_v55 = vld [vmem:[#allocation51_spill] sm:$0xff] }
 0xa87   :  { %11581 = vmatmul.mubr.bf16.vlgmr.msra.gmra.mrb[192].mxu1 %v14417_v45  ;;  %11841 = vmatmul.mubr.bf16.gmra.mrb[52].mxu0 %v14256_v17 }
 0xa88   :  { %11598 = vmatprep.mubr.bf16.mxu1 %v14417_v45  ;;  %11844 = vmatprep.mubr.bf16.mxu0 %v14280_v1 }
 0xa8a   :  { %v11762_v50 = vpop.f32.mrb[228].mxu0 }
 0xa8b   :  { %v9805_v25 = vmul.f32 %v11762_v50, %v14340_v34  ;;  %v8881_v43 = vpop.f32.mrb[229].mxu0 }
 0xa8c   :  { %v9803_v41 = vmul.f32 %v14340_v34, %v8881_v43  ;;  %v11763_v56 = vpop.f32.mrb[230].mxu0 }
 0xa8d   :  { %v10068_v54 = vadd.f32 %v14342_v44, %v9805_v25  ;;  %v9806_v60 = vmul.f32 %v11763_v56, %v14340_v34  ;;  %v8884_v47 = vpop.f32.mrb[231].mxu0 }
 0xa8e   :  { %v10066_v29 = vadd.f32 %v14342_v44, %v9803_v41  ;;  %v9804_v17 = vmul.f32 %v14340_v34, %v8884_v47  ;;  %v15336_v47 = vld [vmem:[#allocation55_spill] sm:$0xff] }
 0xa8f   :  { %v10069_v11 = vadd.f32 %v14342_v44, %v9806_v60  ;;  %11845 = vmatmul.mubr.bf16.gmra.mrb[56].mxu0 %v14300_v2  ;;  %v10324_v13 = vmax.f32 %v10068_v54, 0.0  ;;  %v15335_v54 = vld [vmem:[#allocation53_spill] sm:$0xff]  ;;  %v10671_v60 = vld [vmem:[%s15257_s17] sm:$0xf] }
 0xa90   :  { %v10067_v1 = vadd.f32 %v14342_v44, %v9804_v17  ;;  %11848 = vmatprep.mubr.bf16.mxu0 %v14324_v59  ;;  %v10322_v38 = vmax.f32 %v10066_v29, 0.0  ;;  %10674 = vperm.xlu0 %12133, %v10671_v60  }
 0xa91   :  { %v10325_v8 = vmax.f32 %v10069_v11, 0.0 }
 0xa92   :  { %v10323_v10 = vmax.f32 %v10067_v1, 0.0 }
 0xa93   :  { %v14494_v30 = vpack.c.bf16 %v10325_v8, %v10324_v13 }
 0xa94   :  { %v14496_v53 = vpack.c.bf16 %v10323_v10, %v10322_v38 }
 0xa97   :  { %11849 = vmatmul.mubr.bf16.gmra.mrb[60].mxu0 %v14347_v22 }
 0xa98   :  { %11852 = vmatprep.mubr.bf16.mxu0 %v13588_v63 }
 0xa9a   :  { %v11766_v24 = vpop.f32.mrb[232].mxu0 }
 0xa9b   :  { %v9809_v58 = vmul.f32 %v11766_v24, %v14340_v34  ;;  %v8897_v2 = vpop.f32.mrb[233].mxu0 }
 0xa9c   :  { %v9807_v32 = vmul.f32 %v14340_v34, %v8897_v2  ;;  %v11767_v15 = vpop.f32.mrb[234].mxu0 }
 0xa9d   :  { %v10072_v59 = vadd.f32 %v14342_v44, %v9809_v58  ;;  %v9810_v61 = vmul.f32 %v11767_v15, %v14340_v34  ;;  %v8900_v37 = vpop.f32.mrb[235].mxu0 }
 0xa9e   :  { %v10070_v12 = vadd.f32 %v14342_v44, %v9807_v32  ;;  %v9808_v7 = vmul.f32 %v14340_v34, %v8900_v37  ;;  %v15337_v32 = vld [vmem:[#allocation57_spill] sm:$0xff] }
 0xa9f   :  { %v10073_v22 = vadd.f32 %v14342_v44, %v9810_v61  ;;  %11853 = vmatmul.mubr.bf16.gmra.mrb[64].mxu0 %v15329_v3  ;;  %v10328_v42 = vmax.f32 %v10072_v59, 0.0  ;;  %v15338_v59 = vld [vmem:[#allocation59_spill] sm:$0xff] }
 0xaa0   :  { %v10071_v63 = vadd.f32 %v14342_v44, %v9808_v7  ;;  %11856 = vmatprep.mubr.bf16.mxu0 %v15330_v40  ;;  %v10326_v28 = vmax.f32 %v10070_v12, 0.0  ;;  %v15340_v40 = vld [vmem:[#allocation63_spill] sm:$0xff] }
 0xaa1   :  { %v10329_v23 = vmax.f32 %v10073_v22, 0.0 }
 0xaa2   :  { %v10327_v16 = vmax.f32 %v10071_v63, 0.0  ;;  %v15339_v63 = vld [vmem:[#allocation61_spill] sm:$0xff] }
 0xaa3   :  { %v14510_v51 = vpack.c.bf16 %v10329_v23, %v10328_v42 }
 0xaa4   :  { %v14512_v6 = vpack.c.bf16 %v10327_v16, %v10326_v28 }
 0xaa7   :  { %11857 = vmatmul.mubr.bf16.gmra.mrb[68].mxu0 %v15331_v18 }
 0xaa8   :  { %11860 = vmatprep.mubr.bf16.mxu0 %v15332_v26 }
 0xaaa   :  { %v11770_v39 = vpop.f32.mrb[236].mxu0 }
 0xaab   :  { %v9813_v36 = vmul.f32 %v11770_v39, %v14340_v34  ;;  %v8913_v35 = vpop.f32.mrb[237].mxu0 }
 0xaac   :  { %v9811_v31 = vmul.f32 %v14340_v34, %v8913_v35  ;;  %v11771_v57 = vpop.f32.mrb[238].mxu0 }
 0xaad   :  { %v10076_v33 = vadd.f32 %v14342_v44, %v9813_v36  ;;  %v9814_v27 = vmul.f32 %v11771_v57, %v14340_v34  ;;  %v8916_v19 = vpop.f32.mrb[239].mxu0  ;;  %v15341_v57 = vld [vmem:[#allocation65_spill] sm:$0xff] }
 0xaae   :  { %v10074_v5 = vadd.f32 %v14342_v44, %v9811_v31  ;;  %v9812_v49 = vmul.f32 %v14340_v34, %v8916_v19 }
 0xaaf   :  { %v10077_v20 = vadd.f32 %v14342_v44, %v9814_v27  ;;  %11861 = vmatmul.mubr.bf16.gmra.mrb[72].mxu0 %v15333_v46  ;;  %v10332_v0 = vmax.f32 %v10076_v33, 0.0  ;;  %v15342_v27 = vld [vmem:[#allocation67_spill] sm:$0xff] }
 0xab0   :  { %v10075_v62 = vadd.f32 %v14342_v44, %v9812_v49  ;;  %11864 = vmatprep.mubr.bf16.mxu0 %v15334_v55  ;;  %v10330_v25 = vmax.f32 %v10074_v5, 0.0  ;;  %v15343_v55 = vld [vmem:[#allocation69_spill] sm:$0xff] }
 0xab1   :  { %v10333_v50 = vmax.f32 %v10077_v20, 0.0 }
 0xab2   :  { %v10331_v43 = vmax.f32 %v10075_v62, 0.0 }
 0xab3   :  { %v14526_v41 = vpack.c.bf16 %v10333_v50, %v10332_v0  ;;  %v15344_v0 = vld [vmem:[#allocation71_spill] sm:$0xff] }
 0xab4   :  { %v14528_v56 = vpack.c.bf16 %v10331_v43, %v10330_v25 }
 0xab7   :  { %11865 = vmatmul.mubr.bf16.gmra.mrb[76].mxu0 %v15335_v54 }
 0xab8   :  { %11868 = vmatprep.mubr.bf16.mxu0 %v15336_v47 }
 0xaba   :  { %v11774_v29 = vpop.f32.mrb[240].mxu0 }
 0xabb   :  { %v9817_v17 = vmul.f32 %v11774_v29, %v14340_v34  ;;  %v8929_v11 = vpop.f32.mrb[241].mxu0 }
 0xabc   :  { %v9815_v1 = vmul.f32 %v14340_v34, %v8929_v11  ;;  %v11775_v13 = vpop.f32.mrb[242].mxu0 }
 0xabd   :  { %v10080_v8 = vadd.f32 %v14342_v44, %v9817_v17  ;;  %v9818_v38 = vmul.f32 %v11775_v13, %v14340_v34  ;;  %v8932_v10 = vpop.f32.mrb[243].mxu0 }
 0xabe   :  { %v10078_v24 = vadd.f32 %v14342_v44, %v9815_v1  ;;  %v9816_v58 = vmul.f32 %v14340_v34, %v8932_v10  ;;  %v15345_v1 = vld [vmem:[#allocation73_spill] sm:$0xff] }
 0xabf   :  { %v10081_v2 = vadd.f32 %v14342_v44, %v9818_v38  ;;  %11869 = vmatmul.mubr.bf16.gmra.mrb[80].mxu0 %v15337_v32  ;;  %v10336_v61 = vmax.f32 %v10080_v8, 0.0  ;;  %v15346_v8 = vld [vmem:[#allocation75_spill] sm:$0xff] }
 0xac0   :  { %v10079_v15 = vadd.f32 %v14342_v44, %v9816_v58  ;;  %11872 = vmatprep.mubr.bf16.mxu0 %v15338_v59  ;;  %v10334_v12 = vmax.f32 %v10078_v24, 0.0  ;;  %v15348_v59 = vld [vmem:[#allocation79_spill] sm:$0xff] }
 0xac1   :  { %v10337_v37 = vmax.f32 %v10081_v2, 0.0 }
 0xac2   :  { %v10335_v7 = vmax.f32 %v10079_v15, 0.0  ;;  %v15347_v15 = vld [vmem:[#allocation77_spill] sm:$0xff] }
 0xac3   :  { %v10567_v22 = vpack.c.bf16 %v10337_v37, %v10336_v61 }
 0xac4   :  { %v10566_v3 = vpack.c.bf16 %v10335_v7, %v10334_v12 }
 0xac6   :  { %11582 = vmatprep.subr.bf16.mxu1 %v10566_v3 }
 0xac7   :  { %11873 = vmatmul.mubr.bf16.gmra.mrb[84].mxu0 %v15339_v63  ;;  %11583 = vmatpush3.bf16.xpose.msra.mxu1 %v14478_v4 }
 0xac8   :  { %11876 = vmatprep.mubr.bf16.mxu0 %v15340_v40  ;;  %11584 = vmatprep.subr.bf16.mxu1 %v10567_v22 }
 0xaca   :  { %v11778_v42 = vpop.f32.mrb[244].mxu0 }
 0xacb   :  { %v9821_v23 = vmul.f32 %v11778_v42, %v14340_v34  ;;  %v8945_v28 = vpop.f32.mrb[245].mxu0 }
 0xacc   :  { %v9819_v16 = vmul.f32 %v14340_v34, %v8945_v28  ;;  %v11779_v18 = vpop.f32.mrb[246].mxu0 }
 0xacd   :  { %v10084_v26 = vadd.f32 %v14342_v44, %v9821_v23  ;;  %v9822_v39 = vmul.f32 %v11779_v18, %v14340_v34  ;;  %v8948_v36 = vpop.f32.mrb[247].mxu0  ;;  %v15349_v23 = vld [vmem:[#allocation81_spill] sm:$0xff] }
 0xace   :  { %v10082_v35 = vadd.f32 %v14342_v44, %v9819_v16  ;;  %v9820_v31 = vmul.f32 %v14340_v34, %v8948_v36  ;;  %v15350_v16 = vld [vmem:[#allocation83_spill] sm:$0xff] }
 0xacf   :  { %v10085_v4 = vadd.f32 %v14342_v44, %v9822_v39  ;;  %11877 = vmatmul.mubr.bf16.gmra.mrb[88].mxu0 %v15341_v57  ;;  %11585 = vmatpush3.bf16.xpose.msra.mxu1 %v14476_v52  ;;  %v10340_v19 = vmax.f32 %v10084_v26, 0.0 }
 0xad0   :  { %v10083_v33 = vadd.f32 %v14342_v44, %v9820_v31  ;;  %11880 = vmatprep.mubr.bf16.mxu0 %v15342_v27  ;;  %v10338_v49 = vmax.f32 %v10082_v35, 0.0 }
 0xad1   :  { %v10341_v5 = vmax.f32 %v10085_v4, 0.0 }
 0xad2   :  { %v10339_v20 = vmax.f32 %v10083_v33, 0.0 }
 0xad3   :  { %v10569_v46 = vpack.c.bf16 %v10341_v5, %v10340_v19 }
 0xad4   :  { %v10568_v62 = vpack.c.bf16 %v10339_v20, %v10338_v49 }
 0xad6   :  { %11586 = vmatprep.subr.bf16.mxu1 %v10568_v62 }
 0xad7   :  { %11881 = vmatmul.mubr.bf16.gmra.mrb[92].mxu0 %v15343_v55  ;;  %11587 = vmatpush3.bf16.xpose.msra.mxu1 %v14496_v53  ;;  %v15351_v55 = vld [vmem:[#allocation85_spill] sm:$0xff] }
 0xad8   :  { %11884 = vmatprep.mubr.bf16.mxu0 %v15344_v0  ;;  %11588 = vmatprep.subr.bf16.mxu1 %v10569_v46 }
 0xada   :  { %v11782_v50 = vpop.f32.mrb[248].mxu0 }
 0xadb   :  { %v9825_v52 = vmul.f32 %v11782_v50, %v14340_v34  ;;  %v8961_v25 = vpop.f32.mrb[249].mxu0  ;;  %v15352_v50 = vld [vmem:[#allocation87_spill] sm:$0xff] }
 0xadc   :  { %v9823_v43 = vmul.f32 %v14340_v34, %v8961_v25  ;;  %v11783_v54 = vpop.f32.mrb[250].mxu0 }
 0xadd   :  { %v10088_v60 = vadd.f32 %v14342_v44, %v9825_v52  ;;  %v9826_v47 = vmul.f32 %v11783_v54, %v14340_v34  ;;  %v8964_v29 = vpop.f32.mrb[251].mxu0 }
 0xade   :  { %v10086_v17 = vadd.f32 %v14342_v44, %v9823_v43  ;;  %v9824_v11 = vmul.f32 %v14340_v34, %v8964_v29 }
 0xadf   :  { %v10089_v53 = vadd.f32 %v14342_v44, %v9826_v47  ;;  %11885 = vmatmul.mubr.bf16.gmra.mrb[96].mxu0 %v15345_v1  ;;  %11589 = vmatpush3.bf16.xpose.msra.mxu1 %v14494_v30  ;;  %v10344_v38 = vmax.f32 %v10088_v60, 0.0 }
 0xae0   :  { %v10087_v13 = vadd.f32 %v14342_v44, %v9824_v11  ;;  %11888 = vmatprep.mubr.bf16.mxu0 %v15346_v8  ;;  %v10342_v24 = vmax.f32 %v10086_v17, 0.0 }
 0xae1   :  { %v10345_v10 = vmax.f32 %v10089_v53, 0.0 }
 0xae2   :  { %v10343_v58 = vmax.f32 %v10087_v13, 0.0 }
 0xae3   :  { %v10571_v2 = vpack.c.bf16 %v10345_v10, %v10344_v38 }
 0xae4   :  { %v10570_v32 = vpack.c.bf16 %v10343_v58, %v10342_v24  ;;  %v15353_v58 = vld [vmem:[#allocation89_spill] sm:$0xff] }
 0xae6   :  { %11590 = vmatprep.subr.bf16.mxu1 %v10570_v32  ;;  %v15354_v32 = vld [vmem:[#allocation91_spill] sm:$0xff] }
 0xae7   :  { %11889 = vmatmul.mubr.bf16.gmra.mrb[100].mxu0 %v15347_v15  ;;  %11591 = vmatpush3.bf16.xpose.msra.mxu1 %v14512_v6 }
 0xae8   :  { %11892 = vmatprep.mubr.bf16.mxu0 %v15348_v59  ;;  %11592 = vmatprep.subr.bf16.mxu1 %v10571_v2 }
 0xaea   :  { %v11786_v61 = vpop.f32.mrb[252].mxu0 }
 0xaeb   :  { %v9829_v30 = vmul.f32 %v11786_v61, %v14340_v34  ;;  %v8977_v37 = vpop.f32.mrb[253].mxu0 }
 0xaec   :  { %v9827_v12 = vmul.f32 %v14340_v34, %v8977_v37  ;;  %v11787_v7 = vpop.f32.mrb[254].mxu0 }
 0xaed   :  { %v10092_v22 = vadd.f32 %v14342_v44, %v9829_v30  ;;  %v9830_v3 = vmul.f32 %v11787_v7, %v14340_v34  ;;  %v8980_v63 = vpop.f32.mrb[255].mxu0 }
 0xaee   :  { %v10090_v40 = vadd.f32 %v14342_v44, %v9827_v12  ;;  %v9828_v42 = vmul.f32 %v14340_v34, %v8980_v63 }
 0xaef   :  { %v10093_v6 = vadd.f32 %v14342_v44, %v9830_v3  ;;  %11893 = vmatmul.mubr.bf16.gmra.mrb[104].mxu0 %v15349_v23  ;;  %11593 = vmatpush3.bf16.xpose.msra.mxu1 %v14510_v51  ;;  %v10348_v18 = vmax.f32 %v10092_v22, 0.0 }
 0xaf0   :  { %v10091_v28 = vadd.f32 %v14342_v44, %v9828_v42  ;;  %11896 = vmatprep.mubr.bf16.mxu0 %v15350_v16  ;;  %v10346_v39 = vmax.f32 %v10090_v40, 0.0 }
 0xaf1   :  { %v10349_v26 = vmax.f32 %v10093_v6, 0.0 }
 0xaf2   :  { %v10347_v36 = vmax.f32 %v10091_v28, 0.0  ;;  %v11790_v35 = vpop.f32.mrb[0].mxu0 }
 0xaf3   :  { %v9833_v31 = vmul.f32 %v11790_v35, %v14340_v34  ;;  %v8993_v4 = vpop.f32.mrb[1].mxu0  ;;  %v10573_v57 = vpack.c.bf16 %v10349_v26, %v10348_v18  ;;  %v15355_v18 = vld [vmem:[#allocation93_spill] sm:$0xff] }
 0xaf4   :  { %v9831_v33 = vmul.f32 %v14340_v34, %v8993_v4  ;;  %v11791_v27 = vpop.f32.mrb[2].mxu0  ;;  %v10572_v19 = vpack.c.bf16 %v10347_v36, %v10346_v39  ;;  %v15356_v39 = vld [vmem:[#allocation95_spill] sm:$0xff] }
 0xaf5   :  { %v10096_v5 = vadd.f32 %v14342_v44, %v9833_v31  ;;  %v9834_v51 = vmul.f32 %v11791_v27, %v14340_v34  ;;  %v8996_v49 = vpop.f32.mrb[3].mxu0 }
 0xaf6   :  { %v10094_v20 = vadd.f32 %v14342_v44, %v9831_v33  ;;  %v9832_v46 = vmul.f32 %v14340_v34, %v8996_v49  ;;  %11594 = vmatprep.subr.bf16.mxu1 %v10572_v19 }
 0xaf7   :  { %v10097_v62 = vadd.f32 %v14342_v44, %v9834_v51  ;;  %11897 = vmatmul.mubr.bf16.gmra.mrb[108].mxu0 %v15351_v55  ;;  %11595 = vmatpush3.bf16.xpose.msra.mxu1 %v14528_v56  ;;  %v10352_v52 = vmax.f32 %v10096_v5, 0.0 }
 0xaf8   :  { %v10095_v0 = vadd.f32 %v14342_v44, %v9832_v46  ;;  %11900 = vmatprep.mubr.bf16.mxu0 %v15352_v50  ;;  %11596 = vmatprep.subr.bf16.mxu1 %v10573_v57  ;;  %v10350_v43 = vmax.f32 %v10094_v20, 0.0  ;;  %v15357_v50 = vld [vmem:[#allocation97_spill] sm:$0xff] }
 0xaf9   :  { %v10353_v25 = vmax.f32 %v10097_v62, 0.0 }
 0xafa   :  { %v10351_v54 = vmax.f32 %v10095_v0, 0.0  ;;  %v11794_v60 = vpop.f32.mrb[4].mxu0 }
 0xafb   :  { %v14598_v47 = vpack.c.bf16 %v10353_v25, %v10352_v52  ;;  %v9837_v29 = vmul.f32 %v11794_v60, %v14340_v34  ;;  %v9009_v17 = vpop.f32.mrb[5].mxu0 }
 0xafc   :  { %v14601_v11 = vpack.c.bf16 %v10351_v54, %v10350_v43  ;;  %v9835_v53 = vmul.f32 %v14340_v34, %v9009_v17  ;;  %v11795_v56 = vpop.f32.mrb[6].mxu0 }
 0xafd   :  { %v10100_v1 = vadd.f32 %v14342_v44, %v9837_v29  ;;  %v9838_v13 = vmul.f32 %v11795_v56, %v14340_v34  ;;  %v9012_v8 = vpop.f32.mrb[7].mxu0 }
 0xafe   :  { %v10098_v38 = vadd.f32 %v14342_v44, %v9835_v53  ;;  %v9836_v10 = vmul.f32 %v14340_v34, %v9012_v8 }
 0xaff   :  { %v10101_v24 = vadd.f32 %v14342_v44, %v9838_v13  ;;  %11901 = vmatmul.mubr.bf16.gmra.mrb[112].mxu0 %v15353_v58  ;;  %11597 = vmatpush3.bf16.xpose.msra.mxu1 %v14526_v41  ;;  %v10356_v15 = vmax.f32 %v10100_v1, 0.0 }
 0xb00   :  { %v10099_v2 = vadd.f32 %v14342_v44, %v9836_v10  ;;  %11904 = vmatprep.mubr.bf16.mxu0 %v15354_v32  ;;  %v10354_v61 = vmax.f32 %v10098_v38, 0.0 }
 0xb01   :  { %v10357_v59 = vmax.f32 %v10101_v24, 0.0 }
 0xb02   :  { %v10355_v30 = vmax.f32 %v10099_v2, 0.0  ;;  %v11798_v37 = vpop.f32.mrb[8].mxu0 }
 0xb03   :  { %v14613_v12 = vpack.c.bf16 %v10357_v59, %v10356_v15  ;;  %v9841_v7 = vmul.f32 %v11798_v37, %v14340_v34  ;;  %v9025_v22 = vpop.f32.mrb[9].mxu0  ;;  %v15358_v15 = vld [vmem:[#allocation40_spill] sm:$0xff] }
 0xb04   :  { %v14616_v3 = vpack.c.bf16 %v10355_v30, %v10354_v61  ;;  %v9839_v63 = vmul.f32 %v14340_v34, %v9025_v22  ;;  %v11799_v40 = vpop.f32.mrb[10].mxu0 }
 0xb05   :  { %v10104_v41 = vadd.f32 %v14342_v44, %v9841_v7  ;;  %v9842_v42 = vmul.f32 %v11799_v40, %v14340_v34  ;;  %v9028_v6 = vpop.f32.mrb[11].mxu0 }
 0xb06   :  { %v10102_v23 = vadd.f32 %v14342_v44, %v9839_v63  ;;  %v9840_v28 = vmul.f32 %v14340_v34, %v9028_v6  ;;  %11599 = vmatmul.mubr.bf16.vlgmr.msra.gmra.mrb[196].mxu1 %v14417_v45 }
 0xb07   :  { %v10105_v16 = vadd.f32 %v14342_v44, %v9842_v42  ;;  %11905 = vmatmul.mubr.bf16.gmra.mrb[116].mxu0 %v15355_v18  ;;  %11616 = vmatprep.mubr.bf16.mxu1 %v14417_v45  ;;  %v10360_v36 = vmax.f32 %v10104_v41, 0.0 }
 0xb08   :  { %v10103_v26 = vadd.f32 %v14342_v44, %v9840_v28  ;;  %11908 = vmatprep.mubr.bf16.mxu0 %v15356_v39  ;;  %v10358_v31 = vmax.f32 %v10102_v23, 0.0  ;;  %v15359_v39 = vld [vmem:[#allocation42_spill] sm:$0xff] }
 0xb09   :  { %v10361_v35 = vmax.f32 %v10105_v16, 0.0 }
 0xb0a   :  { %v10359_v4 = vmax.f32 %v10103_v26, 0.0  ;;  %v11802_v57 = vpop.f32.mrb[12].mxu0 }
 0xb0b   :  { %v14629_v33 = vpack.c.bf16 %v10361_v35, %v10360_v36  ;;  %v9845_v27 = vmul.f32 %v11802_v57, %v14340_v34  ;;  %v9041_v19 = vpop.f32.mrb[13].mxu0  ;;  %v15360_v35 = vld [vmem:[#allocation44_spill] sm:$0xff] }
 0xb0c   :  { %v14632_v5 = vpack.c.bf16 %v10359_v4, %v10358_v31  ;;  %v9843_v51 = vmul.f32 %v14340_v34, %v9041_v19  ;;  %v11803_v49 = vpop.f32.mrb[14].mxu0 }
 0xb0d   :  { %v10108_v45 = vadd.f32 %v14342_v44, %v9845_v27  ;;  %v9846_v20 = vmul.f32 %v11803_v49, %v14340_v34  ;;  %v9044_v46 = vpop.f32.mrb[15].mxu0 }
 0xb0e   :  { %v10106_v62 = vadd.f32 %v14342_v44, %v9843_v51  ;;  %v9844_v55 = vmul.f32 %v14340_v34, %v9044_v46  ;;  %v14668_v51 = vld [vmem:[#allocation26] ss:$0 sm:$0xff] }
 0xb0f   :  { %v10109_v0 = vadd.f32 %v14342_v44, %v9846_v20  ;;  %11909 = vmatmul.mubr.bf16.gmra.mrb[120].mxu0 %v15357_v50  ;;  %v10364_v25 = vmax.f32 %v10108_v45, 0.0 }
 0xb10   :  { %v10107_v52 = vadd.f32 %v14342_v44, %v9844_v55  ;;  %11912 = vmatprep.mubr.bf16.mxu0 %v14320_v48  ;;  %v10362_v54 = vmax.f32 %v10106_v62, 0.0  ;;  %v14672_v62 = vld [vmem:[#allocation28] ss:$0 sm:$0xff] }
 0xb11   :  { %v10365_v43 = vmax.f32 %v10109_v0, 0.0 }
 0xb12   :  { %v10363_v60 = vmax.f32 %v10107_v52, 0.0  ;;  %v11806_v29 = vpop.f32.mrb[16].mxu0 }
 0xb13   :  { %v14643_v17 = vpack.c.bf16 %v10365_v43, %v10364_v25  ;;  %v9849_v53 = vmul.f32 %v11806_v29, %v14340_v34  ;;  %v9057_v56 = vpop.f32.mrb[17].mxu0  ;;  %v15361_v43 = vld [vmem:[#allocation46_spill] sm:$0xff] }
 0xb14   :  { %v14646_v1 = vpack.c.bf16 %v10363_v60, %v10362_v54  ;;  %v9847_v13 = vmul.f32 %v14340_v34, %v9057_v56  ;;  %v11807_v8 = vpop.f32.mrb[18].mxu0  ;;  %v15362_v60 = vld [vmem:[#allocation48_spill] sm:$0xff] }
 0xb15   :  { %v10112_v38 = vadd.f32 %v14342_v44, %v9849_v53  ;;  %v9850_v10 = vmul.f32 %v11807_v8, %v14340_v34  ;;  %v9060_v48 = vpop.f32.mrb[19].mxu0 }
 0xb16   :  { %v10110_v24 = vadd.f32 %v14342_v44, %v9847_v13  ;;  %v9848_v58 = vmul.f32 %v14340_v34, %v9060_v48 }
 0xb17   :  { %v10113_v2 = vadd.f32 %v14342_v44, %v9850_v10  ;;  %11913 = vmatmul.mubr.bf16.gmra.mrb[124].mxu0 %v14344_v9  ;;  %v10368_v59 = vmax.f32 %v10112_v38, 0.0 }
 0xb18   :  { %v10111_v32 = vadd.f32 %v14342_v44, %v9848_v58  ;;  %11916 = vmatprep.mubr.bf16.mxu0 %v15358_v15  ;;  %v10366_v30 = vmax.f32 %v10110_v24, 0.0 }
 0xb19   :  { %v10369_v61 = vmax.f32 %v10113_v2, 0.0 }
 0xb1a   :  { %v10367_v37 = vmax.f32 %v10111_v32, 0.0  ;;  %v11810_v7 = vpop.f32.mrb[20].mxu0 }
 0xb1b   :  { %v9853_v22 = vmul.f32 %v11810_v7, %v14340_v34  ;;  %v9073_v63 = vpop.f32.mrb[21].mxu0  ;;  %v10583_v40 = vpack.c.bf16 %v10369_v61, %v10368_v59 }
 0xb1c   :  { %v9851_v41 = vmul.f32 %v14340_v34, %v9073_v63  ;;  %v11811_v42 = vpop.f32.mrb[22].mxu0  ;;  %v10582_v6 = vpack.c.bf16 %v10367_v37, %v10366_v30  ;;  %v15363_v37 = vld [vmem:[#allocation50_spill] sm:$0xff] }
 0xb1d   :  { %v10116_v23 = vadd.f32 %v14342_v44, %v9853_v22  ;;  %v9854_v9 = vmul.f32 %v11811_v42, %v14340_v34  ;;  %v9076_v28 = vpop.f32.mrb[23].mxu0  ;;  %v15364_v22 = vld [vmem:[#allocation52_spill] sm:$0xff] }
 0xb1e   :  { %v10114_v16 = vadd.f32 %v14342_v44, %v9851_v41  ;;  %v9852_v18 = vmul.f32 %v14340_v34, %v9076_v28  ;;  %11600 = vmatprep.subr.bf16.mxu1 %v10582_v6 }
 0xb1f   :  { %v10117_v26 = vadd.f32 %v14342_v44, %v9854_v9  ;;  %11917 = vmatmul.mubr.bf16.gmra.mrb[128].mxu0 %v15359_v39  ;;  %11601 = vmatpush3.bf16.xpose.msra.mxu1 %v14601_v11  ;;  %v10372_v31 = vmax.f32 %v10116_v23, 0.0 }
 0xb20   :  { %v10115_v36 = vadd.f32 %v14342_v44, %v9852_v18  ;;  %11920 = vmatprep.mubr.bf16.mxu0 %v15360_v35  ;;  %11602 = vmatprep.subr.bf16.mxu1 %v10583_v40  ;;  %v10370_v57 = vmax.f32 %v10114_v16, 0.0 }
 0xb21   :  { %v10373_v4 = vmax.f32 %v10117_v26, 0.0 }
 0xb22   :  { %v10371_v27 = vmax.f32 %v10115_v36, 0.0  ;;  %v11814_v19 = vpop.f32.mrb[24].mxu0 }
 0xb23   :  { %v9857_v34 = vmul.f32 %v14668_v51, %v11814_v19  ;;  %v9089_v49 = vpop.f32.mrb[25].mxu0  ;;  %v10585_v45 = vpack.c.bf16 %v10373_v4, %v10372_v31  ;;  %v15366_v19 = vld [vmem:[#allocation56_spill] sm:$0xff] }
 0xb24   :  { %v9855_v20 = vmul.f32 %v14668_v51, %v9089_v49  ;;  %v11815_v46 = vpop.f32.mrb[26].mxu0  ;;  %v10584_v11 = vpack.c.bf16 %v10371_v27, %v10370_v57  ;;  %v15365_v57 = vld [vmem:[#allocation54_spill] sm:$0xff] }
 0xb25   :  { %v10120_v44 = vadd.f32 %v14672_v62, %v9857_v34  ;;  %v9858_v55 = vmul.f32 %v14668_v51, %v11815_v46  ;;  %v9092_v0 = vpop.f32.mrb[27].mxu0 }
 0xb26   :  { %v10118_v50 = vadd.f32 %v14672_v62, %v9855_v20  ;;  %v9856_v52 = vmul.f32 %v14668_v51, %v9092_v0 }
 0xb27   :  { %v10121_v25 = vadd.f32 %v14672_v62, %v9858_v55  ;;  %11921 = vmatmul.mubr.bf16.gmra.mrb[132].mxu0 %v15361_v43  ;;  %11603 = vmatpush3.bf16.xpose.msra.mxu1 %v14598_v47  ;;  %v10376_v29 = vmax.f32 %v10120_v44, 0.0 }
 0xb28   :  { %v10119_v54 = vadd.f32 %v14672_v62, %v9856_v52  ;;  %11924 = vmatprep.mubr.bf16.mxu0 %v15362_v60  ;;  %11604 = vmatprep.subr.bf16.mxu1 %v10584_v11  ;;  %v10374_v56 = vmax.f32 %v10118_v50, 0.0 }
 0xb29   :  { %v10377_v53 = vmax.f32 %v10121_v25, 0.0 }
 0xb2a   :  { %v10375_v13 = vmax.f32 %v10119_v54, 0.0  ;;  %v11818_v8 = vpop.f32.mrb[28].mxu0 }
 0xb2b   :  { %v9861_v38 = vmul.f32 %v14668_v51, %v11818_v8  ;;  %v9105_v10 = vpop.f32.mrb[29].mxu0  ;;  %v10587_v48 = vpack.c.bf16 %v10377_v53, %v10376_v29  ;;  %v15367_v53 = vld [vmem:[#allocation58_spill] sm:$0xff] }
 0xb2c   :  { %v9859_v24 = vmul.f32 %v14668_v51, %v9105_v10  ;;  %v11819_v58 = vpop.f32.mrb[30].mxu0  ;;  %v10586_v2 = vpack.c.bf16 %v10375_v13, %v10374_v56  ;;  %v15368_v13 = vld [vmem:[#allocation60_spill] sm:$0xff] }
 0xb2d   :  { %v10124_v47 = vadd.f32 %v14672_v62, %v9861_v38  ;;  %v9862_v32 = vmul.f32 %v14668_v51, %v11819_v58  ;;  %v9108_v15 = vpop.f32.mrb[31].mxu0 }
 0xb2e   :  { %v10122_v59 = vadd.f32 %v14672_v62, %v9859_v24  ;;  %v9860_v61 = vmul.f32 %v14668_v51, %v9108_v15 }
 0xb2f   :  { %v10125_v30 = vadd.f32 %v14672_v62, %v9862_v32  ;;  %11925 = vmatmul.mubr.bf16.gmra.mrb[136].mxu0 %v15363_v37  ;;  %11605 = vmatpush3.bf16.xpose.msra.mxu1 %v14616_v3  ;;  %v10380_v63 = vmax.f32 %v10124_v47, 0.0 }
 0xb30   :  { %v10123_v7 = vadd.f32 %v14672_v62, %v9860_v61  ;;  %11928 = vmatprep.mubr.bf16.mxu0 %v15364_v22  ;;  %11606 = vmatprep.subr.bf16.mxu1 %v10585_v45  ;;  %v10378_v41 = vmax.f32 %v10122_v59, 0.0 }
 0xb31   :  { %v10381_v40 = vmax.f32 %v10125_v30, 0.0 }
 0xb32   :  { %v10379_v42 = vmax.f32 %v10123_v7, 0.0  ;;  %v11822_v6 = vpop.f32.mrb[32].mxu0 }
 0xb33   :  { %v9865_v23 = vmul.f32 %v14668_v51, %v11822_v6  ;;  %v9121_v9 = vpop.f32.mrb[33].mxu0  ;;  %v14695_v28 = vpack.c.bf16 %v10381_v40, %v10380_v63  ;;  %v15369_v63 = vld [vmem:[#allocation62_spill] sm:$0xff] }
 0xb34   :  { %v9863_v16 = vmul.f32 %v14668_v51, %v9121_v9  ;;  %v11823_v18 = vpop.f32.mrb[34].mxu0  ;;  %v10588_v26 = vpack.c.bf16 %v10379_v42, %v10378_v41  ;;  %v15370_v41 = vld [vmem:[#allocation64_spill] sm:$0xff] }
 0xb35   :  { %v10128_v3 = vadd.f32 %v14672_v62, %v9865_v23  ;;  %v9866_v39 = vmul.f32 %v14668_v51, %v11823_v18  ;;  %v9124_v36 = vpop.f32.mrb[35].mxu0 }
 0xb36   :  { %v10126_v35 = vadd.f32 %v14672_v62, %v9863_v16  ;;  %v9864_v31 = vmul.f32 %v14668_v51, %v9124_v36 }
 0xb37   :  { %v10129_v4 = vadd.f32 %v14672_v62, %v9866_v39  ;;  %11929 = vmatmul.mubr.bf16.gmra.mrb[140].mxu0 %v15365_v57  ;;  %11607 = vmatpush3.bf16.xpose.msra.mxu1 %v14613_v12  ;;  %v10384_v34 = vmax.f32 %v10128_v3, 0.0 }
 0xb38   :  { %v10127_v27 = vadd.f32 %v14672_v62, %v9864_v31  ;;  %11932 = vmatprep.mubr.bf16.mxu0 %v15366_v19  ;;  %11608 = vmatprep.subr.bf16.mxu1 %v10586_v2  ;;  %v10382_v45 = vmax.f32 %v10126_v35, 0.0 }
 0xb39   :  { %v10385_v49 = vmax.f32 %v10129_v4, 0.0 }
 0xb3a   :  { %v10383_v20 = vmax.f32 %v10127_v27, 0.0  ;;  %v11826_v46 = vpop.f32.mrb[36].mxu0 }
 0xb3b   :  { %v14707_v11 = vpack.c.bf16 %v10385_v49, %v10384_v34  ;;  %v9869_v44 = vmul.f32 %v14668_v51, %v11826_v46  ;;  %v9137_v55 = vpop.f32.mrb[37].mxu0  ;;  %v15371_v34 = vld [vmem:[#allocation66_spill] sm:$0xff] }
 0xb3c   :  { %v14710_v0 = vpack.c.bf16 %v10383_v20, %v10382_v45  ;;  %v9867_v50 = vmul.f32 %v14668_v51, %v9137_v55  ;;  %v11827_v12 = vpop.f32.mrb[38].mxu0  ;;  %v15372_v45 = vld [vmem:[#allocation68_spill] sm:$0xff] }
 0xb3d   :  { %v10132_v52 = vadd.f32 %v14672_v62, %v9869_v44  ;;  %v9870_v25 = vmul.f32 %v14668_v51, %v11827_v12  ;;  %v9140_v43 = vpop.f32.mrb[39].mxu0 }
 0xb3e   :  { %v10130_v54 = vadd.f32 %v14672_v62, %v9867_v50  ;;  %v9868_v60 = vmul.f32 %v14668_v51, %v9140_v43 }
 0xb3f   :  { %v10133_v29 = vadd.f32 %v14672_v62, %v9870_v25  ;;  %11933 = vmatmul.mubr.bf16.gmra.mrb[144].mxu0 %v15367_v53  ;;  %11609 = vmatpush3.bf16.xpose.msra.mxu1 %v14632_v5  ;;  %v10388_v8 = vmax.f32 %v10132_v52, 0.0 }
 0xb40   :  { %v10131_v56 = vadd.f32 %v14672_v62, %v9868_v60  ;;  %11936 = vmatprep.mubr.bf16.mxu0 %v15368_v13  ;;  %11610 = vmatprep.subr.bf16.mxu1 %v10587_v48  ;;  %v10386_v10 = vmax.f32 %v10130_v54, 0.0 }
 0xb41   :  { %v10389_v38 = vmax.f32 %v10133_v29, 0.0 }
 0xb42   :  { %v10387_v24 = vmax.f32 %v10131_v56, 0.0  ;;  %v11830_v58 = vpop.f32.mrb[40].mxu0 }
 0xb43   :  { %v14722_v2 = vpack.c.bf16 %v10389_v38, %v10388_v8  ;;  %v9873_v47 = vmul.f32 %v14668_v51, %v11830_v58  ;;  %v9153_v32 = vpop.f32.mrb[41].mxu0  ;;  %v15373_v8 = vld [vmem:[#allocation70_spill] sm:$0xff]  ;;  %v14766_v38 = vpop.permute.xlu0 %10674 }
 0xb44   :  { %v14725_v15 = vpack.c.bf16 %v10387_v24, %v10386_v10  ;;  %v9871_v59 = vmul.f32 %v14668_v51, %v9153_v32  ;;  %v11831_v5 = vpop.f32.mrb[42].mxu0  ;;  %v15374_v24 = vld [vmem:[#allocation72_spill] sm:$0xff] }
 0xb45   :  { %v10136_v61 = vadd.f32 %v14672_v62, %v9873_v47  ;;  %v9874_v30 = vmul.f32 %v14668_v51, %v11831_v5  ;;  %v9156_v48 = vpop.f32.mrb[43].mxu0 }
 0xb46   :  { %v10134_v37 = vadd.f32 %v14672_v62, %v9871_v59  ;;  %v9872_v7 = vmul.f32 %v14668_v51, %v9156_v48 }
 0xb47   :  { %v10137_v22 = vadd.f32 %v14672_v62, %v9874_v30  ;;  %11937 = vmatmul.mubr.bf16.gmra.mrb[148].mxu0 %v15369_v63  ;;  %11611 = vmatpush3.bf16.xpose.msra.mxu1 %v14629_v33  ;;  %v10392_v42 = vmax.f32 %v10136_v61, 0.0 }
 0xb48   :  { %v10135_v40 = vadd.f32 %v14672_v62, %v9872_v7  ;;  %11940 = vmatprep.mubr.bf16.mxu0 %v15370_v41  ;;  %11612 = vmatprep.subr.bf16.mxu1 %v10588_v26  ;;  %v10390_v23 = vmax.f32 %v10134_v37, 0.0 }
 0xb49   :  { %v10393_v6 = vmax.f32 %v10137_v22, 0.0 }
 0xb4a   :  { %v10391_v9 = vmax.f32 %v10135_v40, 0.0  ;;  %v11834_v16 = vpop.f32.mrb[44].mxu0 }
 0xb4b   :  { %v14737_v18 = vpack.c.bf16 %v10393_v6, %v10392_v42  ;;  %v9877_v3 = vmul.f32 %v14668_v51, %v11834_v16  ;;  %v9169_v39 = vpop.f32.mrb[45].mxu0 }
 0xb4c   :  { %v14740_v36 = vpack.c.bf16 %v10391_v9, %v10390_v23  ;;  %v9875_v35 = vmul.f32 %v14668_v51, %v9169_v39  ;;  %v11835_v33 = vpop.f32.mrb[46].mxu0 }
 0xb4d   :  { %v10140_v31 = vadd.f32 %v14672_v62, %v9877_v3  ;;  %v9878_v4 = vmul.f32 %v14668_v51, %v11835_v33  ;;  %v9172_v26 = vpop.f32.mrb[47].mxu0  ;;  %v14778_v33 = vld [vmem:[#allocation29] sm:$0x3] }
 0xb4e   :  { %v10138_v57 = vadd.f32 %v14672_v62, %v9875_v35  ;;  %v9876_v27 = vmul.f32 %v14668_v51, %v9172_v26 }
 0xb4f   :  { %v10141_v19 = vadd.f32 %v14672_v62, %v9878_v4  ;;  %11941 = vmatmul.mubr.bf16.gmra.mrb[152].mxu0 %v15371_v34  ;;  %11613 = vmatpush3.bf16.xpose.msra.mxu1 %v14646_v1  ;;  %v10396_v20 = vmax.f32 %v10140_v31, 0.0  ;;  %v15375_v4 = vld [vmem:[#allocation74_spill] sm:$0xff] }
 0xb50   :  { %v10139_v49 = vadd.f32 %v14672_v62, %v9876_v27  ;;  %11944 = vmatprep.mubr.bf16.mxu0 %v15372_v45  ;;  %11614 = vmatprep.subr.bf16.mxu1 %v14695_v28  ;;  %v10394_v44 = vmax.f32 %v10138_v57, 0.0  ;;  %v15377_v57 = vld [vmem:[#allocation76_spill] sm:$0xff] }
 0xb51   :  { %v10397_v46 = vmax.f32 %v10141_v19, 0.0 }
 0xb52   :  { %v10395_v55 = vmax.f32 %v10139_v49, 0.0  ;;  %v11838_v50 = vpop.f32.mrb[48].mxu0 }
 0xb53   :  { %v14753_v12 = vpack.c.bf16 %v10397_v46, %v10396_v20  ;;  %v9881_v52 = vmul.f32 %v14668_v51, %v11838_v50  ;;  %v9185_v25 = vpop.f32.mrb[49].mxu0 }
 0xb54   :  { %v14756_v43 = vpack.c.bf16 %v10395_v55, %v10394_v44  ;;  %v9879_v1 = vmul.f32 %v14668_v51, %v9185_v25  ;;  %v11839_v54 = vpop.f32.mrb[50].mxu0 }
 0xb55   :  { %v10144_v60 = vadd.f32 %v14672_v62, %v9881_v52  ;;  %v9882_v29 = vmul.f32 %v14668_v51, %v11839_v54  ;;  %v9188_v28 = vpop.f32.mrb[51].mxu0 }
 0xb56   :  { %v10142_v53 = vadd.f32 %v14672_v62, %v9879_v1  ;;  %v9880_v56 = vmul.f32 %v14668_v51, %v9188_v28  ;;  %v15378_v28 = vld [vmem:[#allocation78_spill] sm:$0xff] }
 0xb57   :  { %v10145_v13 = vadd.f32 %v14672_v62, %v9882_v29  ;;  %11945 = vmatmul.mubr.bf16.gmra.mrb[156].mxu0 %v15373_v8  ;;  %11615 = vmatpush3.bf16.xpose.msra.mxu1 %v14643_v17  ;;  %v10400_v58 = vmax.f32 %v10144_v60, 0.0 }
 0xb58   :  { %v10143_v10 = vadd.f32 %v14672_v62, %v9880_v56  ;;  %11948 = vmatprep.mubr.bf16.mxu0 %v15374_v24  ;;  %v10398_v59 = vmax.f32 %v10142_v53, 0.0  ;;  %v15379_v56 = vld [vmem:[#allocation80_spill] sm:$0xff] }
 0xb59   :  { %v10401_v47 = vmax.f32 %v10145_v13, 0.0 }
 0xb5a   :  { %v10711_v32 = vpop.f32.mrb[192].mxu1  ;;  %v10399_v5 = vmax.f32 %v10143_v10, 0.0  ;;  %v11842_v61 = vpop.f32.mrb[52].mxu0 }
 0xb5b   :  { %v10713_v30 = vpop.f32.mrb[193].mxu1  ;;  %v10712_v48 = vadd.f32 %v10711_v32, %v14766_v38  ;;  %v9885_v37 = vmul.f32 %v14668_v51, %v11842_v61  ;;  %v9201_v7 = vpop.f32.mrb[53].mxu0  ;;  %v10599_v22 = vpack.c.bf16 %v10401_v47, %v10400_v58 }
 0xb5c   :  { %v10715_v17 = vpop.f32.mrb[194].mxu1  ;;  %v10714_v63 = vadd.f32 %v10713_v30, %v14766_v38  ;;  %v9883_v40 = vmul.f32 %v14668_v51, %v9201_v7  ;;  %v11843_v41 = vpop.f32.mrb[54].mxu0  ;;  %v10598_v42 = vpack.c.bf16 %v10399_v5, %v10398_v59 }
 0xb5d   :  { %v10716_v6 = vpop.f32.mrb[195].mxu1  ;;  %v10148_v23 = vadd.f32 %v14672_v62, %v9885_v37  ;;  %v9886_v9 = vmul.f32 %v14668_v51, %v11843_v41  ;;  %v9204_v16 = vpop.f32.mrb[55].mxu0  ;;  %v15381_v41 = vld [vmem:[#allocation84_spill] sm:$0xff] }
 0xb5e   :  { %v11021_v3 = vcombine.low %v10712_v48, %v10714_v63  ;;  %v10146_v39 = vadd.f32 %v14672_v62, %v9883_v40  ;;  %v9884_v35 = vmul.f32 %v14668_v51, %v9204_v16  ;;  %11618 = vmatprep.subr.bf16.mxu1 %v10598_v42  ;;  %11617 = vmatmul.mubr.bf16.vlgmr.msra.gmra.mrb[200].mxu1 %v14778_v33  ;;  %v15380_v63 = vld [vmem:[#allocation82_spill] sm:$0xff] }
 0xb5f   :  { %v10149_v31 = vadd.f32 %v14672_v62, %v9886_v9  ;;  %11949 = vmatmul.mubr.bf16.gmra.mrb[160].mxu0 %v15375_v4  ;;  %11619 = vmatpush3.bf16.xpose.msra.mxu1 %v14710_v0  ;;  %v10404_v27 = vmax.f32 %v10148_v23, 0.0 }
 0xb60   :  { %11037 = vst [vmem:[%s15376_s25] sm:$0xff] %v11021_v3  ;;  %v10147_v26 = vadd.f32 %v14672_v62, %v9884_v35  ;;  %11952 = vmatprep.mubr.bf16.mxu0 %v15377_v57  ;;  %11620 = vmatprep.subr.bf16.mxu1 %v10599_v22  ;;  %v10402_v34 = vmax.f32 %v10146_v39, 0.0 }
 0xb61   :  { %v10405_v19 = vmax.f32 %v10149_v31, 0.0  ;;  %11634 = vmatprep.mubr.bf16.mxu1 %v14778_v33 }
 0xb62   :  { %v10403_v49 = vmax.f32 %v10147_v26, 0.0  ;;  %v11846_v45 = vpop.f32.mrb[56].mxu0 }
 0xb63   :  { %v9889_v20 = vmul.f32 %v14668_v51, %v11846_v45  ;;  %v9217_v46 = vpop.f32.mrb[57].mxu0  ;;  %v10601_v0 = vpack.c.bf16 %v10405_v19, %v10404_v27  ;;  %v15382_v45 = vld [vmem:[#allocation86_spill] sm:$0xff] }
 0xb64   :  { %v9887_v44 = vmul.f32 %v14668_v51, %v9217_v46  ;;  %v11847_v55 = vpop.f32.mrb[58].mxu0  ;;  %v10600_v50 = vpack.c.bf16 %v10403_v49, %v10402_v34  ;;  %v15383_v46 = vld [vmem:[#allocation88_spill] sm:$0xff] }
 0xb65   :  { %v10152_v52 = vadd.f32 %v14672_v62, %v9889_v20  ;;  %v9890_v25 = vmul.f32 %v14668_v51, %v11847_v55  ;;  %v9220_v1 = vpop.f32.mrb[59].mxu0 }
 0xb66   :  { %v10150_v54 = vadd.f32 %v14672_v62, %v9887_v44  ;;  %v9888_v60 = vmul.f32 %v14668_v51, %v9220_v1 }
 0xb67   :  { %v10153_v29 = vadd.f32 %v14672_v62, %v9890_v25  ;;  %11953 = vmatmul.mubr.bf16.gmra.mrb[164].mxu0 %v15378_v28  ;;  %11621 = vmatpush3.bf16.xpose.msra.mxu1 %v14707_v11  ;;  %v10408_v13 = vmax.f32 %v10152_v52, 0.0 }
 0xb68   :  { %v10151_v53 = vadd.f32 %v14672_v62, %v9888_v60  ;;  %11956 = vmatprep.mubr.bf16.mxu0 %v15379_v56  ;;  %11622 = vmatprep.subr.bf16.mxu1 %v10600_v50  ;;  %v10406_v10 = vmax.f32 %v10150_v54, 0.0 }
 0xb69   :  { %v10409_v8 = vmax.f32 %v10153_v29, 0.0 }
 0xb6a   :  { %v10407_v24 = vmax.f32 %v10151_v53, 0.0  ;;  %v11850_v58 = vpop.f32.mrb[60].mxu0 }
 0xb6b   :  { %v9893_v47 = vmul.f32 %v14668_v51, %v11850_v58  ;;  %v9233_v32 = vpop.f32.mrb[61].mxu0  ;;  %v10603_v59 = vpack.c.bf16 %v10409_v8, %v10408_v13 }
 0xb6c   :  { %v9891_v5 = vmul.f32 %v14668_v51, %v9233_v32  ;;  %v11851_v61 = vpop.f32.mrb[62].mxu0  ;;  %v10602_v30 = vpack.c.bf16 %v10407_v24, %v10406_v10  ;;  %v15384_v24 = vld [vmem:[#allocation90_spill] sm:$0xff] }
 0xb6d   :  { %v10156_v11 = vadd.f32 %v14672_v62, %v9893_v47  ;;  %v9894_v48 = vmul.f32 %v14668_v51, %v11851_v61  ;;  %v9236_v37 = vpop.f32.mrb[63].mxu0  ;;  %v15385_v47 = vld [vmem:[#allocation92_spill] sm:$0xff] }
 0xb6e   :  { %v10154_v7 = vadd.f32 %v14672_v62, %v9891_v5  ;;  %v9892_v22 = vmul.f32 %v14668_v51, %v9236_v37 }
 0xb6f   :  { %v10157_v17 = vadd.f32 %v14672_v62, %v9894_v48  ;;  %11957 = vmatmul.mubr.bf16.gmra.mrb[168].mxu0 %v15380_v63  ;;  %11623 = vmatpush3.bf16.xpose.msra.mxu1 %v14725_v15  ;;  %v10412_v42 = vmax.f32 %v10156_v11, 0.0 }
 0xb70   :  { %v10155_v40 = vadd.f32 %v14672_v62, %v9892_v22  ;;  %11960 = vmatprep.mubr.bf16.mxu0 %v15381_v41  ;;  %11624 = vmatprep.subr.bf16.mxu1 %v10601_v0  ;;  %v10410_v23 = vmax.f32 %v10154_v7, 0.0 }
 0xb71   :  { %v10413_v6 = vmax.f32 %v10157_v17, 0.0 }
 0xb72   :  { %v10411_v9 = vmax.f32 %v10155_v40, 0.0  ;;  %v11854_v16 = vpop.f32.mrb[64].mxu0 }
 0xb73   :  { %v9897_v3 = vmul.f32 %v14668_v51, %v11854_v16  ;;  %v9249_v39 = vpop.f32.mrb[65].mxu0  ;;  %v14813_v35 = vpack.c.bf16 %v10413_v6, %v10412_v42  ;;  %v15387_v16 = vld [vmem:[#allocation96_spill] sm:$0xff] }
 0xb74   :  { %v9895_v31 = vmul.f32 %v14668_v51, %v9249_v39  ;;  %v11855_v4 = vpop.f32.mrb[66].mxu0  ;;  %v10604_v26 = vpack.c.bf16 %v10411_v9, %v10410_v23  ;;  %v15386_v23 = vld [vmem:[#allocation94_spill] sm:$0xff] }
 0xb75   :  { %v10160_v15 = vadd.f32 %v14672_v62, %v9897_v3  ;;  %v9898_v57 = vmul.f32 %v14668_v51, %v11855_v4  ;;  %v9252_v27 = vpop.f32.mrb[67].mxu0 }
 0xb76   :  { %v10158_v19 = vadd.f32 %v14672_v62, %v9895_v31  ;;  %v9896_v34 = vmul.f32 %v14668_v51, %v9252_v27 }
 0xb77   :  { %v10161_v49 = vadd.f32 %v14672_v62, %v9898_v57  ;;  %11961 = vmatmul.mubr.bf16.gmra.mrb[172].mxu0 %v15382_v45  ;;  %11625 = vmatpush3.bf16.xpose.msra.mxu1 %v14722_v2  ;;  %v10416_v0 = vmax.f32 %v10160_v15, 0.0 }
 0xb78   :  { %v10159_v20 = vadd.f32 %v14672_v62, %v9896_v34  ;;  %11964 = vmatprep.mubr.bf16.mxu0 %v15383_v46  ;;  %11626 = vmatprep.subr.bf16.mxu1 %v10602_v30  ;;  %v10414_v55 = vmax.f32 %v10158_v19, 0.0 }
 0xb79   :  { %v10417_v44 = vmax.f32 %v10161_v49, 0.0 }
 0xb7a   :  { %v10415_v50 = vmax.f32 %v10159_v20, 0.0  ;;  %v11858_v52 = vpop.f32.mrb[68].mxu0 }
 0xb7b   :  { %v14825_v25 = vpack.c.bf16 %v10417_v44, %v10416_v0  ;;  %v9901_v1 = vmul.f32 %v14668_v51, %v11858_v52  ;;  %v9265_v54 = vpop.f32.mrb[69].mxu0 }
 0xb7c   :  { %v14828_v60 = vpack.c.bf16 %v10415_v50, %v10414_v55  ;;  %v9899_v29 = vmul.f32 %v14668_v51, %v9265_v54  ;;  %v11859_v2 = vpop.f32.mrb[70].mxu0  ;;  %v15388_v55 = vld [vmem:[#allocation98_spill] sm:$0xff] }
 0xb7d   :  { %v10164_v28 = vadd.f32 %v14672_v62, %v9901_v1  ;;  %v9902_v53 = vmul.f32 %v14668_v51, %v11859_v2  ;;  %v9268_v56 = vpop.f32.mrb[71].mxu0 }
 0xb7e   :  { %v10162_v13 = vadd.f32 %v14672_v62, %v9899_v29  ;;  %v9900_v8 = vmul.f32 %v14668_v51, %v9268_v56 }
 0xb7f   :  { %v10165_v10 = vadd.f32 %v14672_v62, %v9902_v53  ;;  %11965 = vmatmul.mubr.bf16.gmra.mrb[176].mxu0 %v15384_v24  ;;  %11627 = vmatpush3.bf16.xpose.msra.mxu1 %v14740_v36  ;;  %v10420_v32 = vmax.f32 %v10164_v28, 0.0 }
 0xb80   :  { %v10163_v58 = vadd.f32 %v14672_v62, %v9900_v8  ;;  %11968 = vmatprep.mubr.bf16.mxu0 %v15385_v47  ;;  %11628 = vmatprep.subr.bf16.mxu1 %v10603_v59  ;;  %v10418_v61 = vmax.f32 %v10162_v13, 0.0 }
 0xb81   :  { %v10421_v5 = vmax.f32 %v10165_v10, 0.0 }
 0xb82   :  { %v10419_v30 = vmax.f32 %v10163_v58, 0.0  ;;  %v11862_v11 = vpop.f32.mrb[72].mxu0 }
 0xb83   :  { %v14840_v48 = vpack.c.bf16 %v10421_v5, %v10420_v32  ;;  %v9905_v37 = vmul.f32 %v14668_v51, %v11862_v11  ;;  %v9281_v7 = vpop.f32.mrb[73].mxu0 }
 0xb84   :  { %v14843_v22 = vpack.c.bf16 %v10419_v30, %v10418_v61  ;;  %v9903_v17 = vmul.f32 %v14668_v51, %v9281_v7  ;;  %v11863_v36 = vpop.f32.mrb[74].mxu0 }
 0xb85   :  { %v10168_v63 = vadd.f32 %v14672_v62, %v9905_v37  ;;  %v9906_v40 = vmul.f32 %v14668_v51, %v11863_v36  ;;  %v9284_v59 = vpop.f32.mrb[75].mxu0 }
 0xb86   :  { %v10166_v41 = vadd.f32 %v14672_v62, %v9903_v17  ;;  %v9904_v42 = vmul.f32 %v14668_v51, %v9284_v59 }
 0xb87   :  { %v10169_v6 = vadd.f32 %v14672_v62, %v9906_v40  ;;  %11969 = vmatmul.mubr.bf16.gmra.mrb[180].mxu0 %v15386_v23  ;;  %11629 = vmatpush3.bf16.xpose.msra.mxu1 %v14737_v18  ;;  %v10424_v3 = vmax.f32 %v10168_v63, 0.0 }
 0xb88   :  { %v10167_v9 = vadd.f32 %v14672_v62, %v9904_v42  ;;  %11972 = vmatprep.mubr.bf16.mxu0 %v15387_v16  ;;  %11630 = vmatprep.subr.bf16.mxu1 %v10604_v26  ;;  %v10422_v31 = vmax.f32 %v10166_v41, 0.0 }
 0xb89   :  { %v10425_v39 = vmax.f32 %v10169_v6, 0.0 }
 0xb8a   :  { %v10423_v4 = vmax.f32 %v10167_v9, 0.0  ;;  %v11866_v15 = vpop.f32.mrb[76].mxu0 }
 0xb8b   :  { %v14855_v57 = vpack.c.bf16 %v10425_v39, %v10424_v3  ;;  %v9909_v27 = vmul.f32 %v14668_v51, %v11866_v15  ;;  %v9297_v19 = vpop.f32.mrb[77].mxu0 }
 0xb8c   :  { %v14858_v34 = vpack.c.bf16 %v10423_v4, %v10422_v31  ;;  %v9907_v49 = vmul.f32 %v14668_v51, %v9297_v19  ;;  %v11867_v18 = vpop.f32.mrb[78].mxu0 }
 0xb8d   :  { %v10172_v45 = vadd.f32 %v14672_v62, %v9909_v27  ;;  %v9910_v20 = vmul.f32 %v14668_v51, %v11867_v18  ;;  %v9300_v26 = vpop.f32.mrb[79].mxu0 }
 0xb8e   :  { %v10170_v46 = vadd.f32 %v14672_v62, %v9907_v49  ;;  %v9908_v0 = vmul.f32 %v14668_v51, %v9300_v26 }
 0xb8f   :  { %v10173_v44 = vadd.f32 %v14672_v62, %v9910_v20  ;;  %11973 = vmatmul.mubr.bf16.gmra.mrb[184].mxu0 %v15388_v55  ;;  %11631 = vmatpush3.bf16.xpose.msra.mxu1 %v14756_v43  ;;  %v10428_v52 = vmax.f32 %v10172_v45, 0.0 }
 0xb90   :  { %v10171_v50 = vadd.f32 %v14672_v62, %v9908_v0  ;;  %11976 = vmatprep.mubr.bf16.mxu0 %v14326_v14  ;;  %11632 = vmatprep.subr.bf16.mxu1 %v14813_v35  ;;  %v10426_v54 = vmax.f32 %v10170_v46, 0.0 }
 0xb91   :  { %v10429_v1 = vmax.f32 %v10173_v44, 0.0 }
 0xb92   :  { %v10427_v29 = vmax.f32 %v10171_v50, 0.0  ;;  %v11870_v2 = vpop.f32.mrb[80].mxu0 }
 0xb93   :  { %v14871_v28 = vpack.c.bf16 %v10429_v1, %v10428_v52  ;;  %v9913_v53 = vmul.f32 %v14668_v51, %v11870_v2  ;;  %v9313_v56 = vpop.f32.mrb[81].mxu0 }
 0xb94   :  { %v14874_v13 = vpack.c.bf16 %v10427_v29, %v10426_v54  ;;  %v9911_v43 = vmul.f32 %v14668_v51, %v9313_v56  ;;  %v11871_v8 = vpop.f32.mrb[82].mxu0 }
 0xb95   :  { %v10176_v10 = vadd.f32 %v14672_v62, %v9913_v53  ;;  %v9914_v14 = vmul.f32 %v14668_v51, %v11871_v8  ;;  %v9316_v35 = vpop.f32.mrb[83].mxu0 }
 0xb96   :  { %v10174_v24 = vadd.f32 %v14672_v62, %v9911_v43  ;;  %v9912_v58 = vmul.f32 %v14668_v51, %v9316_v35 }
 0xb97   :  { %v10177_v47 = vadd.f32 %v14672_v62, %v9914_v14  ;;  %11977 = vmatmul.mubr.bf16.gmra.mrb[188].mxu0 %v14349_v21  ;;  %11633 = vmatpush3.bf16.xpose.msra.mxu1 %v14753_v12  ;;  %v10432_v5 = vmax.f32 %v10176_v10, 0.0 }
 0xb98   :  { %v10175_v32 = vadd.f32 %v14672_v62, %v9912_v58  ;;  %v10430_v30 = vmax.f32 %v10174_v24, 0.0 }
 0xb99   :  { %v10433_v61 = vmax.f32 %v10177_v47, 0.0 }
 0xb9a   :  { %v10431_v11 = vmax.f32 %v10175_v32, 0.0  ;;  %v11874_v37 = vpop.f32.mrb[84].mxu0 }
 0xb9b   :  { %v9917_v7 = vmul.f32 %v14668_v51, %v11874_v37  ;;  %v9329_v17 = vpop.f32.mrb[85].mxu0  ;;  %v10615_v36 = vpack.c.bf16 %v10433_v61, %v10432_v5 }
 0xb9c   :  { %v9915_v63 = vmul.f32 %v14668_v51, %v9329_v17  ;;  %v11875_v40 = vpop.f32.mrb[86].mxu0  ;;  %v10614_v59 = vpack.c.bf16 %v10431_v11, %v10430_v30 }
 0xb9d   :  { %v10180_v41 = vadd.f32 %v14672_v62, %v9917_v7  ;;  %v9918_v21 = vmul.f32 %v14668_v51, %v11875_v40  ;;  %v9332_v12 = vpop.f32.mrb[87].mxu0 }
 0xb9e   :  { %v10178_v42 = vadd.f32 %v14672_v62, %v9915_v63  ;;  %v9916_v6 = vmul.f32 %v14668_v51, %v9332_v12  ;;  %11636 = vmatprep.subr.bf16.mxu1 %v10614_v59  ;;  %11635 = vmatmul.mubr.bf16.vlgmr.msra.gmra.mrb[204].mxu1 %v14778_v33 }
 0xb9f   :  { %v10181_v23 = vadd.f32 %v14672_v62, %v9918_v21  ;;  %11637 = vmatpush3.bf16.xpose.msra.mxu1 %v14828_v60  ;;  %11652 = vmatprep.mubr.bf16.mxu1 %v14778_v33  ;;  %v10436_v16 = vmax.f32 %v10180_v41, 0.0 }
 0xba0   :  { %v10179_v9 = vadd.f32 %v14672_v62, %v9916_v6  ;;  %11638 = vmatprep.subr.bf16.mxu1 %v10615_v36  ;;  %v10434_v39 = vmax.f32 %v10178_v42, 0.0 }
 0xba1   :  { %v10437_v3 = vmax.f32 %v10181_v23, 0.0 }
 0xba2   :  { %v10435_v31 = vmax.f32 %v10179_v9, 0.0  ;;  %v11878_v4 = vpop.f32.mrb[88].mxu0 }
 0xba3   :  { %v9921_v15 = vmul.f32 %v14668_v51, %v11878_v4  ;;  %v9345_v27 = vpop.f32.mrb[89].mxu0  ;;  %v10617_v19 = vpack.c.bf16 %v10437_v3, %v10436_v16 }
 0xba4   :  { %v9919_v49 = vmul.f32 %v14668_v51, %v9345_v27  ;;  %v11879_v18 = vpop.f32.mrb[90].mxu0  ;;  %v10616_v45 = vpack.c.bf16 %v10435_v31, %v10434_v39 }
 0xba5   :  { %v10184_v60 = vadd.f32 %v14672_v62, %v9921_v15  ;;  %v9922_v20 = vmul.f32 %v14668_v51, %v11879_v18  ;;  %v9348_v26 = vpop.f32.mrb[91].mxu0 }
 0xba6   :  { %v10182_v46 = vadd.f32 %v14672_v62, %v9919_v49  ;;  %v9920_v0 = vmul.f32 %v14668_v51, %v9348_v26 }
 0xba7   :  { %v10185_v44 = vadd.f32 %v14672_v62, %v9922_v20  ;;  %11639 = vmatpush3.bf16.xpose.msra.mxu1 %v14825_v25  ;;  %v10440_v50 = vmax.f32 %v10184_v60, 0.0 }
 0xba8   :  { %v10183_v55 = vadd.f32 %v14672_v62, %v9920_v0  ;;  %11640 = vmatprep.subr.bf16.mxu1 %v10616_v45  ;;  %v10438_v1 = vmax.f32 %v10182_v46, 0.0 }
 0xba9   :  { %v10441_v52 = vmax.f32 %v10185_v44, 0.0 }
 0xbaa   :  { %v10439_v54 = vmax.f32 %v10183_v55, 0.0  ;;  %v11882_v29 = vpop.f32.mrb[92].mxu0 }
 0xbab   :  { %v9925_v2 = vmul.f32 %v14668_v51, %v11882_v29  ;;  %v9361_v53 = vpop.f32.mrb[93].mxu0  ;;  %v10619_v56 = vpack.c.bf16 %v10441_v52, %v10440_v50 }
 0xbac   :  { %v9923_v43 = vmul.f32 %v14668_v51, %v9361_v53  ;;  %v11883_v8 = vpop.f32.mrb[94].mxu0  ;;  %v10618_v10 = vpack.c.bf16 %v10439_v54, %v10438_v1 }
 0xbad   :  { %v10188_v14 = vadd.f32 %v14672_v62, %v9925_v2  ;;  %v9926_v25 = vmul.f32 %v14668_v51, %v11883_v8  ;;  %v9364_v35 = vpop.f32.mrb[95].mxu0 }
 0xbae   :  { %v10186_v24 = vadd.f32 %v14672_v62, %v9923_v43  ;;  %v9924_v58 = vmul.f32 %v14668_v51, %v9364_v35 }
 0xbaf   :  { %v10189_v47 = vadd.f32 %v14672_v62, %v9926_v25  ;;  %11641 = vmatpush3.bf16.xpose.msra.mxu1 %v14843_v22  ;;  %v10444_v5 = vmax.f32 %v10188_v14, 0.0 }
 0xbb0   :  { %v10187_v32 = vadd.f32 %v14672_v62, %v9924_v58  ;;  %11642 = vmatprep.subr.bf16.mxu1 %v10617_v19  ;;  %v10442_v30 = vmax.f32 %v10186_v24, 0.0 }
 0xbb1   :  { %v10445_v61 = vmax.f32 %v10189_v47, 0.0 }
 0xbb2   :  { %v10443_v11 = vmax.f32 %v10187_v32, 0.0  ;;  %v11886_v37 = vpop.f32.mrb[96].mxu0 }
 0xbb3   :  { %v9929_v7 = vmul.f32 %v14668_v51, %v11886_v37  ;;  %v9377_v17 = vpop.f32.mrb[97].mxu0  ;;  %v14915_v36 = vpack.c.bf16 %v10445_v61, %v10444_v5 }
 0xbb4   :  { %v9927_v63 = vmul.f32 %v14668_v51, %v9377_v17  ;;  %v11887_v40 = vpop.f32.mrb[98].mxu0  ;;  %v10620_v59 = vpack.c.bf16 %v10443_v11, %v10442_v30 }
 0xbb5   :  { %v10192_v41 = vadd.f32 %v14672_v62, %v9929_v7  ;;  %v9930_v22 = vmul.f32 %v14668_v51, %v11887_v40  ;;  %v9380_v21 = vpop.f32.mrb[99].mxu0 }
 0xbb6   :  { %v10190_v12 = vadd.f32 %v14672_v62, %v9927_v63  ;;  %v9928_v42 = vmul.f32 %v14668_v51, %v9380_v21 }
 0xbb7   :  { %v10193_v6 = vadd.f32 %v14672_v62, %v9930_v22  ;;  %11643 = vmatpush3.bf16.xpose.msra.mxu1 %v14840_v48  ;;  %v10448_v9 = vmax.f32 %v10192_v41, 0.0 }
 0xbb8   :  { %v10191_v23 = vadd.f32 %v14672_v62, %v9928_v42  ;;  %11644 = vmatprep.subr.bf16.mxu1 %v10618_v10  ;;  %v10446_v3 = vmax.f32 %v10190_v12, 0.0 }
 0xbb9   :  { %v10449_v16 = vmax.f32 %v10193_v6, 0.0 }
 0xbba   :  { %v10447_v39 = vmax.f32 %v10191_v23, 0.0  ;;  %v11890_v31 = vpop.f32.mrb[100].mxu0 }
 0xbbb   :  { %v14925_v4 = vpack.c.bf16 %v10449_v16, %v10448_v9  ;;  %v9933_v15 = vmul.f32 %v14668_v51, %v11890_v31  ;;  %v9393_v27 = vpop.f32.mrb[101].mxu0 }
 0xbbc   :  { %v14928_v19 = vpack.c.bf16 %v10447_v39, %v10446_v3  ;;  %v9931_v49 = vmul.f32 %v14668_v51, %v9393_v27  ;;  %v11891_v18 = vpop.f32.mrb[102].mxu0 }
 0xbbd   :  { %v10196_v48 = vadd.f32 %v14672_v62, %v9933_v15  ;;  %v9934_v45 = vmul.f32 %v14668_v51, %v11891_v18  ;;  %v9396_v60 = vpop.f32.mrb[103].mxu0 }
 0xbbe   :  { %v10194_v20 = vadd.f32 %v14672_v62, %v9931_v49  ;;  %v9932_v26 = vmul.f32 %v14668_v51, %v9396_v60 }
 0xbbf   :  { %v10197_v46 = vadd.f32 %v14672_v62, %v9934_v45  ;;  %11645 = vmatpush3.bf16.xpose.msra.mxu1 %v14858_v34  ;;  %v10452_v44 = vmax.f32 %v10196_v48, 0.0 }
 0xbc0   :  { %v10195_v0 = vadd.f32 %v14672_v62, %v9932_v26  ;;  %11646 = vmatprep.subr.bf16.mxu1 %v10619_v56  ;;  %v10450_v50 = vmax.f32 %v10194_v20, 0.0 }
 0xbc1   :  { %v10453_v55 = vmax.f32 %v10197_v46, 0.0 }
 0xbc2   :  { %v10451_v52 = vmax.f32 %v10195_v0, 0.0  ;;  %v11894_v1 = vpop.f32.mrb[104].mxu0 }
 0xbc3   :  { %v14938_v54 = vpack.c.bf16 %v10453_v55, %v10452_v44  ;;  %v9937_v29 = vmul.f32 %v14668_v51, %v11894_v1  ;;  %v9409_v2 = vpop.f32.mrb[105].mxu0 }
 0xbc4   :  { %v14941_v53 = vpack.c.bf16 %v10451_v52, %v10450_v50  ;;  %v9935_v43 = vmul.f32 %v14668_v51, %v9409_v2  ;;  %v11895_v8 = vpop.f32.mrb[106].mxu0 }
 0xbc5   :  { %v10200_v34 = vadd.f32 %v14672_v62, %v9937_v29  ;;  %v9938_v10 = vmul.f32 %v14668_v51, %v11895_v8  ;;  %v9412_v56 = vpop.f32.mrb[107].mxu0 }
 0xbc6   :  { %v10198_v14 = vadd.f32 %v14672_v62, %v9935_v43  ;;  %v9936_v25 = vmul.f32 %v14668_v51, %v9412_v56 }
 0xbc7   :  { %v10201_v35 = vadd.f32 %v14672_v62, %v9938_v10  ;;  %11647 = vmatpush3.bf16.xpose.msra.mxu1 %v14855_v57  ;;  %v10456_v58 = vmax.f32 %v10200_v34, 0.0 }
 0xbc8   :  { %v10199_v24 = vadd.f32 %v14672_v62, %v9936_v25  ;;  %11648 = vmatprep.subr.bf16.mxu1 %v10620_v59  ;;  %v10454_v32 = vmax.f32 %v10198_v14, 0.0 }
 0xbc9   :  { %v10457_v47 = vmax.f32 %v10201_v35, 0.0  ;;  %v14983_v35 = vld [vmem:[#allocation26] ss:$0 sm:$0xff] }
 0xbca   :  { %v10455_v5 = vmax.f32 %v10199_v24, 0.0  ;;  %v11898_v61 = vpop.f32.mrb[108].mxu0 }
 0xbcb   :  { %v14951_v30 = vpack.c.bf16 %v10457_v47, %v10456_v58  ;;  %v9941_v11 = vmul.f32 %v14668_v51, %v11898_v61  ;;  %v9425_v37 = vpop.f32.mrb[109].mxu0  ;;  %v14989_v61 = vld [vmem:[#allocation28] ss:$0 sm:$0xff] }
 0xbcc   :  { %v14954_v7 = vpack.c.bf16 %v10455_v5, %v10454_v32  ;;  %v9939_v17 = vmul.f32 %v14668_v51, %v9425_v37  ;;  %v11899_v63 = vpop.f32.mrb[110].mxu0 }
 0xbcd   :  { %v10204_v57 = vadd.f32 %v14672_v62, %v9941_v11  ;;  %v9942_v40 = vmul.f32 %v14668_v51, %v11899_v63  ;;  %v9428_v59 = vpop.f32.mrb[111].mxu0 }
 0xbce   :  { %v10202_v41 = vadd.f32 %v14672_v62, %v9939_v17  ;;  %v9940_v22 = vmul.f32 %v14668_v51, %v9428_v59 }
 0xbcf   :  { %v10205_v21 = vadd.f32 %v14672_v62, %v9942_v40  ;;  %11649 = vmatpush3.bf16.xpose.msra.mxu1 %v14874_v13  ;;  %v10460_v42 = vmax.f32 %v10204_v57, 0.0 }
 0xbd0   :  { %v10203_v12 = vadd.f32 %v14672_v62, %v9940_v22  ;;  %11650 = vmatprep.subr.bf16.mxu1 %v14915_v36  ;;  %v10458_v23 = vmax.f32 %v10202_v41, 0.0 }
 0xbd1   :  { %v10461_v6 = vmax.f32 %v10205_v21, 0.0 }
 0xbd2   :  { %v10459_v9 = vmax.f32 %v10203_v12, 0.0  ;;  %v11902_v16 = vpop.f32.mrb[112].mxu0 }
 0xbd3   :  { %v14965_v3 = vpack.c.bf16 %v10461_v6, %v10460_v42  ;;  %v9945_v39 = vmul.f32 %v14668_v51, %v11902_v16  ;;  %v9441_v31 = vpop.f32.mrb[113].mxu0 }
 0xbd4   :  { %v14968_v15 = vpack.c.bf16 %v10459_v9, %v10458_v23  ;;  %v9943_v27 = vmul.f32 %v14668_v51, %v9441_v31  ;;  %v11903_v49 = vpop.f32.mrb[114].mxu0 }
 0xbd5   :  { %v10208_v13 = vadd.f32 %v14672_v62, %v9945_v39  ;;  %v9946_v18 = vmul.f32 %v14668_v51, %v11903_v49  ;;  %v9444_v36 = vpop.f32.mrb[115].mxu0 }
 0xbd6   :  { %v10206_v48 = vadd.f32 %v14672_v62, %v9943_v27  ;;  %v9944_v45 = vmul.f32 %v14668_v51, %v9444_v36 }
 0xbd7   :  { %v10209_v60 = vadd.f32 %v14672_v62, %v9946_v18  ;;  %11651 = vmatpush3.bf16.xpose.msra.mxu1 %v14871_v28  ;;  %v10464_v26 = vmax.f32 %v10208_v13, 0.0 }
 0xbd8   :  { %v10207_v20 = vadd.f32 %v14672_v62, %v9944_v45  ;;  %v10462_v44 = vmax.f32 %v10206_v48, 0.0 }
 0xbd9   :  { %v10465_v46 = vmax.f32 %v10209_v60, 0.0  ;;  %v10752_v0 = vpop.f32.mrb[196].mxu1 }
 0xbda   :  { %v10463_v55 = vmax.f32 %v10207_v20, 0.0  ;;  %v11906_v50 = vpop.f32.mrb[116].mxu0  ;;  %v10753_v52 = vadd.f32 %v10752_v0, %v14766_v38  ;;  %v10754_v1 = vpop.f32.mrb[197].mxu1 }
 0xbdb   :  { %v9949_v29 = vmul.f32 %v14668_v51, %v11906_v50  ;;  %v9457_v2 = vpop.f32.mrb[117].mxu0  ;;  %v10631_v43 = vpack.c.bf16 %v10465_v46, %v10464_v26  ;;  %v10755_v8 = vadd.f32 %v10754_v1, %v14766_v38  ;;  %v10756_v34 = vpop.f32.mrb[198].mxu1 }
 0xbdc   :  { %v9947_v28 = vmul.f32 %v14668_v51, %v9457_v2  ;;  %v11907_v10 = vpop.f32.mrb[118].mxu0  ;;  %v10630_v56 = vpack.c.bf16 %v10463_v55, %v10462_v44  ;;  %v10757_v14 = vpop.f32.mrb[199].mxu1 }
 0xbdd   :  { %v10212_v25 = vadd.f32 %v14672_v62, %v9949_v29  ;;  %v9950_v24 = vmul.f32 %v14983_v35, %v11907_v10  ;;  %v9460_v58 = vpop.f32.mrb[119].mxu0  ;;  %v11022_v47 = vcombine.low %v10753_v52, %v10755_v8 }
 0xbde   :  { %v10210_v32 = vadd.f32 %v14672_v62, %v9947_v28  ;;  %v9948_v5 = vmul.f32 %v14983_v35, %v9460_v58  ;;  %11654 = vmatprep.subr.bf16.mxu1 %v10630_v56  ;;  %11653 = vmatmul.mubr.bf16.vlgmr.msra.gmra.mrb[208].mxu1 %v14778_v33 }
 0xbdf   :  { %v10213_v51 = vadd.f32 %v14989_v61, %v9950_v24  ;;  %11655 = vmatpush3.bf16.xpose.msra.mxu1 %v14928_v19  ;;  %11670 = vmatprep.mubr.bf16.mxu1 %v14778_v33  ;;  %11038 = vst [vmem:[%s15376_s25 + $0x8] sm:$0xff] %v11022_v47  ;;  %v10468_v62 = vmax.f32 %v10212_v25, 0.0 }
 0xbe0   :  { %v10211_v11 = vadd.f32 %v14989_v61, %v9948_v5  ;;  %11656 = vmatprep.subr.bf16.mxu1 %v10631_v43  ;;  %v10466_v17 = vmax.f32 %v10210_v32, 0.0 }
 0xbe1   :  { %v10469_v37 = vmax.f32 %v10213_v51, 0.0 }
 0xbe2   :  { %v10467_v63 = vmax.f32 %v10211_v11, 0.0  ;;  %v11910_v57 = vpop.f32.mrb[120].mxu0 }
 0xbe3   :  { %v9953_v40 = vmul.f32 %v14983_v35, %v11910_v57  ;;  %v9473_v59 = vpop.f32.mrb[121].mxu0  ;;  %v10633_v41 = vpack.c.bf16 %v10469_v37, %v10468_v62 }
 0xbe4   :  { %v9951_v19 = vmul.f32 %v14983_v35, %v9473_v59  ;;  %v11911_v22 = vpop.f32.mrb[122].mxu0  ;;  %v10632_v21 = vpack.c.bf16 %v10467_v63, %v10466_v17 }
 0xbe5   :  { %v10216_v12 = vadd.f32 %v14989_v61, %v9953_v40  ;;  %v9954_v42 = vmul.f32 %v14983_v35, %v11911_v22  ;;  %v9476_v6 = vpop.f32.mrb[123].mxu0 }
 0xbe6   :  { %v10214_v23 = vadd.f32 %v14989_v61, %v9951_v19  ;;  %v9952_v9 = vmul.f32 %v14983_v35, %v9476_v6 }
 0xbe7   :  { %v10217_v16 = vadd.f32 %v14989_v61, %v9954_v42  ;;  %11657 = vmatpush3.bf16.xpose.msra.mxu1 %v14925_v4  ;;  %v10472_v31 = vmax.f32 %v10216_v12, 0.0 }
 0xbe8   :  { %v10215_v39 = vadd.f32 %v14989_v61, %v9952_v9  ;;  %11658 = vmatprep.subr.bf16.mxu1 %v10632_v21  ;;  %v10470_v49 = vmax.f32 %v10214_v23, 0.0 }
 0xbe9   :  { %v10473_v27 = vmax.f32 %v10217_v16, 0.0 }
 0xbea   :  { %v10471_v13 = vmax.f32 %v10215_v39, 0.0  ;;  %v11914_v18 = vpop.f32.mrb[124].mxu0 }
 0xbeb   :  { %v9957_v36 = vmul.f32 %v14983_v35, %v11914_v18  ;;  %v9489_v48 = vpop.f32.mrb[125].mxu0  ;;  %v10635_v45 = vpack.c.bf16 %v10473_v27, %v10472_v31 }
 0xbec   :  { %v9955_v60 = vmul.f32 %v14983_v35, %v9489_v48  ;;  %v11915_v20 = vpop.f32.mrb[126].mxu0  ;;  %v10634_v26 = vpack.c.bf16 %v10471_v13, %v10470_v49 }
 0xbed   :  { %v10220_v46 = vadd.f32 %v14989_v61, %v9957_v36  ;;  %v9958_v4 = vmul.f32 %v14983_v35, %v11915_v20  ;;  %v9492_v0 = vpop.f32.mrb[127].mxu0 }
 0xbee   :  { %v10218_v44 = vadd.f32 %v14989_v61, %v9955_v60  ;;  %v9956_v55 = vmul.f32 %v14983_v35, %v9492_v0 }
 0xbef   :  { %v10221_v50 = vadd.f32 %v14989_v61, %v9958_v4  ;;  %11659 = vmatpush3.bf16.xpose.msra.mxu1 %v14941_v53  ;;  %v10476_v1 = vmax.f32 %v10220_v46, 0.0 }
 0xbf0   :  { %v10219_v52 = vadd.f32 %v14989_v61, %v9956_v55  ;;  %11660 = vmatprep.subr.bf16.mxu1 %v10633_v41  ;;  %v10474_v2 = vmax.f32 %v10218_v44, 0.0 }
 0xbf1   :  { %v10477_v29 = vmax.f32 %v10221_v50, 0.0 }
 0xbf2   :  { %v10475_v43 = vmax.f32 %v10219_v52, 0.0  ;;  %v11918_v8 = vpop.f32.mrb[128].mxu0 }
 0xbf3   :  { %v9961_v34 = vmul.f32 %v14983_v35, %v11918_v8  ;;  %v9505_v28 = vpop.f32.mrb[129].mxu0  ;;  %v15017_v10 = vpack.c.bf16 %v10477_v29, %v10476_v1 }
 0xbf4   :  { %v9959_v56 = vmul.f32 %v14983_v35, %v9505_v28  ;;  %v11919_v14 = vpop.f32.mrb[130].mxu0  ;;  %v10636_v25 = vpack.c.bf16 %v10475_v43, %v10474_v2 }
 0xbf5   :  { %v10224_v24 = vadd.f32 %v14989_v61, %v9961_v34  ;;  %v9962_v53 = vmul.f32 %v14983_v35, %v11919_v14  ;;  %v9508_v58 = vpop.f32.mrb[131].mxu0 }
 0xbf6   :  { %v10222_v47 = vadd.f32 %v14989_v61, %v9959_v56  ;;  %v9960_v32 = vmul.f32 %v14983_v35, %v9508_v58 }
 0xbf7   :  { %v10225_v5 = vadd.f32 %v14989_v61, %v9962_v53  ;;  %11661 = vmatpush3.bf16.xpose.msra.mxu1 %v14938_v54  ;;  %v10480_v11 = vmax.f32 %v10224_v24, 0.0 }
 0xbf8   :  { %v10223_v51 = vadd.f32 %v14989_v61, %v9960_v32  ;;  %11662 = vmatprep.subr.bf16.mxu1 %v10634_v26  ;;  %v10478_v37 = vmax.f32 %v10222_v47, 0.0 }
 0xbf9   :  { %v10481_v62 = vmax.f32 %v10225_v5, 0.0 }
 0xbfa   :  { %v10479_v17 = vmax.f32 %v10223_v51, 0.0  ;;  %v11922_v63 = vpop.f32.mrb[132].mxu0 }
 0xbfb   :  { %v15027_v57 = vpack.c.bf16 %v10481_v62, %v10480_v11  ;;  %v9965_v40 = vmul.f32 %v14983_v35, %v11922_v63  ;;  %v9521_v59 = vpop.f32.mrb[133].mxu0 }
 0xbfc   :  { %v15030_v41 = vpack.c.bf16 %v10479_v17, %v10478_v37  ;;  %v9963_v19 = vmul.f32 %v14983_v35, %v9521_v59  ;;  %v11923_v22 = vpop.f32.mrb[134].mxu0 }
 0xbfd   :  { %v10228_v54 = vadd.f32 %v14989_v61, %v9965_v40  ;;  %v9966_v21 = vmul.f32 %v14983_v35, %v11923_v22  ;;  %v9524_v12 = vpop.f32.mrb[135].mxu0 }
 0xbfe   :  { %v10226_v42 = vadd.f32 %v14989_v61, %v9963_v19  ;;  %v9964_v6 = vmul.f32 %v14983_v35, %v9524_v12 }
 0xbff   :  { %v10229_v23 = vadd.f32 %v14989_v61, %v9966_v21  ;;  %11663 = vmatpush3.bf16.xpose.msra.mxu1 %v14954_v7  ;;  %v10484_v16 = vmax.f32 %v10228_v54, 0.0 }
 0xc00   :  { %v10227_v9 = vadd.f32 %v14989_v61, %v9964_v6  ;;  %11664 = vmatprep.subr.bf16.mxu1 %v10635_v45  ;;  %v10482_v31 = vmax.f32 %v10226_v42, 0.0 }
 0xc01   :  { %v10485_v39 = vmax.f32 %v10229_v23, 0.0 }
 0xc02   :  { %v10483_v27 = vmax.f32 %v10227_v9, 0.0  ;;  %v11926_v49 = vpop.f32.mrb[136].mxu0 }
 0xc03   :  { %v15040_v13 = vpack.c.bf16 %v10485_v39, %v10484_v16  ;;  %v9969_v18 = vmul.f32 %v14983_v35, %v11926_v49  ;;  %v9537_v36 = vpop.f32.mrb[137].mxu0 }
 0xc04   :  { %v15043_v48 = vpack.c.bf16 %v10483_v27, %v10482_v31  ;;  %v9967_v60 = vmul.f32 %v14983_v35, %v9537_v36  ;;  %v11927_v20 = vpop.f32.mrb[138].mxu0 }
 0xc05   :  { %v10232_v7 = vadd.f32 %v14989_v61, %v9969_v18  ;;  %v9970_v26 = vmul.f32 %v14983_v35, %v11927_v20  ;;  %v9540_v45 = vpop.f32.mrb[139].mxu0 }
 0xc06   :  { %v10230_v46 = vadd.f32 %v14989_v61, %v9967_v60  ;;  %v9968_v4 = vmul.f32 %v14983_v35, %v9540_v45 }
 0xc07   :  { %v10233_v0 = vadd.f32 %v14989_v61, %v9970_v26  ;;  %11665 = vmatpush3.bf16.xpose.msra.mxu1 %v14951_v30  ;;  %v10488_v55 = vmax.f32 %v10232_v7, 0.0 }
 0xc08   :  { %v10231_v44 = vadd.f32 %v14989_v61, %v9968_v4  ;;  %11666 = vmatprep.subr.bf16.mxu1 %v10636_v25  ;;  %v10486_v52 = vmax.f32 %v10230_v46, 0.0  ;;  %v15089_v4 = vld [vmem:[#allocation29] sm:$0x3] }
 0xc09   :  { %v10489_v50 = vmax.f32 %v10233_v0, 0.0 }
 0xc0a   :  { %v10487_v1 = vmax.f32 %v10231_v44, 0.0  ;;  %v11930_v29 = vpop.f32.mrb[140].mxu0 }
 0xc0b   :  { %v15053_v2 = vpack.c.bf16 %v10489_v50, %v10488_v55  ;;  %v9973_v43 = vmul.f32 %v14983_v35, %v11930_v29  ;;  %v9553_v8 = vpop.f32.mrb[141].mxu0 }
 0xc0c   :  { %v15056_v34 = vpack.c.bf16 %v10487_v1, %v10486_v52  ;;  %v9971_v28 = vmul.f32 %v14983_v35, %v9553_v8  ;;  %v11931_v56 = vpop.f32.mrb[142].mxu0 }
 0xc0d   :  { %v10236_v30 = vadd.f32 %v14989_v61, %v9973_v43  ;;  %v9974_v14 = vmul.f32 %v14983_v35, %v11931_v56  ;;  %v9556_v25 = vpop.f32.mrb[143].mxu0 }
 0xc0e   :  { %v10234_v24 = vadd.f32 %v14989_v61, %v9971_v28  ;;  %v9972_v53 = vmul.f32 %v14983_v35, %v9556_v25 }
 0xc0f   :  { %v10237_v58 = vadd.f32 %v14989_v61, %v9974_v14  ;;  %11667 = vmatpush3.bf16.xpose.msra.mxu1 %v14968_v15  ;;  %v10492_v32 = vmax.f32 %v10236_v30, 0.0 }
 0xc10   :  { %v10235_v47 = vadd.f32 %v14989_v61, %v9972_v53  ;;  %11668 = vmatprep.subr.bf16.mxu1 %v15017_v10  ;;  %v10490_v51 = vmax.f32 %v10234_v24, 0.0 }
 0xc11   :  { %v10493_v5 = vmax.f32 %v10237_v58, 0.0 }
 0xc12   :  { %v10491_v11 = vmax.f32 %v10235_v47, 0.0  ;;  %v11934_v62 = vpop.f32.mrb[144].mxu0 }
 0xc13   :  { %v15067_v37 = vpack.c.bf16 %v10493_v5, %v10492_v32  ;;  %v9977_v17 = vmul.f32 %v14983_v35, %v11934_v62  ;;  %v9569_v63 = vpop.f32.mrb[145].mxu0 }
 0xc14   :  { %v15070_v40 = vpack.c.bf16 %v10491_v11, %v10490_v51  ;;  %v9975_v59 = vmul.f32 %v14983_v35, %v9569_v63  ;;  %v11935_v19 = vpop.f32.mrb[146].mxu0 }
 0xc15   :  { %v10240_v15 = vadd.f32 %v14989_v61, %v9977_v17  ;;  %v9978_v22 = vmul.f32 %v14983_v35, %v11935_v19  ;;  %v9572_v10 = vpop.f32.mrb[147].mxu0 }
 0xc16   :  { %v10238_v54 = vadd.f32 %v14989_v61, %v9975_v59  ;;  %v9976_v21 = vmul.f32 %v14983_v35, %v9572_v10 }
 0xc17   :  { %v10241_v12 = vadd.f32 %v14989_v61, %v9978_v22  ;;  %11669 = vmatpush3.bf16.xpose.msra.mxu1 %v14965_v3  ;;  %v10496_v6 = vmax.f32 %v10240_v15, 0.0 }
 0xc18   :  { %v10239_v42 = vadd.f32 %v14989_v61, %v9976_v21  ;;  %v10494_v9 = vmax.f32 %v10238_v54, 0.0 }
 0xc19   :  { %v10497_v23 = vmax.f32 %v10241_v12, 0.0 }
 0xc1a   :  { %v10495_v16 = vmax.f32 %v10239_v42, 0.0  ;;  %v11938_v39 = vpop.f32.mrb[148].mxu0 }
 0xc1b   :  { %v9981_v31 = vmul.f32 %v14983_v35, %v11938_v39  ;;  %v9585_v27 = vpop.f32.mrb[149].mxu0  ;;  %v10647_v49 = vpack.c.bf16 %v10497_v23, %v10496_v6 }
 0xc1c   :  { %v9979_v18 = vmul.f32 %v14983_v35, %v9585_v27  ;;  %v11939_v36 = vpop.f32.mrb[150].mxu0  ;;  %v10646_v60 = vpack.c.bf16 %v10495_v16, %v10494_v9 }
 0xc1d   :  { %v10244_v20 = vadd.f32 %v14989_v61, %v9981_v31  ;;  %v9982_v7 = vmul.f32 %v14983_v35, %v11939_v36  ;;  %v9588_v3 = vpop.f32.mrb[151].mxu0 }
 0xc1e   :  { %v10242_v26 = vadd.f32 %v14989_v61, %v9979_v18  ;;  %v9980_v45 = vmul.f32 %v14983_v35, %v9588_v3  ;;  %11672 = vmatprep.subr.bf16.mxu1 %v10646_v60  ;;  %11671 = vmatmul.mubr.bf16.vlgmr.msra.gmra.mrb[212].mxu1 %v14778_v33 }
 0xc1f   :  { %v10245_v46 = vadd.f32 %v14989_v61, %v9982_v7  ;;  %11673 = vmatpush3.bf16.xpose.msra.mxu1 %v15030_v41  ;;  %11688 = vmatprep.mubr.bf16.mxu1 %v15089_v4  ;;  %v10500_v44 = vmax.f32 %v10244_v20, 0.0 }
 0xc20   :  { %v10243_v0 = vadd.f32 %v14989_v61, %v9980_v45  ;;  %11674 = vmatprep.subr.bf16.mxu1 %v10647_v49  ;;  %v10498_v50 = vmax.f32 %v10242_v26, 0.0 }
 0xc21   :  { %v10501_v55 = vmax.f32 %v10245_v46, 0.0 }
 0xc22   :  { %v10499_v52 = vmax.f32 %v10243_v0, 0.0  ;;  %v11942_v1 = vpop.f32.mrb[152].mxu0 }
 0xc23   :  { %v9985_v29 = vmul.f32 %v14983_v35, %v11942_v1  ;;  %v9601_v43 = vpop.f32.mrb[153].mxu0  ;;  %v10649_v33 = vpack.c.bf16 %v10501_v55, %v10500_v44 }
 0xc24   :  { %v9983_v8 = vmul.f32 %v14983_v35, %v9601_v43  ;;  %v11943_v28 = vpop.f32.mrb[154].mxu0  ;;  %v10648_v41 = vpack.c.bf16 %v10499_v52, %v10498_v50 }
 0xc25   :  { %v10248_v56 = vadd.f32 %v14989_v61, %v9985_v29  ;;  %v9986_v30 = vmul.f32 %v14983_v35, %v11943_v28  ;;  %v9604_v14 = vpop.f32.mrb[155].mxu0 }
 0xc26   :  { %v10246_v25 = vadd.f32 %v14989_v61, %v9983_v8  ;;  %v9984_v24 = vmul.f32 %v14983_v35, %v9604_v14 }
 0xc27   :  { %v10249_v53 = vadd.f32 %v14989_v61, %v9986_v30  ;;  %11675 = vmatpush3.bf16.xpose.msra.mxu1 %v15027_v57  ;;  %v10504_v47 = vmax.f32 %v10248_v56, 0.0 }
 0xc28   :  { %v10247_v58 = vadd.f32 %v14989_v61, %v9984_v24  ;;  %11676 = vmatprep.subr.bf16.mxu1 %v10648_v41  ;;  %v10502_v5 = vmax.f32 %v10246_v25, 0.0 }
 0xc29   :  { %v10505_v32 = vmax.f32 %v10249_v53, 0.0 }
 0xc2a   :  { %v10503_v51 = vmax.f32 %v10247_v58, 0.0  ;;  %v11946_v11 = vpop.f32.mrb[156].mxu0 }
 0xc2b   :  { %v9989_v62 = vmul.f32 %v14983_v35, %v11946_v11  ;;  %v9617_v17 = vpop.f32.mrb[157].mxu0  ;;  %v10651_v63 = vpack.c.bf16 %v10505_v32, %v10504_v47 }
 0xc2c   :  { %v9987_v59 = vmul.f32 %v14983_v35, %v9617_v17  ;;  %v11947_v19 = vpop.f32.mrb[158].mxu0  ;;  %v10650_v15 = vpack.c.bf16 %v10503_v51, %v10502_v5 }
 0xc2d   :  { %v10252_v22 = vadd.f32 %v14989_v61, %v9989_v62  ;;  %v9990_v57 = vmul.f32 %v14983_v35, %v11947_v19  ;;  %v9620_v10 = vpop.f32.mrb[159].mxu0 }
 0xc2e   :  { %v10250_v54 = vadd.f32 %v14989_v61, %v9987_v59  ;;  %v9988_v21 = vmul.f32 %v14983_v35, %v9620_v10 }
 0xc2f   :  { %v10253_v12 = vadd.f32 %v14989_v61, %v9990_v57  ;;  %11677 = vmatpush3.bf16.xpose.msra.mxu1 %v15043_v48  ;;  %v10508_v6 = vmax.f32 %v10252_v22, 0.0 }
 0xc30   :  { %v10251_v42 = vadd.f32 %v14989_v61, %v9988_v21  ;;  %11678 = vmatprep.subr.bf16.mxu1 %v10649_v33  ;;  %v10506_v16 = vmax.f32 %v10250_v54, 0.0 }
 0xc31   :  { %v10509_v23 = vmax.f32 %v10253_v12, 0.0  ;;  %v10793_v9 = vpop.f32.mrb[200].mxu1 }
 0xc32   :  { %v10507_v39 = vmax.f32 %v10251_v42, 0.0  ;;  %v11950_v31 = vpop.f32.mrb[160].mxu0  ;;  %v10794_v27 = vadd.f32 %v10793_v9, %v14766_v38  ;;  %v10795_v49 = vpop.f32.mrb[201].mxu1 }
 0xc33   :  { %v9993_v18 = vmul.f32 %v14983_v35, %v11950_v31  ;;  %v9633_v36 = vpop.f32.mrb[161].mxu0  ;;  %v15113_v60 = vpack.c.bf16 %v10509_v23, %v10508_v6  ;;  %v10796_v20 = vadd.f32 %v10795_v49, %v14766_v38  ;;  %v10797_v48 = vpop.f32.mrb[202].mxu1 }
 0xc34   :  { %v9991_v7 = vmul.f32 %v14983_v35, %v9633_v36  ;;  %v11951_v3 = vpop.f32.mrb[162].mxu0  ;;  %v10652_v26 = vpack.c.bf16 %v10507_v39, %v10506_v16  ;;  %v10798_v45 = vpop.f32.mrb[203].mxu1 }
 0xc35   :  { %v10256_v46 = vadd.f32 %v14989_v61, %v9993_v18  ;;  %v9994_v0 = vmul.f32 %v14983_v35, %v11951_v3  ;;  %v9636_v44 = vpop.f32.mrb[163].mxu0  ;;  %v11023_v55 = vcombine.low %v10794_v27, %v10796_v20 }
 0xc36   :  { %v10254_v50 = vadd.f32 %v14989_v61, %v9991_v7  ;;  %v9992_v52 = vmul.f32 %v14983_v35, %v9636_v44 }
 0xc37   :  { %v10257_v1 = vadd.f32 %v14989_v61, %v9994_v0  ;;  %11679 = vmatpush3.bf16.xpose.msra.mxu1 %v15040_v13  ;;  %11039 = vst [vmem:[%s15376_s25 + $0x10] sm:$0xff] %v11023_v55  ;;  %v10512_v43 = vmax.f32 %v10256_v46, 0.0 }
 0xc38   :  { %v10255_v29 = vadd.f32 %v14989_v61, %v9992_v52  ;;  %11680 = vmatprep.subr.bf16.mxu1 %v10650_v15  ;;  %v10510_v8 = vmax.f32 %v10254_v50, 0.0 }
 0xc39   :  { %v10513_v33 = vmax.f32 %v10257_v1, 0.0 }
 0xc3a   :  { %v10511_v28 = vmax.f32 %v10255_v29, 0.0  ;;  %v11954_v41 = vpop.f32.mrb[164].mxu0 }
 0xc3b   :  { %v15127_v56 = vpack.c.bf16 %v10513_v33, %v10512_v43  ;;  %v9997_v30 = vmul.f32 %v14983_v35, %v11954_v41  ;;  %v9649_v14 = vpop.f32.mrb[165].mxu0 }
 0xc3c   :  { %v15130_v25 = vpack.c.bf16 %v10511_v28, %v10510_v8  ;;  %v9995_v13 = vmul.f32 %v14983_v35, %v9649_v14  ;;  %v11955_v24 = vpop.f32.mrb[166].mxu0 }
 0xc3d   :  { %v10260_v53 = vadd.f32 %v14989_v61, %v9997_v30  ;;  %v9998_v58 = vmul.f32 %v14983_v35, %v11955_v24  ;;  %v9652_v47 = vpop.f32.mrb[167].mxu0 }
 0xc3e   :  { %v10258_v32 = vadd.f32 %v14989_v61, %v9995_v13  ;;  %v9996_v5 = vmul.f32 %v14983_v35, %v9652_v47 }
 0xc3f   :  { %v10261_v51 = vadd.f32 %v14989_v61, %v9998_v58  ;;  %11681 = vmatpush3.bf16.xpose.msra.mxu1 %v15056_v34  ;;  %v10516_v62 = vmax.f32 %v10260_v53, 0.0 }
 0xc40   :  { %v10259_v11 = vadd.f32 %v14989_v61, %v9996_v5  ;;  %11682 = vmatprep.subr.bf16.mxu1 %v10651_v63  ;;  %v10514_v59 = vmax.f32 %v10258_v32, 0.0 }
 0xc41   :  { %v10517_v17 = vmax.f32 %v10261_v51, 0.0 }
 0xc42   :  { %v10515_v19 = vmax.f32 %v10259_v11, 0.0  ;;  %v11958_v15 = vpop.f32.mrb[168].mxu0 }
 0xc43   :  { %v15140_v22 = vpack.c.bf16 %v10517_v17, %v10516_v62  ;;  %v10001_v57 = vmul.f32 %v14983_v35, %v11958_v15  ;;  %v9665_v10 = vpop.f32.mrb[169].mxu0 }
 0xc44   :  { %v15143_v54 = vpack.c.bf16 %v10515_v19, %v10514_v59  ;;  %v9999_v21 = vmul.f32 %v14983_v35, %v9665_v10  ;;  %v11959_v12 = vpop.f32.mrb[170].mxu0 }
 0xc45   :  { %v10264_v34 = vadd.f32 %v14989_v61, %v10001_v57  ;;  %v10002_v42 = vmul.f32 %v14983_v35, %v11959_v12  ;;  %v9668_v63 = vpop.f32.mrb[171].mxu0 }
 0xc46   :  { %v10262_v6 = vadd.f32 %v14989_v61, %v9999_v21  ;;  %v10000_v23 = vmul.f32 %v14983_v35, %v9668_v63 }
 0xc47   :  { %v10265_v9 = vadd.f32 %v14989_v61, %v10002_v42  ;;  %11683 = vmatpush3.bf16.xpose.msra.mxu1 %v15053_v2  ;;  %v10520_v39 = vmax.f32 %v10264_v34, 0.0 }
 0xc48   :  { %v10263_v16 = vadd.f32 %v14989_v61, %v10000_v23  ;;  %11684 = vmatprep.subr.bf16.mxu1 %v10652_v26  ;;  %v10518_v27 = vmax.f32 %v10262_v6, 0.0 }
 0xc49   :  { %v10521_v31 = vmax.f32 %v10265_v9, 0.0 }
 0xc4a   :  { %v10519_v49 = vmax.f32 %v10263_v16, 0.0  ;;  %v11962_v18 = vpop.f32.mrb[172].mxu0 }
 0xc4b   :  { %v15153_v36 = vpack.c.bf16 %v10521_v31, %v10520_v39  ;;  %v10005_v20 = vmul.f32 %v14983_v35, %v11962_v18  ;;  %v9681_v48 = vpop.f32.mrb[173].mxu0 }
 0xc4c   :  { %v15156_v7 = vpack.c.bf16 %v10519_v49, %v10518_v27  ;;  %v10003_v3 = vmul.f32 %v14983_v35, %v9681_v48  ;;  %v11963_v45 = vpop.f32.mrb[174].mxu0 }
 0xc4d   :  { %v10268_v2 = vadd.f32 %v14989_v61, %v10005_v20  ;;  %v10006_v46 = vmul.f32 %v14983_v35, %v11963_v45  ;;  %v9684_v26 = vpop.f32.mrb[175].mxu0 }
 0xc4e   :  { %v10266_v0 = vadd.f32 %v14989_v61, %v10003_v3  ;;  %v10004_v44 = vmul.f32 %v14983_v35, %v9684_v26 }
 0xc4f   :  { %v10269_v55 = vadd.f32 %v14989_v61, %v10006_v46  ;;  %11685 = vmatpush3.bf16.xpose.msra.mxu1 %v15070_v40  ;;  %v10524_v52 = vmax.f32 %v10268_v2, 0.0 }
 0xc50   :  { %v10267_v50 = vadd.f32 %v14989_v61, %v10004_v44  ;;  %11686 = vmatprep.subr.bf16.mxu1 %v15113_v60  ;;  %v10522_v29 = vmax.f32 %v10266_v0, 0.0 }
 0xc51   :  { %v10525_v1 = vmax.f32 %v10269_v55, 0.0 }
 0xc52   :  { %v10523_v43 = vmax.f32 %v10267_v50, 0.0  ;;  %v11966_v33 = vpop.f32.mrb[176].mxu0 }
 0xc53   :  { %v15167_v8 = vpack.c.bf16 %v10525_v1, %v10524_v52  ;;  %v10009_v28 = vmul.f32 %v14983_v35, %v11966_v33  ;;  %v9697_v41 = vpop.f32.mrb[177].mxu0 }
 0xc54   :  { %v15170_v30 = vpack.c.bf16 %v10523_v43, %v10522_v29  ;;  %v10007_v14 = vmul.f32 %v14983_v35, %v9697_v41  ;;  %v11967_v13 = vpop.f32.mrb[178].mxu0 }
 0xc55   :  { %v10272_v40 = vadd.f32 %v14989_v61, %v10009_v28  ;;  %v10010_v24 = vmul.f32 %v14983_v35, %v11967_v13  ;;  %v9700_v60 = vpop.f32.mrb[179].mxu0 }
 0xc56   :  { %v10270_v53 = vadd.f32 %v14989_v61, %v10007_v14  ;;  %v10008_v58 = vmul.f32 %v14983_v35, %v9700_v60 }
 0xc57   :  { %v10273_v47 = vadd.f32 %v14989_v61, %v10010_v24  ;;  %11687 = vmatpush3.bf16.xpose.msra.mxu1 %v15067_v37  ;;  %v10528_v5 = vmax.f32 %v10272_v40, 0.0 }
 0xc58   :  { %v10271_v32 = vadd.f32 %v14989_v61, %v10008_v58  ;;  %v10526_v11 = vmax.f32 %v10270_v53, 0.0 }
 0xc59   :  { %v10529_v51 = vmax.f32 %v10273_v47, 0.0 }
 0xc5a   :  { %v10527_v62 = vmax.f32 %v10271_v32, 0.0  ;;  %v11970_v17 = vpop.f32.mrb[180].mxu0 }
 0xc5b   :  { %v10013_v59 = vmul.f32 %v14983_v35, %v11970_v17  ;;  %v9713_v19 = vpop.f32.mrb[181].mxu0  ;;  %v10663_v15 = vpack.c.bf16 %v10529_v51, %v10528_v5 }
 0xc5c   :  { %v10011_v57 = vmul.f32 %v14983_v35, %v9713_v19  ;;  %v11971_v10 = vpop.f32.mrb[182].mxu0  ;;  %v10662_v21 = vpack.c.bf16 %v10527_v62, %v10526_v11 }
 0xc5d   :  { %v10276_v12 = vadd.f32 %v14989_v61, %v10013_v59  ;;  %v10014_v34 = vmul.f32 %v14983_v35, %v11971_v10  ;;  %v9716_v37 = vpop.f32.mrb[183].mxu0 }
 0xc5e   :  { %v10274_v42 = vadd.f32 %v14989_v61, %v10011_v57  ;;  %v10012_v63 = vmul.f32 %v14983_v35, %v9716_v37  ;;  %11690 = vmatprep.subr.bf16.mxu1 %v10662_v21  ;;  %11689 = vmatmul.mubr.bf16.vlgmr.msra.gmra.mrb[216].mxu1 %v15089_v4 }
 0xc5f   :  { %v10277_v6 = vadd.f32 %v14989_v61, %v10014_v34  ;;  %11691 = vmatpush3.bf16.xpose.msra.mxu1 %v15130_v25  ;;  %11706 = vmatprep.mubr.bf16.mxu1 %v15089_v4  ;;  %v10532_v9 = vmax.f32 %v10276_v12, 0.0 }
 0xc60   :  { %v10275_v23 = vadd.f32 %v14989_v61, %v10012_v63  ;;  %11692 = vmatprep.subr.bf16.mxu1 %v10663_v15  ;;  %v10530_v39 = vmax.f32 %v10274_v42, 0.0 }
 0xc61   :  { %v10533_v16 = vmax.f32 %v10277_v6, 0.0 }
 0xc62   :  { %v10531_v31 = vmax.f32 %v10275_v23, 0.0  ;;  %v11974_v27 = vpop.f32.mrb[184].mxu0 }
 0xc63   :  { %v10017_v49 = vmul.f32 %v14983_v35, %v11974_v27  ;;  %v9729_v18 = vpop.f32.mrb[185].mxu0  ;;  %v10665_v20 = vpack.c.bf16 %v10533_v16, %v10532_v9 }
 0xc64   :  { %v10015_v48 = vmul.f32 %v14983_v35, %v9729_v18  ;;  %v11975_v3 = vpop.f32.mrb[186].mxu0  ;;  %v10664_v45 = vpack.c.bf16 %v10531_v31, %v10530_v39 }
 0xc65   :  { %v10280_v25 = vadd.f32 %v14989_v61, %v10017_v49  ;;  %v10018_v2 = vmul.f32 %v14983_v35, %v11975_v3  ;;  %v9732_v46 = vpop.f32.mrb[187].mxu0 }
 0xc66   :  { %v10278_v26 = vadd.f32 %v14989_v61, %v10015_v48  ;;  %v10016_v0 = vmul.f32 %v14983_v35, %v9732_v46 }
 0xc67   :  { %v10281_v44 = vadd.f32 %v14989_v61, %v10018_v2  ;;  %11693 = vmatpush3.bf16.xpose.msra.mxu1 %v15127_v56  ;;  %v10536_v50 = vmax.f32 %v10280_v25, 0.0 }
 0xc68   :  { %v10279_v55 = vadd.f32 %v14989_v61, %v10016_v0  ;;  %11694 = vmatprep.subr.bf16.mxu1 %v10664_v45  ;;  %v10534_v1 = vmax.f32 %v10278_v26, 0.0 }
 0xc69   :  { %v10537_v52 = vmax.f32 %v10281_v44, 0.0 }
 0xc6a   :  { %v10535_v29 = vmax.f32 %v10279_v55, 0.0  ;;  %v11978_v43 = vpop.f32.mrb[188].mxu0 }
 0xc6b   :  { %v10021_v33 = vmul.f32 %v14983_v35, %v11978_v43  ;;  %v9745_v28 = vpop.f32.mrb[189].mxu0  ;;  %v10667_v41 = vpack.c.bf16 %v10537_v52, %v10536_v50 }
 0xc6c   :  { %v10019_v14 = vmul.f32 %v14983_v35, %v9745_v28  ;;  %v11979_v13 = vpop.f32.mrb[190].mxu0  ;;  %v10666_v40 = vpack.c.bf16 %v10535_v29, %v10534_v1 }
 0xc6d   :  { %v10284_v24 = vadd.f32 %v14989_v61, %v10021_v33  ;;  %v10022_v56 = vmul.f32 %v14983_v35, %v11979_v13  ;;  %v9748_v60 = vpop.f32.mrb[191].mxu0 }
 0xc6e   :  { %v10282_v53 = vadd.f32 %v14989_v61, %v10019_v14  ;;  %v10020_v58 = vmul.f32 %v14983_v35, %v9748_v60 }
 0xc6f   :  { %v10285_v47 = vadd.f32 %v14989_v61, %v10022_v56  ;;  %11695 = vmatpush3.bf16.xpose.msra.mxu1 %v15143_v54  ;;  %v10540_v5 = vmax.f32 %v10284_v24, 0.0 }
 0xc70   :  { %v10283_v32 = vadd.f32 %v14989_v61, %v10020_v58  ;;  %11696 = vmatprep.subr.bf16.mxu1 %v10665_v20  ;;  %v10538_v62 = vmax.f32 %v10282_v53, 0.0 }
 0xc71   :  { %v10541_v51 = vmax.f32 %v10285_v47, 0.0  ;;  %v10834_v11 = vpop.f32.mrb[204].mxu1 }
 0xc72   :  { %v10539_v17 = vmax.f32 %v10283_v32, 0.0  ;;  %v10835_v59 = vadd.f32 %v10834_v11, %v14766_v38  ;;  %v10836_v19 = vpop.f32.mrb[205].mxu1 }
 0xc73   :  { %v10669_v15 = vpack.c.bf16 %v10541_v51, %v10540_v5  ;;  %v10837_v57 = vadd.f32 %v10836_v19, %v14766_v38  ;;  %v10838_v10 = vpop.f32.mrb[206].mxu1 }
 0xc74   :  { %v10668_v35 = vpack.c.bf16 %v10539_v17, %v10538_v62  ;;  %v10839_v21 = vpop.f32.mrb[207].mxu1 }
 0xc75   :  { %v11024_v12 = vcombine.low %v10835_v59, %v10837_v57 }
 0xc77   :  { %11697 = vmatpush3.bf16.xpose.msra.mxu1 %v15140_v22  ;;  %11040 = vst [vmem:[%s15376_s25 + $0x18] sm:$0xff] %v11024_v12 }
 0xc78   :  { %11698 = vmatprep.subr.bf16.mxu1 %v10666_v40 }
 0xc7f   :  { %11699 = vmatpush3.bf16.xpose.msra.mxu1 %v15156_v7 }
 0xc80   :  { %11700 = vmatprep.subr.bf16.mxu1 %v10667_v41 }
 0xc87   :  { %11701 = vmatpush3.bf16.xpose.msra.mxu1 %v15153_v36 }
 0xc88   :  { %11702 = vmatprep.subr.bf16.mxu1 %v10668_v35 }
 0xc8f   :  { %11703 = vmatpush3.bf16.xpose.msra.mxu1 %v15170_v30 }
 0xc90   :  { %11704 = vmatprep.subr.bf16.mxu1 %v10669_v15 }
 0xc97   :  { %11705 = vmatpush3.bf16.xpose.msra.mxu1 %v15167_v8 }
 0xc9e   :  { %11707 = vmatmul.mubr.bf16.vlgmr.msra.gmra.mrb[220].mxu1 %v15089_v4 }
 0xcb1   :  { %v10875_v61 = vpop.f32.mrb[208].mxu1 }
 0xcb2   :  { %v10876_v22 = vadd.f32 %v10875_v61, %v14766_v38  ;;  %v10877_v54 = vpop.f32.mrb[209].mxu1 }
 0xcb3   :  { %v10878_v34 = vadd.f32 %v10877_v54, %v14766_v38  ;;  %v10879_v37 = vpop.f32.mrb[210].mxu1 }
 0xcb4   :  { %v10880_v42 = vpop.f32.mrb[211].mxu1 }
 0xcb5   :  { %v11025_v7 = vcombine.low %v10876_v22, %v10878_v34 }
 0xcb7   :  { %11041 = vst [vmem:[%s15376_s25 + $0x20] sm:$0xff] %v11025_v7 }
 0xcf1   :  { %v10916_v36 = vpop.f32.mrb[212].mxu1 }
 0xcf2   :  { %v10917_v30 = vadd.f32 %v10916_v36, %v14766_v38  ;;  %v10918_v63 = vpop.f32.mrb[213].mxu1 }
 0xcf3   :  { %v10919_v8 = vadd.f32 %v10918_v63, %v14766_v38  ;;  %v10920_v4 = vpop.f32.mrb[214].mxu1 }
 0xcf4   :  { %v10921_v6 = vpop.f32.mrb[215].mxu1 }
 0xcf5   :  { %v11026_v23 = vcombine.low %v10917_v30, %v10919_v8 }
 0xcf7   :  { %11042 = vst [vmem:[%s15376_s25 + $0x28] sm:$0xff] %v11026_v23 }
 0xd31   :  { %v10957_v9 = vpop.f32.mrb[216].mxu1 }
 0xd32   :  { %v10958_v16 = vadd.f32 %v10957_v9, %v14766_v38  ;;  %v10959_v39 = vpop.f32.mrb[217].mxu1 }
 0xd33   :  { %v10960_v31 = vadd.f32 %v10959_v39, %v14766_v38  ;;  %v10961_v27 = vpop.f32.mrb[218].mxu1 }
 0xd34   :  { %v10962_v49 = vpop.f32.mrb[219].mxu1 }
 0xd35   :  { %v11027_v18 = vcombine.low %v10958_v16, %v10960_v31 }
 0xd37   :  { %11043 = vst [vmem:[%s15376_s25 + $0x30] sm:$0xff] %v11027_v18 }
 0xd71   :  { %v10998_v20 = vpop.f32.mrb[220].mxu1 }
 0xd72   :  { %v10999_v48 = vadd.f32 %v10998_v20, %v14766_v38  ;;  %v11000_v3 = vpop.f32.mrb[221].mxu1 }
 0xd73   :  { %v11001_v45 = vadd.f32 %v11000_v3, %v14766_v38  ;;  %v11002_v25 = vpop.f32.mrb[222].mxu1 }
 0xd74   :  { %v11003_v2 = vpop.f32.mrb[223].mxu1 }
 0xd75   :  { %v11028_v46 = vcombine.low %v10999_v48, %v11001_v45 }
 0xd77   :  { %11044 = vst [vmem:[%s15376_s25 + $0x38] sm:$0xff] %v11028_v46 }
 0xd78   :  { %11049 = vsyncpa [#allocation7], 1 }
 0xd79   :  { %11050 = vsyncpa [#allocation9], 1 }
 0xd7a   :  { %11051 = vsyncpa [#allocation12], 1 }
 0xd7b   :  { %11052 = vsyncpa [#allocation15], 1 }
 0xd7c   :  { %11053 = vsyncpa [#allocation18], 1 }
 0xd7d   :  { %11054 = vsyncpa [#allocation21], 1 }
 0xd7e   :  { %11055 = vsyncpa [#allocation24], 1 }
 0xd7f   :  { %11056 = vsyncpa [#allocation27], 1 }
 0xd80   :  { %11057 = vsyncpa [#allocation30], 1 }

</bundles_post_ra>
